<compile_context>
chip_gen: v7x
topology: tpu7x:2x2x1
jax: 0.10.0
libtpu: 0.0.40
codegen_flags: <defaults>
</compile_context>

<pallas_src>
import jax
import jax.numpy as jnp
from jax.experimental import pallas as pl
from jax.experimental.pallas import tpu as pltpu


# ----------------------------- static configuration ------------------------ #

_LAYERS = ("e1", "e2", "e3", "d1", "d2", "d3", "d4")
_WEIGHT_SHAPES = {                       # (KH, KW, Cin, Cout)
    "e1": (3, 3, 1, 16), "e2": (3, 3, 16, 8), "e3": (3, 3, 8, 8),
    "d1": (3, 3, 8, 8), "d2": (3, 3, 8, 8), "d3": (3, 3, 8, 16),
    "d4": (3, 3, 16, 1),
}

_P0 = 128            # lane-aligned column where activations are staged in scratch
_SCRATCH_ROWS = 16   # max channel count
_SCRATCH_COLS = 512  # >= _P0 + 256 + (2*16 + 2) worst-case shifted read


# ------------------------------- fused kernel ------------------------------ #

def _autoencoder_kernel(x_ref, *rest):
    (w1, b1, w2, b2, w3, b3, w4, b4, w5, b5, w6, b6, w7, b7,
     o_ref, scratch) = rest

    # Zero the staging scratch once so masked / out-of-range taps never touch
    # uninitialized (possibly NaN) VMEM.
    scratch[...] = jnp.zeros_like(scratch)

    def spatial_iota(n_cols):
        return jax.lax.broadcasted_iota(jnp.int32, (1, n_cols), 1)

    def conv3x3(a, w_ref, b_ref, S, pad, act):
        # a: (Cin, S*S) activation on an SxS grid (row-major m = h*S + w).
        cin, M = a.shape
        cout = w_ref.shape[1]
        s_log2 = S.bit_length() - 1
        scratch[0:cin, _P0:_P0 + M] = a           # stage once, read 9 shifted taps
        m = spatial_iota(M)
        ho = jnp.right_shift(m, s_log2)
        wo = jnp.bitwise_and(m, S - 1)
        acc = jnp.zeros((cout, M), jnp.float32)
        for i in range(3):
            for j in range(3):
                dh, dw = i - pad, j - pad
                off = dh * S + dw
                tap = scratch[0:cin, _P0 + off:_P0 + off + M]
                if not (dh == 0 and dw == 0):
                    hi, wi = ho + dh, wo + dw
                    ok = (hi >= 0) & (hi < S) & (wi >= 0) & (wi < S)
                    tap = tap * jnp.where(ok, 1.0, 0.0)   # zero padding
                w_tap = w_ref[i * 3 + j]                  # (cout, cin)
                if cin == 1:
                    acc = acc + w_tap * tap               # outer product (VPU)
                else:
                    acc = acc + jnp.dot(w_tap, tap,
                                        preferred_element_type=jnp.float32)
        y = acc + b_ref[...]
        if act == "relu":
            return jnp.maximum(y, 0.0)
        # numerically stable sigmoid (exp on the EUP, no overflow path)
        e = jnp.exp(-jnp.abs(y))
        return jnp.where(y >= 0.0, 1.0 / (1.0 + e), e / (1.0 + e))

    def gather_cols(a, idx, m_out):
        # y[:, mo] = a[:, idx[0, mo]] via a one-hot matmul (exact for 0/1 weights).
        m_in = a.shape[1]
        rows = jax.lax.broadcasted_iota(jnp.int32, (m_in, m_out), 0)
        onehot = jnp.where(rows == idx, 1.0, 0.0)
        return jnp.dot(a, onehot, preferred_element_type=jnp.float32)

    def maxpool2x2(a, S):
        cin, M = a.shape
        So = S // 2
        so_log2 = So.bit_length() - 1
        Mo = So * So
        scratch[0:cin, _P0:_P0 + M] = a
        m4 = jnp.maximum(
            jnp.maximum(scratch[0:cin, _P0:_P0 + M],
                        scratch[0:cin, _P0 + 1:_P0 + 1 + M]),
            jnp.maximum(scratch[0:cin, _P0 + S:_P0 + S + M],
                        scratch[0:cin, _P0 + S + 1:_P0 + S + 1 + M]))
        mo = spatial_iota(Mo)
        ho = jnp.right_shift(mo, so_log2)
        wo = jnp.bitwise_and(mo, So - 1)
        idx = 2 * ho * S + 2 * wo
        return gather_cols(m4, idx, Mo)

    def upsample_nearest(a, s_store, s_valid, s_out):
        # `a` lives on an s_store x s_store grid; only its top-left
        # s_valid x s_valid region is meaningful (s_valid < s_store only for d3).
        Mo = s_out * s_out
        so_log2 = s_out.bit_length() - 1
        mo = spatial_iota(Mo)
        ho = jnp.right_shift(mo, so_log2)
        wo = jnp.bitwise_and(mo, s_out - 1)
        hi = jnp.right_shift(ho * s_valid, so_log2)   # floor(ho * s_valid / s_out)
        wi = jnp.right_shift(wo * s_valid, so_log2)
        idx = hi * s_store + wi
        return gather_cols(a, idx, Mo)

    # ---------------- forward pass (one batch element per grid step) -------- #
    a = x_ref[0]                                        # (1, 256)   16x16, Cin=1
    a = conv3x3(a, w1, b1, 16, 1, "relu")               # (16, 256)
    a = maxpool2x2(a, 16)                               # (16, 64)   8x8
    a = conv3x3(a, w2, b2, 8, 1, "relu")                # (8, 64)
    a = maxpool2x2(a, 8)                                # (8, 16)    4x4
    a = conv3x3(a, w3, b3, 4, 1, "relu")                # (8, 16)
    a = maxpool2x2(a, 4)                                # (8, 4)     2x2
    a = conv3x3(a, w4, b4, 2, 1, "relu")                # (8, 4)
    a = upsample_nearest(a, 2, 2, 8)                    # (8, 64)    8x8
    a = conv3x3(a, w5, b5, 8, 1, "relu")                # (8, 64)
    a = upsample_nearest(a, 8, 8, 16)                   # (8, 256)   16x16
    a = conv3x3(a, w6, b6, 16, 0, "relu")               # (16, 256)  14x14 valid
    a = upsample_nearest(a, 16, 14, 16)                 # (16, 256)  16x16
    a = conv3x3(a, w7, b7, 16, 1, "sigmoid")            # (1, 256)
    o_ref[0] = a


# ------------------------------ module wrapper ------------------------------ #

def init_params(key):
    """Deterministic synthetic params; weight layout (KH, KW, Cin, Cout)."""
    params = {}
    keys = jax.random.split(key, 2 * len(_LAYERS))
    for idx, name in enumerate(_LAYERS):
        shp = _WEIGHT_SHAPES[name]
        fan_in = shp[0] * shp[1] * shp[2]
        bound = 1.0 / jnp.sqrt(fan_in)
        params[name + "_w"] = jax.random.uniform(
            keys[2 * idx], shp, jnp.float32, -bound, bound)
        params[name + "_b"] = jax.random.uniform(
            keys[2 * idx + 1], (shp[3],), jnp.float32, -bound, bound)
    return params


def autoencoder_forward(x_nchw, params):
    N, C, H, W = x_nchw.shape
    assert (C, H, W) == (1, 16, 16), "fused kernel specialized to 1x16x16 inputs"
    M = H * W
    x3 = x_nchw.astype(jnp.float32).reshape(N, 1, M)      # (N, Cin=1, H*W)

    operands = [x3]
    in_specs = [pl.BlockSpec((1, 1, M), lambda n: (n, 0, 0))]
    for name in _LAYERS:
        w = params[name + "_w"].astype(jnp.float32)
        b = params[name + "_b"].astype(jnp.float32)
        kh, kw, cin, cout = w.shape
        # kernel wants (tap, Cout, Cin) so each tap is a ready-to-use (Cout, Cin)
        wk = jnp.transpose(w, (0, 1, 3, 2)).reshape(kh * kw, cout, cin)
        bk = b.reshape(cout, 1)
        operands += [wk, bk]
        in_specs += [
            pl.BlockSpec((kh * kw, cout, cin), lambda n: (0, 0, 0)),
            pl.BlockSpec((cout, 1), lambda n: (0, 0)),
        ]

    out = pl.pallas_call(
        _autoencoder_kernel,
        out_shape=jax.ShapeDtypeStruct((N, 1, M), jnp.float32),
        grid=(N,),
        in_specs=in_specs,
        out_specs=pl.BlockSpec((1, 1, M), lambda n: (n, 0, 0)),
        scratch_shapes=[pltpu.VMEM((_SCRATCH_ROWS, _SCRATCH_COLS), jnp.float32)],
        compiler_params=pltpu.CompilerParams(
            dimension_semantics=("parallel",)),   # v7x: 2 TCs split the batch
    )(*operands)
    return out.reshape(N, 1, H, W)


# ----------------------- pure-JAX reference (for checking) ------------------ #

def _reference_forward(x_nchw, params):
    def conv(x, w, b, pad):
        y = jax.lax.conv_general_dilated(
            x, jnp.transpose(w, (3, 2, 0, 1)),
            window_strides=(1, 1), padding=[(pad, pad), (pad, pad)],
            dimension_numbers=("NCHW", "OIHW", "NCHW"),
            precision=jax.lax.Precision.HIGHEST)
        return y + b.reshape(1, -1, 1, 1)

    def pool(x):
        return jax.lax.reduce_window(x, -jnp.inf, jax.lax.max,
                                     (1, 1, 2, 2), (1, 1, 2, 2), "VALID")

    def up(x, oh, ow):
        _, _, h, w = x.shape
        hi = jnp.floor(jnp.arange(oh) * (h / oh)).astype(jnp.int32)
        wi = jnp.floor(jnp.arange(ow) * (w / ow)).astype(jnp.int32)
        return x[:, :, hi][:, :, :, wi]

    x = x_nchw.astype(jnp.float32)
    x = jnp.maximum(conv(x, params["e1_w"], params["e1_b"], 1), 0.0); x = pool(x)
    x = jnp.maximum(conv(x, params["e2_w"], params["e2_b"], 1), 0.0); x = pool(x)
    x = jnp.maximum(conv(x, params["e3_w"], params["e3_b"], 1), 0.0); x = pool(x)
    x = jnp.maximum(conv(x, params["d1_w"], params["d1_b"], 1), 0.0); x = up(x, 8, 8)
    x = jnp.maximum(conv(x, params["d2_w"], params["d2_b"], 1), 0.0); x = up(x, 16, 16)
    x = jnp.maximum(conv(x, params["d3_w"], params["d3_b"], 0), 0.0); x = up(x, 16, 16)
    x = conv(x, params["d4_w"], params["d4_b"], 1)
    return jax.nn.sigmoid(x)


# ----------------------------------- main ----------------------------------- #

if __name__ == "__main__":
    key = jax.random.PRNGKey(0)
    k_x, k_p = jax.random.split(key)
    x = jax.random.normal(k_x, (2, 1, 16, 16), jnp.float32)   # NCHW, 1 input channel
    params = init_params(k_p)

    fwd = jax.jit(autoencoder_forward)
    out = jax.block_until_ready(fwd(x, params))

    assert out.shape == (2, 1, 16, 16), out.shape
    assert bool(jnp.all(jnp.isfinite(out)))
    assert bool(jnp.all((out >= 0.0) & (out <= 1.0)))         # sigmoid range

    # Functional check against a plain-JAX reference (tolerance leaves headroom
    # for MXU pass-count / accumulation-order differences vs the XLA convs).
    ref = _reference_forward(x, params)
    max_err = float(jnp.max(jnp.abs(out - ref)))
    assert max_err < 3e-2, f"mismatch vs reference: max abs err {max_err}"

    print("KERNEL_OK")
</pallas_src>

<mosaic_0001>
module attributes {stable_mosaic.version = 11 : i64} {
  func.func @_autoencoder_kernel(%arg0: i32, %arg1: memref<1x1x256xf32, #tpu.memory_space<vmem>>, %arg2: memref<9x16x1xf32, #tpu.memory_space<vmem>>, %arg3: memref<16x1xf32, #tpu.memory_space<vmem>>, %arg4: memref<9x8x16xf32, #tpu.memory_space<vmem>>, %arg5: memref<8x1xf32, #tpu.memory_space<vmem>>, %arg6: memref<9x8x8xf32, #tpu.memory_space<vmem>>, %arg7: memref<8x1xf32, #tpu.memory_space<vmem>>, %arg8: memref<9x8x8xf32, #tpu.memory_space<vmem>>, %arg9: memref<8x1xf32, #tpu.memory_space<vmem>>, %arg10: memref<9x8x8xf32, #tpu.memory_space<vmem>>, %arg11: memref<8x1xf32, #tpu.memory_space<vmem>>, %arg12: memref<9x16x8xf32, #tpu.memory_space<vmem>>, %arg13: memref<16x1xf32, #tpu.memory_space<vmem>>, %arg14: memref<9x1x16xf32, #tpu.memory_space<vmem>>, %arg15: memref<1x1xf32, #tpu.memory_space<vmem>>, %arg16: memref<1x1x256xf32, #tpu.memory_space<vmem>>, %arg17: memref<16x512xf32, #tpu.memory_space<vmem>>) attributes {dimension_semantics = [#tpu.dimension_semantics<parallel>], iteration_bounds = array<i64: 2>, scalar_prefetch = 0 : i64, scratch_operands = 1 : i64, tpu.core_type = #tpu.core_type<tc>, window_params = [{transform_indices = @transform_0, window_bounds = array<i64: 1, 1, 256>}, {pipeline_mode = #tpu.pipeline_mode<synchronous>, transform_indices = @transform_1, window_bounds = array<i64: 9, 16, 1>}, {pipeline_mode = #tpu.pipeline_mode<synchronous>, transform_indices = @transform_2, window_bounds = array<i64: 16, 1>}, {pipeline_mode = #tpu.pipeline_mode<synchronous>, transform_indices = @transform_3, window_bounds = array<i64: 9, 8, 16>}, {pipeline_mode = #tpu.pipeline_mode<synchronous>, transform_indices = @transform_4, window_bounds = array<i64: 8, 1>}, {pipeline_mode = #tpu.pipeline_mode<synchronous>, transform_indices = @transform_5, window_bounds = array<i64: 9, 8, 8>}, {pipeline_mode = #tpu.pipeline_mode<synchronous>, transform_indices = @transform_6, window_bounds = array<i64: 8, 1>}, {pipeline_mode = #tpu.pipeline_mode<synchronous>, transform_indices = @transform_7, window_bounds = array<i64: 9, 8, 8>}, {pipeline_mode = #tpu.pipeline_mode<synchronous>, transform_indices = @transform_8, window_bounds = array<i64: 8, 1>}, {pipeline_mode = #tpu.pipeline_mode<synchronous>, transform_indices = @transform_9, window_bounds = array<i64: 9, 8, 8>}, {pipeline_mode = #tpu.pipeline_mode<synchronous>, transform_indices = @transform_10, window_bounds = array<i64: 8, 1>}, {pipeline_mode = #tpu.pipeline_mode<synchronous>, transform_indices = @transform_11, window_bounds = array<i64: 9, 16, 8>}, {pipeline_mode = #tpu.pipeline_mode<synchronous>, transform_indices = @transform_12, window_bounds = array<i64: 16, 1>}, {pipeline_mode = #tpu.pipeline_mode<synchronous>, transform_indices = @transform_13, window_bounds = array<i64: 9, 1, 16>}, {pipeline_mode = #tpu.pipeline_mode<synchronous>, transform_indices = @transform_14, window_bounds = array<i64: 1, 1>}, {transform_indices = @transform_15, window_bounds = array<i64: 1, 1, 256>}]} {
    %cst = arith.constant 0.000000e+00 : f32
    %0 = vector.broadcast %cst : f32 to vector<16x512xf32>
    %c0 = arith.constant 0 : index
    %c0_0 = arith.constant 0 : index
    %1 = vector.load %arg17[%c0, %c0_0] : memref<16x512xf32, #tpu.memory_space<vmem>>, vector<16x512xf32>
    tpu.vector_store %arg17[%c0, %c0_0], %0 {strides = array<i32>} : memref<16x512xf32, #tpu.memory_space<vmem>>, vector<16x512xf32>,
    %c0_1 = arith.constant 0 : index
    %c0_2 = arith.constant 0 : index
    %c0_3 = arith.constant 0 : index
    %2 = vector.load %arg1[%c0_1, %c0_2, %c0_3] : memref<1x1x256xf32, #tpu.memory_space<vmem>>, vector<1x1x256xf32>
    %3 = vector.shape_cast %2 : vector<1x1x256xf32> to vector<1x256xf32>
    %c0_4 = arith.constant 0 : index
    %c128 = arith.constant 128 : index
    %4 = vector.load %arg17[%c0_4, %c128] : memref<16x512xf32, #tpu.memory_space<vmem>>, vector<1x256xf32>
    tpu.vector_store %arg17[%c0_4, %c128], %3 {strides = array<i32>} : memref<16x512xf32, #tpu.memory_space<vmem>>, vector<1x256xf32>,
    %5 = tpu.iota {dimensions = array<i32: 1>} : vector<1x256xi32>
    %c4_i32 = arith.constant 4 : i32
    %6 = vector.broadcast %c4_i32 : i32 to vector<1x256xi32>
    %7 = arith.shrsi %5, %6 : vector<1x256xi32>
    %c15_i32 = arith.constant 15 : i32
    %8 = vector.broadcast %c15_i32 : i32 to vector<1x256xi32>
    %9 = arith.andi %5, %8 : vector<1x256xi32>
    %cst_5 = arith.constant 0.000000e+00 : f32
    %10 = vector.broadcast %cst_5 : f32 to vector<16x256xf32>
    %c0_6 = arith.constant 0 : index
    %c111 = arith.constant 111 : index
    %11 = vector.load %arg17[%c0_6, %c111] : memref<16x512xf32, #tpu.memory_space<vmem>>, vector<1x256xf32>
    %c-1_i32 = arith.constant -1 : i32
    %12 = vector.broadcast %c-1_i32 : i32 to vector<1x256xi32>
    %13 = arith.addi %7, %12 : vector<1x256xi32>
    %c-1_i32_7 = arith.constant -1 : i32
    %14 = vector.broadcast %c-1_i32_7 : i32 to vector<1x256xi32>
    %15 = arith.addi %9, %14 : vector<1x256xi32>
    %c0_i32 = arith.constant 0 : i32
    %16 = vector.broadcast %c0_i32 : i32 to vector<1x256xi32>
    %17 = arith.cmpi sge, %13, %16 : vector<1x256xi32>
    %c16_i32 = arith.constant 16 : i32
    %18 = vector.broadcast %c16_i32 : i32 to vector<1x256xi32>
    %19 = arith.cmpi slt, %13, %18 : vector<1x256xi32>
    %20 = arith.andi %17, %19 : vector<1x256xi1>
    %c0_i32_8 = arith.constant 0 : i32
    %21 = vector.broadcast %c0_i32_8 : i32 to vector<1x256xi32>
    %22 = arith.cmpi sge, %15, %21 : vector<1x256xi32>
    %23 = arith.andi %20, %22 : vector<1x256xi1>
    %c16_i32_9 = arith.constant 16 : i32
    %24 = vector.broadcast %c16_i32_9 : i32 to vector<1x256xi32>
    %25 = arith.cmpi slt, %15, %24 : vector<1x256xi32>
    %26 = arith.andi %23, %25 : vector<1x256xi1>
    %cst_10 = arith.constant 1.000000e+00 : f32
    %cst_11 = arith.constant 0.000000e+00 : f32
    %27 = vector.broadcast %cst_10 : f32 to vector<1x256xf32>
    %28 = vector.broadcast %cst_11 : f32 to vector<1x256xf32>
    %29 = arith.select %26, %27, %28 : vector<1x256xi1>, vector<1x256xf32>
    %30 = arith.mulf %11, %29 : vector<1x256xf32>
    %c0_12 = arith.constant 0 : index
    %c0_13 = arith.constant 0 : index
    %c0_14 = arith.constant 0 : index
    %31 = vector.load %arg2[%c0_12, %c0_13, %c0_14] : memref<9x16x1xf32, #tpu.memory_space<vmem>>, vector<1x16x1xf32>
    %32 = vector.shape_cast %31 : vector<1x16x1xf32> to vector<16x1xf32>
    %33 = vector.broadcast %32 : vector<16x1xf32> to vector<16x256xf32>
    %34 = vector.broadcast %30 : vector<1x256xf32> to vector<16x256xf32>
    %35 = arith.mulf %33, %34 : vector<16x256xf32>
    %36 = arith.addf %10, %35 : vector<16x256xf32>
    %c0_15 = arith.constant 0 : index
    %c112 = arith.constant 112 : index
    %37 = vector.load %arg17[%c0_15, %c112] : memref<16x512xf32, #tpu.memory_space<vmem>>, vector<1x256xf32>
    %c-1_i32_16 = arith.constant -1 : i32
    %38 = vector.broadcast %c-1_i32_16 : i32 to vector<1x256xi32>
    %39 = arith.addi %7, %38 : vector<1x256xi32>
    %c0_i32_17 = arith.constant 0 : i32
    %40 = vector.broadcast %c0_i32_17 : i32 to vector<1x256xi32>
    %41 = arith.addi %9, %40 : vector<1x256xi32>
    %c0_i32_18 = arith.constant 0 : i32
    %42 = vector.broadcast %c0_i32_18 : i32 to vector<1x256xi32>
    %43 = arith.cmpi sge, %39, %42 : vector<1x256xi32>
    %c16_i32_19 = arith.constant 16 : i32
    %44 = vector.broadcast %c16_i32_19 : i32 to vector<1x256xi32>
    %45 = arith.cmpi slt, %39, %44 : vector<1x256xi32>
    %46 = arith.andi %43, %45 : vector<1x256xi1>
    %c0_i32_20 = arith.constant 0 : i32
    %47 = vector.broadcast %c0_i32_20 : i32 to vector<1x256xi32>
    %48 = arith.cmpi sge, %41, %47 : vector<1x256xi32>
    %49 = arith.andi %46, %48 : vector<1x256xi1>
    %c16_i32_21 = arith.constant 16 : i32
    %50 = vector.broadcast %c16_i32_21 : i32 to vector<1x256xi32>
    %51 = arith.cmpi slt, %41, %50 : vector<1x256xi32>
    %52 = arith.andi %49, %51 : vector<1x256xi1>
    %cst_22 = arith.constant 1.000000e+00 : f32
    %cst_23 = arith.constant 0.000000e+00 : f32
    %53 = vector.broadcast %cst_22 : f32 to vector<1x256xf32>
    %54 = vector.broadcast %cst_23 : f32 to vector<1x256xf32>
    %55 = arith.select %52, %53, %54 : vector<1x256xi1>, vector<1x256xf32>
    %56 = arith.mulf %37, %55 : vector<1x256xf32>
    %c1 = arith.constant 1 : index
    %c0_24 = arith.constant 0 : index
    %c0_25 = arith.constant 0 : index
    %57 = vector.load %arg2[%c1, %c0_24, %c0_25] : memref<9x16x1xf32, #tpu.memory_space<vmem>>, vector<1x16x1xf32>
    %58 = vector.shape_cast %57 : vector<1x16x1xf32> to vector<16x1xf32>
    %59 = vector.broadcast %58 : vector<16x1xf32> to vector<16x256xf32>
    %60 = vector.broadcast %56 : vector<1x256xf32> to vector<16x256xf32>
    %61 = arith.mulf %59, %60 : vector<16x256xf32>
    %62 = arith.addf %36, %61 : vector<16x256xf32>
    %c0_26 = arith.constant 0 : index
    %c113 = arith.constant 113 : index
    %63 = vector.load %arg17[%c0_26, %c113] : memref<16x512xf32, #tpu.memory_space<vmem>>, vector<1x256xf32>
    %c-1_i32_27 = arith.constant -1 : i32
    %64 = vector.broadcast %c-1_i32_27 : i32 to vector<1x256xi32>
    %65 = arith.addi %7, %64 : vector<1x256xi32>
    %c1_i32 = arith.constant 1 : i32
    %66 = vector.broadcast %c1_i32 : i32 to vector<1x256xi32>
    %67 = arith.addi %9, %66 : vector<1x256xi32>
    %c0_i32_28 = arith.constant 0 : i32
    %68 = vector.broadcast %c0_i32_28 : i32 to vector<1x256xi32>
    %69 = arith.cmpi sge, %65, %68 : vector<1x256xi32>
    %c16_i32_29 = arith.constant 16 : i32
    %70 = vector.broadcast %c16_i32_29 : i32 to vector<1x256xi32>
    %71 = arith.cmpi slt, %65, %70 : vector<1x256xi32>
    %72 = arith.andi %69, %71 : vector<1x256xi1>
    %c0_i32_30 = arith.constant 0 : i32
    %73 = vector.broadcast %c0_i32_30 : i32 to vector<1x256xi32>
    %74 = arith.cmpi sge, %67, %73 : vector<1x256xi32>
    %75 = arith.andi %72, %74 : vector<1x256xi1>
    %c16_i32_31 = arith.constant 16 : i32
    %76 = vector.broadcast %c16_i32_31 : i32 to vector<1x256xi32>
    %77 = arith.cmpi slt, %67, %76 : vector<1x256xi32>
    %78 = arith.andi %75, %77 : vector<1x256xi1>
    %cst_32 = arith.constant 1.000000e+00 : f32
    %cst_33 = arith.constant 0.000000e+00 : f32
    %79 = vector.broadcast %cst_32 : f32 to vector<1x256xf32>
    %80 = vector.broadcast %cst_33 : f32 to vector<1x256xf32>
    %81 = arith.select %78, %79, %80 : vector<1x256xi1>, vector<1x256xf32>
    %82 = arith.mulf %63, %81 : vector<1x256xf32>
    %c2 = arith.constant 2 : index
    %c0_34 = arith.constant 0 : index
    %c0_35 = arith.constant 0 : index
    %83 = vector.load %arg2[%c2, %c0_34, %c0_35] : memref<9x16x1xf32, #tpu.memory_space<vmem>>, vector<1x16x1xf32>
    %84 = vector.shape_cast %83 : vector<1x16x1xf32> to vector<16x1xf32>
    %85 = vector.broadcast %84 : vector<16x1xf32> to vector<16x256xf32>
    %86 = vector.broadcast %82 : vector<1x256xf32> to vector<16x256xf32>
    %87 = arith.mulf %85, %86 : vector<16x256xf32>
    %88 = arith.addf %62, %87 : vector<16x256xf32>
    %c0_36 = arith.constant 0 : index
    %c127 = arith.constant 127 : index
    %89 = vector.load %arg17[%c0_36, %c127] : memref<16x512xf32, #tpu.memory_space<vmem>>, vector<1x256xf32>
    %c0_i32_37 = arith.constant 0 : i32
    %90 = vector.broadcast %c0_i32_37 : i32 to vector<1x256xi32>
    %91 = arith.addi %7, %90 : vector<1x256xi32>
    %c-1_i32_38 = arith.constant -1 : i32
    %92 = vector.broadcast %c-1_i32_38 : i32 to vector<1x256xi32>
    %93 = arith.addi %9, %92 : vector<1x256xi32>
    %c0_i32_39 = arith.constant 0 : i32
    %94 = vector.broadcast %c0_i32_39 : i32 to vector<1x256xi32>
    %95 = arith.cmpi sge, %91, %94 : vector<1x256xi32>
    %c16_i32_40 = arith.constant 16 : i32
    %96 = vector.broadcast %c16_i32_40 : i32 to vector<1x256xi32>
    %97 = arith.cmpi slt, %91, %96 : vector<1x256xi32>
    %98 = arith.andi %95, %97 : vector<1x256xi1>
    %c0_i32_41 = arith.constant 0 : i32
    %99 = vector.broadcast %c0_i32_41 : i32 to vector<1x256xi32>
    %100 = arith.cmpi sge, %93, %99 : vector<1x256xi32>
    %101 = arith.andi %98, %100 : vector<1x256xi1>
    %c16_i32_42 = arith.constant 16 : i32
    %102 = vector.broadcast %c16_i32_42 : i32 to vector<1x256xi32>
    %103 = arith.cmpi slt, %93, %102 : vector<1x256xi32>
    %104 = arith.andi %101, %103 : vector<1x256xi1>
    %cst_43 = arith.constant 1.000000e+00 : f32
    %cst_44 = arith.constant 0.000000e+00 : f32
    %105 = vector.broadcast %cst_43 : f32 to vector<1x256xf32>
    %106 = vector.broadcast %cst_44 : f32 to vector<1x256xf32>
    %107 = arith.select %104, %105, %106 : vector<1x256xi1>, vector<1x256xf32>
    %108 = arith.mulf %89, %107 : vector<1x256xf32>
    %c3 = arith.constant 3 : index
    %c0_45 = arith.constant 0 : index
    %c0_46 = arith.constant 0 : index
    %109 = vector.load %arg2[%c3, %c0_45, %c0_46] : memref<9x16x1xf32, #tpu.memory_space<vmem>>, vector<1x16x1xf32>
    %110 = vector.shape_cast %109 : vector<1x16x1xf32> to vector<16x1xf32>
    %111 = vector.broadcast %110 : vector<16x1xf32> to vector<16x256xf32>
    %112 = vector.broadcast %108 : vector<1x256xf32> to vector<16x256xf32>
    %113 = arith.mulf %111, %112 : vector<16x256xf32>
    %114 = arith.addf %88, %113 : vector<16x256xf32>
    %c0_47 = arith.constant 0 : index
    %c128_48 = arith.constant 128 : index
    %115 = vector.load %arg17[%c0_47, %c128_48] : memref<16x512xf32, #tpu.memory_space<vmem>>, vector<1x256xf32>
    %c4 = arith.constant 4 : index
    %c0_49 = arith.constant 0 : index
    %c0_50 = arith.constant 0 : index
    %116 = vector.load %arg2[%c4, %c0_49, %c0_50] : memref<9x16x1xf32, #tpu.memory_space<vmem>>, vector<1x16x1xf32>
    %117 = vector.shape_cast %116 : vector<1x16x1xf32> to vector<16x1xf32>
    %118 = vector.broadcast %117 : vector<16x1xf32> to vector<16x256xf32>
    %119 = vector.broadcast %115 : vector<1x256xf32> to vector<16x256xf32>
    %120 = arith.mulf %118, %119 : vector<16x256xf32>
    %121 = arith.addf %114, %120 : vector<16x256xf32>
    %c0_51 = arith.constant 0 : index
    %c129 = arith.constant 129 : index
    %122 = vector.load %arg17[%c0_51, %c129] : memref<16x512xf32, #tpu.memory_space<vmem>>, vector<1x256xf32>
    %c0_i32_52 = arith.constant 0 : i32
    %123 = vector.broadcast %c0_i32_52 : i32 to vector<1x256xi32>
    %124 = arith.addi %7, %123 : vector<1x256xi32>
    %c1_i32_53 = arith.constant 1 : i32
    %125 = vector.broadcast %c1_i32_53 : i32 to vector<1x256xi32>
    %126 = arith.addi %9, %125 : vector<1x256xi32>
    %c0_i32_54 = arith.constant 0 : i32
    %127 = vector.broadcast %c0_i32_54 : i32 to vector<1x256xi32>
    %128 = arith.cmpi sge, %124, %127 : vector<1x256xi32>
    %c16_i32_55 = arith.constant 16 : i32
    %129 = vector.broadcast %c16_i32_55 : i32 to vector<1x256xi32>
    %130 = arith.cmpi slt, %124, %129 : vector<1x256xi32>
    %131 = arith.andi %128, %130 : vector<1x256xi1>
    %c0_i32_56 = arith.constant 0 : i32
    %132 = vector.broadcast %c0_i32_56 : i32 to vector<1x256xi32>
    %133 = arith.cmpi sge, %126, %132 : vector<1x256xi32>
    %134 = arith.andi %131, %133 : vector<1x256xi1>
    %c16_i32_57 = arith.constant 16 : i32
    %135 = vector.broadcast %c16_i32_57 : i32 to vector<1x256xi32>
    %136 = arith.cmpi slt, %126, %135 : vector<1x256xi32>
    %137 = arith.andi %134, %136 : vector<1x256xi1>
    %cst_58 = arith.constant 1.000000e+00 : f32
    %cst_59 = arith.constant 0.000000e+00 : f32
    %138 = vector.broadcast %cst_58 : f32 to vector<1x256xf32>
    %139 = vector.broadcast %cst_59 : f32 to vector<1x256xf32>
    %140 = arith.select %137, %138, %139 : vector<1x256xi1>, vector<1x256xf32>
    %141 = arith.mulf %122, %140 : vector<1x256xf32>
    %c5 = arith.constant 5 : index
    %c0_60 = arith.constant 0 : index
    %c0_61 = arith.constant 0 : index
    %142 = vector.load %arg2[%c5, %c0_60, %c0_61] : memref<9x16x1xf32, #tpu.memory_space<vmem>>, vector<1x16x1xf32>
    %143 = vector.shape_cast %142 : vector<1x16x1xf32> to vector<16x1xf32>
    %144 = vector.broadcast %143 : vector<16x1xf32> to vector<16x256xf32>
    %145 = vector.broadcast %141 : vector<1x256xf32> to vector<16x256xf32>
    %146 = arith.mulf %144, %145 : vector<16x256xf32>
    %147 = arith.addf %121, %146 : vector<16x256xf32>
    %c0_62 = arith.constant 0 : index
    %c143 = arith.constant 143 : index
    %148 = vector.load %arg17[%c0_62, %c143] : memref<16x512xf32, #tpu.memory_space<vmem>>, vector<1x256xf32>
    %c1_i32_63 = arith.constant 1 : i32
    %149 = vector.broadcast %c1_i32_63 : i32 to vector<1x256xi32>
    %150 = arith.addi %7, %149 : vector<1x256xi32>
    %c-1_i32_64 = arith.constant -1 : i32
    %151 = vector.broadcast %c-1_i32_64 : i32 to vector<1x256xi32>
    %152 = arith.addi %9, %151 : vector<1x256xi32>
    %c0_i32_65 = arith.constant 0 : i32
    %153 = vector.broadcast %c0_i32_65 : i32 to vector<1x256xi32>
    %154 = arith.cmpi sge, %150, %153 : vector<1x256xi32>
    %c16_i32_66 = arith.constant 16 : i32
    %155 = vector.broadcast %c16_i32_66 : i32 to vector<1x256xi32>
    %156 = arith.cmpi slt, %150, %155 : vector<1x256xi32>
    %157 = arith.andi %154, %156 : vector<1x256xi1>
    %c0_i32_67 = arith.constant 0 : i32
    %158 = vector.broadcast %c0_i32_67 : i32 to vector<1x256xi32>
    %159 = arith.cmpi sge, %152, %158 : vector<1x256xi32>
    %160 = arith.andi %157, %159 : vector<1x256xi1>
    %c16_i32_68 = arith.constant 16 : i32
    %161 = vector.broadcast %c16_i32_68 : i32 to vector<1x256xi32>
    %162 = arith.cmpi slt, %152, %161 : vector<1x256xi32>
    %163 = arith.andi %160, %162 : vector<1x256xi1>
    %cst_69 = arith.constant 1.000000e+00 : f32
    %cst_70 = arith.constant 0.000000e+00 : f32
    %164 = vector.broadcast %cst_69 : f32 to vector<1x256xf32>
    %165 = vector.broadcast %cst_70 : f32 to vector<1x256xf32>
    %166 = arith.select %163, %164, %165 : vector<1x256xi1>, vector<1x256xf32>
    %167 = arith.mulf %148, %166 : vector<1x256xf32>
    %c6 = arith.constant 6 : index
    %c0_71 = arith.constant 0 : index
    %c0_72 = arith.constant 0 : index
    %168 = vector.load %arg2[%c6, %c0_71, %c0_72] : memref<9x16x1xf32, #tpu.memory_space<vmem>>, vector<1x16x1xf32>
    %169 = vector.shape_cast %168 : vector<1x16x1xf32> to vector<16x1xf32>
    %170 = vector.broadcast %169 : vector<16x1xf32> to vector<16x256xf32>
    %171 = vector.broadcast %167 : vector<1x256xf32> to vector<16x256xf32>
    %172 = arith.mulf %170, %171 : vector<16x256xf32>
    %173 = arith.addf %147, %172 : vector<16x256xf32>
    %c0_73 = arith.constant 0 : index
    %c144 = arith.constant 144 : index
    %174 = vector.load %arg17[%c0_73, %c144] : memref<16x512xf32, #tpu.memory_space<vmem>>, vector<1x256xf32>
    %c1_i32_74 = arith.constant 1 : i32
    %175 = vector.broadcast %c1_i32_74 : i32 to vector<1x256xi32>
    %176 = arith.addi %7, %175 : vector<1x256xi32>
    %c0_i32_75 = arith.constant 0 : i32
    %177 = vector.broadcast %c0_i32_75 : i32 to vector<1x256xi32>
    %178 = arith.addi %9, %177 : vector<1x256xi32>
    %c0_i32_76 = arith.constant 0 : i32
    %179 = vector.broadcast %c0_i32_76 : i32 to vector<1x256xi32>
    %180 = arith.cmpi sge, %176, %179 : vector<1x256xi32>
    %c16_i32_77 = arith.constant 16 : i32
    %181 = vector.broadcast %c16_i32_77 : i32 to vector<1x256xi32>
    %182 = arith.cmpi slt, %176, %181 : vector<1x256xi32>
    %183 = arith.andi %180, %182 : vector<1x256xi1>
    %c0_i32_78 = arith.constant 0 : i32
    %184 = vector.broadcast %c0_i32_78 : i32 to vector<1x256xi32>
    %185 = arith.cmpi sge, %178, %184 : vector<1x256xi32>
    %186 = arith.andi %183, %185 : vector<1x256xi1>
    %c16_i32_79 = arith.constant 16 : i32
    %187 = vector.broadcast %c16_i32_79 : i32 to vector<1x256xi32>
    %188 = arith.cmpi slt, %178, %187 : vector<1x256xi32>
    %189 = arith.andi %186, %188 : vector<1x256xi1>
    %cst_80 = arith.constant 1.000000e+00 : f32
    %cst_81 = arith.constant 0.000000e+00 : f32
    %190 = vector.broadcast %cst_80 : f32 to vector<1x256xf32>
    %191 = vector.broadcast %cst_81 : f32 to vector<1x256xf32>
    %192 = arith.select %189, %190, %191 : vector<1x256xi1>, vector<1x256xf32>
    %193 = arith.mulf %174, %192 : vector<1x256xf32>
    %c7 = arith.constant 7 : index
    %c0_82 = arith.constant 0 : index
    %c0_83 = arith.constant 0 : index
    %194 = vector.load %arg2[%c7, %c0_82, %c0_83] : memref<9x16x1xf32, #tpu.memory_space<vmem>>, vector<1x16x1xf32>
    %195 = vector.shape_cast %194 : vector<1x16x1xf32> to vector<16x1xf32>
    %196 = vector.broadcast %195 : vector<16x1xf32> to vector<16x256xf32>
    %197 = vector.broadcast %193 : vector<1x256xf32> to vector<16x256xf32>
    %198 = arith.mulf %196, %197 : vector<16x256xf32>
    %199 = arith.addf %173, %198 : vector<16x256xf32>
    %c0_84 = arith.constant 0 : index
    %c145 = arith.constant 145 : index
    %200 = vector.load %arg17[%c0_84, %c145] : memref<16x512xf32, #tpu.memory_space<vmem>>, vector<1x256xf32>
    %c1_i32_85 = arith.constant 1 : i32
    %201 = vector.broadcast %c1_i32_85 : i32 to vector<1x256xi32>
    %202 = arith.addi %7, %201 : vector<1x256xi32>
    %c1_i32_86 = arith.constant 1 : i32
    %203 = vector.broadcast %c1_i32_86 : i32 to vector<1x256xi32>
    %204 = arith.addi %9, %203 : vector<1x256xi32>
    %c0_i32_87 = arith.constant 0 : i32
    %205 = vector.broadcast %c0_i32_87 : i32 to vector<1x256xi32>
    %206 = arith.cmpi sge, %202, %205 : vector<1x256xi32>
    %c16_i32_88 = arith.constant 16 : i32
    %207 = vector.broadcast %c16_i32_88 : i32 to vector<1x256xi32>
    %208 = arith.cmpi slt, %202, %207 : vector<1x256xi32>
    %209 = arith.andi %206, %208 : vector<1x256xi1>
    %c0_i32_89 = arith.constant 0 : i32
    %210 = vector.broadcast %c0_i32_89 : i32 to vector<1x256xi32>
    %211 = arith.cmpi sge, %204, %210 : vector<1x256xi32>
    %212 = arith.andi %209, %211 : vector<1x256xi1>
    %c16_i32_90 = arith.constant 16 : i32
    %213 = vector.broadcast %c16_i32_90 : i32 to vector<1x256xi32>
    %214 = arith.cmpi slt, %204, %213 : vector<1x256xi32>
    %215 = arith.andi %212, %214 : vector<1x256xi1>
    %cst_91 = arith.constant 1.000000e+00 : f32
    %cst_92 = arith.constant 0.000000e+00 : f32
    %216 = vector.broadcast %cst_91 : f32 to vector<1x256xf32>
    %217 = vector.broadcast %cst_92 : f32 to vector<1x256xf32>
    %218 = arith.select %215, %216, %217 : vector<1x256xi1>, vector<1x256xf32>
    %219 = arith.mulf %200, %218 : vector<1x256xf32>
    %c8 = arith.constant 8 : index
    %c0_93 = arith.constant 0 : index
    %c0_94 = arith.constant 0 : index
    %220 = vector.load %arg2[%c8, %c0_93, %c0_94] : memref<9x16x1xf32, #tpu.memory_space<vmem>>, vector<1x16x1xf32>
    %221 = vector.shape_cast %220 : vector<1x16x1xf32> to vector<16x1xf32>
    %222 = vector.broadcast %221 : vector<16x1xf32> to vector<16x256xf32>
    %223 = vector.broadcast %219 : vector<1x256xf32> to vector<16x256xf32>
    %224 = arith.mulf %222, %223 : vector<16x256xf32>
    %225 = arith.addf %199, %224 : vector<16x256xf32>
    %c0_95 = arith.constant 0 : index
    %c0_96 = arith.constant 0 : index
    %226 = vector.load %arg3[%c0_95, %c0_96] : memref<16x1xf32, #tpu.memory_space<vmem>>, vector<16x1xf32>
    %227 = vector.broadcast %226 : vector<16x1xf32> to vector<16x256xf32>
    %228 = arith.addf %225, %227 : vector<16x256xf32>
    %cst_97 = arith.constant 0.000000e+00 : f32
    %229 = vector.broadcast %cst_97 : f32 to vector<16x256xf32>
    %230 = arith.maximumf %228, %229 : vector<16x256xf32>
    %c0_98 = arith.constant 0 : index
    %c128_99 = arith.constant 128 : index
    %231 = vector.load %arg17[%c0_98, %c128_99] : memref<16x512xf32, #tpu.memory_space<vmem>>, vector<16x256xf32>
    tpu.vector_store %arg17[%c0_98, %c128_99], %230 {strides = array<i32>} : memref<16x512xf32, #tpu.memory_space<vmem>>, vector<16x256xf32>,
    %c0_100 = arith.constant 0 : index
    %c128_101 = arith.constant 128 : index
    %232 = vector.load %arg17[%c0_100, %c128_101] : memref<16x512xf32, #tpu.memory_space<vmem>>, vector<16x256xf32>
    %c0_102 = arith.constant 0 : index
    %c129_103 = arith.constant 129 : index
    %233 = vector.load %arg17[%c0_102, %c129_103] : memref<16x512xf32, #tpu.memory_space<vmem>>, vector<16x256xf32>
    %234 = arith.maximumf %232, %233 : vector<16x256xf32>
    %c0_104 = arith.constant 0 : index
    %c144_105 = arith.constant 144 : index
    %235 = vector.load %arg17[%c0_104, %c144_105] : memref<16x512xf32, #tpu.memory_space<vmem>>, vector<16x256xf32>
    %c0_106 = arith.constant 0 : index
    %c145_107 = arith.constant 145 : index
    %236 = vector.load %arg17[%c0_106, %c145_107] : memref<16x512xf32, #tpu.memory_space<vmem>>, vector<16x256xf32>
    %237 = arith.maximumf %235, %236 : vector<16x256xf32>
    %238 = arith.maximumf %234, %237 : vector<16x256xf32>
    %239 = tpu.iota {dimensions = array<i32: 1>} : vector<1x64xi32>
    %c3_i32 = arith.constant 3 : i32
    %240 = vector.broadcast %c3_i32 : i32 to vector<1x64xi32>
    %241 = arith.shrsi %239, %240 : vector<1x64xi32>
    %c7_i32 = arith.constant 7 : i32
    %242 = vector.broadcast %c7_i32 : i32 to vector<1x64xi32>
    %243 = arith.andi %239, %242 : vector<1x64xi32>
    %c2_i32 = arith.constant 2 : i32
    %244 = vector.broadcast %c2_i32 : i32 to vector<1x64xi32>
    %245 = arith.muli %244, %241 : vector<1x64xi32>
    %c16_i32_108 = arith.constant 16 : i32
    %246 = vector.broadcast %c16_i32_108 : i32 to vector<1x64xi32>
    %247 = arith.muli %245, %246 : vector<1x64xi32>
    %c2_i32_109 = arith.constant 2 : i32
    %248 = vector.broadcast %c2_i32_109 : i32 to vector<1x64xi32>
    %249 = arith.muli %248, %243 : vector<1x64xi32>
    %250 = arith.addi %247, %249 : vector<1x64xi32>
    %251 = tpu.iota {dimensions = array<i32: 0>} : vector<256x64xi32>
    %252 = vector.broadcast %250 : vector<1x64xi32> to vector<256x64xi32>
    %253 = arith.cmpi eq, %251, %252 : vector<256x64xi32>
    %cst_110 = arith.constant 1.000000e+00 : f32
    %cst_111 = arith.constant 0.000000e+00 : f32
    %254 = vector.broadcast %cst_110 : f32 to vector<256x64xf32>
    %255 = vector.broadcast %cst_111 : f32 to vector<256x64xf32>
    %256 = arith.select %253, %254, %255 : vector<256x64xi1>, vector<256x64xf32>
    %cst_112 = arith.constant dense<0.000000e+00> : vector<16x64xf32>
    %257 = tpu.matmul %238, %256, %cst_112 {dimension_numbers = #tpu.dot_dimension_numbers<[1], [0], [0], [1], [0, 0, 1, 1], [], []>} : vector<16x256xf32>, vector<256x64xf32>, vector<16x64xf32> -> vector<16x64xf32>
    %c0_113 = arith.constant 0 : index
    %c128_114 = arith.constant 128 : index
    %258 = vector.load %arg17[%c0_113, %c128_114] : memref<16x512xf32, #tpu.memory_space<vmem>>, vector<16x64xf32>
    tpu.vector_store %arg17[%c0_113, %c128_114], %257 {strides = array<i32>} : memref<16x512xf32, #tpu.memory_space<vmem>>, vector<16x64xf32>,
    %259 = tpu.iota {dimensions = array<i32: 1>} : vector<1x64xi32>
    %c3_i32_115 = arith.constant 3 : i32
    %260 = vector.broadcast %c3_i32_115 : i32 to vector<1x64xi32>
    %261 = arith.shrsi %259, %260 : vector<1x64xi32>
    %c7_i32_116 = arith.constant 7 : i32
    %262 = vector.broadcast %c7_i32_116 : i32 to vector<1x64xi32>
    %263 = arith.andi %259, %262 : vector<1x64xi32>
    %cst_117 = arith.constant 0.000000e+00 : f32
    %264 = vector.broadcast %cst_117 : f32 to vector<8x64xf32>
    %c0_118 = arith.constant 0 : index
    %c119 = arith.constant 119 : index
    %265 = vector.load %arg17[%c0_118, %c119] : memref<16x512xf32, #tpu.memory_space<vmem>>, vector<16x64xf32>
    %c-1_i32_119 = arith.constant -1 : i32
    %266 = vector.broadcast %c-1_i32_119 : i32 to vector<1x64xi32>
    %267 = arith.addi %261, %266 : vector<1x64xi32>
    %c-1_i32_120 = arith.constant -1 : i32
    %268 = vector.broadcast %c-1_i32_120 : i32 to vector<1x64xi32>
    %269 = arith.addi %263, %268 : vector<1x64xi32>
    %c0_i32_121 = arith.constant 0 : i32
    %270 = vector.broadcast %c0_i32_121 : i32 to vector<1x64xi32>
    %271 = arith.cmpi sge, %267, %270 : vector<1x64xi32>
    %c8_i32 = arith.constant 8 : i32
    %272 = vector.broadcast %c8_i32 : i32 to vector<1x64xi32>
    %273 = arith.cmpi slt, %267, %272 : vector<1x64xi32>
    %274 = arith.andi %271, %273 : vector<1x64xi1>
    %c0_i32_122 = arith.constant 0 : i32
    %275 = vector.broadcast %c0_i32_122 : i32 to vector<1x64xi32>
    %276 = arith.cmpi sge, %269, %275 : vector<1x64xi32>
    %277 = arith.andi %274, %276 : vector<1x64xi1>
    %c8_i32_123 = arith.constant 8 : i32
    %278 = vector.broadcast %c8_i32_123 : i32 to vector<1x64xi32>
    %279 = arith.cmpi slt, %269, %278 : vector<1x64xi32>
    %280 = arith.andi %277, %279 : vector<1x64xi1>
    %cst_124 = arith.constant 1.000000e+00 : f32
    %cst_125 = arith.constant 0.000000e+00 : f32
    %281 = vector.broadcast %cst_124 : f32 to vector<1x64xf32>
    %282 = vector.broadcast %cst_125 : f32 to vector<1x64xf32>
    %283 = arith.select %280, %281, %282 : vector<1x64xi1>, vector<1x64xf32>
    %284 = vector.broadcast %283 : vector<1x64xf32> to vector<16x64xf32>
    %285 = arith.mulf %265, %284 : vector<16x64xf32>
    %c0_126 = arith.constant 0 : index
    %c0_127 = arith.constant 0 : index
    %c0_128 = arith.constant 0 : index
    %286 = vector.load %arg4[%c0_126, %c0_127, %c0_128] : memref<9x8x16xf32, #tpu.memory_space<vmem>>, vector<1x8x16xf32>
    %287 = vector.shape_cast %286 : vector<1x8x16xf32> to vector<8x16xf32>
    %cst_129 = arith.constant dense<0.000000e+00> : vector<8x64xf32>
    %288 = tpu.matmul %287, %285, %cst_129 {dimension_numbers = #tpu.dot_dimension_numbers<[1], [0], [0], [1], [0, 0, 1, 1], [], []>} : vector<8x16xf32>, vector<16x64xf32>, vector<8x64xf32> -> vector<8x64xf32>
    %289 = arith.addf %264, %288 : vector<8x64xf32>
    %c0_130 = arith.constant 0 : index
    %c120 = arith.constant 120 : index
    %290 = vector.load %arg17[%c0_130, %c120] : memref<16x512xf32, #tpu.memory_space<vmem>>, vector<16x64xf32>
    %c-1_i32_131 = arith.constant -1 : i32
    %291 = vector.broadcast %c-1_i32_131 : i32 to vector<1x64xi32>
    %292 = arith.addi %261, %291 : vector<1x64xi32>
    %c0_i32_132 = arith.constant 0 : i32
    %293 = vector.broadcast %c0_i32_132 : i32 to vector<1x64xi32>
    %294 = arith.addi %263, %293 : vector<1x64xi32>
    %c0_i32_133 = arith.constant 0 : i32
    %295 = vector.broadcast %c0_i32_133 : i32 to vector<1x64xi32>
    %296 = arith.cmpi sge, %292, %295 : vector<1x64xi32>
    %c8_i32_134 = arith.constant 8 : i32
    %297 = vector.broadcast %c8_i32_134 : i32 to vector<1x64xi32>
    %298 = arith.cmpi slt, %292, %297 : vector<1x64xi32>
    %299 = arith.andi %296, %298 : vector<1x64xi1>
    %c0_i32_135 = arith.constant 0 : i32
    %300 = vector.broadcast %c0_i32_135 : i32 to vector<1x64xi32>
    %301 = arith.cmpi sge, %294, %300 : vector<1x64xi32>
    %302 = arith.andi %299, %301 : vector<1x64xi1>
    %c8_i32_136 = arith.constant 8 : i32
    %303 = vector.broadcast %c8_i32_136 : i32 to vector<1x64xi32>
    %304 = arith.cmpi slt, %294, %303 : vector<1x64xi32>
    %305 = arith.andi %302, %304 : vector<1x64xi1>
    %cst_137 = arith.constant 1.000000e+00 : f32
    %cst_138 = arith.constant 0.000000e+00 : f32
    %306 = vector.broadcast %cst_137 : f32 to vector<1x64xf32>
    %307 = vector.broadcast %cst_138 : f32 to vector<1x64xf32>
    %308 = arith.select %305, %306, %307 : vector<1x64xi1>, vector<1x64xf32>
    %309 = vector.broadcast %308 : vector<1x64xf32> to vector<16x64xf32>
    %310 = arith.mulf %290, %309 : vector<16x64xf32>
    %c1_139 = arith.constant 1 : index
    %c0_140 = arith.constant 0 : index
    %c0_141 = arith.constant 0 : index
    %311 = vector.load %arg4[%c1_139, %c0_140, %c0_141] : memref<9x8x16xf32, #tpu.memory_space<vmem>>, vector<1x8x16xf32>
    %312 = vector.shape_cast %311 : vector<1x8x16xf32> to vector<8x16xf32>
    %cst_142 = arith.constant dense<0.000000e+00> : vector<8x64xf32>
    %313 = tpu.matmul %312, %310, %cst_142 {dimension_numbers = #tpu.dot_dimension_numbers<[1], [0], [0], [1], [0, 0, 1, 1], [], []>} : vector<8x16xf32>, vector<16x64xf32>, vector<8x64xf32> -> vector<8x64xf32>
    %314 = arith.addf %289, %313 : vector<8x64xf32>
    %c0_143 = arith.constant 0 : index
    %c121 = arith.constant 121 : index
    %315 = vector.load %arg17[%c0_143, %c121] : memref<16x512xf32, #tpu.memory_space<vmem>>, vector<16x64xf32>
    %c-1_i32_144 = arith.constant -1 : i32
    %316 = vector.broadcast %c-1_i32_144 : i32 to vector<1x64xi32>
    %317 = arith.addi %261, %316 : vector<1x64xi32>
    %c1_i32_145 = arith.constant 1 : i32
    %318 = vector.broadcast %c1_i32_145 : i32 to vector<1x64xi32>
    %319 = arith.addi %263, %318 : vector<1x64xi32>
    %c0_i32_146 = arith.constant 0 : i32
    %320 = vector.broadcast %c0_i32_146 : i32 to vector<1x64xi32>
    %321 = arith.cmpi sge, %317, %320 : vector<1x64xi32>
    %c8_i32_147 = arith.constant 8 : i32
    %322 = vector.broadcast %c8_i32_147 : i32 to vector<1x64xi32>
    %323 = arith.cmpi slt, %317, %322 : vector<1x64xi32>
    %324 = arith.andi %321, %323 : vector<1x64xi1>
    %c0_i32_148 = arith.constant 0 : i32
    %325 = vector.broadcast %c0_i32_148 : i32 to vector<1x64xi32>
    %326 = arith.cmpi sge, %319, %325 : vector<1x64xi32>
    %327 = arith.andi %324, %326 : vector<1x64xi1>
    %c8_i32_149 = arith.constant 8 : i32
    %328 = vector.broadcast %c8_i32_149 : i32 to vector<1x64xi32>
    %329 = arith.cmpi slt, %319, %328 : vector<1x64xi32>
    %330 = arith.andi %327, %329 : vector<1x64xi1>
    %cst_150 = arith.constant 1.000000e+00 : f32
    %cst_151 = arith.constant 0.000000e+00 : f32
    %331 = vector.broadcast %cst_150 : f32 to vector<1x64xf32>
    %332 = vector.broadcast %cst_151 : f32 to vector<1x64xf32>
    %333 = arith.select %330, %331, %332 : vector<1x64xi1>, vector<1x64xf32>
    %334 = vector.broadcast %333 : vector<1x64xf32> to vector<16x64xf32>
    %335 = arith.mulf %315, %334 : vector<16x64xf32>
    %c2_152 = arith.constant 2 : index
    %c0_153 = arith.constant 0 : index
    %c0_154 = arith.constant 0 : index
    %336 = vector.load %arg4[%c2_152, %c0_153, %c0_154] : memref<9x8x16xf32, #tpu.memory_space<vmem>>, vector<1x8x16xf32>
    %337 = vector.shape_cast %336 : vector<1x8x16xf32> to vector<8x16xf32>
    %cst_155 = arith.constant dense<0.000000e+00> : vector<8x64xf32>
    %338 = tpu.matmul %337, %335, %cst_155 {dimension_numbers = #tpu.dot_dimension_numbers<[1], [0], [0], [1], [0, 0, 1, 1], [], []>} : vector<8x16xf32>, vector<16x64xf32>, vector<8x64xf32> -> vector<8x64xf32>
    %339 = arith.addf %314, %338 : vector<8x64xf32>
    %c0_156 = arith.constant 0 : index
    %c127_157 = arith.constant 127 : index
    %340 = vector.load %arg17[%c0_156, %c127_157] : memref<16x512xf32, #tpu.memory_space<vmem>>, vector<16x64xf32>
    %c0_i32_158 = arith.constant 0 : i32
    %341 = vector.broadcast %c0_i32_158 : i32 to vector<1x64xi32>
    %342 = arith.addi %261, %341 : vector<1x64xi32>
    %c-1_i32_159 = arith.constant -1 : i32
    %343 = vector.broadcast %c-1_i32_159 : i32 to vector<1x64xi32>
    %344 = arith.addi %263, %343 : vector<1x64xi32>
    %c0_i32_160 = arith.constant 0 : i32
    %345 = vector.broadcast %c0_i32_160 : i32 to vector<1x64xi32>
    %346 = arith.cmpi sge, %342, %345 : vector<1x64xi32>
    %c8_i32_161 = arith.constant 8 : i32
    %347 = vector.broadcast %c8_i32_161 : i32 to vector<1x64xi32>
    %348 = arith.cmpi slt, %342, %347 : vector<1x64xi32>
    %349 = arith.andi %346, %348 : vector<1x64xi1>
    %c0_i32_162 = arith.constant 0 : i32
    %350 = vector.broadcast %c0_i32_162 : i32 to vector<1x64xi32>
    %351 = arith.cmpi sge, %344, %350 : vector<1x64xi32>
    %352 = arith.andi %349, %351 : vector<1x64xi1>
    %c8_i32_163 = arith.constant 8 : i32
    %353 = vector.broadcast %c8_i32_163 : i32 to vector<1x64xi32>
    %354 = arith.cmpi slt, %344, %353 : vector<1x64xi32>
    %355 = arith.andi %352, %354 : vector<1x64xi1>
    %cst_164 = arith.constant 1.000000e+00 : f32
    %cst_165 = arith.constant 0.000000e+00 : f32
    %356 = vector.broadcast %cst_164 : f32 to vector<1x64xf32>
    %357 = vector.broadcast %cst_165 : f32 to vector<1x64xf32>
    %358 = arith.select %355, %356, %357 : vector<1x64xi1>, vector<1x64xf32>
    %359 = vector.broadcast %358 : vector<1x64xf32> to vector<16x64xf32>
    %360 = arith.mulf %340, %359 : vector<16x64xf32>
    %c3_166 = arith.constant 3 : index
    %c0_167 = arith.constant 0 : index
    %c0_168 = arith.constant 0 : index
    %361 = vector.load %arg4[%c3_166, %c0_167, %c0_168] : memref<9x8x16xf32, #tpu.memory_space<vmem>>, vector<1x8x16xf32>
    %362 = vector.shape_cast %361 : vector<1x8x16xf32> to vector<8x16xf32>
    %cst_169 = arith.constant dense<0.000000e+00> : vector<8x64xf32>
    %363 = tpu.matmul %362, %360, %cst_169 {dimension_numbers = #tpu.dot_dimension_numbers<[1], [0], [0], [1], [0, 0, 1, 1], [], []>} : vector<8x16xf32>, vector<16x64xf32>, vector<8x64xf32> -> vector<8x64xf32>
    %364 = arith.addf %339, %363 : vector<8x64xf32>
    %c0_170 = arith.constant 0 : index
    %c128_171 = arith.constant 128 : index
    %365 = vector.load %arg17[%c0_170, %c128_171] : memref<16x512xf32, #tpu.memory_space<vmem>>, vector<16x64xf32>
    %c4_172 = arith.constant 4 : index
    %c0_173 = arith.constant 0 : index
    %c0_174 = arith.constant 0 : index
    %366 = vector.load %arg4[%c4_172, %c0_173, %c0_174] : memref<9x8x16xf32, #tpu.memory_space<vmem>>, vector<1x8x16xf32>
    %367 = vector.shape_cast %366 : vector<1x8x16xf32> to vector<8x16xf32>
    %cst_175 = arith.constant dense<0.000000e+00> : vector<8x64xf32>
    %368 = tpu.matmul %367, %365, %cst_175 {dimension_numbers = #tpu.dot_dimension_numbers<[1], [0], [0], [1], [0, 0, 1, 1], [], []>} : vector<8x16xf32>, vector<16x64xf32>, vector<8x64xf32> -> vector<8x64xf32>
    %369 = arith.addf %364, %368 : vector<8x64xf32>
    %c0_176 = arith.constant 0 : index
    %c129_177 = arith.constant 129 : index
    %370 = vector.load %arg17[%c0_176, %c129_177] : memref<16x512xf32, #tpu.memory_space<vmem>>, vector<16x64xf32>
    %c0_i32_178 = arith.constant 0 : i32
    %371 = vector.broadcast %c0_i32_178 : i32 to vector<1x64xi32>
    %372 = arith.addi %261, %371 : vector<1x64xi32>
    %c1_i32_179 = arith.constant 1 : i32
    %373 = vector.broadcast %c1_i32_179 : i32 to vector<1x64xi32>
    %374 = arith.addi %263, %373 : vector<1x64xi32>
    %c0_i32_180 = arith.constant 0 : i32
    %375 = vector.broadcast %c0_i32_180 : i32 to vector<1x64xi32>
    %376 = arith.cmpi sge, %372, %375 : vector<1x64xi32>
    %c8_i32_181 = arith.constant 8 : i32
    %377 = vector.broadcast %c8_i32_181 : i32 to vector<1x64xi32>
    %378 = arith.cmpi slt, %372, %377 : vector<1x64xi32>
    %379 = arith.andi %376, %378 : vector<1x64xi1>
    %c0_i32_182 = arith.constant 0 : i32
    %380 = vector.broadcast %c0_i32_182 : i32 to vector<1x64xi32>
    %381 = arith.cmpi sge, %374, %380 : vector<1x64xi32>
    %382 = arith.andi %379, %381 : vector<1x64xi1>
    %c8_i32_183 = arith.constant 8 : i32
    %383 = vector.broadcast %c8_i32_183 : i32 to vector<1x64xi32>
    %384 = arith.cmpi slt, %374, %383 : vector<1x64xi32>
    %385 = arith.andi %382, %384 : vector<1x64xi1>
    %cst_184 = arith.constant 1.000000e+00 : f32
    %cst_185 = arith.constant 0.000000e+00 : f32
    %386 = vector.broadcast %cst_184 : f32 to vector<1x64xf32>
    %387 = vector.broadcast %cst_185 : f32 to vector<1x64xf32>
    %388 = arith.select %385, %386, %387 : vector<1x64xi1>, vector<1x64xf32>
    %389 = vector.broadcast %388 : vector<1x64xf32> to vector<16x64xf32>
    %390 = arith.mulf %370, %389 : vector<16x64xf32>
    %c5_186 = arith.constant 5 : index
    %c0_187 = arith.constant 0 : index
    %c0_188 = arith.constant 0 : index
    %391 = vector.load %arg4[%c5_186, %c0_187, %c0_188] : memref<9x8x16xf32, #tpu.memory_space<vmem>>, vector<1x8x16xf32>
    %392 = vector.shape_cast %391 : vector<1x8x16xf32> to vector<8x16xf32>
    %cst_189 = arith.constant dense<0.000000e+00> : vector<8x64xf32>
    %393 = tpu.matmul %392, %390, %cst_189 {dimension_numbers = #tpu.dot_dimension_numbers<[1], [0], [0], [1], [0, 0, 1, 1], [], []>} : vector<8x16xf32>, vector<16x64xf32>, vector<8x64xf32> -> vector<8x64xf32>
    %394 = arith.addf %369, %393 : vector<8x64xf32>
    %c0_190 = arith.constant 0 : index
    %c135 = arith.constant 135 : index
    %395 = vector.load %arg17[%c0_190, %c135] : memref<16x512xf32, #tpu.memory_space<vmem>>, vector<16x64xf32>
    %c1_i32_191 = arith.constant 1 : i32
    %396 = vector.broadcast %c1_i32_191 : i32 to vector<1x64xi32>
    %397 = arith.addi %261, %396 : vector<1x64xi32>
    %c-1_i32_192 = arith.constant -1 : i32
    %398 = vector.broadcast %c-1_i32_192 : i32 to vector<1x64xi32>
    %399 = arith.addi %263, %398 : vector<1x64xi32>
    %c0_i32_193 = arith.constant 0 : i32
    %400 = vector.broadcast %c0_i32_193 : i32 to vector<1x64xi32>
    %401 = arith.cmpi sge, %397, %400 : vector<1x64xi32>
    %c8_i32_194 = arith.constant 8 : i32
    %402 = vector.broadcast %c8_i32_194 : i32 to vector<1x64xi32>
    %403 = arith.cmpi slt, %397, %402 : vector<1x64xi32>
    %404 = arith.andi %401, %403 : vector<1x64xi1>
    %c0_i32_195 = arith.constant 0 : i32
    %405 = vector.broadcast %c0_i32_195 : i32 to vector<1x64xi32>
    %406 = arith.cmpi sge, %399, %405 : vector<1x64xi32>
    %407 = arith.andi %404, %406 : vector<1x64xi1>
    %c8_i32_196 = arith.constant 8 : i32
    %408 = vector.broadcast %c8_i32_196 : i32 to vector<1x64xi32>
    %409 = arith.cmpi slt, %399, %408 : vector<1x64xi32>
    %410 = arith.andi %407, %409 : vector<1x64xi1>
    %cst_197 = arith.constant 1.000000e+00 : f32
    %cst_198 = arith.constant 0.000000e+00 : f32
    %411 = vector.broadcast %cst_197 : f32 to vector<1x64xf32>
    %412 = vector.broadcast %cst_198 : f32 to vector<1x64xf32>
    %413 = arith.select %410, %411, %412 : vector<1x64xi1>, vector<1x64xf32>
    %414 = vector.broadcast %413 : vector<1x64xf32> to vector<16x64xf32>
    %415 = arith.mulf %395, %414 : vector<16x64xf32>
    %c6_199 = arith.constant 6 : index
    %c0_200 = arith.constant 0 : index
    %c0_201 = arith.constant 0 : index
    %416 = vector.load %arg4[%c6_199, %c0_200, %c0_201] : memref<9x8x16xf32, #tpu.memory_space<vmem>>, vector<1x8x16xf32>
    %417 = vector.shape_cast %416 : vector<1x8x16xf32> to vector<8x16xf32>
    %cst_202 = arith.constant dense<0.000000e+00> : vector<8x64xf32>
    %418 = tpu.matmul %417, %415, %cst_202 {dimension_numbers = #tpu.dot_dimension_numbers<[1], [0], [0], [1], [0, 0, 1, 1], [], []>} : vector<8x16xf32>, vector<16x64xf32>, vector<8x64xf32> -> vector<8x64xf32>
    %419 = arith.addf %394, %418 : vector<8x64xf32>
    %c0_203 = arith.constant 0 : index
    %c136 = arith.constant 136 : index
    %420 = vector.load %arg17[%c0_203, %c136] : memref<16x512xf32, #tpu.memory_space<vmem>>, vector<16x64xf32>
    %c1_i32_204 = arith.constant 1 : i32
    %421 = vector.broadcast %c1_i32_204 : i32 to vector<1x64xi32>
    %422 = arith.addi %261, %421 : vector<1x64xi32>
    %c0_i32_205 = arith.constant 0 : i32
    %423 = vector.broadcast %c0_i32_205 : i32 to vector<1x64xi32>
    %424 = arith.addi %263, %423 : vector<1x64xi32>
    %c0_i32_206 = arith.constant 0 : i32
    %425 = vector.broadcast %c0_i32_206 : i32 to vector<1x64xi32>
    %426 = arith.cmpi sge, %422, %425 : vector<1x64xi32>
    %c8_i32_207 = arith.constant 8 : i32
    %427 = vector.broadcast %c8_i32_207 : i32 to vector<1x64xi32>
    %428 = arith.cmpi slt, %422, %427 : vector<1x64xi32>
    %429 = arith.andi %426, %428 : vector<1x64xi1>
    %c0_i32_208 = arith.constant 0 : i32
    %430 = vector.broadcast %c0_i32_208 : i32 to vector<1x64xi32>
    %431 = arith.cmpi sge, %424, %430 : vector<1x64xi32>
    %432 = arith.andi %429, %431 : vector<1x64xi1>
    %c8_i32_209 = arith.constant 8 : i32
    %433 = vector.broadcast %c8_i32_209 : i32 to vector<1x64xi32>
    %434 = arith.cmpi slt, %424, %433 : vector<1x64xi32>
    %435 = arith.andi %432, %434 : vector<1x64xi1>
    %cst_210 = arith.constant 1.000000e+00 : f32
    %cst_211 = arith.constant 0.000000e+00 : f32
    %436 = vector.broadcast %cst_210 : f32 to vector<1x64xf32>
    %437 = vector.broadcast %cst_211 : f32 to vector<1x64xf32>
    %438 = arith.select %435, %436, %437 : vector<1x64xi1>, vector<1x64xf32>
    %439 = vector.broadcast %438 : vector<1x64xf32> to vector<16x64xf32>
    %440 = arith.mulf %420, %439 : vector<16x64xf32>
    %c7_212 = arith.constant 7 : index
    %c0_213 = arith.constant 0 : index
    %c0_214 = arith.constant 0 : index
    %441 = vector.load %arg4[%c7_212, %c0_213, %c0_214] : memref<9x8x16xf32, #tpu.memory_space<vmem>>, vector<1x8x16xf32>
    %442 = vector.shape_cast %441 : vector<1x8x16xf32> to vector<8x16xf32>
    %cst_215 = arith.constant dense<0.000000e+00> : vector<8x64xf32>
    %443 = tpu.matmul %442, %440, %cst_215 {dimension_numbers = #tpu.dot_dimension_numbers<[1], [0], [0], [1], [0, 0, 1, 1], [], []>} : vector<8x16xf32>, vector<16x64xf32>, vector<8x64xf32> -> vector<8x64xf32>
    %444 = arith.addf %419, %443 : vector<8x64xf32>
    %c0_216 = arith.constant 0 : index
    %c137 = arith.constant 137 : index
    %445 = vector.load %arg17[%c0_216, %c137] : memref<16x512xf32, #tpu.memory_space<vmem>>, vector<16x64xf32>
    %c1_i32_217 = arith.constant 1 : i32
    %446 = vector.broadcast %c1_i32_217 : i32 to vector<1x64xi32>
    %447 = arith.addi %261, %446 : vector<1x64xi32>
    %c1_i32_218 = arith.constant 1 : i32
    %448 = vector.broadcast %c1_i32_218 : i32 to vector<1x64xi32>
    %449 = arith.addi %263, %448 : vector<1x64xi32>
    %c0_i32_219 = arith.constant 0 : i32
    %450 = vector.broadcast %c0_i32_219 : i32 to vector<1x64xi32>
    %451 = arith.cmpi sge, %447, %450 : vector<1x64xi32>
    %c8_i32_220 = arith.constant 8 : i32
    %452 = vector.broadcast %c8_i32_220 : i32 to vector<1x64xi32>
    %453 = arith.cmpi slt, %447, %452 : vector<1x64xi32>
    %454 = arith.andi %451, %453 : vector<1x64xi1>
    %c0_i32_221 = arith.constant 0 : i32
    %455 = vector.broadcast %c0_i32_221 : i32 to vector<1x64xi32>
    %456 = arith.cmpi sge, %449, %455 : vector<1x64xi32>
    %457 = arith.andi %454, %456 : vector<1x64xi1>
    %c8_i32_222 = arith.constant 8 : i32
    %458 = vector.broadcast %c8_i32_222 : i32 to vector<1x64xi32>
    %459 = arith.cmpi slt, %449, %458 : vector<1x64xi32>
    %460 = arith.andi %457, %459 : vector<1x64xi1>
    %cst_223 = arith.constant 1.000000e+00 : f32
    %cst_224 = arith.constant 0.000000e+00 : f32
    %461 = vector.broadcast %cst_223 : f32 to vector<1x64xf32>
    %462 = vector.broadcast %cst_224 : f32 to vector<1x64xf32>
    %463 = arith.select %460, %461, %462 : vector<1x64xi1>, vector<1x64xf32>
    %464 = vector.broadcast %463 : vector<1x64xf32> to vector<16x64xf32>
    %465 = arith.mulf %445, %464 : vector<16x64xf32>
    %c8_225 = arith.constant 8 : index
    %c0_226 = arith.constant 0 : index
    %c0_227 = arith.constant 0 : index
    %466 = vector.load %arg4[%c8_225, %c0_226, %c0_227] : memref<9x8x16xf32, #tpu.memory_space<vmem>>, vector<1x8x16xf32>
    %467 = vector.shape_cast %466 : vector<1x8x16xf32> to vector<8x16xf32>
    %cst_228 = arith.constant dense<0.000000e+00> : vector<8x64xf32>
    %468 = tpu.matmul %467, %465, %cst_228 {dimension_numbers = #tpu.dot_dimension_numbers<[1], [0], [0], [1], [0, 0, 1, 1], [], []>} : vector<8x16xf32>, vector<16x64xf32>, vector<8x64xf32> -> vector<8x64xf32>
    %469 = arith.addf %444, %468 : vector<8x64xf32>
    %c0_229 = arith.constant 0 : index
    %c0_230 = arith.constant 0 : index
    %470 = vector.load %arg5[%c0_229, %c0_230] : memref<8x1xf32, #tpu.memory_space<vmem>>, vector<8x1xf32>
    %471 = vector.broadcast %470 : vector<8x1xf32> to vector<8x64xf32>
    %472 = arith.addf %469, %471 : vector<8x64xf32>
    %cst_231 = arith.constant 0.000000e+00 : f32
    %473 = vector.broadcast %cst_231 : f32 to vector<8x64xf32>
    %474 = arith.maximumf %472, %473 : vector<8x64xf32>
    %c0_232 = arith.constant 0 : index
    %c128_233 = arith.constant 128 : index
    %475 = vector.load %arg17[%c0_232, %c128_233] : memref<16x512xf32, #tpu.memory_space<vmem>>, vector<8x64xf32>
    tpu.vector_store %arg17[%c0_232, %c128_233], %474 {strides = array<i32>} : memref<16x512xf32, #tpu.memory_space<vmem>>, vector<8x64xf32>,
    %c0_234 = arith.constant 0 : index
    %c128_235 = arith.constant 128 : index
    %476 = vector.load %arg17[%c0_234, %c128_235] : memref<16x512xf32, #tpu.memory_space<vmem>>, vector<8x64xf32>
    %c0_236 = arith.constant 0 : index
    %c129_237 = arith.constant 129 : index
    %477 = vector.load %arg17[%c0_236, %c129_237] : memref<16x512xf32, #tpu.memory_space<vmem>>, vector<8x64xf32>
    %478 = arith.maximumf %476, %477 : vector<8x64xf32>
    %c0_238 = arith.constant 0 : index
    %c136_239 = arith.constant 136 : index
    %479 = vector.load %arg17[%c0_238, %c136_239] : memref<16x512xf32, #tpu.memory_space<vmem>>, vector<8x64xf32>
    %c0_240 = arith.constant 0 : index
    %c137_241 = arith.constant 137 : index
    %480 = vector.load %arg17[%c0_240, %c137_241] : memref<16x512xf32, #tpu.memory_space<vmem>>, vector<8x64xf32>
    %481 = arith.maximumf %479, %480 : vector<8x64xf32>
    %482 = arith.maximumf %478, %481 : vector<8x64xf32>
    %483 = tpu.iota {dimensions = array<i32: 1>} : vector<1x16xi32>
    %c2_i32_242 = arith.constant 2 : i32
    %484 = vector.broadcast %c2_i32_242 : i32 to vector<1x16xi32>
    %485 = arith.shrsi %483, %484 : vector<1x16xi32>
    %c3_i32_243 = arith.constant 3 : i32
    %486 = vector.broadcast %c3_i32_243 : i32 to vector<1x16xi32>
    %487 = arith.andi %483, %486 : vector<1x16xi32>
    %c2_i32_244 = arith.constant 2 : i32
    %488 = vector.broadcast %c2_i32_244 : i32 to vector<1x16xi32>
    %489 = arith.muli %488, %485 : vector<1x16xi32>
    %c8_i32_245 = arith.constant 8 : i32
    %490 = vector.broadcast %c8_i32_245 : i32 to vector<1x16xi32>
    %491 = arith.muli %489, %490 : vector<1x16xi32>
    %c2_i32_246 = arith.constant 2 : i32
    %492 = vector.broadcast %c2_i32_246 : i32 to vector<1x16xi32>
    %493 = arith.muli %492, %487 : vector<1x16xi32>
    %494 = arith.addi %491, %493 : vector<1x16xi32>
    %495 = tpu.iota {dimensions = array<i32: 0>} : vector<64x16xi32>
    %496 = vector.broadcast %494 : vector<1x16xi32> to vector<64x16xi32>
    %497 = arith.cmpi eq, %495, %496 : vector<64x16xi32>
    %cst_247 = arith.constant 1.000000e+00 : f32
    %cst_248 = arith.constant 0.000000e+00 : f32
    %498 = vector.broadcast %cst_247 : f32 to vector<64x16xf32>
    %499 = vector.broadcast %cst_248 : f32 to vector<64x16xf32>
    %500 = arith.select %497, %498, %499 : vector<64x16xi1>, vector<64x16xf32>
    %cst_249 = arith.constant dense<0.000000e+00> : vector<8x16xf32>
    %501 = tpu.matmul %482, %500, %cst_249 {dimension_numbers = #tpu.dot_dimension_numbers<[1], [0], [0], [1], [0, 0, 1, 1], [], []>} : vector<8x64xf32>, vector<64x16xf32>, vector<8x16xf32> -> vector<8x16xf32>
    %c0_250 = arith.constant 0 : index
    %c128_251 = arith.constant 128 : index
    %502 = vector.load %arg17[%c0_250, %c128_251] : memref<16x512xf32, #tpu.memory_space<vmem>>, vector<8x16xf32>
    tpu.vector_store %arg17[%c0_250, %c128_251], %501 {strides = array<i32>} : memref<16x512xf32, #tpu.memory_space<vmem>>, vector<8x16xf32>,
    %503 = tpu.iota {dimensions = array<i32: 1>} : vector<1x16xi32>
    %c2_i32_252 = arith.constant 2 : i32
    %504 = vector.broadcast %c2_i32_252 : i32 to vector<1x16xi32>
    %505 = arith.shrsi %503, %504 : vector<1x16xi32>
    %c3_i32_253 = arith.constant 3 : i32
    %506 = vector.broadcast %c3_i32_253 : i32 to vector<1x16xi32>
    %507 = arith.andi %503, %506 : vector<1x16xi32>
    %cst_254 = arith.constant 0.000000e+00 : f32
    %508 = vector.broadcast %cst_254 : f32 to vector<8x16xf32>
    %c0_255 = arith.constant 0 : index
    %c123 = arith.constant 123 : index
    %509 = vector.load %arg17[%c0_255, %c123] : memref<16x512xf32, #tpu.memory_space<vmem>>, vector<8x16xf32>
    %c-1_i32_256 = arith.constant -1 : i32
    %510 = vector.broadcast %c-1_i32_256 : i32 to vector<1x16xi32>
    %511 = arith.addi %505, %510 : vector<1x16xi32>
    %c-1_i32_257 = arith.constant -1 : i32
    %512 = vector.broadcast %c-1_i32_257 : i32 to vector<1x16xi32>
    %513 = arith.addi %507, %512 : vector<1x16xi32>
    %c0_i32_258 = arith.constant 0 : i32
    %514 = vector.broadcast %c0_i32_258 : i32 to vector<1x16xi32>
    %515 = arith.cmpi sge, %511, %514 : vector<1x16xi32>
    %c4_i32_259 = arith.constant 4 : i32
    %516 = vector.broadcast %c4_i32_259 : i32 to vector<1x16xi32>
    %517 = arith.cmpi slt, %511, %516 : vector<1x16xi32>
    %518 = arith.andi %515, %517 : vector<1x16xi1>
    %c0_i32_260 = arith.constant 0 : i32
    %519 = vector.broadcast %c0_i32_260 : i32 to vector<1x16xi32>
    %520 = arith.cmpi sge, %513, %519 : vector<1x16xi32>
    %521 = arith.andi %518, %520 : vector<1x16xi1>
    %c4_i32_261 = arith.constant 4 : i32
    %522 = vector.broadcast %c4_i32_261 : i32 to vector<1x16xi32>
    %523 = arith.cmpi slt, %513, %522 : vector<1x16xi32>
    %524 = arith.andi %521, %523 : vector<1x16xi1>
    %cst_262 = arith.constant 1.000000e+00 : f32
    %cst_263 = arith.constant 0.000000e+00 : f32
    %525 = vector.broadcast %cst_262 : f32 to vector<1x16xf32>
    %526 = vector.broadcast %cst_263 : f32 to vector<1x16xf32>
    %527 = arith.select %524, %525, %526 : vector<1x16xi1>, vector<1x16xf32>
    %528 = vector.broadcast %527 : vector<1x16xf32> to vector<8x16xf32>
    %529 = arith.mulf %509, %528 : vector<8x16xf32>
    %c0_264 = arith.constant 0 : index
    %c0_265 = arith.constant 0 : index
    %c0_266 = arith.constant 0 : index
    %530 = vector.load %arg6[%c0_264, %c0_265, %c0_266] : memref<9x8x8xf32, #tpu.memory_space<vmem>>, vector<1x8x8xf32>
    %531 = vector.shape_cast %530 : vector<1x8x8xf32> to vector<8x8xf32>
    %cst_267 = arith.constant dense<0.000000e+00> : vector<8x16xf32>
    %532 = tpu.matmul %531, %529, %cst_267 {dimension_numbers = #tpu.dot_dimension_numbers<[1], [0], [0], [1], [0, 0, 1, 1], [], []>} : vector<8x8xf32>, vector<8x16xf32>, vector<8x16xf32> -> vector<8x16xf32>
    %533 = arith.addf %508, %532 : vector<8x16xf32>
    %c0_268 = arith.constant 0 : index
    %c124 = arith.constant 124 : index
    %534 = vector.load %arg17[%c0_268, %c124] : memref<16x512xf32, #tpu.memory_space<vmem>>, vector<8x16xf32>
    %c-1_i32_269 = arith.constant -1 : i32
    %535 = vector.broadcast %c-1_i32_269 : i32 to vector<1x16xi32>
    %536 = arith.addi %505, %535 : vector<1x16xi32>
    %c0_i32_270 = arith.constant 0 : i32
    %537 = vector.broadcast %c0_i32_270 : i32 to vector<1x16xi32>
    %538 = arith.addi %507, %537 : vector<1x16xi32>
    %c0_i32_271 = arith.constant 0 : i32
    %539 = vector.broadcast %c0_i32_271 : i32 to vector<1x16xi32>
    %540 = arith.cmpi sge, %536, %539 : vector<1x16xi32>
    %c4_i32_272 = arith.constant 4 : i32
    %541 = vector.broadcast %c4_i32_272 : i32 to vector<1x16xi32>
    %542 = arith.cmpi slt, %536, %541 : vector<1x16xi32>
    %543 = arith.andi %540, %542 : vector<1x16xi1>
    %c0_i32_273 = arith.constant 0 : i32
    %544 = vector.broadcast %c0_i32_273 : i32 to vector<1x16xi32>
    %545 = arith.cmpi sge, %538, %544 : vector<1x16xi32>
    %546 = arith.andi %543, %545 : vector<1x16xi1>
    %c4_i32_274 = arith.constant 4 : i32
    %547 = vector.broadcast %c4_i32_274 : i32 to vector<1x16xi32>
    %548 = arith.cmpi slt, %538, %547 : vector<1x16xi32>
    %549 = arith.andi %546, %548 : vector<1x16xi1>
    %cst_275 = arith.constant 1.000000e+00 : f32
    %cst_276 = arith.constant 0.000000e+00 : f32
    %550 = vector.broadcast %cst_275 : f32 to vector<1x16xf32>
    %551 = vector.broadcast %cst_276 : f32 to vector<1x16xf32>
    %552 = arith.select %549, %550, %551 : vector<1x16xi1>, vector<1x16xf32>
    %553 = vector.broadcast %552 : vector<1x16xf32> to vector<8x16xf32>
    %554 = arith.mulf %534, %553 : vector<8x16xf32>
    %c1_277 = arith.constant 1 : index
    %c0_278 = arith.constant 0 : index
    %c0_279 = arith.constant 0 : index
    %555 = vector.load %arg6[%c1_277, %c0_278, %c0_279] : memref<9x8x8xf32, #tpu.memory_space<vmem>>, vector<1x8x8xf32>
    %556 = vector.shape_cast %555 : vector<1x8x8xf32> to vector<8x8xf32>
    %cst_280 = arith.constant dense<0.000000e+00> : vector<8x16xf32>
    %557 = tpu.matmul %556, %554, %cst_280 {dimension_numbers = #tpu.dot_dimension_numbers<[1], [0], [0], [1], [0, 0, 1, 1], [], []>} : vector<8x8xf32>, vector<8x16xf32>, vector<8x16xf32> -> vector<8x16xf32>
    %558 = arith.addf %533, %557 : vector<8x16xf32>
    %c0_281 = arith.constant 0 : index
    %c125 = arith.constant 125 : index
    %559 = vector.load %arg17[%c0_281, %c125] : memref<16x512xf32, #tpu.memory_space<vmem>>, vector<8x16xf32>
    %c-1_i32_282 = arith.constant -1 : i32
    %560 = vector.broadcast %c-1_i32_282 : i32 to vector<1x16xi32>
    %561 = arith.addi %505, %560 : vector<1x16xi32>
    %c1_i32_283 = arith.constant 1 : i32
    %562 = vector.broadcast %c1_i32_283 : i32 to vector<1x16xi32>
    %563 = arith.addi %507, %562 : vector<1x16xi32>
    %c0_i32_284 = arith.constant 0 : i32
    %564 = vector.broadcast %c0_i32_284 : i32 to vector<1x16xi32>
    %565 = arith.cmpi sge, %561, %564 : vector<1x16xi32>
    %c4_i32_285 = arith.constant 4 : i32
    %566 = vector.broadcast %c4_i32_285 : i32 to vector<1x16xi32>
    %567 = arith.cmpi slt, %561, %566 : vector<1x16xi32>
    %568 = arith.andi %565, %567 : vector<1x16xi1>
    %c0_i32_286 = arith.constant 0 : i32
    %569 = vector.broadcast %c0_i32_286 : i32 to vector<1x16xi32>
    %570 = arith.cmpi sge, %563, %569 : vector<1x16xi32>
    %571 = arith.andi %568, %570 : vector<1x16xi1>
    %c4_i32_287 = arith.constant 4 : i32
    %572 = vector.broadcast %c4_i32_287 : i32 to vector<1x16xi32>
    %573 = arith.cmpi slt, %563, %572 : vector<1x16xi32>
    %574 = arith.andi %571, %573 : vector<1x16xi1>
    %cst_288 = arith.constant 1.000000e+00 : f32
    %cst_289 = arith.constant 0.000000e+00 : f32
    %575 = vector.broadcast %cst_288 : f32 to vector<1x16xf32>
    %576 = vector.broadcast %cst_289 : f32 to vector<1x16xf32>
    %577 = arith.select %574, %575, %576 : vector<1x16xi1>, vector<1x16xf32>
    %578 = vector.broadcast %577 : vector<1x16xf32> to vector<8x16xf32>
    %579 = arith.mulf %559, %578 : vector<8x16xf32>
    %c2_290 = arith.constant 2 : index
    %c0_291 = arith.constant 0 : index
    %c0_292 = arith.constant 0 : index
    %580 = vector.load %arg6[%c2_290, %c0_291, %c0_292] : memref<9x8x8xf32, #tpu.memory_space<vmem>>, vector<1x8x8xf32>
    %581 = vector.shape_cast %580 : vector<1x8x8xf32> to vector<8x8xf32>
    %cst_293 = arith.constant dense<0.000000e+00> : vector<8x16xf32>
    %582 = tpu.matmul %581, %579, %cst_293 {dimension_numbers = #tpu.dot_dimension_numbers<[1], [0], [0], [1], [0, 0, 1, 1], [], []>} : vector<8x8xf32>, vector<8x16xf32>, vector<8x16xf32> -> vector<8x16xf32>
    %583 = arith.addf %558, %582 : vector<8x16xf32>
    %c0_294 = arith.constant 0 : index
    %c127_295 = arith.constant 127 : index
    %584 = vector.load %arg17[%c0_294, %c127_295] : memref<16x512xf32, #tpu.memory_space<vmem>>, vector<8x16xf32>
    %c0_i32_296 = arith.constant 0 : i32
    %585 = vector.broadcast %c0_i32_296 : i32 to vector<1x16xi32>
    %586 = arith.addi %505, %585 : vector<1x16xi32>
    %c-1_i32_297 = arith.constant -1 : i32
    %587 = vector.broadcast %c-1_i32_297 : i32 to vector<1x16xi32>
    %588 = arith.addi %507, %587 : vector<1x16xi32>
    %c0_i32_298 = arith.constant 0 : i32
    %589 = vector.broadcast %c0_i32_298 : i32 to vector<1x16xi32>
    %590 = arith.cmpi sge, %586, %589 : vector<1x16xi32>
    %c4_i32_299 = arith.constant 4 : i32
    %591 = vector.broadcast %c4_i32_299 : i32 to vector<1x16xi32>
    %592 = arith.cmpi slt, %586, %591 : vector<1x16xi32>
    %593 = arith.andi %590, %592 : vector<1x16xi1>
    %c0_i32_300 = arith.constant 0 : i32
    %594 = vector.broadcast %c0_i32_300 : i32 to vector<1x16xi32>
    %595 = arith.cmpi sge, %588, %594 : vector<1x16xi32>
    %596 = arith.andi %593, %595 : vector<1x16xi1>
    %c4_i32_301 = arith.constant 4 : i32
    %597 = vector.broadcast %c4_i32_301 : i32 to vector<1x16xi32>
    %598 = arith.cmpi slt, %588, %597 : vector<1x16xi32>
    %599 = arith.andi %596, %598 : vector<1x16xi1>
    %cst_302 = arith.constant 1.000000e+00 : f32
    %cst_303 = arith.constant 0.000000e+00 : f32
    %600 = vector.broadcast %cst_302 : f32 to vector<1x16xf32>
    %601 = vector.broadcast %cst_303 : f32 to vector<1x16xf32>
    %602 = arith.select %599, %600, %601 : vector<1x16xi1>, vector<1x16xf32>
    %603 = vector.broadcast %602 : vector<1x16xf32> to vector<8x16xf32>
    %604 = arith.mulf %584, %603 : vector<8x16xf32>
    %c3_304 = arith.constant 3 : index
    %c0_305 = arith.constant 0 : index
    %c0_306 = arith.constant 0 : index
    %605 = vector.load %arg6[%c3_304, %c0_305, %c0_306] : memref<9x8x8xf32, #tpu.memory_space<vmem>>, vector<1x8x8xf32>
    %606 = vector.shape_cast %605 : vector<1x8x8xf32> to vector<8x8xf32>
    %cst_307 = arith.constant dense<0.000000e+00> : vector<8x16xf32>
    %607 = tpu.matmul %606, %604, %cst_307 {dimension_numbers = #tpu.dot_dimension_numbers<[1], [0], [0], [1], [0, 0, 1, 1], [], []>} : vector<8x8xf32>, vector<8x16xf32>, vector<8x16xf32> -> vector<8x16xf32>
    %608 = arith.addf %583, %607 : vector<8x16xf32>
    %c0_308 = arith.constant 0 : index
    %c128_309 = arith.constant 128 : index
    %609 = vector.load %arg17[%c0_308, %c128_309] : memref<16x512xf32, #tpu.memory_space<vmem>>, vector<8x16xf32>
    %c4_310 = arith.constant 4 : index
    %c0_311 = arith.constant 0 : index
    %c0_312 = arith.constant 0 : index
    %610 = vector.load %arg6[%c4_310, %c0_311, %c0_312] : memref<9x8x8xf32, #tpu.memory_space<vmem>>, vector<1x8x8xf32>
    %611 = vector.shape_cast %610 : vector<1x8x8xf32> to vector<8x8xf32>
    %cst_313 = arith.constant dense<0.000000e+00> : vector<8x16xf32>
    %612 = tpu.matmul %611, %609, %cst_313 {dimension_numbers = #tpu.dot_dimension_numbers<[1], [0], [0], [1], [0, 0, 1, 1], [], []>} : vector<8x8xf32>, vector<8x16xf32>, vector<8x16xf32> -> vector<8x16xf32>
    %613 = arith.addf %608, %612 : vector<8x16xf32>
    %c0_314 = arith.constant 0 : index
    %c129_315 = arith.constant 129 : index
    %614 = vector.load %arg17[%c0_314, %c129_315] : memref<16x512xf32, #tpu.memory_space<vmem>>, vector<8x16xf32>
    %c0_i32_316 = arith.constant 0 : i32
    %615 = vector.broadcast %c0_i32_316 : i32 to vector<1x16xi32>
    %616 = arith.addi %505, %615 : vector<1x16xi32>
    %c1_i32_317 = arith.constant 1 : i32
    %617 = vector.broadcast %c1_i32_317 : i32 to vector<1x16xi32>
    %618 = arith.addi %507, %617 : vector<1x16xi32>
    %c0_i32_318 = arith.constant 0 : i32
    %619 = vector.broadcast %c0_i32_318 : i32 to vector<1x16xi32>
    %620 = arith.cmpi sge, %616, %619 : vector<1x16xi32>
    %c4_i32_319 = arith.constant 4 : i32
    %621 = vector.broadcast %c4_i32_319 : i32 to vector<1x16xi32>
    %622 = arith.cmpi slt, %616, %621 : vector<1x16xi32>
    %623 = arith.andi %620, %622 : vector<1x16xi1>
    %c0_i32_320 = arith.constant 0 : i32
    %624 = vector.broadcast %c0_i32_320 : i32 to vector<1x16xi32>
    %625 = arith.cmpi sge, %618, %624 : vector<1x16xi32>
    %626 = arith.andi %623, %625 : vector<1x16xi1>
    %c4_i32_321 = arith.constant 4 : i32
    %627 = vector.broadcast %c4_i32_321 : i32 to vector<1x16xi32>
    %628 = arith.cmpi slt, %618, %627 : vector<1x16xi32>
    %629 = arith.andi %626, %628 : vector<1x16xi1>
    %cst_322 = arith.constant 1.000000e+00 : f32
    %cst_323 = arith.constant 0.000000e+00 : f32
    %630 = vector.broadcast %cst_322 : f32 to vector<1x16xf32>
    %631 = vector.broadcast %cst_323 : f32 to vector<1x16xf32>
    %632 = arith.select %629, %630, %631 : vector<1x16xi1>, vector<1x16xf32>
    %633 = vector.broadcast %632 : vector<1x16xf32> to vector<8x16xf32>
    %634 = arith.mulf %614, %633 : vector<8x16xf32>
    %c5_324 = arith.constant 5 : index
    %c0_325 = arith.constant 0 : index
    %c0_326 = arith.constant 0 : index
    %635 = vector.load %arg6[%c5_324, %c0_325, %c0_326] : memref<9x8x8xf32, #tpu.memory_space<vmem>>, vector<1x8x8xf32>
    %636 = vector.shape_cast %635 : vector<1x8x8xf32> to vector<8x8xf32>
    %cst_327 = arith.constant dense<0.000000e+00> : vector<8x16xf32>
    %637 = tpu.matmul %636, %634, %cst_327 {dimension_numbers = #tpu.dot_dimension_numbers<[1], [0], [0], [1], [0, 0, 1, 1], [], []>} : vector<8x8xf32>, vector<8x16xf32>, vector<8x16xf32> -> vector<8x16xf32>
    %638 = arith.addf %613, %637 : vector<8x16xf32>
    %c0_328 = arith.constant 0 : index
    %c131 = arith.constant 131 : index
    %639 = vector.load %arg17[%c0_328, %c131] : memref<16x512xf32, #tpu.memory_space<vmem>>, vector<8x16xf32>
    %c1_i32_329 = arith.constant 1 : i32
    %640 = vector.broadcast %c1_i32_329 : i32 to vector<1x16xi32>
    %641 = arith.addi %505, %640 : vector<1x16xi32>
    %c-1_i32_330 = arith.constant -1 : i32
    %642 = vector.broadcast %c-1_i32_330 : i32 to vector<1x16xi32>
    %643 = arith.addi %507, %642 : vector<1x16xi32>
    %c0_i32_331 = arith.constant 0 : i32
    %644 = vector.broadcast %c0_i32_331 : i32 to vector<1x16xi32>
    %645 = arith.cmpi sge, %641, %644 : vector<1x16xi32>
    %c4_i32_332 = arith.constant 4 : i32
    %646 = vector.broadcast %c4_i32_332 : i32 to vector<1x16xi32>
    %647 = arith.cmpi slt, %641, %646 : vector<1x16xi32>
    %648 = arith.andi %645, %647 : vector<1x16xi1>
    %c0_i32_333 = arith.constant 0 : i32
    %649 = vector.broadcast %c0_i32_333 : i32 to vector<1x16xi32>
    %650 = arith.cmpi sge, %643, %649 : vector<1x16xi32>
    %651 = arith.andi %648, %650 : vector<1x16xi1>
    %c4_i32_334 = arith.constant 4 : i32
    %652 = vector.broadcast %c4_i32_334 : i32 to vector<1x16xi32>
    %653 = arith.cmpi slt, %643, %652 : vector<1x16xi32>
    %654 = arith.andi %651, %653 : vector<1x16xi1>
    %cst_335 = arith.constant 1.000000e+00 : f32
    %cst_336 = arith.constant 0.000000e+00 : f32
    %655 = vector.broadcast %cst_335 : f32 to vector<1x16xf32>
    %656 = vector.broadcast %cst_336 : f32 to vector<1x16xf32>
    %657 = arith.select %654, %655, %656 : vector<1x16xi1>, vector<1x16xf32>
    %658 = vector.broadcast %657 : vector<1x16xf32> to vector<8x16xf32>
    %659 = arith.mulf %639, %658 : vector<8x16xf32>
    %c6_337 = arith.constant 6 : index
    %c0_338 = arith.constant 0 : index
    %c0_339 = arith.constant 0 : index
    %660 = vector.load %arg6[%c6_337, %c0_338, %c0_339] : memref<9x8x8xf32, #tpu.memory_space<vmem>>, vector<1x8x8xf32>
    %661 = vector.shape_cast %660 : vector<1x8x8xf32> to vector<8x8xf32>
    %cst_340 = arith.constant dense<0.000000e+00> : vector<8x16xf32>
    %662 = tpu.matmul %661, %659, %cst_340 {dimension_numbers = #tpu.dot_dimension_numbers<[1], [0], [0], [1], [0, 0, 1, 1], [], []>} : vector<8x8xf32>, vector<8x16xf32>, vector<8x16xf32> -> vector<8x16xf32>
    %663 = arith.addf %638, %662 : vector<8x16xf32>
    %c0_341 = arith.constant 0 : index
    %c132 = arith.constant 132 : index
    %664 = vector.load %arg17[%c0_341, %c132] : memref<16x512xf32, #tpu.memory_space<vmem>>, vector<8x16xf32>
    %c1_i32_342 = arith.constant 1 : i32
    %665 = vector.broadcast %c1_i32_342 : i32 to vector<1x16xi32>
    %666 = arith.addi %505, %665 : vector<1x16xi32>
    %c0_i32_343 = arith.constant 0 : i32
    %667 = vector.broadcast %c0_i32_343 : i32 to vector<1x16xi32>
    %668 = arith.addi %507, %667 : vector<1x16xi32>
    %c0_i32_344 = arith.constant 0 : i32
    %669 = vector.broadcast %c0_i32_344 : i32 to vector<1x16xi32>
    %670 = arith.cmpi sge, %666, %669 : vector<1x16xi32>
    %c4_i32_345 = arith.constant 4 : i32
    %671 = vector.broadcast %c4_i32_345 : i32 to vector<1x16xi32>
    %672 = arith.cmpi slt, %666, %671 : vector<1x16xi32>
    %673 = arith.andi %670, %672 : vector<1x16xi1>
    %c0_i32_346 = arith.constant 0 : i32
    %674 = vector.broadcast %c0_i32_346 : i32 to vector<1x16xi32>
    %675 = arith.cmpi sge, %668, %674 : vector<1x16xi32>
    %676 = arith.andi %673, %675 : vector<1x16xi1>
    %c4_i32_347 = arith.constant 4 : i32
    %677 = vector.broadcast %c4_i32_347 : i32 to vector<1x16xi32>
    %678 = arith.cmpi slt, %668, %677 : vector<1x16xi32>
    %679 = arith.andi %676, %678 : vector<1x16xi1>
    %cst_348 = arith.constant 1.000000e+00 : f32
    %cst_349 = arith.constant 0.000000e+00 : f32
    %680 = vector.broadcast %cst_348 : f32 to vector<1x16xf32>
    %681 = vector.broadcast %cst_349 : f32 to vector<1x16xf32>
    %682 = arith.select %679, %680, %681 : vector<1x16xi1>, vector<1x16xf32>
    %683 = vector.broadcast %682 : vector<1x16xf32> to vector<8x16xf32>
    %684 = arith.mulf %664, %683 : vector<8x16xf32>
    %c7_350 = arith.constant 7 : index
    %c0_351 = arith.constant 0 : index
    %c0_352 = arith.constant 0 : index
    %685 = vector.load %arg6[%c7_350, %c0_351, %c0_352] : memref<9x8x8xf32, #tpu.memory_space<vmem>>, vector<1x8x8xf32>
    %686 = vector.shape_cast %685 : vector<1x8x8xf32> to vector<8x8xf32>
    %cst_353 = arith.constant dense<0.000000e+00> : vector<8x16xf32>
    %687 = tpu.matmul %686, %684, %cst_353 {dimension_numbers = #tpu.dot_dimension_numbers<[1], [0], [0], [1], [0, 0, 1, 1], [], []>} : vector<8x8xf32>, vector<8x16xf32>, vector<8x16xf32> -> vector<8x16xf32>
    %688 = arith.addf %663, %687 : vector<8x16xf32>
    %c0_354 = arith.constant 0 : index
    %c133 = arith.constant 133 : index
    %689 = vector.load %arg17[%c0_354, %c133] : memref<16x512xf32, #tpu.memory_space<vmem>>, vector<8x16xf32>
    %c1_i32_355 = arith.constant 1 : i32
    %690 = vector.broadcast %c1_i32_355 : i32 to vector<1x16xi32>
    %691 = arith.addi %505, %690 : vector<1x16xi32>
    %c1_i32_356 = arith.constant 1 : i32
    %692 = vector.broadcast %c1_i32_356 : i32 to vector<1x16xi32>
    %693 = arith.addi %507, %692 : vector<1x16xi32>
    %c0_i32_357 = arith.constant 0 : i32
    %694 = vector.broadcast %c0_i32_357 : i32 to vector<1x16xi32>
    %695 = arith.cmpi sge, %691, %694 : vector<1x16xi32>
    %c4_i32_358 = arith.constant 4 : i32
    %696 = vector.broadcast %c4_i32_358 : i32 to vector<1x16xi32>
    %697 = arith.cmpi slt, %691, %696 : vector<1x16xi32>
    %698 = arith.andi %695, %697 : vector<1x16xi1>
    %c0_i32_359 = arith.constant 0 : i32
    %699 = vector.broadcast %c0_i32_359 : i32 to vector<1x16xi32>
    %700 = arith.cmpi sge, %693, %699 : vector<1x16xi32>
    %701 = arith.andi %698, %700 : vector<1x16xi1>
    %c4_i32_360 = arith.constant 4 : i32
    %702 = vector.broadcast %c4_i32_360 : i32 to vector<1x16xi32>
    %703 = arith.cmpi slt, %693, %702 : vector<1x16xi32>
    %704 = arith.andi %701, %703 : vector<1x16xi1>
    %cst_361 = arith.constant 1.000000e+00 : f32
    %cst_362 = arith.constant 0.000000e+00 : f32
    %705 = vector.broadcast %cst_361 : f32 to vector<1x16xf32>
    %706 = vector.broadcast %cst_362 : f32 to vector<1x16xf32>
    %707 = arith.select %704, %705, %706 : vector<1x16xi1>, vector<1x16xf32>
    %708 = vector.broadcast %707 : vector<1x16xf32> to vector<8x16xf32>
    %709 = arith.mulf %689, %708 : vector<8x16xf32>
    %c8_363 = arith.constant 8 : index
    %c0_364 = arith.constant 0 : index
    %c0_365 = arith.constant 0 : index
    %710 = vector.load %arg6[%c8_363, %c0_364, %c0_365] : memref<9x8x8xf32, #tpu.memory_space<vmem>>, vector<1x8x8xf32>
    %711 = vector.shape_cast %710 : vector<1x8x8xf32> to vector<8x8xf32>
    %cst_366 = arith.constant dense<0.000000e+00> : vector<8x16xf32>
    %712 = tpu.matmul %711, %709, %cst_366 {dimension_numbers = #tpu.dot_dimension_numbers<[1], [0], [0], [1], [0, 0, 1, 1], [], []>} : vector<8x8xf32>, vector<8x16xf32>, vector<8x16xf32> -> vector<8x16xf32>
    %713 = arith.addf %688, %712 : vector<8x16xf32>
    %c0_367 = arith.constant 0 : index
    %c0_368 = arith.constant 0 : index
    %714 = vector.load %arg7[%c0_367, %c0_368] : memref<8x1xf32, #tpu.memory_space<vmem>>, vector<8x1xf32>
    %715 = vector.broadcast %714 : vector<8x1xf32> to vector<8x16xf32>
    %716 = arith.addf %713, %715 : vector<8x16xf32>
    %cst_369 = arith.constant 0.000000e+00 : f32
    %717 = vector.broadcast %cst_369 : f32 to vector<8x16xf32>
    %718 = arith.maximumf %716, %717 : vector<8x16xf32>
    %c0_370 = arith.constant 0 : index
    %c128_371 = arith.constant 128 : index
    %719 = vector.load %arg17[%c0_370, %c128_371] : memref<16x512xf32, #tpu.memory_space<vmem>>, vector<8x16xf32>
    tpu.vector_store %arg17[%c0_370, %c128_371], %718 {strides = array<i32>} : memref<16x512xf32, #tpu.memory_space<vmem>>, vector<8x16xf32>,
    %c0_372 = arith.constant 0 : index
    %c128_373 = arith.constant 128 : index
    %720 = vector.load %arg17[%c0_372, %c128_373] : memref<16x512xf32, #tpu.memory_space<vmem>>, vector<8x16xf32>
    %c0_374 = arith.constant 0 : index
    %c129_375 = arith.constant 129 : index
    %721 = vector.load %arg17[%c0_374, %c129_375] : memref<16x512xf32, #tpu.memory_space<vmem>>, vector<8x16xf32>
    %722 = arith.maximumf %720, %721 : vector<8x16xf32>
    %c0_376 = arith.constant 0 : index
    %c132_377 = arith.constant 132 : index
    %723 = vector.load %arg17[%c0_376, %c132_377] : memref<16x512xf32, #tpu.memory_space<vmem>>, vector<8x16xf32>
    %c0_378 = arith.constant 0 : index
    %c133_379 = arith.constant 133 : index
    %724 = vector.load %arg17[%c0_378, %c133_379] : memref<16x512xf32, #tpu.memory_space<vmem>>, vector<8x16xf32>
    %725 = arith.maximumf %723, %724 : vector<8x16xf32>
    %726 = arith.maximumf %722, %725 : vector<8x16xf32>
    %727 = tpu.iota {dimensions = array<i32: 1>} : vector<1x4xi32>
    %c1_i32_380 = arith.constant 1 : i32
    %728 = vector.broadcast %c1_i32_380 : i32 to vector<1x4xi32>
    %729 = arith.shrsi %727, %728 : vector<1x4xi32>
    %c1_i32_381 = arith.constant 1 : i32
    %730 = vector.broadcast %c1_i32_381 : i32 to vector<1x4xi32>
    %731 = arith.andi %727, %730 : vector<1x4xi32>
    %c2_i32_382 = arith.constant 2 : i32
    %732 = vector.broadcast %c2_i32_382 : i32 to vector<1x4xi32>
    %733 = arith.muli %732, %729 : vector<1x4xi32>
    %c4_i32_383 = arith.constant 4 : i32
    %734 = vector.broadcast %c4_i32_383 : i32 to vector<1x4xi32>
    %735 = arith.muli %733, %734 : vector<1x4xi32>
    %c2_i32_384 = arith.constant 2 : i32
    %736 = vector.broadcast %c2_i32_384 : i32 to vector<1x4xi32>
    %737 = arith.muli %736, %731 : vector<1x4xi32>
    %738 = arith.addi %735, %737 : vector<1x4xi32>
    %739 = tpu.iota {dimensions = array<i32: 0>} : vector<16x4xi32>
    %740 = vector.broadcast %738 : vector<1x4xi32> to vector<16x4xi32>
    %741 = arith.cmpi eq, %739, %740 : vector<16x4xi32>
    %cst_385 = arith.constant 1.000000e+00 : f32
    %cst_386 = arith.constant 0.000000e+00 : f32
    %742 = vector.broadcast %cst_385 : f32 to vector<16x4xf32>
    %743 = vector.broadcast %cst_386 : f32 to vector<16x4xf32>
    %744 = arith.select %741, %742, %743 : vector<16x4xi1>, vector<16x4xf32>
    %cst_387 = arith.constant dense<0.000000e+00> : vector<8x4xf32>
    %745 = tpu.matmul %726, %744, %cst_387 {dimension_numbers = #tpu.dot_dimension_numbers<[1], [0], [0], [1], [0, 0, 1, 1], [], []>} : vector<8x16xf32>, vector<16x4xf32>, vector<8x4xf32> -> vector<8x4xf32>
    %c0_388 = arith.constant 0 : index
    %c128_389 = arith.constant 128 : index
    %746 = vector.load %arg17[%c0_388, %c128_389] : memref<16x512xf32, #tpu.memory_space<vmem>>, vector<8x4xf32>
    tpu.vector_store %arg17[%c0_388, %c128_389], %745 {strides = array<i32>} : memref<16x512xf32, #tpu.memory_space<vmem>>, vector<8x4xf32>,
    %747 = tpu.iota {dimensions = array<i32: 1>} : vector<1x4xi32>
    %c1_i32_390 = arith.constant 1 : i32
    %748 = vector.broadcast %c1_i32_390 : i32 to vector<1x4xi32>
    %749 = arith.shrsi %747, %748 : vector<1x4xi32>
    %c1_i32_391 = arith.constant 1 : i32
    %750 = vector.broadcast %c1_i32_391 : i32 to vector<1x4xi32>
    %751 = arith.andi %747, %750 : vector<1x4xi32>
    %cst_392 = arith.constant 0.000000e+00 : f32
    %752 = vector.broadcast %cst_392 : f32 to vector<8x4xf32>
    %c0_393 = arith.constant 0 : index
    %c125_394 = arith.constant 125 : index
    %753 = vector.load %arg17[%c0_393, %c125_394] : memref<16x512xf32, #tpu.memory_space<vmem>>, vector<8x4xf32>
    %c-1_i32_395 = arith.constant -1 : i32
    %754 = vector.broadcast %c-1_i32_395 : i32 to vector<1x4xi32>
    %755 = arith.addi %749, %754 : vector<1x4xi32>
    %c-1_i32_396 = arith.constant -1 : i32
    %756 = vector.broadcast %c-1_i32_396 : i32 to vector<1x4xi32>
    %757 = arith.addi %751, %756 : vector<1x4xi32>
    %c0_i32_397 = arith.constant 0 : i32
    %758 = vector.broadcast %c0_i32_397 : i32 to vector<1x4xi32>
    %759 = arith.cmpi sge, %755, %758 : vector<1x4xi32>
    %c2_i32_398 = arith.constant 2 : i32
    %760 = vector.broadcast %c2_i32_398 : i32 to vector<1x4xi32>
    %761 = arith.cmpi slt, %755, %760 : vector<1x4xi32>
    %762 = arith.andi %759, %761 : vector<1x4xi1>
    %c0_i32_399 = arith.constant 0 : i32
    %763 = vector.broadcast %c0_i32_399 : i32 to vector<1x4xi32>
    %764 = arith.cmpi sge, %757, %763 : vector<1x4xi32>
    %765 = arith.andi %762, %764 : vector<1x4xi1>
    %c2_i32_400 = arith.constant 2 : i32
    %766 = vector.broadcast %c2_i32_400 : i32 to vector<1x4xi32>
    %767 = arith.cmpi slt, %757, %766 : vector<1x4xi32>
    %768 = arith.andi %765, %767 : vector<1x4xi1>
    %cst_401 = arith.constant 1.000000e+00 : f32
    %cst_402 = arith.constant 0.000000e+00 : f32
    %769 = vector.broadcast %cst_401 : f32 to vector<1x4xf32>
    %770 = vector.broadcast %cst_402 : f32 to vector<1x4xf32>
    %771 = arith.select %768, %769, %770 : vector<1x4xi1>, vector<1x4xf32>
    %772 = vector.broadcast %771 : vector<1x4xf32> to vector<8x4xf32>
    %773 = arith.mulf %753, %772 : vector<8x4xf32>
    %c0_403 = arith.constant 0 : index
    %c0_404 = arith.constant 0 : index
    %c0_405 = arith.constant 0 : index
    %774 = vector.load %arg8[%c0_403, %c0_404, %c0_405] : memref<9x8x8xf32, #tpu.memory_space<vmem>>, vector<1x8x8xf32>
    %775 = vector.shape_cast %774 : vector<1x8x8xf32> to vector<8x8xf32>
    %cst_406 = arith.constant dense<0.000000e+00> : vector<8x4xf32>
    %776 = tpu.matmul %775, %773, %cst_406 {dimension_numbers = #tpu.dot_dimension_numbers<[1], [0], [0], [1], [0, 0, 1, 1], [], []>} : vector<8x8xf32>, vector<8x4xf32>, vector<8x4xf32> -> vector<8x4xf32>
    %777 = arith.addf %752, %776 : vector<8x4xf32>
    %c0_407 = arith.constant 0 : index
    %c126 = arith.constant 126 : index
    %778 = vector.load %arg17[%c0_407, %c126] : memref<16x512xf32, #tpu.memory_space<vmem>>, vector<8x4xf32>
    %c-1_i32_408 = arith.constant -1 : i32
    %779 = vector.broadcast %c-1_i32_408 : i32 to vector<1x4xi32>
    %780 = arith.addi %749, %779 : vector<1x4xi32>
    %c0_i32_409 = arith.constant 0 : i32
    %781 = vector.broadcast %c0_i32_409 : i32 to vector<1x4xi32>
    %782 = arith.addi %751, %781 : vector<1x4xi32>
    %c0_i32_410 = arith.constant 0 : i32
    %783 = vector.broadcast %c0_i32_410 : i32 to vector<1x4xi32>
    %784 = arith.cmpi sge, %780, %783 : vector<1x4xi32>
    %c2_i32_411 = arith.constant 2 : i32
    %785 = vector.broadcast %c2_i32_411 : i32 to vector<1x4xi32>
    %786 = arith.cmpi slt, %780, %785 : vector<1x4xi32>
    %787 = arith.andi %784, %786 : vector<1x4xi1>
    %c0_i32_412 = arith.constant 0 : i32
    %788 = vector.broadcast %c0_i32_412 : i32 to vector<1x4xi32>
    %789 = arith.cmpi sge, %782, %788 : vector<1x4xi32>
    %790 = arith.andi %787, %789 : vector<1x4xi1>
    %c2_i32_413 = arith.constant 2 : i32
    %791 = vector.broadcast %c2_i32_413 : i32 to vector<1x4xi32>
    %792 = arith.cmpi slt, %782, %791 : vector<1x4xi32>
    %793 = arith.andi %790, %792 : vector<1x4xi1>
    %cst_414 = arith.constant 1.000000e+00 : f32
    %cst_415 = arith.constant 0.000000e+00 : f32
    %794 = vector.broadcast %cst_414 : f32 to vector<1x4xf32>
    %795 = vector.broadcast %cst_415 : f32 to vector<1x4xf32>
    %796 = arith.select %793, %794, %795 : vector<1x4xi1>, vector<1x4xf32>
    %797 = vector.broadcast %796 : vector<1x4xf32> to vector<8x4xf32>
    %798 = arith.mulf %778, %797 : vector<8x4xf32>
    %c1_416 = arith.constant 1 : index
    %c0_417 = arith.constant 0 : index
    %c0_418 = arith.constant 0 : index
    %799 = vector.load %arg8[%c1_416, %c0_417, %c0_418] : memref<9x8x8xf32, #tpu.memory_space<vmem>>, vector<1x8x8xf32>
    %800 = vector.shape_cast %799 : vector<1x8x8xf32> to vector<8x8xf32>
    %cst_419 = arith.constant dense<0.000000e+00> : vector<8x4xf32>
    %801 = tpu.matmul %800, %798, %cst_419 {dimension_numbers = #tpu.dot_dimension_numbers<[1], [0], [0], [1], [0, 0, 1, 1], [], []>} : vector<8x8xf32>, vector<8x4xf32>, vector<8x4xf32> -> vector<8x4xf32>
    %802 = arith.addf %777, %801 : vector<8x4xf32>
    %c0_420 = arith.constant 0 : index
    %c127_421 = arith.constant 127 : index
    %803 = vector.load %arg17[%c0_420, %c127_421] : memref<16x512xf32, #tpu.memory_space<vmem>>, vector<8x4xf32>
    %c-1_i32_422 = arith.constant -1 : i32
    %804 = vector.broadcast %c-1_i32_422 : i32 to vector<1x4xi32>
    %805 = arith.addi %749, %804 : vector<1x4xi32>
    %c1_i32_423 = arith.constant 1 : i32
    %806 = vector.broadcast %c1_i32_423 : i32 to vector<1x4xi32>
    %807 = arith.addi %751, %806 : vector<1x4xi32>
    %c0_i32_424 = arith.constant 0 : i32
    %808 = vector.broadcast %c0_i32_424 : i32 to vector<1x4xi32>
    %809 = arith.cmpi sge, %805, %808 : vector<1x4xi32>
    %c2_i32_425 = arith.constant 2 : i32
    %810 = vector.broadcast %c2_i32_425 : i32 to vector<1x4xi32>
    %811 = arith.cmpi slt, %805, %810 : vector<1x4xi32>
    %812 = arith.andi %809, %811 : vector<1x4xi1>
    %c0_i32_426 = arith.constant 0 : i32
    %813 = vector.broadcast %c0_i32_426 : i32 to vector<1x4xi32>
    %814 = arith.cmpi sge, %807, %813 : vector<1x4xi32>
    %815 = arith.andi %812, %814 : vector<1x4xi1>
    %c2_i32_427 = arith.constant 2 : i32
    %816 = vector.broadcast %c2_i32_427 : i32 to vector<1x4xi32>
    %817 = arith.cmpi slt, %807, %816 : vector<1x4xi32>
    %818 = arith.andi %815, %817 : vector<1x4xi1>
    %cst_428 = arith.constant 1.000000e+00 : f32
    %cst_429 = arith.constant 0.000000e+00 : f32
    %819 = vector.broadcast %cst_428 : f32 to vector<1x4xf32>
    %820 = vector.broadcast %cst_429 : f32 to vector<1x4xf32>
    %821 = arith.select %818, %819, %820 : vector<1x4xi1>, vector<1x4xf32>
    %822 = vector.broadcast %821 : vector<1x4xf32> to vector<8x4xf32>
    %823 = arith.mulf %803, %822 : vector<8x4xf32>
    %c2_430 = arith.constant 2 : index
    %c0_431 = arith.constant 0 : index
    %c0_432 = arith.constant 0 : index
    %824 = vector.load %arg8[%c2_430, %c0_431, %c0_432] : memref<9x8x8xf32, #tpu.memory_space<vmem>>, vector<1x8x8xf32>
    %825 = vector.shape_cast %824 : vector<1x8x8xf32> to vector<8x8xf32>
    %cst_433 = arith.constant dense<0.000000e+00> : vector<8x4xf32>
    %826 = tpu.matmul %825, %823, %cst_433 {dimension_numbers = #tpu.dot_dimension_numbers<[1], [0], [0], [1], [0, 0, 1, 1], [], []>} : vector<8x8xf32>, vector<8x4xf32>, vector<8x4xf32> -> vector<8x4xf32>
    %827 = arith.addf %802, %826 : vector<8x4xf32>
    %c0_434 = arith.constant 0 : index
    %c127_435 = arith.constant 127 : index
    %828 = vector.load %arg17[%c0_434, %c127_435] : memref<16x512xf32, #tpu.memory_space<vmem>>, vector<8x4xf32>
    %c0_i32_436 = arith.constant 0 : i32
    %829 = vector.broadcast %c0_i32_436 : i32 to vector<1x4xi32>
    %830 = arith.addi %749, %829 : vector<1x4xi32>
    %c-1_i32_437 = arith.constant -1 : i32
    %831 = vector.broadcast %c-1_i32_437 : i32 to vector<1x4xi32>
    %832 = arith.addi %751, %831 : vector<1x4xi32>
    %c0_i32_438 = arith.constant 0 : i32
    %833 = vector.broadcast %c0_i32_438 : i32 to vector<1x4xi32>
    %834 = arith.cmpi sge, %830, %833 : vector<1x4xi32>
    %c2_i32_439 = arith.constant 2 : i32
    %835 = vector.broadcast %c2_i32_439 : i32 to vector<1x4xi32>
    %836 = arith.cmpi slt, %830, %835 : vector<1x4xi32>
    %837 = arith.andi %834, %836 : vector<1x4xi1>
    %c0_i32_440 = arith.constant 0 : i32
    %838 = vector.broadcast %c0_i32_440 : i32 to vector<1x4xi32>
    %839 = arith.cmpi sge, %832, %838 : vector<1x4xi32>
    %840 = arith.andi %837, %839 : vector<1x4xi1>
    %c2_i32_441 = arith.constant 2 : i32
    %841 = vector.broadcast %c2_i32_441 : i32 to vector<1x4xi32>
    %842 = arith.cmpi slt, %832, %841 : vector<1x4xi32>
    %843 = arith.andi %840, %842 : vector<1x4xi1>
    %cst_442 = arith.constant 1.000000e+00 : f32
    %cst_443 = arith.constant 0.000000e+00 : f32
    %844 = vector.broadcast %cst_442 : f32 to vector<1x4xf32>
    %845 = vector.broadcast %cst_443 : f32 to vector<1x4xf32>
    %846 = arith.select %843, %844, %845 : vector<1x4xi1>, vector<1x4xf32>
    %847 = vector.broadcast %846 : vector<1x4xf32> to vector<8x4xf32>
    %848 = arith.mulf %828, %847 : vector<8x4xf32>
    %c3_444 = arith.constant 3 : index
    %c0_445 = arith.constant 0 : index
    %c0_446 = arith.constant 0 : index
    %849 = vector.load %arg8[%c3_444, %c0_445, %c0_446] : memref<9x8x8xf32, #tpu.memory_space<vmem>>, vector<1x8x8xf32>
    %850 = vector.shape_cast %849 : vector<1x8x8xf32> to vector<8x8xf32>
    %cst_447 = arith.constant dense<0.000000e+00> : vector<8x4xf32>
    %851 = tpu.matmul %850, %848, %cst_447 {dimension_numbers = #tpu.dot_dimension_numbers<[1], [0], [0], [1], [0, 0, 1, 1], [], []>} : vector<8x8xf32>, vector<8x4xf32>, vector<8x4xf32> -> vector<8x4xf32>
    %852 = arith.addf %827, %851 : vector<8x4xf32>
    %c0_448 = arith.constant 0 : index
    %c128_449 = arith.constant 128 : index
    %853 = vector.load %arg17[%c0_448, %c128_449] : memref<16x512xf32, #tpu.memory_space<vmem>>, vector<8x4xf32>
    %c4_450 = arith.constant 4 : index
    %c0_451 = arith.constant 0 : index
    %c0_452 = arith.constant 0 : index
    %854 = vector.load %arg8[%c4_450, %c0_451, %c0_452] : memref<9x8x8xf32, #tpu.memory_space<vmem>>, vector<1x8x8xf32>
    %855 = vector.shape_cast %854 : vector<1x8x8xf32> to vector<8x8xf32>
    %cst_453 = arith.constant dense<0.000000e+00> : vector<8x4xf32>
    %856 = tpu.matmul %855, %853, %cst_453 {dimension_numbers = #tpu.dot_dimension_numbers<[1], [0], [0], [1], [0, 0, 1, 1], [], []>} : vector<8x8xf32>, vector<8x4xf32>, vector<8x4xf32> -> vector<8x4xf32>
    %857 = arith.addf %852, %856 : vector<8x4xf32>
    %c0_454 = arith.constant 0 : index
    %c129_455 = arith.constant 129 : index
    %858 = vector.load %arg17[%c0_454, %c129_455] : memref<16x512xf32, #tpu.memory_space<vmem>>, vector<8x4xf32>
    %c0_i32_456 = arith.constant 0 : i32
    %859 = vector.broadcast %c0_i32_456 : i32 to vector<1x4xi32>
    %860 = arith.addi %749, %859 : vector<1x4xi32>
    %c1_i32_457 = arith.constant 1 : i32
    %861 = vector.broadcast %c1_i32_457 : i32 to vector<1x4xi32>
    %862 = arith.addi %751, %861 : vector<1x4xi32>
    %c0_i32_458 = arith.constant 0 : i32
    %863 = vector.broadcast %c0_i32_458 : i32 to vector<1x4xi32>
    %864 = arith.cmpi sge, %860, %863 : vector<1x4xi32>
    %c2_i32_459 = arith.constant 2 : i32
    %865 = vector.broadcast %c2_i32_459 : i32 to vector<1x4xi32>
    %866 = arith.cmpi slt, %860, %865 : vector<1x4xi32>
    %867 = arith.andi %864, %866 : vector<1x4xi1>
    %c0_i32_460 = arith.constant 0 : i32
    %868 = vector.broadcast %c0_i32_460 : i32 to vector<1x4xi32>
    %869 = arith.cmpi sge, %862, %868 : vector<1x4xi32>
    %870 = arith.andi %867, %869 : vector<1x4xi1>
    %c2_i32_461 = arith.constant 2 : i32
    %871 = vector.broadcast %c2_i32_461 : i32 to vector<1x4xi32>
    %872 = arith.cmpi slt, %862, %871 : vector<1x4xi32>
    %873 = arith.andi %870, %872 : vector<1x4xi1>
    %cst_462 = arith.constant 1.000000e+00 : f32
    %cst_463 = arith.constant 0.000000e+00 : f32
    %874 = vector.broadcast %cst_462 : f32 to vector<1x4xf32>
    %875 = vector.broadcast %cst_463 : f32 to vector<1x4xf32>
    %876 = arith.select %873, %874, %875 : vector<1x4xi1>, vector<1x4xf32>
    %877 = vector.broadcast %876 : vector<1x4xf32> to vector<8x4xf32>
    %878 = arith.mulf %858, %877 : vector<8x4xf32>
    %c5_464 = arith.constant 5 : index
    %c0_465 = arith.constant 0 : index
    %c0_466 = arith.constant 0 : index
    %879 = vector.load %arg8[%c5_464, %c0_465, %c0_466] : memref<9x8x8xf32, #tpu.memory_space<vmem>>, vector<1x8x8xf32>
    %880 = vector.shape_cast %879 : vector<1x8x8xf32> to vector<8x8xf32>
    %cst_467 = arith.constant dense<0.000000e+00> : vector<8x4xf32>
    %881 = tpu.matmul %880, %878, %cst_467 {dimension_numbers = #tpu.dot_dimension_numbers<[1], [0], [0], [1], [0, 0, 1, 1], [], []>} : vector<8x8xf32>, vector<8x4xf32>, vector<8x4xf32> -> vector<8x4xf32>
    %882 = arith.addf %857, %881 : vector<8x4xf32>
    %c0_468 = arith.constant 0 : index
    %c129_469 = arith.constant 129 : index
    %883 = vector.load %arg17[%c0_468, %c129_469] : memref<16x512xf32, #tpu.memory_space<vmem>>, vector<8x4xf32>
    %c1_i32_470 = arith.constant 1 : i32
    %884 = vector.broadcast %c1_i32_470 : i32 to vector<1x4xi32>
    %885 = arith.addi %749, %884 : vector<1x4xi32>
    %c-1_i32_471 = arith.constant -1 : i32
    %886 = vector.broadcast %c-1_i32_471 : i32 to vector<1x4xi32>
    %887 = arith.addi %751, %886 : vector<1x4xi32>
    %c0_i32_472 = arith.constant 0 : i32
    %888 = vector.broadcast %c0_i32_472 : i32 to vector<1x4xi32>
    %889 = arith.cmpi sge, %885, %888 : vector<1x4xi32>
    %c2_i32_473 = arith.constant 2 : i32
    %890 = vector.broadcast %c2_i32_473 : i32 to vector<1x4xi32>
    %891 = arith.cmpi slt, %885, %890 : vector<1x4xi32>
    %892 = arith.andi %889, %891 : vector<1x4xi1>
    %c0_i32_474 = arith.constant 0 : i32
    %893 = vector.broadcast %c0_i32_474 : i32 to vector<1x4xi32>
    %894 = arith.cmpi sge, %887, %893 : vector<1x4xi32>
    %895 = arith.andi %892, %894 : vector<1x4xi1>
    %c2_i32_475 = arith.constant 2 : i32
    %896 = vector.broadcast %c2_i32_475 : i32 to vector<1x4xi32>
    %897 = arith.cmpi slt, %887, %896 : vector<1x4xi32>
    %898 = arith.andi %895, %897 : vector<1x4xi1>
    %cst_476 = arith.constant 1.000000e+00 : f32
    %cst_477 = arith.constant 0.000000e+00 : f32
    %899 = vector.broadcast %cst_476 : f32 to vector<1x4xf32>
    %900 = vector.broadcast %cst_477 : f32 to vector<1x4xf32>
    %901 = arith.select %898, %899, %900 : vector<1x4xi1>, vector<1x4xf32>
    %902 = vector.broadcast %901 : vector<1x4xf32> to vector<8x4xf32>
    %903 = arith.mulf %883, %902 : vector<8x4xf32>
    %c6_478 = arith.constant 6 : index
    %c0_479 = arith.constant 0 : index
    %c0_480 = arith.constant 0 : index
    %904 = vector.load %arg8[%c6_478, %c0_479, %c0_480] : memref<9x8x8xf32, #tpu.memory_space<vmem>>, vector<1x8x8xf32>
    %905 = vector.shape_cast %904 : vector<1x8x8xf32> to vector<8x8xf32>
    %cst_481 = arith.constant dense<0.000000e+00> : vector<8x4xf32>
    %906 = tpu.matmul %905, %903, %cst_481 {dimension_numbers = #tpu.dot_dimension_numbers<[1], [0], [0], [1], [0, 0, 1, 1], [], []>} : vector<8x8xf32>, vector<8x4xf32>, vector<8x4xf32> -> vector<8x4xf32>
    %907 = arith.addf %882, %906 : vector<8x4xf32>
    %c0_482 = arith.constant 0 : index
    %c130 = arith.constant 130 : index
    %908 = vector.load %arg17[%c0_482, %c130] : memref<16x512xf32, #tpu.memory_space<vmem>>, vector<8x4xf32>
    %c1_i32_483 = arith.constant 1 : i32
    %909 = vector.broadcast %c1_i32_483 : i32 to vector<1x4xi32>
    %910 = arith.addi %749, %909 : vector<1x4xi32>
    %c0_i32_484 = arith.constant 0 : i32
    %911 = vector.broadcast %c0_i32_484 : i32 to vector<1x4xi32>
    %912 = arith.addi %751, %911 : vector<1x4xi32>
    %c0_i32_485 = arith.constant 0 : i32
    %913 = vector.broadcast %c0_i32_485 : i32 to vector<1x4xi32>
    %914 = arith.cmpi sge, %910, %913 : vector<1x4xi32>
    %c2_i32_486 = arith.constant 2 : i32
    %915 = vector.broadcast %c2_i32_486 : i32 to vector<1x4xi32>
    %916 = arith.cmpi slt, %910, %915 : vector<1x4xi32>
    %917 = arith.andi %914, %916 : vector<1x4xi1>
    %c0_i32_487 = arith.constant 0 : i32
    %918 = vector.broadcast %c0_i32_487 : i32 to vector<1x4xi32>
    %919 = arith.cmpi sge, %912, %918 : vector<1x4xi32>
    %920 = arith.andi %917, %919 : vector<1x4xi1>
    %c2_i32_488 = arith.constant 2 : i32
    %921 = vector.broadcast %c2_i32_488 : i32 to vector<1x4xi32>
    %922 = arith.cmpi slt, %912, %921 : vector<1x4xi32>
    %923 = arith.andi %920, %922 : vector<1x4xi1>
    %cst_489 = arith.constant 1.000000e+00 : f32
    %cst_490 = arith.constant 0.000000e+00 : f32
    %924 = vector.broadcast %cst_489 : f32 to vector<1x4xf32>
    %925 = vector.broadcast %cst_490 : f32 to vector<1x4xf32>
    %926 = arith.select %923, %924, %925 : vector<1x4xi1>, vector<1x4xf32>
    %927 = vector.broadcast %926 : vector<1x4xf32> to vector<8x4xf32>
    %928 = arith.mulf %908, %927 : vector<8x4xf32>
    %c7_491 = arith.constant 7 : index
    %c0_492 = arith.constant 0 : index
    %c0_493 = arith.constant 0 : index
    %929 = vector.load %arg8[%c7_491, %c0_492, %c0_493] : memref<9x8x8xf32, #tpu.memory_space<vmem>>, vector<1x8x8xf32>
    %930 = vector.shape_cast %929 : vector<1x8x8xf32> to vector<8x8xf32>
    %cst_494 = arith.constant dense<0.000000e+00> : vector<8x4xf32>
    %931 = tpu.matmul %930, %928, %cst_494 {dimension_numbers = #tpu.dot_dimension_numbers<[1], [0], [0], [1], [0, 0, 1, 1], [], []>} : vector<8x8xf32>, vector<8x4xf32>, vector<8x4xf32> -> vector<8x4xf32>
    %932 = arith.addf %907, %931 : vector<8x4xf32>
    %c0_495 = arith.constant 0 : index
    %c131_496 = arith.constant 131 : index
    %933 = vector.load %arg17[%c0_495, %c131_496] : memref<16x512xf32, #tpu.memory_space<vmem>>, vector<8x4xf32>
    %c1_i32_497 = arith.constant 1 : i32
    %934 = vector.broadcast %c1_i32_497 : i32 to vector<1x4xi32>
    %935 = arith.addi %749, %934 : vector<1x4xi32>
    %c1_i32_498 = arith.constant 1 : i32
    %936 = vector.broadcast %c1_i32_498 : i32 to vector<1x4xi32>
    %937 = arith.addi %751, %936 : vector<1x4xi32>
    %c0_i32_499 = arith.constant 0 : i32
    %938 = vector.broadcast %c0_i32_499 : i32 to vector<1x4xi32>
    %939 = arith.cmpi sge, %935, %938 : vector<1x4xi32>
    %c2_i32_500 = arith.constant 2 : i32
    %940 = vector.broadcast %c2_i32_500 : i32 to vector<1x4xi32>
    %941 = arith.cmpi slt, %935, %940 : vector<1x4xi32>
    %942 = arith.andi %939, %941 : vector<1x4xi1>
    %c0_i32_501 = arith.constant 0 : i32
    %943 = vector.broadcast %c0_i32_501 : i32 to vector<1x4xi32>
    %944 = arith.cmpi sge, %937, %943 : vector<1x4xi32>
    %945 = arith.andi %942, %944 : vector<1x4xi1>
    %c2_i32_502 = arith.constant 2 : i32
    %946 = vector.broadcast %c2_i32_502 : i32 to vector<1x4xi32>
    %947 = arith.cmpi slt, %937, %946 : vector<1x4xi32>
    %948 = arith.andi %945, %947 : vector<1x4xi1>
    %cst_503 = arith.constant 1.000000e+00 : f32
    %cst_504 = arith.constant 0.000000e+00 : f32
    %949 = vector.broadcast %cst_503 : f32 to vector<1x4xf32>
    %950 = vector.broadcast %cst_504 : f32 to vector<1x4xf32>
    %951 = arith.select %948, %949, %950 : vector<1x4xi1>, vector<1x4xf32>
    %952 = vector.broadcast %951 : vector<1x4xf32> to vector<8x4xf32>
    %953 = arith.mulf %933, %952 : vector<8x4xf32>
    %c8_505 = arith.constant 8 : index
    %c0_506 = arith.constant 0 : index
    %c0_507 = arith.constant 0 : index
    %954 = vector.load %arg8[%c8_505, %c0_506, %c0_507] : memref<9x8x8xf32, #tpu.memory_space<vmem>>, vector<1x8x8xf32>
    %955 = vector.shape_cast %954 : vector<1x8x8xf32> to vector<8x8xf32>
    %cst_508 = arith.constant dense<0.000000e+00> : vector<8x4xf32>
    %956 = tpu.matmul %955, %953, %cst_508 {dimension_numbers = #tpu.dot_dimension_numbers<[1], [0], [0], [1], [0, 0, 1, 1], [], []>} : vector<8x8xf32>, vector<8x4xf32>, vector<8x4xf32> -> vector<8x4xf32>
    %957 = arith.addf %932, %956 : vector<8x4xf32>
    %c0_509 = arith.constant 0 : index
    %c0_510 = arith.constant 0 : index
    %958 = vector.load %arg9[%c0_509, %c0_510] : memref<8x1xf32, #tpu.memory_space<vmem>>, vector<8x1xf32>
    %959 = vector.broadcast %958 : vector<8x1xf32> to vector<8x4xf32>
    %960 = arith.addf %957, %959 : vector<8x4xf32>
    %cst_511 = arith.constant 0.000000e+00 : f32
    %961 = vector.broadcast %cst_511 : f32 to vector<8x4xf32>
    %962 = arith.maximumf %960, %961 : vector<8x4xf32>
    %963 = tpu.iota {dimensions = array<i32: 1>} : vector<1x64xi32>
    %c3_i32_512 = arith.constant 3 : i32
    %964 = vector.broadcast %c3_i32_512 : i32 to vector<1x64xi32>
    %965 = arith.shrsi %963, %964 : vector<1x64xi32>
    %c7_i32_513 = arith.constant 7 : i32
    %966 = vector.broadcast %c7_i32_513 : i32 to vector<1x64xi32>
    %967 = arith.andi %963, %966 : vector<1x64xi32>
    %c2_i32_514 = arith.constant 2 : i32
    %968 = vector.broadcast %c2_i32_514 : i32 to vector<1x64xi32>
    %969 = arith.muli %965, %968 : vector<1x64xi32>
    %c3_i32_515 = arith.constant 3 : i32
    %970 = vector.broadcast %c3_i32_515 : i32 to vector<1x64xi32>
    %971 = arith.shrsi %969, %970 : vector<1x64xi32>
    %c2_i32_516 = arith.constant 2 : i32
    %972 = vector.broadcast %c2_i32_516 : i32 to vector<1x64xi32>
    %973 = arith.muli %967, %972 : vector<1x64xi32>
    %c3_i32_517 = arith.constant 3 : i32
    %974 = vector.broadcast %c3_i32_517 : i32 to vector<1x64xi32>
    %975 = arith.shrsi %973, %974 : vector<1x64xi32>
    %c2_i32_518 = arith.constant 2 : i32
    %976 = vector.broadcast %c2_i32_518 : i32 to vector<1x64xi32>
    %977 = arith.muli %971, %976 : vector<1x64xi32>
    %978 = arith.addi %977, %975 : vector<1x64xi32>
    %979 = tpu.iota {dimensions = array<i32: 0>} : vector<4x64xi32>
    %980 = vector.broadcast %978 : vector<1x64xi32> to vector<4x64xi32>
    %981 = arith.cmpi eq, %979, %980 : vector<4x64xi32>
    %cst_519 = arith.constant 1.000000e+00 : f32
    %cst_520 = arith.constant 0.000000e+00 : f32
    %982 = vector.broadcast %cst_519 : f32 to vector<4x64xf32>
    %983 = vector.broadcast %cst_520 : f32 to vector<4x64xf32>
    %984 = arith.select %981, %982, %983 : vector<4x64xi1>, vector<4x64xf32>
    %cst_521 = arith.constant dense<0.000000e+00> : vector<8x64xf32>
    %985 = tpu.matmul %962, %984, %cst_521 {dimension_numbers = #tpu.dot_dimension_numbers<[1], [0], [0], [1], [0, 0, 1, 1], [], []>} : vector<8x4xf32>, vector<4x64xf32>, vector<8x64xf32> -> vector<8x64xf32>
    %c0_522 = arith.constant 0 : index
    %c128_523 = arith.constant 128 : index
    %986 = vector.load %arg17[%c0_522, %c128_523] : memref<16x512xf32, #tpu.memory_space<vmem>>, vector<8x64xf32>
    tpu.vector_store %arg17[%c0_522, %c128_523], %985 {strides = array<i32>} : memref<16x512xf32, #tpu.memory_space<vmem>>, vector<8x64xf32>,
    %987 = tpu.iota {dimensions = array<i32: 1>} : vector<1x64xi32>
    %c3_i32_524 = arith.constant 3 : i32
    %988 = vector.broadcast %c3_i32_524 : i32 to vector<1x64xi32>
    %989 = arith.shrsi %987, %988 : vector<1x64xi32>
    %c7_i32_525 = arith.constant 7 : i32
    %990 = vector.broadcast %c7_i32_525 : i32 to vector<1x64xi32>
    %991 = arith.andi %987, %990 : vector<1x64xi32>
    %cst_526 = arith.constant 0.000000e+00 : f32
    %992 = vector.broadcast %cst_526 : f32 to vector<8x64xf32>
    %c0_527 = arith.constant 0 : index
    %c119_528 = arith.constant 119 : index
    %993 = vector.load %arg17[%c0_527, %c119_528] : memref<16x512xf32, #tpu.memory_space<vmem>>, vector<8x64xf32>
    %c-1_i32_529 = arith.constant -1 : i32
    %994 = vector.broadcast %c-1_i32_529 : i32 to vector<1x64xi32>
    %995 = arith.addi %989, %994 : vector<1x64xi32>
    %c-1_i32_530 = arith.constant -1 : i32
    %996 = vector.broadcast %c-1_i32_530 : i32 to vector<1x64xi32>
    %997 = arith.addi %991, %996 : vector<1x64xi32>
    %c0_i32_531 = arith.constant 0 : i32
    %998 = vector.broadcast %c0_i32_531 : i32 to vector<1x64xi32>
    %999 = arith.cmpi sge, %995, %998 : vector<1x64xi32>
    %c8_i32_532 = arith.constant 8 : i32
    %1000 = vector.broadcast %c8_i32_532 : i32 to vector<1x64xi32>
    %1001 = arith.cmpi slt, %995, %1000 : vector<1x64xi32>
    %1002 = arith.andi %999, %1001 : vector<1x64xi1>
    %c0_i32_533 = arith.constant 0 : i32
    %1003 = vector.broadcast %c0_i32_533 : i32 to vector<1x64xi32>
    %1004 = arith.cmpi sge, %997, %1003 : vector<1x64xi32>
    %1005 = arith.andi %1002, %1004 : vector<1x64xi1>
    %c8_i32_534 = arith.constant 8 : i32
    %1006 = vector.broadcast %c8_i32_534 : i32 to vector<1x64xi32>
    %1007 = arith.cmpi slt, %997, %1006 : vector<1x64xi32>
    %1008 = arith.andi %1005, %1007 : vector<1x64xi1>
    %cst_535 = arith.constant 1.000000e+00 : f32
    %cst_536 = arith.constant 0.000000e+00 : f32
    %1009 = vector.broadcast %cst_535 : f32 to vector<1x64xf32>
    %1010 = vector.broadcast %cst_536 : f32 to vector<1x64xf32>
    %1011 = arith.select %1008, %1009, %1010 : vector<1x64xi1>, vector<1x64xf32>
    %1012 = vector.broadcast %1011 : vector<1x64xf32> to vector<8x64xf32>
    %1013 = arith.mulf %993, %1012 : vector<8x64xf32>
    %c0_537 = arith.constant 0 : index
    %c0_538 = arith.constant 0 : index
    %c0_539 = arith.constant 0 : index
    %1014 = vector.load %arg10[%c0_537, %c0_538, %c0_539] : memref<9x8x8xf32, #tpu.memory_space<vmem>>, vector<1x8x8xf32>
    %1015 = vector.shape_cast %1014 : vector<1x8x8xf32> to vector<8x8xf32>
    %cst_540 = arith.constant dense<0.000000e+00> : vector<8x64xf32>
    %1016 = tpu.matmul %1015, %1013, %cst_540 {dimension_numbers = #tpu.dot_dimension_numbers<[1], [0], [0], [1], [0, 0, 1, 1], [], []>} : vector<8x8xf32>, vector<8x64xf32>, vector<8x64xf32> -> vector<8x64xf32>
    %1017 = arith.addf %992, %1016 : vector<8x64xf32>
    %c0_541 = arith.constant 0 : index
    %c120_542 = arith.constant 120 : index
    %1018 = vector.load %arg17[%c0_541, %c120_542] : memref<16x512xf32, #tpu.memory_space<vmem>>, vector<8x64xf32>
    %c-1_i32_543 = arith.constant -1 : i32
    %1019 = vector.broadcast %c-1_i32_543 : i32 to vector<1x64xi32>
    %1020 = arith.addi %989, %1019 : vector<1x64xi32>
    %c0_i32_544 = arith.constant 0 : i32
    %1021 = vector.broadcast %c0_i32_544 : i32 to vector<1x64xi32>
    %1022 = arith.addi %991, %1021 : vector<1x64xi32>
    %c0_i32_545 = arith.constant 0 : i32
    %1023 = vector.broadcast %c0_i32_545 : i32 to vector<1x64xi32>
    %1024 = arith.cmpi sge, %1020, %1023 : vector<1x64xi32>
    %c8_i32_546 = arith.constant 8 : i32
    %1025 = vector.broadcast %c8_i32_546 : i32 to vector<1x64xi32>
    %1026 = arith.cmpi slt, %1020, %1025 : vector<1x64xi32>
    %1027 = arith.andi %1024, %1026 : vector<1x64xi1>
    %c0_i32_547 = arith.constant 0 : i32
    %1028 = vector.broadcast %c0_i32_547 : i32 to vector<1x64xi32>
    %1029 = arith.cmpi sge, %1022, %1028 : vector<1x64xi32>
    %1030 = arith.andi %1027, %1029 : vector<1x64xi1>
    %c8_i32_548 = arith.constant 8 : i32
    %1031 = vector.broadcast %c8_i32_548 : i32 to vector<1x64xi32>
    %1032 = arith.cmpi slt, %1022, %1031 : vector<1x64xi32>
    %1033 = arith.andi %1030, %1032 : vector<1x64xi1>
    %cst_549 = arith.constant 1.000000e+00 : f32
    %cst_550 = arith.constant 0.000000e+00 : f32
    %1034 = vector.broadcast %cst_549 : f32 to vector<1x64xf32>
    %1035 = vector.broadcast %cst_550 : f32 to vector<1x64xf32>
    %1036 = arith.select %1033, %1034, %1035 : vector<1x64xi1>, vector<1x64xf32>
    %1037 = vector.broadcast %1036 : vector<1x64xf32> to vector<8x64xf32>
    %1038 = arith.mulf %1018, %1037 : vector<8x64xf32>
    %c1_551 = arith.constant 1 : index
    %c0_552 = arith.constant 0 : index
    %c0_553 = arith.constant 0 : index
    %1039 = vector.load %arg10[%c1_551, %c0_552, %c0_553] : memref<9x8x8xf32, #tpu.memory_space<vmem>>, vector<1x8x8xf32>
    %1040 = vector.shape_cast %1039 : vector<1x8x8xf32> to vector<8x8xf32>
    %cst_554 = arith.constant dense<0.000000e+00> : vector<8x64xf32>
    %1041 = tpu.matmul %1040, %1038, %cst_554 {dimension_numbers = #tpu.dot_dimension_numbers<[1], [0], [0], [1], [0, 0, 1, 1], [], []>} : vector<8x8xf32>, vector<8x64xf32>, vector<8x64xf32> -> vector<8x64xf32>
    %1042 = arith.addf %1017, %1041 : vector<8x64xf32>
    %c0_555 = arith.constant 0 : index
    %c121_556 = arith.constant 121 : index
    %1043 = vector.load %arg17[%c0_555, %c121_556] : memref<16x512xf32, #tpu.memory_space<vmem>>, vector<8x64xf32>
    %c-1_i32_557 = arith.constant -1 : i32
    %1044 = vector.broadcast %c-1_i32_557 : i32 to vector<1x64xi32>
    %1045 = arith.addi %989, %1044 : vector<1x64xi32>
    %c1_i32_558 = arith.constant 1 : i32
    %1046 = vector.broadcast %c1_i32_558 : i32 to vector<1x64xi32>
    %1047 = arith.addi %991, %1046 : vector<1x64xi32>
    %c0_i32_559 = arith.constant 0 : i32
    %1048 = vector.broadcast %c0_i32_559 : i32 to vector<1x64xi32>
    %1049 = arith.cmpi sge, %1045, %1048 : vector<1x64xi32>
    %c8_i32_560 = arith.constant 8 : i32
    %1050 = vector.broadcast %c8_i32_560 : i32 to vector<1x64xi32>
    %1051 = arith.cmpi slt, %1045, %1050 : vector<1x64xi32>
    %1052 = arith.andi %1049, %1051 : vector<1x64xi1>
    %c0_i32_561 = arith.constant 0 : i32
    %1053 = vector.broadcast %c0_i32_561 : i32 to vector<1x64xi32>
    %1054 = arith.cmpi sge, %1047, %1053 : vector<1x64xi32>
    %1055 = arith.andi %1052, %1054 : vector<1x64xi1>
    %c8_i32_562 = arith.constant 8 : i32
    %1056 = vector.broadcast %c8_i32_562 : i32 to vector<1x64xi32>
    %1057 = arith.cmpi slt, %1047, %1056 : vector<1x64xi32>
    %1058 = arith.andi %1055, %1057 : vector<1x64xi1>
    %cst_563 = arith.constant 1.000000e+00 : f32
    %cst_564 = arith.constant 0.000000e+00 : f32
    %1059 = vector.broadcast %cst_563 : f32 to vector<1x64xf32>
    %1060 = vector.broadcast %cst_564 : f32 to vector<1x64xf32>
    %1061 = arith.select %1058, %1059, %1060 : vector<1x64xi1>, vector<1x64xf32>
    %1062 = vector.broadcast %1061 : vector<1x64xf32> to vector<8x64xf32>
    %1063 = arith.mulf %1043, %1062 : vector<8x64xf32>
    %c2_565 = arith.constant 2 : index
    %c0_566 = arith.constant 0 : index
    %c0_567 = arith.constant 0 : index
    %1064 = vector.load %arg10[%c2_565, %c0_566, %c0_567] : memref<9x8x8xf32, #tpu.memory_space<vmem>>, vector<1x8x8xf32>
    %1065 = vector.shape_cast %1064 : vector<1x8x8xf32> to vector<8x8xf32>
    %cst_568 = arith.constant dense<0.000000e+00> : vector<8x64xf32>
    %1066 = tpu.matmul %1065, %1063, %cst_568 {dimension_numbers = #tpu.dot_dimension_numbers<[1], [0], [0], [1], [0, 0, 1, 1], [], []>} : vector<8x8xf32>, vector<8x64xf32>, vector<8x64xf32> -> vector<8x64xf32>
    %1067 = arith.addf %1042, %1066 : vector<8x64xf32>
    %c0_569 = arith.constant 0 : index
    %c127_570 = arith.constant 127 : index
    %1068 = vector.load %arg17[%c0_569, %c127_570] : memref<16x512xf32, #tpu.memory_space<vmem>>, vector<8x64xf32>
    %c0_i32_571 = arith.constant 0 : i32
    %1069 = vector.broadcast %c0_i32_571 : i32 to vector<1x64xi32>
    %1070 = arith.addi %989, %1069 : vector<1x64xi32>
    %c-1_i32_572 = arith.constant -1 : i32
    %1071 = vector.broadcast %c-1_i32_572 : i32 to vector<1x64xi32>
    %1072 = arith.addi %991, %1071 : vector<1x64xi32>
    %c0_i32_573 = arith.constant 0 : i32
    %1073 = vector.broadcast %c0_i32_573 : i32 to vector<1x64xi32>
    %1074 = arith.cmpi sge, %1070, %1073 : vector<1x64xi32>
    %c8_i32_574 = arith.constant 8 : i32
    %1075 = vector.broadcast %c8_i32_574 : i32 to vector<1x64xi32>
    %1076 = arith.cmpi slt, %1070, %1075 : vector<1x64xi32>
    %1077 = arith.andi %1074, %1076 : vector<1x64xi1>
    %c0_i32_575 = arith.constant 0 : i32
    %1078 = vector.broadcast %c0_i32_575 : i32 to vector<1x64xi32>
    %1079 = arith.cmpi sge, %1072, %1078 : vector<1x64xi32>
    %1080 = arith.andi %1077, %1079 : vector<1x64xi1>
    %c8_i32_576 = arith.constant 8 : i32
    %1081 = vector.broadcast %c8_i32_576 : i32 to vector<1x64xi32>
    %1082 = arith.cmpi slt, %1072, %1081 : vector<1x64xi32>
    %1083 = arith.andi %1080, %1082 : vector<1x64xi1>
    %cst_577 = arith.constant 1.000000e+00 : f32
    %cst_578 = arith.constant 0.000000e+00 : f32
    %1084 = vector.broadcast %cst_577 : f32 to vector<1x64xf32>
    %1085 = vector.broadcast %cst_578 : f32 to vector<1x64xf32>
    %1086 = arith.select %1083, %1084, %1085 : vector<1x64xi1>, vector<1x64xf32>
    %1087 = vector.broadcast %1086 : vector<1x64xf32> to vector<8x64xf32>
    %1088 = arith.mulf %1068, %1087 : vector<8x64xf32>
    %c3_579 = arith.constant 3 : index
    %c0_580 = arith.constant 0 : index
    %c0_581 = arith.constant 0 : index
    %1089 = vector.load %arg10[%c3_579, %c0_580, %c0_581] : memref<9x8x8xf32, #tpu.memory_space<vmem>>, vector<1x8x8xf32>
    %1090 = vector.shape_cast %1089 : vector<1x8x8xf32> to vector<8x8xf32>
    %cst_582 = arith.constant dense<0.000000e+00> : vector<8x64xf32>
    %1091 = tpu.matmul %1090, %1088, %cst_582 {dimension_numbers = #tpu.dot_dimension_numbers<[1], [0], [0], [1], [0, 0, 1, 1], [], []>} : vector<8x8xf32>, vector<8x64xf32>, vector<8x64xf32> -> vector<8x64xf32>
    %1092 = arith.addf %1067, %1091 : vector<8x64xf32>
    %c0_583 = arith.constant 0 : index
    %c128_584 = arith.constant 128 : index
    %1093 = vector.load %arg17[%c0_583, %c128_584] : memref<16x512xf32, #tpu.memory_space<vmem>>, vector<8x64xf32>
    %c4_585 = arith.constant 4 : index
    %c0_586 = arith.constant 0 : index
    %c0_587 = arith.constant 0 : index
    %1094 = vector.load %arg10[%c4_585, %c0_586, %c0_587] : memref<9x8x8xf32, #tpu.memory_space<vmem>>, vector<1x8x8xf32>
    %1095 = vector.shape_cast %1094 : vector<1x8x8xf32> to vector<8x8xf32>
    %cst_588 = arith.constant dense<0.000000e+00> : vector<8x64xf32>
    %1096 = tpu.matmul %1095, %1093, %cst_588 {dimension_numbers = #tpu.dot_dimension_numbers<[1], [0], [0], [1], [0, 0, 1, 1], [], []>} : vector<8x8xf32>, vector<8x64xf32>, vector<8x64xf32> -> vector<8x64xf32>
    %1097 = arith.addf %1092, %1096 : vector<8x64xf32>
    %c0_589 = arith.constant 0 : index
    %c129_590 = arith.constant 129 : index
    %1098 = vector.load %arg17[%c0_589, %c129_590] : memref<16x512xf32, #tpu.memory_space<vmem>>, vector<8x64xf32>
    %c0_i32_591 = arith.constant 0 : i32
    %1099 = vector.broadcast %c0_i32_591 : i32 to vector<1x64xi32>
    %1100 = arith.addi %989, %1099 : vector<1x64xi32>
    %c1_i32_592 = arith.constant 1 : i32
    %1101 = vector.broadcast %c1_i32_592 : i32 to vector<1x64xi32>
    %1102 = arith.addi %991, %1101 : vector<1x64xi32>
    %c0_i32_593 = arith.constant 0 : i32
    %1103 = vector.broadcast %c0_i32_593 : i32 to vector<1x64xi32>
    %1104 = arith.cmpi sge, %1100, %1103 : vector<1x64xi32>
    %c8_i32_594 = arith.constant 8 : i32
    %1105 = vector.broadcast %c8_i32_594 : i32 to vector<1x64xi32>
    %1106 = arith.cmpi slt, %1100, %1105 : vector<1x64xi32>
    %1107 = arith.andi %1104, %1106 : vector<1x64xi1>
    %c0_i32_595 = arith.constant 0 : i32
    %1108 = vector.broadcast %c0_i32_595 : i32 to vector<1x64xi32>
    %1109 = arith.cmpi sge, %1102, %1108 : vector<1x64xi32>
    %1110 = arith.andi %1107, %1109 : vector<1x64xi1>
    %c8_i32_596 = arith.constant 8 : i32
    %1111 = vector.broadcast %c8_i32_596 : i32 to vector<1x64xi32>
    %1112 = arith.cmpi slt, %1102, %1111 : vector<1x64xi32>
    %1113 = arith.andi %1110, %1112 : vector<1x64xi1>
    %cst_597 = arith.constant 1.000000e+00 : f32
    %cst_598 = arith.constant 0.000000e+00 : f32
    %1114 = vector.broadcast %cst_597 : f32 to vector<1x64xf32>
    %1115 = vector.broadcast %cst_598 : f32 to vector<1x64xf32>
    %1116 = arith.select %1113, %1114, %1115 : vector<1x64xi1>, vector<1x64xf32>
    %1117 = vector.broadcast %1116 : vector<1x64xf32> to vector<8x64xf32>
    %1118 = arith.mulf %1098, %1117 : vector<8x64xf32>
    %c5_599 = arith.constant 5 : index
    %c0_600 = arith.constant 0 : index
    %c0_601 = arith.constant 0 : index
    %1119 = vector.load %arg10[%c5_599, %c0_600, %c0_601] : memref<9x8x8xf32, #tpu.memory_space<vmem>>, vector<1x8x8xf32>
    %1120 = vector.shape_cast %1119 : vector<1x8x8xf32> to vector<8x8xf32>
    %cst_602 = arith.constant dense<0.000000e+00> : vector<8x64xf32>
    %1121 = tpu.matmul %1120, %1118, %cst_602 {dimension_numbers = #tpu.dot_dimension_numbers<[1], [0], [0], [1], [0, 0, 1, 1], [], []>} : vector<8x8xf32>, vector<8x64xf32>, vector<8x64xf32> -> vector<8x64xf32>
    %1122 = arith.addf %1097, %1121 : vector<8x64xf32>
    %c0_603 = arith.constant 0 : index
    %c135_604 = arith.constant 135 : index
    %1123 = vector.load %arg17[%c0_603, %c135_604] : memref<16x512xf32, #tpu.memory_space<vmem>>, vector<8x64xf32>
    %c1_i32_605 = arith.constant 1 : i32
    %1124 = vector.broadcast %c1_i32_605 : i32 to vector<1x64xi32>
    %1125 = arith.addi %989, %1124 : vector<1x64xi32>
    %c-1_i32_606 = arith.constant -1 : i32
    %1126 = vector.broadcast %c-1_i32_606 : i32 to vector<1x64xi32>
    %1127 = arith.addi %991, %1126 : vector<1x64xi32>
    %c0_i32_607 = arith.constant 0 : i32
    %1128 = vector.broadcast %c0_i32_607 : i32 to vector<1x64xi32>
    %1129 = arith.cmpi sge, %1125, %1128 : vector<1x64xi32>
    %c8_i32_608 = arith.constant 8 : i32
    %1130 = vector.broadcast %c8_i32_608 : i32 to vector<1x64xi32>
    %1131 = arith.cmpi slt, %1125, %1130 : vector<1x64xi32>
    %1132 = arith.andi %1129, %1131 : vector<1x64xi1>
    %c0_i32_609 = arith.constant 0 : i32
    %1133 = vector.broadcast %c0_i32_609 : i32 to vector<1x64xi32>
    %1134 = arith.cmpi sge, %1127, %1133 : vector<1x64xi32>
    %1135 = arith.andi %1132, %1134 : vector<1x64xi1>
    %c8_i32_610 = arith.constant 8 : i32
    %1136 = vector.broadcast %c8_i32_610 : i32 to vector<1x64xi32>
    %1137 = arith.cmpi slt, %1127, %1136 : vector<1x64xi32>
    %1138 = arith.andi %1135, %1137 : vector<1x64xi1>
    %cst_611 = arith.constant 1.000000e+00 : f32
    %cst_612 = arith.constant 0.000000e+00 : f32
    %1139 = vector.broadcast %cst_611 : f32 to vector<1x64xf32>
    %1140 = vector.broadcast %cst_612 : f32 to vector<1x64xf32>
    %1141 = arith.select %1138, %1139, %1140 : vector<1x64xi1>, vector<1x64xf32>
    %1142 = vector.broadcast %1141 : vector<1x64xf32> to vector<8x64xf32>
    %1143 = arith.mulf %1123, %1142 : vector<8x64xf32>
    %c6_613 = arith.constant 6 : index
    %c0_614 = arith.constant 0 : index
    %c0_615 = arith.constant 0 : index
    %1144 = vector.load %arg10[%c6_613, %c0_614, %c0_615] : memref<9x8x8xf32, #tpu.memory_space<vmem>>, vector<1x8x8xf32>
    %1145 = vector.shape_cast %1144 : vector<1x8x8xf32> to vector<8x8xf32>
    %cst_616 = arith.constant dense<0.000000e+00> : vector<8x64xf32>
    %1146 = tpu.matmul %1145, %1143, %cst_616 {dimension_numbers = #tpu.dot_dimension_numbers<[1], [0], [0], [1], [0, 0, 1, 1], [], []>} : vector<8x8xf32>, vector<8x64xf32>, vector<8x64xf32> -> vector<8x64xf32>
    %1147 = arith.addf %1122, %1146 : vector<8x64xf32>
    %c0_617 = arith.constant 0 : index
    %c136_618 = arith.constant 136 : index
    %1148 = vector.load %arg17[%c0_617, %c136_618] : memref<16x512xf32, #tpu.memory_space<vmem>>, vector<8x64xf32>
    %c1_i32_619 = arith.constant 1 : i32
    %1149 = vector.broadcast %c1_i32_619 : i32 to vector<1x64xi32>
    %1150 = arith.addi %989, %1149 : vector<1x64xi32>
    %c0_i32_620 = arith.constant 0 : i32
    %1151 = vector.broadcast %c0_i32_620 : i32 to vector<1x64xi32>
    %1152 = arith.addi %991, %1151 : vector<1x64xi32>
    %c0_i32_621 = arith.constant 0 : i32
    %1153 = vector.broadcast %c0_i32_621 : i32 to vector<1x64xi32>
    %1154 = arith.cmpi sge, %1150, %1153 : vector<1x64xi32>
    %c8_i32_622 = arith.constant 8 : i32
    %1155 = vector.broadcast %c8_i32_622 : i32 to vector<1x64xi32>
    %1156 = arith.cmpi slt, %1150, %1155 : vector<1x64xi32>
    %1157 = arith.andi %1154, %1156 : vector<1x64xi1>
    %c0_i32_623 = arith.constant 0 : i32
    %1158 = vector.broadcast %c0_i32_623 : i32 to vector<1x64xi32>
    %1159 = arith.cmpi sge, %1152, %1158 : vector<1x64xi32>
    %1160 = arith.andi %1157, %1159 : vector<1x64xi1>
    %c8_i32_624 = arith.constant 8 : i32
    %1161 = vector.broadcast %c8_i32_624 : i32 to vector<1x64xi32>
    %1162 = arith.cmpi slt, %1152, %1161 : vector<1x64xi32>
    %1163 = arith.andi %1160, %1162 : vector<1x64xi1>
    %cst_625 = arith.constant 1.000000e+00 : f32
    %cst_626 = arith.constant 0.000000e+00 : f32
    %1164 = vector.broadcast %cst_625 : f32 to vector<1x64xf32>
    %1165 = vector.broadcast %cst_626 : f32 to vector<1x64xf32>
    %1166 = arith.select %1163, %1164, %1165 : vector<1x64xi1>, vector<1x64xf32>
    %1167 = vector.broadcast %1166 : vector<1x64xf32> to vector<8x64xf32>
    %1168 = arith.mulf %1148, %1167 : vector<8x64xf32>
    %c7_627 = arith.constant 7 : index
    %c0_628 = arith.constant 0 : index
    %c0_629 = arith.constant 0 : index
    %1169 = vector.load %arg10[%c7_627, %c0_628, %c0_629] : memref<9x8x8xf32, #tpu.memory_space<vmem>>, vector<1x8x8xf32>
    %1170 = vector.shape_cast %1169 : vector<1x8x8xf32> to vector<8x8xf32>
    %cst_630 = arith.constant dense<0.000000e+00> : vector<8x64xf32>
    %1171 = tpu.matmul %1170, %1168, %cst_630 {dimension_numbers = #tpu.dot_dimension_numbers<[1], [0], [0], [1], [0, 0, 1, 1], [], []>} : vector<8x8xf32>, vector<8x64xf32>, vector<8x64xf32> -> vector<8x64xf32>
    %1172 = arith.addf %1147, %1171 : vector<8x64xf32>
    %c0_631 = arith.constant 0 : index
    %c137_632 = arith.constant 137 : index
    %1173 = vector.load %arg17[%c0_631, %c137_632] : memref<16x512xf32, #tpu.memory_space<vmem>>, vector<8x64xf32>
    %c1_i32_633 = arith.constant 1 : i32
    %1174 = vector.broadcast %c1_i32_633 : i32 to vector<1x64xi32>
    %1175 = arith.addi %989, %1174 : vector<1x64xi32>
    %c1_i32_634 = arith.constant 1 : i32
    %1176 = vector.broadcast %c1_i32_634 : i32 to vector<1x64xi32>
    %1177 = arith.addi %991, %1176 : vector<1x64xi32>
    %c0_i32_635 = arith.constant 0 : i32
    %1178 = vector.broadcast %c0_i32_635 : i32 to vector<1x64xi32>
    %1179 = arith.cmpi sge, %1175, %1178 : vector<1x64xi32>
    %c8_i32_636 = arith.constant 8 : i32
    %1180 = vector.broadcast %c8_i32_636 : i32 to vector<1x64xi32>
    %1181 = arith.cmpi slt, %1175, %1180 : vector<1x64xi32>
    %1182 = arith.andi %1179, %1181 : vector<1x64xi1>
    %c0_i32_637 = arith.constant 0 : i32
    %1183 = vector.broadcast %c0_i32_637 : i32 to vector<1x64xi32>
    %1184 = arith.cmpi sge, %1177, %1183 : vector<1x64xi32>
    %1185 = arith.andi %1182, %1184 : vector<1x64xi1>
    %c8_i32_638 = arith.constant 8 : i32
    %1186 = vector.broadcast %c8_i32_638 : i32 to vector<1x64xi32>
    %1187 = arith.cmpi slt, %1177, %1186 : vector<1x64xi32>
    %1188 = arith.andi %1185, %1187 : vector<1x64xi1>
    %cst_639 = arith.constant 1.000000e+00 : f32
    %cst_640 = arith.constant 0.000000e+00 : f32
    %1189 = vector.broadcast %cst_639 : f32 to vector<1x64xf32>
    %1190 = vector.broadcast %cst_640 : f32 to vector<1x64xf32>
    %1191 = arith.select %1188, %1189, %1190 : vector<1x64xi1>, vector<1x64xf32>
    %1192 = vector.broadcast %1191 : vector<1x64xf32> to vector<8x64xf32>
    %1193 = arith.mulf %1173, %1192 : vector<8x64xf32>
    %c8_641 = arith.constant 8 : index
    %c0_642 = arith.constant 0 : index
    %c0_643 = arith.constant 0 : index
    %1194 = vector.load %arg10[%c8_641, %c0_642, %c0_643] : memref<9x8x8xf32, #tpu.memory_space<vmem>>, vector<1x8x8xf32>
    %1195 = vector.shape_cast %1194 : vector<1x8x8xf32> to vector<8x8xf32>
    %cst_644 = arith.constant dense<0.000000e+00> : vector<8x64xf32>
    %1196 = tpu.matmul %1195, %1193, %cst_644 {dimension_numbers = #tpu.dot_dimension_numbers<[1], [0], [0], [1], [0, 0, 1, 1], [], []>} : vector<8x8xf32>, vector<8x64xf32>, vector<8x64xf32> -> vector<8x64xf32>
    %1197 = arith.addf %1172, %1196 : vector<8x64xf32>
    %c0_645 = arith.constant 0 : index
    %c0_646 = arith.constant 0 : index
    %1198 = vector.load %arg11[%c0_645, %c0_646] : memref<8x1xf32, #tpu.memory_space<vmem>>, vector<8x1xf32>
    %1199 = vector.broadcast %1198 : vector<8x1xf32> to vector<8x64xf32>
    %1200 = arith.addf %1197, %1199 : vector<8x64xf32>
    %cst_647 = arith.constant 0.000000e+00 : f32
    %1201 = vector.broadcast %cst_647 : f32 to vector<8x64xf32>
    %1202 = arith.maximumf %1200, %1201 : vector<8x64xf32>
    %1203 = tpu.iota {dimensions = array<i32: 1>} : vector<1x256xi32>
    %c4_i32_648 = arith.constant 4 : i32
    %1204 = vector.broadcast %c4_i32_648 : i32 to vector<1x256xi32>
    %1205 = arith.shrsi %1203, %1204 : vector<1x256xi32>
    %c15_i32_649 = arith.constant 15 : i32
    %1206 = vector.broadcast %c15_i32_649 : i32 to vector<1x256xi32>
    %1207 = arith.andi %1203, %1206 : vector<1x256xi32>
    %c8_i32_650 = arith.constant 8 : i32
    %1208 = vector.broadcast %c8_i32_650 : i32 to vector<1x256xi32>
    %1209 = arith.muli %1205, %1208 : vector<1x256xi32>
    %c4_i32_651 = arith.constant 4 : i32
    %1210 = vector.broadcast %c4_i32_651 : i32 to vector<1x256xi32>
    %1211 = arith.shrsi %1209, %1210 : vector<1x256xi32>
    %c8_i32_652 = arith.constant 8 : i32
    %1212 = vector.broadcast %c8_i32_652 : i32 to vector<1x256xi32>
    %1213 = arith.muli %1207, %1212 : vector<1x256xi32>
    %c4_i32_653 = arith.constant 4 : i32
    %1214 = vector.broadcast %c4_i32_653 : i32 to vector<1x256xi32>
    %1215 = arith.shrsi %1213, %1214 : vector<1x256xi32>
    %c8_i32_654 = arith.constant 8 : i32
    %1216 = vector.broadcast %c8_i32_654 : i32 to vector<1x256xi32>
    %1217 = arith.muli %1211, %1216 : vector<1x256xi32>
    %1218 = arith.addi %1217, %1215 : vector<1x256xi32>
    %1219 = tpu.iota {dimensions = array<i32: 0>} : vector<64x256xi32>
    %1220 = vector.broadcast %1218 : vector<1x256xi32> to vector<64x256xi32>
    %1221 = arith.cmpi eq, %1219, %1220 : vector<64x256xi32>
    %cst_655 = arith.constant 1.000000e+00 : f32
    %cst_656 = arith.constant 0.000000e+00 : f32
    %1222 = vector.broadcast %cst_655 : f32 to vector<64x256xf32>
    %1223 = vector.broadcast %cst_656 : f32 to vector<64x256xf32>
    %1224 = arith.select %1221, %1222, %1223 : vector<64x256xi1>, vector<64x256xf32>
    %cst_657 = arith.constant dense<0.000000e+00> : vector<8x256xf32>
    %1225 = tpu.matmul %1202, %1224, %cst_657 {dimension_numbers = #tpu.dot_dimension_numbers<[1], [0], [0], [1], [0, 0, 1, 1], [], []>} : vector<8x64xf32>, vector<64x256xf32>, vector<8x256xf32> -> vector<8x256xf32>
    %c0_658 = arith.constant 0 : index
    %c128_659 = arith.constant 128 : index
    %1226 = vector.load %arg17[%c0_658, %c128_659] : memref<16x512xf32, #tpu.memory_space<vmem>>, vector<8x256xf32>
    tpu.vector_store %arg17[%c0_658, %c128_659], %1225 {strides = array<i32>} : memref<16x512xf32, #tpu.memory_space<vmem>>, vector<8x256xf32>,
    %1227 = tpu.iota {dimensions = array<i32: 1>} : vector<1x256xi32>
    %c4_i32_660 = arith.constant 4 : i32
    %1228 = vector.broadcast %c4_i32_660 : i32 to vector<1x256xi32>
    %1229 = arith.shrsi %1227, %1228 : vector<1x256xi32>
    %c15_i32_661 = arith.constant 15 : i32
    %1230 = vector.broadcast %c15_i32_661 : i32 to vector<1x256xi32>
    %1231 = arith.andi %1227, %1230 : vector<1x256xi32>
    %cst_662 = arith.constant 0.000000e+00 : f32
    %1232 = vector.broadcast %cst_662 : f32 to vector<16x256xf32>
    %c0_663 = arith.constant 0 : index
    %c128_664 = arith.constant 128 : index
    %1233 = vector.load %arg17[%c0_663, %c128_664] : memref<16x512xf32, #tpu.memory_space<vmem>>, vector<8x256xf32>
    %c0_665 = arith.constant 0 : index
    %c0_666 = arith.constant 0 : index
    %c0_667 = arith.constant 0 : index
    %1234 = vector.load %arg12[%c0_665, %c0_666, %c0_667] : memref<9x16x8xf32, #tpu.memory_space<vmem>>, vector<1x16x8xf32>
    %1235 = vector.shape_cast %1234 : vector<1x16x8xf32> to vector<16x8xf32>
    %cst_668 = arith.constant dense<0.000000e+00> : vector<16x256xf32>
    %1236 = tpu.matmul %1235, %1233, %cst_668 {dimension_numbers = #tpu.dot_dimension_numbers<[1], [0], [0], [1], [0, 0, 1, 1], [], []>} : vector<16x8xf32>, vector<8x256xf32>, vector<16x256xf32> -> vector<16x256xf32>
    %1237 = arith.addf %1232, %1236 : vector<16x256xf32>
    %c0_669 = arith.constant 0 : index
    %c129_670 = arith.constant 129 : index
    %1238 = vector.load %arg17[%c0_669, %c129_670] : memref<16x512xf32, #tpu.memory_space<vmem>>, vector<8x256xf32>
    %c0_i32_671 = arith.constant 0 : i32
    %1239 = vector.broadcast %c0_i32_671 : i32 to vector<1x256xi32>
    %1240 = arith.addi %1229, %1239 : vector<1x256xi32>
    %c1_i32_672 = arith.constant 1 : i32
    %1241 = vector.broadcast %c1_i32_672 : i32 to vector<1x256xi32>
    %1242 = arith.addi %1231, %1241 : vector<1x256xi32>
    %c0_i32_673 = arith.constant 0 : i32
    %1243 = vector.broadcast %c0_i32_673 : i32 to vector<1x256xi32>
    %1244 = arith.cmpi sge, %1240, %1243 : vector<1x256xi32>
    %c16_i32_674 = arith.constant 16 : i32
    %1245 = vector.broadcast %c16_i32_674 : i32 to vector<1x256xi32>
    %1246 = arith.cmpi slt, %1240, %1245 : vector<1x256xi32>
    %1247 = arith.andi %1244, %1246 : vector<1x256xi1>
    %c0_i32_675 = arith.constant 0 : i32
    %1248 = vector.broadcast %c0_i32_675 : i32 to vector<1x256xi32>
    %1249 = arith.cmpi sge, %1242, %1248 : vector<1x256xi32>
    %1250 = arith.andi %1247, %1249 : vector<1x256xi1>
    %c16_i32_676 = arith.constant 16 : i32
    %1251 = vector.broadcast %c16_i32_676 : i32 to vector<1x256xi32>
    %1252 = arith.cmpi slt, %1242, %1251 : vector<1x256xi32>
    %1253 = arith.andi %1250, %1252 : vector<1x256xi1>
    %cst_677 = arith.constant 1.000000e+00 : f32
    %cst_678 = arith.constant 0.000000e+00 : f32
    %1254 = vector.broadcast %cst_677 : f32 to vector<1x256xf32>
    %1255 = vector.broadcast %cst_678 : f32 to vector<1x256xf32>
    %1256 = arith.select %1253, %1254, %1255 : vector<1x256xi1>, vector<1x256xf32>
    %1257 = vector.broadcast %1256 : vector<1x256xf32> to vector<8x256xf32>
    %1258 = arith.mulf %1238, %1257 : vector<8x256xf32>
    %c1_679 = arith.constant 1 : index
    %c0_680 = arith.constant 0 : index
    %c0_681 = arith.constant 0 : index
    %1259 = vector.load %arg12[%c1_679, %c0_680, %c0_681] : memref<9x16x8xf32, #tpu.memory_space<vmem>>, vector<1x16x8xf32>
    %1260 = vector.shape_cast %1259 : vector<1x16x8xf32> to vector<16x8xf32>
    %cst_682 = arith.constant dense<0.000000e+00> : vector<16x256xf32>
    %1261 = tpu.matmul %1260, %1258, %cst_682 {dimension_numbers = #tpu.dot_dimension_numbers<[1], [0], [0], [1], [0, 0, 1, 1], [], []>} : vector<16x8xf32>, vector<8x256xf32>, vector<16x256xf32> -> vector<16x256xf32>
    %1262 = arith.addf %1237, %1261 : vector<16x256xf32>
    %c0_683 = arith.constant 0 : index
    %c130_684 = arith.constant 130 : index
    %1263 = vector.load %arg17[%c0_683, %c130_684] : memref<16x512xf32, #tpu.memory_space<vmem>>, vector<8x256xf32>
    %c0_i32_685 = arith.constant 0 : i32
    %1264 = vector.broadcast %c0_i32_685 : i32 to vector<1x256xi32>
    %1265 = arith.addi %1229, %1264 : vector<1x256xi32>
    %c2_i32_686 = arith.constant 2 : i32
    %1266 = vector.broadcast %c2_i32_686 : i32 to vector<1x256xi32>
    %1267 = arith.addi %1231, %1266 : vector<1x256xi32>
    %c0_i32_687 = arith.constant 0 : i32
    %1268 = vector.broadcast %c0_i32_687 : i32 to vector<1x256xi32>
    %1269 = arith.cmpi sge, %1265, %1268 : vector<1x256xi32>
    %c16_i32_688 = arith.constant 16 : i32
    %1270 = vector.broadcast %c16_i32_688 : i32 to vector<1x256xi32>
    %1271 = arith.cmpi slt, %1265, %1270 : vector<1x256xi32>
    %1272 = arith.andi %1269, %1271 : vector<1x256xi1>
    %c0_i32_689 = arith.constant 0 : i32
    %1273 = vector.broadcast %c0_i32_689 : i32 to vector<1x256xi32>
    %1274 = arith.cmpi sge, %1267, %1273 : vector<1x256xi32>
    %1275 = arith.andi %1272, %1274 : vector<1x256xi1>
    %c16_i32_690 = arith.constant 16 : i32
    %1276 = vector.broadcast %c16_i32_690 : i32 to vector<1x256xi32>
    %1277 = arith.cmpi slt, %1267, %1276 : vector<1x256xi32>
    %1278 = arith.andi %1275, %1277 : vector<1x256xi1>
    %cst_691 = arith.constant 1.000000e+00 : f32
    %cst_692 = arith.constant 0.000000e+00 : f32
    %1279 = vector.broadcast %cst_691 : f32 to vector<1x256xf32>
    %1280 = vector.broadcast %cst_692 : f32 to vector<1x256xf32>
    %1281 = arith.select %1278, %1279, %1280 : vector<1x256xi1>, vector<1x256xf32>
    %1282 = vector.broadcast %1281 : vector<1x256xf32> to vector<8x256xf32>
    %1283 = arith.mulf %1263, %1282 : vector<8x256xf32>
    %c2_693 = arith.constant 2 : index
    %c0_694 = arith.constant 0 : index
    %c0_695 = arith.constant 0 : index
    %1284 = vector.load %arg12[%c2_693, %c0_694, %c0_695] : memref<9x16x8xf32, #tpu.memory_space<vmem>>, vector<1x16x8xf32>
    %1285 = vector.shape_cast %1284 : vector<1x16x8xf32> to vector<16x8xf32>
    %cst_696 = arith.constant dense<0.000000e+00> : vector<16x256xf32>
    %1286 = tpu.matmul %1285, %1283, %cst_696 {dimension_numbers = #tpu.dot_dimension_numbers<[1], [0], [0], [1], [0, 0, 1, 1], [], []>} : vector<16x8xf32>, vector<8x256xf32>, vector<16x256xf32> -> vector<16x256xf32>
    %1287 = arith.addf %1262, %1286 : vector<16x256xf32>
    %c0_697 = arith.constant 0 : index
    %c144_698 = arith.constant 144 : index
    %1288 = vector.load %arg17[%c0_697, %c144_698] : memref<16x512xf32, #tpu.memory_space<vmem>>, vector<8x256xf32>
    %c1_i32_699 = arith.constant 1 : i32
    %1289 = vector.broadcast %c1_i32_699 : i32 to vector<1x256xi32>
    %1290 = arith.addi %1229, %1289 : vector<1x256xi32>
    %c0_i32_700 = arith.constant 0 : i32
    %1291 = vector.broadcast %c0_i32_700 : i32 to vector<1x256xi32>
    %1292 = arith.addi %1231, %1291 : vector<1x256xi32>
    %c0_i32_701 = arith.constant 0 : i32
    %1293 = vector.broadcast %c0_i32_701 : i32 to vector<1x256xi32>
    %1294 = arith.cmpi sge, %1290, %1293 : vector<1x256xi32>
    %c16_i32_702 = arith.constant 16 : i32
    %1295 = vector.broadcast %c16_i32_702 : i32 to vector<1x256xi32>
    %1296 = arith.cmpi slt, %1290, %1295 : vector<1x256xi32>
    %1297 = arith.andi %1294, %1296 : vector<1x256xi1>
    %c0_i32_703 = arith.constant 0 : i32
    %1298 = vector.broadcast %c0_i32_703 : i32 to vector<1x256xi32>
    %1299 = arith.cmpi sge, %1292, %1298 : vector<1x256xi32>
    %1300 = arith.andi %1297, %1299 : vector<1x256xi1>
    %c16_i32_704 = arith.constant 16 : i32
    %1301 = vector.broadcast %c16_i32_704 : i32 to vector<1x256xi32>
    %1302 = arith.cmpi slt, %1292, %1301 : vector<1x256xi32>
    %1303 = arith.andi %1300, %1302 : vector<1x256xi1>
    %cst_705 = arith.constant 1.000000e+00 : f32
    %cst_706 = arith.constant 0.000000e+00 : f32
    %1304 = vector.broadcast %cst_705 : f32 to vector<1x256xf32>
    %1305 = vector.broadcast %cst_706 : f32 to vector<1x256xf32>
    %1306 = arith.select %1303, %1304, %1305 : vector<1x256xi1>, vector<1x256xf32>
    %1307 = vector.broadcast %1306 : vector<1x256xf32> to vector<8x256xf32>
    %1308 = arith.mulf %1288, %1307 : vector<8x256xf32>
    %c3_707 = arith.constant 3 : index
    %c0_708 = arith.constant 0 : index
    %c0_709 = arith.constant 0 : index
    %1309 = vector.load %arg12[%c3_707, %c0_708, %c0_709] : memref<9x16x8xf32, #tpu.memory_space<vmem>>, vector<1x16x8xf32>
    %1310 = vector.shape_cast %1309 : vector<1x16x8xf32> to vector<16x8xf32>
    %cst_710 = arith.constant dense<0.000000e+00> : vector<16x256xf32>
    %1311 = tpu.matmul %1310, %1308, %cst_710 {dimension_numbers = #tpu.dot_dimension_numbers<[1], [0], [0], [1], [0, 0, 1, 1], [], []>} : vector<16x8xf32>, vector<8x256xf32>, vector<16x256xf32> -> vector<16x256xf32>
    %1312 = arith.addf %1287, %1311 : vector<16x256xf32>
    %c0_711 = arith.constant 0 : index
    %c145_712 = arith.constant 145 : index
    %1313 = vector.load %arg17[%c0_711, %c145_712] : memref<16x512xf32, #tpu.memory_space<vmem>>, vector<8x256xf32>
    %c1_i32_713 = arith.constant 1 : i32
    %1314 = vector.broadcast %c1_i32_713 : i32 to vector<1x256xi32>
    %1315 = arith.addi %1229, %1314 : vector<1x256xi32>
    %c1_i32_714 = arith.constant 1 : i32
    %1316 = vector.broadcast %c1_i32_714 : i32 to vector<1x256xi32>
    %1317 = arith.addi %1231, %1316 : vector<1x256xi32>
    %c0_i32_715 = arith.constant 0 : i32
    %1318 = vector.broadcast %c0_i32_715 : i32 to vector<1x256xi32>
    %1319 = arith.cmpi sge, %1315, %1318 : vector<1x256xi32>
    %c16_i32_716 = arith.constant 16 : i32
    %1320 = vector.broadcast %c16_i32_716 : i32 to vector<1x256xi32>
    %1321 = arith.cmpi slt, %1315, %1320 : vector<1x256xi32>
    %1322 = arith.andi %1319, %1321 : vector<1x256xi1>
    %c0_i32_717 = arith.constant 0 : i32
    %1323 = vector.broadcast %c0_i32_717 : i32 to vector<1x256xi32>
    %1324 = arith.cmpi sge, %1317, %1323 : vector<1x256xi32>
    %1325 = arith.andi %1322, %1324 : vector<1x256xi1>
    %c16_i32_718 = arith.constant 16 : i32
    %1326 = vector.broadcast %c16_i32_718 : i32 to vector<1x256xi32>
    %1327 = arith.cmpi slt, %1317, %1326 : vector<1x256xi32>
    %1328 = arith.andi %1325, %1327 : vector<1x256xi1>
    %cst_719 = arith.constant 1.000000e+00 : f32
    %cst_720 = arith.constant 0.000000e+00 : f32
    %1329 = vector.broadcast %cst_719 : f32 to vector<1x256xf32>
    %1330 = vector.broadcast %cst_720 : f32 to vector<1x256xf32>
    %1331 = arith.select %1328, %1329, %1330 : vector<1x256xi1>, vector<1x256xf32>
    %1332 = vector.broadcast %1331 : vector<1x256xf32> to vector<8x256xf32>
    %1333 = arith.mulf %1313, %1332 : vector<8x256xf32>
    %c4_721 = arith.constant 4 : index
    %c0_722 = arith.constant 0 : index
    %c0_723 = arith.constant 0 : index
    %1334 = vector.load %arg12[%c4_721, %c0_722, %c0_723] : memref<9x16x8xf32, #tpu.memory_space<vmem>>, vector<1x16x8xf32>
    %1335 = vector.shape_cast %1334 : vector<1x16x8xf32> to vector<16x8xf32>
    %cst_724 = arith.constant dense<0.000000e+00> : vector<16x256xf32>
    %1336 = tpu.matmul %1335, %1333, %cst_724 {dimension_numbers = #tpu.dot_dimension_numbers<[1], [0], [0], [1], [0, 0, 1, 1], [], []>} : vector<16x8xf32>, vector<8x256xf32>, vector<16x256xf32> -> vector<16x256xf32>
    %1337 = arith.addf %1312, %1336 : vector<16x256xf32>
    %c0_725 = arith.constant 0 : index
    %c146 = arith.constant 146 : index
    %1338 = vector.load %arg17[%c0_725, %c146] : memref<16x512xf32, #tpu.memory_space<vmem>>, vector<8x256xf32>
    %c1_i32_726 = arith.constant 1 : i32
    %1339 = vector.broadcast %c1_i32_726 : i32 to vector<1x256xi32>
    %1340 = arith.addi %1229, %1339 : vector<1x256xi32>
    %c2_i32_727 = arith.constant 2 : i32
    %1341 = vector.broadcast %c2_i32_727 : i32 to vector<1x256xi32>
    %1342 = arith.addi %1231, %1341 : vector<1x256xi32>
    %c0_i32_728 = arith.constant 0 : i32
    %1343 = vector.broadcast %c0_i32_728 : i32 to vector<1x256xi32>
    %1344 = arith.cmpi sge, %1340, %1343 : vector<1x256xi32>
    %c16_i32_729 = arith.constant 16 : i32
    %1345 = vector.broadcast %c16_i32_729 : i32 to vector<1x256xi32>
    %1346 = arith.cmpi slt, %1340, %1345 : vector<1x256xi32>
    %1347 = arith.andi %1344, %1346 : vector<1x256xi1>
    %c0_i32_730 = arith.constant 0 : i32
    %1348 = vector.broadcast %c0_i32_730 : i32 to vector<1x256xi32>
    %1349 = arith.cmpi sge, %1342, %1348 : vector<1x256xi32>
    %1350 = arith.andi %1347, %1349 : vector<1x256xi1>
    %c16_i32_731 = arith.constant 16 : i32
    %1351 = vector.broadcast %c16_i32_731 : i32 to vector<1x256xi32>
    %1352 = arith.cmpi slt, %1342, %1351 : vector<1x256xi32>
    %1353 = arith.andi %1350, %1352 : vector<1x256xi1>
    %cst_732 = arith.constant 1.000000e+00 : f32
    %cst_733 = arith.constant 0.000000e+00 : f32
    %1354 = vector.broadcast %cst_732 : f32 to vector<1x256xf32>
    %1355 = vector.broadcast %cst_733 : f32 to vector<1x256xf32>
    %1356 = arith.select %1353, %1354, %1355 : vector<1x256xi1>, vector<1x256xf32>
    %1357 = vector.broadcast %1356 : vector<1x256xf32> to vector<8x256xf32>
    %1358 = arith.mulf %1338, %1357 : vector<8x256xf32>
    %c5_734 = arith.constant 5 : index
    %c0_735 = arith.constant 0 : index
    %c0_736 = arith.constant 0 : index
    %1359 = vector.load %arg12[%c5_734, %c0_735, %c0_736] : memref<9x16x8xf32, #tpu.memory_space<vmem>>, vector<1x16x8xf32>
    %1360 = vector.shape_cast %1359 : vector<1x16x8xf32> to vector<16x8xf32>
    %cst_737 = arith.constant dense<0.000000e+00> : vector<16x256xf32>
    %1361 = tpu.matmul %1360, %1358, %cst_737 {dimension_numbers = #tpu.dot_dimension_numbers<[1], [0], [0], [1], [0, 0, 1, 1], [], []>} : vector<16x8xf32>, vector<8x256xf32>, vector<16x256xf32> -> vector<16x256xf32>
    %1362 = arith.addf %1337, %1361 : vector<16x256xf32>
    %c0_738 = arith.constant 0 : index
    %c160 = arith.constant 160 : index
    %1363 = vector.load %arg17[%c0_738, %c160] : memref<16x512xf32, #tpu.memory_space<vmem>>, vector<8x256xf32>
    %c2_i32_739 = arith.constant 2 : i32
    %1364 = vector.broadcast %c2_i32_739 : i32 to vector<1x256xi32>
    %1365 = arith.addi %1229, %1364 : vector<1x256xi32>
    %c0_i32_740 = arith.constant 0 : i32
    %1366 = vector.broadcast %c0_i32_740 : i32 to vector<1x256xi32>
    %1367 = arith.addi %1231, %1366 : vector<1x256xi32>
    %c0_i32_741 = arith.constant 0 : i32
    %1368 = vector.broadcast %c0_i32_741 : i32 to vector<1x256xi32>
    %1369 = arith.cmpi sge, %1365, %1368 : vector<1x256xi32>
    %c16_i32_742 = arith.constant 16 : i32
    %1370 = vector.broadcast %c16_i32_742 : i32 to vector<1x256xi32>
    %1371 = arith.cmpi slt, %1365, %1370 : vector<1x256xi32>
    %1372 = arith.andi %1369, %1371 : vector<1x256xi1>
    %c0_i32_743 = arith.constant 0 : i32
    %1373 = vector.broadcast %c0_i32_743 : i32 to vector<1x256xi32>
    %1374 = arith.cmpi sge, %1367, %1373 : vector<1x256xi32>
    %1375 = arith.andi %1372, %1374 : vector<1x256xi1>
    %c16_i32_744 = arith.constant 16 : i32
    %1376 = vector.broadcast %c16_i32_744 : i32 to vector<1x256xi32>
    %1377 = arith.cmpi slt, %1367, %1376 : vector<1x256xi32>
    %1378 = arith.andi %1375, %1377 : vector<1x256xi1>
    %cst_745 = arith.constant 1.000000e+00 : f32
    %cst_746 = arith.constant 0.000000e+00 : f32
    %1379 = vector.broadcast %cst_745 : f32 to vector<1x256xf32>
    %1380 = vector.broadcast %cst_746 : f32 to vector<1x256xf32>
    %1381 = arith.select %1378, %1379, %1380 : vector<1x256xi1>, vector<1x256xf32>
    %1382 = vector.broadcast %1381 : vector<1x256xf32> to vector<8x256xf32>
    %1383 = arith.mulf %1363, %1382 : vector<8x256xf32>
    %c6_747 = arith.constant 6 : index
    %c0_748 = arith.constant 0 : index
    %c0_749 = arith.constant 0 : index
    %1384 = vector.load %arg12[%c6_747, %c0_748, %c0_749] : memref<9x16x8xf32, #tpu.memory_space<vmem>>, vector<1x16x8xf32>
    %1385 = vector.shape_cast %1384 : vector<1x16x8xf32> to vector<16x8xf32>
    %cst_750 = arith.constant dense<0.000000e+00> : vector<16x256xf32>
    %1386 = tpu.matmul %1385, %1383, %cst_750 {dimension_numbers = #tpu.dot_dimension_numbers<[1], [0], [0], [1], [0, 0, 1, 1], [], []>} : vector<16x8xf32>, vector<8x256xf32>, vector<16x256xf32> -> vector<16x256xf32>
    %1387 = arith.addf %1362, %1386 : vector<16x256xf32>
    %c0_751 = arith.constant 0 : index
    %c161 = arith.constant 161 : index
    %1388 = vector.load %arg17[%c0_751, %c161] : memref<16x512xf32, #tpu.memory_space<vmem>>, vector<8x256xf32>
    %c2_i32_752 = arith.constant 2 : i32
    %1389 = vector.broadcast %c2_i32_752 : i32 to vector<1x256xi32>
    %1390 = arith.addi %1229, %1389 : vector<1x256xi32>
    %c1_i32_753 = arith.constant 1 : i32
    %1391 = vector.broadcast %c1_i32_753 : i32 to vector<1x256xi32>
    %1392 = arith.addi %1231, %1391 : vector<1x256xi32>
    %c0_i32_754 = arith.constant 0 : i32
    %1393 = vector.broadcast %c0_i32_754 : i32 to vector<1x256xi32>
    %1394 = arith.cmpi sge, %1390, %1393 : vector<1x256xi32>
    %c16_i32_755 = arith.constant 16 : i32
    %1395 = vector.broadcast %c16_i32_755 : i32 to vector<1x256xi32>
    %1396 = arith.cmpi slt, %1390, %1395 : vector<1x256xi32>
    %1397 = arith.andi %1394, %1396 : vector<1x256xi1>
    %c0_i32_756 = arith.constant 0 : i32
    %1398 = vector.broadcast %c0_i32_756 : i32 to vector<1x256xi32>
    %1399 = arith.cmpi sge, %1392, %1398 : vector<1x256xi32>
    %1400 = arith.andi %1397, %1399 : vector<1x256xi1>
    %c16_i32_757 = arith.constant 16 : i32
    %1401 = vector.broadcast %c16_i32_757 : i32 to vector<1x256xi32>
    %1402 = arith.cmpi slt, %1392, %1401 : vector<1x256xi32>
    %1403 = arith.andi %1400, %1402 : vector<1x256xi1>
    %cst_758 = arith.constant 1.000000e+00 : f32
    %cst_759 = arith.constant 0.000000e+00 : f32
    %1404 = vector.broadcast %cst_758 : f32 to vector<1x256xf32>
    %1405 = vector.broadcast %cst_759 : f32 to vector<1x256xf32>
    %1406 = arith.select %1403, %1404, %1405 : vector<1x256xi1>, vector<1x256xf32>
    %1407 = vector.broadcast %1406 : vector<1x256xf32> to vector<8x256xf32>
    %1408 = arith.mulf %1388, %1407 : vector<8x256xf32>
    %c7_760 = arith.constant 7 : index
    %c0_761 = arith.constant 0 : index
    %c0_762 = arith.constant 0 : index
    %1409 = vector.load %arg12[%c7_760, %c0_761, %c0_762] : memref<9x16x8xf32, #tpu.memory_space<vmem>>, vector<1x16x8xf32>
    %1410 = vector.shape_cast %1409 : vector<1x16x8xf32> to vector<16x8xf32>
    %cst_763 = arith.constant dense<0.000000e+00> : vector<16x256xf32>
    %1411 = tpu.matmul %1410, %1408, %cst_763 {dimension_numbers = #tpu.dot_dimension_numbers<[1], [0], [0], [1], [0, 0, 1, 1], [], []>} : vector<16x8xf32>, vector<8x256xf32>, vector<16x256xf32> -> vector<16x256xf32>
    %1412 = arith.addf %1387, %1411 : vector<16x256xf32>
    %c0_764 = arith.constant 0 : index
    %c162 = arith.constant 162 : index
    %1413 = vector.load %arg17[%c0_764, %c162] : memref<16x512xf32, #tpu.memory_space<vmem>>, vector<8x256xf32>
    %c2_i32_765 = arith.constant 2 : i32
    %1414 = vector.broadcast %c2_i32_765 : i32 to vector<1x256xi32>
    %1415 = arith.addi %1229, %1414 : vector<1x256xi32>
    %c2_i32_766 = arith.constant 2 : i32
    %1416 = vector.broadcast %c2_i32_766 : i32 to vector<1x256xi32>
    %1417 = arith.addi %1231, %1416 : vector<1x256xi32>
    %c0_i32_767 = arith.constant 0 : i32
    %1418 = vector.broadcast %c0_i32_767 : i32 to vector<1x256xi32>
    %1419 = arith.cmpi sge, %1415, %1418 : vector<1x256xi32>
    %c16_i32_768 = arith.constant 16 : i32
    %1420 = vector.broadcast %c16_i32_768 : i32 to vector<1x256xi32>
    %1421 = arith.cmpi slt, %1415, %1420 : vector<1x256xi32>
    %1422 = arith.andi %1419, %1421 : vector<1x256xi1>
    %c0_i32_769 = arith.constant 0 : i32
    %1423 = vector.broadcast %c0_i32_769 : i32 to vector<1x256xi32>
    %1424 = arith.cmpi sge, %1417, %1423 : vector<1x256xi32>
    %1425 = arith.andi %1422, %1424 : vector<1x256xi1>
    %c16_i32_770 = arith.constant 16 : i32
    %1426 = vector.broadcast %c16_i32_770 : i32 to vector<1x256xi32>
    %1427 = arith.cmpi slt, %1417, %1426 : vector<1x256xi32>
    %1428 = arith.andi %1425, %1427 : vector<1x256xi1>
    %cst_771 = arith.constant 1.000000e+00 : f32
    %cst_772 = arith.constant 0.000000e+00 : f32
    %1429 = vector.broadcast %cst_771 : f32 to vector<1x256xf32>
    %1430 = vector.broadcast %cst_772 : f32 to vector<1x256xf32>
    %1431 = arith.select %1428, %1429, %1430 : vector<1x256xi1>, vector<1x256xf32>
    %1432 = vector.broadcast %1431 : vector<1x256xf32> to vector<8x256xf32>
    %1433 = arith.mulf %1413, %1432 : vector<8x256xf32>
    %c8_773 = arith.constant 8 : index
    %c0_774 = arith.constant 0 : index
    %c0_775 = arith.constant 0 : index
    %1434 = vector.load %arg12[%c8_773, %c0_774, %c0_775] : memref<9x16x8xf32, #tpu.memory_space<vmem>>, vector<1x16x8xf32>
    %1435 = vector.shape_cast %1434 : vector<1x16x8xf32> to vector<16x8xf32>
    %cst_776 = arith.constant dense<0.000000e+00> : vector<16x256xf32>
    %1436 = tpu.matmul %1435, %1433, %cst_776 {dimension_numbers = #tpu.dot_dimension_numbers<[1], [0], [0], [1], [0, 0, 1, 1], [], []>} : vector<16x8xf32>, vector<8x256xf32>, vector<16x256xf32> -> vector<16x256xf32>
    %1437 = arith.addf %1412, %1436 : vector<16x256xf32>
    %c0_777 = arith.constant 0 : index
    %c0_778 = arith.constant 0 : index
    %1438 = vector.load %arg13[%c0_777, %c0_778] : memref<16x1xf32, #tpu.memory_space<vmem>>, vector<16x1xf32>
    %1439 = vector.broadcast %1438 : vector<16x1xf32> to vector<16x256xf32>
    %1440 = arith.addf %1437, %1439 : vector<16x256xf32>
    %cst_779 = arith.constant 0.000000e+00 : f32
    %1441 = vector.broadcast %cst_779 : f32 to vector<16x256xf32>
    %1442 = arith.maximumf %1440, %1441 : vector<16x256xf32>
    %1443 = tpu.iota {dimensions = array<i32: 1>} : vector<1x256xi32>
    %c4_i32_780 = arith.constant 4 : i32
    %1444 = vector.broadcast %c4_i32_780 : i32 to vector<1x256xi32>
    %1445 = arith.shrsi %1443, %1444 : vector<1x256xi32>
    %c15_i32_781 = arith.constant 15 : i32
    %1446 = vector.broadcast %c15_i32_781 : i32 to vector<1x256xi32>
    %1447 = arith.andi %1443, %1446 : vector<1x256xi32>
    %c14_i32 = arith.constant 14 : i32
    %1448 = vector.broadcast %c14_i32 : i32 to vector<1x256xi32>
    %1449 = arith.muli %1445, %1448 : vector<1x256xi32>
    %c4_i32_782 = arith.constant 4 : i32
    %1450 = vector.broadcast %c4_i32_782 : i32 to vector<1x256xi32>
    %1451 = arith.shrsi %1449, %1450 : vector<1x256xi32>
    %c14_i32_783 = arith.constant 14 : i32
    %1452 = vector.broadcast %c14_i32_783 : i32 to vector<1x256xi32>
    %1453 = arith.muli %1447, %1452 : vector<1x256xi32>
    %c4_i32_784 = arith.constant 4 : i32
    %1454 = vector.broadcast %c4_i32_784 : i32 to vector<1x256xi32>
    %1455 = arith.shrsi %1453, %1454 : vector<1x256xi32>
    %c16_i32_785 = arith.constant 16 : i32
    %1456 = vector.broadcast %c16_i32_785 : i32 to vector<1x256xi32>
    %1457 = arith.muli %1451, %1456 : vector<1x256xi32>
    %1458 = arith.addi %1457, %1455 : vector<1x256xi32>
    %1459 = tpu.iota {dimensions = array<i32: 0>} : vector<256x256xi32>
    %1460 = vector.broadcast %1458 : vector<1x256xi32> to vector<256x256xi32>
    %1461 = arith.cmpi eq, %1459, %1460 : vector<256x256xi32>
    %cst_786 = arith.constant 1.000000e+00 : f32
    %cst_787 = arith.constant 0.000000e+00 : f32
    %1462 = vector.broadcast %cst_786 : f32 to vector<256x256xf32>
    %1463 = vector.broadcast %cst_787 : f32 to vector<256x256xf32>
    %1464 = arith.select %1461, %1462, %1463 : vector<256x256xi1>, vector<256x256xf32>
    %cst_788 = arith.constant dense<0.000000e+00> : vector<16x256xf32>
    %1465 = tpu.matmul %1442, %1464, %cst_788 {dimension_numbers = #tpu.dot_dimension_numbers<[1], [0], [0], [1], [0, 0, 1, 1], [], []>} : vector<16x256xf32>, vector<256x256xf32>, vector<16x256xf32> -> vector<16x256xf32>
    %c0_789 = arith.constant 0 : index
    %c128_790 = arith.constant 128 : index
    %1466 = vector.load %arg17[%c0_789, %c128_790] : memref<16x512xf32, #tpu.memory_space<vmem>>, vector<16x256xf32>
    tpu.vector_store %arg17[%c0_789, %c128_790], %1465 {strides = array<i32>} : memref<16x512xf32, #tpu.memory_space<vmem>>, vector<16x256xf32>,
    %1467 = tpu.iota {dimensions = array<i32: 1>} : vector<1x256xi32>
    %c4_i32_791 = arith.constant 4 : i32
    %1468 = vector.broadcast %c4_i32_791 : i32 to vector<1x256xi32>
    %1469 = arith.shrsi %1467, %1468 : vector<1x256xi32>
    %c15_i32_792 = arith.constant 15 : i32
    %1470 = vector.broadcast %c15_i32_792 : i32 to vector<1x256xi32>
    %1471 = arith.andi %1467, %1470 : vector<1x256xi32>
    %cst_793 = arith.constant 0.000000e+00 : f32
    %1472 = vector.broadcast %cst_793 : f32 to vector<1x256xf32>
    %c0_794 = arith.constant 0 : index
    %c111_795 = arith.constant 111 : index
    %1473 = vector.load %arg17[%c0_794, %c111_795] : memref<16x512xf32, #tpu.memory_space<vmem>>, vector<16x256xf32>
    %c-1_i32_796 = arith.constant -1 : i32
    %1474 = vector.broadcast %c-1_i32_796 : i32 to vector<1x256xi32>
    %1475 = arith.addi %1469, %1474 : vector<1x256xi32>
    %c-1_i32_797 = arith.constant -1 : i32
    %1476 = vector.broadcast %c-1_i32_797 : i32 to vector<1x256xi32>
    %1477 = arith.addi %1471, %1476 : vector<1x256xi32>
    %c0_i32_798 = arith.constant 0 : i32
    %1478 = vector.broadcast %c0_i32_798 : i32 to vector<1x256xi32>
    %1479 = arith.cmpi sge, %1475, %1478 : vector<1x256xi32>
    %c16_i32_799 = arith.constant 16 : i32
    %1480 = vector.broadcast %c16_i32_799 : i32 to vector<1x256xi32>
    %1481 = arith.cmpi slt, %1475, %1480 : vector<1x256xi32>
    %1482 = arith.andi %1479, %1481 : vector<1x256xi1>
    %c0_i32_800 = arith.constant 0 : i32
    %1483 = vector.broadcast %c0_i32_800 : i32 to vector<1x256xi32>
    %1484 = arith.cmpi sge, %1477, %1483 : vector<1x256xi32>
    %1485 = arith.andi %1482, %1484 : vector<1x256xi1>
    %c16_i32_801 = arith.constant 16 : i32
    %1486 = vector.broadcast %c16_i32_801 : i32 to vector<1x256xi32>
    %1487 = arith.cmpi slt, %1477, %1486 : vector<1x256xi32>
    %1488 = arith.andi %1485, %1487 : vector<1x256xi1>
    %cst_802 = arith.constant 1.000000e+00 : f32
    %cst_803 = arith.constant 0.000000e+00 : f32
    %1489 = vector.broadcast %cst_802 : f32 to vector<1x256xf32>
    %1490 = vector.broadcast %cst_803 : f32 to vector<1x256xf32>
    %1491 = arith.select %1488, %1489, %1490 : vector<1x256xi1>, vector<1x256xf32>
    %1492 = vector.broadcast %1491 : vector<1x256xf32> to vector<16x256xf32>
    %1493 = arith.mulf %1473, %1492 : vector<16x256xf32>
    %c0_804 = arith.constant 0 : index
    %c0_805 = arith.constant 0 : index
    %c0_806 = arith.constant 0 : index
    %1494 = vector.load %arg14[%c0_804, %c0_805, %c0_806] : memref<9x1x16xf32, #tpu.memory_space<vmem>>, vector<1x1x16xf32>
    %1495 = vector.shape_cast %1494 : vector<1x1x16xf32> to vector<1x16xf32>
    %cst_807 = arith.constant dense<0.000000e+00> : vector<1x256xf32>
    %1496 = tpu.matmul %1495, %1493, %cst_807 {dimension_numbers = #tpu.dot_dimension_numbers<[1], [0], [0], [1], [0, 0, 1, 1], [], []>} : vector<1x16xf32>, vector<16x256xf32>, vector<1x256xf32> -> vector<1x256xf32>
    %1497 = arith.addf %1472, %1496 : vector<1x256xf32>
    %c0_808 = arith.constant 0 : index
    %c112_809 = arith.constant 112 : index
    %1498 = vector.load %arg17[%c0_808, %c112_809] : memref<16x512xf32, #tpu.memory_space<vmem>>, vector<16x256xf32>
    %c-1_i32_810 = arith.constant -1 : i32
    %1499 = vector.broadcast %c-1_i32_810 : i32 to vector<1x256xi32>
    %1500 = arith.addi %1469, %1499 : vector<1x256xi32>
    %c0_i32_811 = arith.constant 0 : i32
    %1501 = vector.broadcast %c0_i32_811 : i32 to vector<1x256xi32>
    %1502 = arith.addi %1471, %1501 : vector<1x256xi32>
    %c0_i32_812 = arith.constant 0 : i32
    %1503 = vector.broadcast %c0_i32_812 : i32 to vector<1x256xi32>
    %1504 = arith.cmpi sge, %1500, %1503 : vector<1x256xi32>
    %c16_i32_813 = arith.constant 16 : i32
    %1505 = vector.broadcast %c16_i32_813 : i32 to vector<1x256xi32>
    %1506 = arith.cmpi slt, %1500, %1505 : vector<1x256xi32>
    %1507 = arith.andi %1504, %1506 : vector<1x256xi1>
    %c0_i32_814 = arith.constant 0 : i32
    %1508 = vector.broadcast %c0_i32_814 : i32 to vector<1x256xi32>
    %1509 = arith.cmpi sge, %1502, %1508 : vector<1x256xi32>
    %1510 = arith.andi %1507, %1509 : vector<1x256xi1>
    %c16_i32_815 = arith.constant 16 : i32
    %1511 = vector.broadcast %c16_i32_815 : i32 to vector<1x256xi32>
    %1512 = arith.cmpi slt, %1502, %1511 : vector<1x256xi32>
    %1513 = arith.andi %1510, %1512 : vector<1x256xi1>
    %cst_816 = arith.constant 1.000000e+00 : f32
    %cst_817 = arith.constant 0.000000e+00 : f32
    %1514 = vector.broadcast %cst_816 : f32 to vector<1x256xf32>
    %1515 = vector.broadcast %cst_817 : f32 to vector<1x256xf32>
    %1516 = arith.select %1513, %1514, %1515 : vector<1x256xi1>, vector<1x256xf32>
    %1517 = vector.broadcast %1516 : vector<1x256xf32> to vector<16x256xf32>
    %1518 = arith.mulf %1498, %1517 : vector<16x256xf32>
    %c1_818 = arith.constant 1 : index
    %c0_819 = arith.constant 0 : index
    %c0_820 = arith.constant 0 : index
    %1519 = vector.load %arg14[%c1_818, %c0_819, %c0_820] : memref<9x1x16xf32, #tpu.memory_space<vmem>>, vector<1x1x16xf32>
    %1520 = vector.shape_cast %1519 : vector<1x1x16xf32> to vector<1x16xf32>
    %cst_821 = arith.constant dense<0.000000e+00> : vector<1x256xf32>
    %1521 = tpu.matmul %1520, %1518, %cst_821 {dimension_numbers = #tpu.dot_dimension_numbers<[1], [0], [0], [1], [0, 0, 1, 1], [], []>} : vector<1x16xf32>, vector<16x256xf32>, vector<1x256xf32> -> vector<1x256xf32>
    %1522 = arith.addf %1497, %1521 : vector<1x256xf32>
    %c0_822 = arith.constant 0 : index
    %c113_823 = arith.constant 113 : index
    %1523 = vector.load %arg17[%c0_822, %c113_823] : memref<16x512xf32, #tpu.memory_space<vmem>>, vector<16x256xf32>
    %c-1_i32_824 = arith.constant -1 : i32
    %1524 = vector.broadcast %c-1_i32_824 : i32 to vector<1x256xi32>
    %1525 = arith.addi %1469, %1524 : vector<1x256xi32>
    %c1_i32_825 = arith.constant 1 : i32
    %1526 = vector.broadcast %c1_i32_825 : i32 to vector<1x256xi32>
    %1527 = arith.addi %1471, %1526 : vector<1x256xi32>
    %c0_i32_826 = arith.constant 0 : i32
    %1528 = vector.broadcast %c0_i32_826 : i32 to vector<1x256xi32>
    %1529 = arith.cmpi sge, %1525, %1528 : vector<1x256xi32>
    %c16_i32_827 = arith.constant 16 : i32
    %1530 = vector.broadcast %c16_i32_827 : i32 to vector<1x256xi32>
    %1531 = arith.cmpi slt, %1525, %1530 : vector<1x256xi32>
    %1532 = arith.andi %1529, %1531 : vector<1x256xi1>
    %c0_i32_828 = arith.constant 0 : i32
    %1533 = vector.broadcast %c0_i32_828 : i32 to vector<1x256xi32>
    %1534 = arith.cmpi sge, %1527, %1533 : vector<1x256xi32>
    %1535 = arith.andi %1532, %1534 : vector<1x256xi1>
    %c16_i32_829 = arith.constant 16 : i32
    %1536 = vector.broadcast %c16_i32_829 : i32 to vector<1x256xi32>
    %1537 = arith.cmpi slt, %1527, %1536 : vector<1x256xi32>
    %1538 = arith.andi %1535, %1537 : vector<1x256xi1>
    %cst_830 = arith.constant 1.000000e+00 : f32
    %cst_831 = arith.constant 0.000000e+00 : f32
    %1539 = vector.broadcast %cst_830 : f32 to vector<1x256xf32>
    %1540 = vector.broadcast %cst_831 : f32 to vector<1x256xf32>
    %1541 = arith.select %1538, %1539, %1540 : vector<1x256xi1>, vector<1x256xf32>
    %1542 = vector.broadcast %1541 : vector<1x256xf32> to vector<16x256xf32>
    %1543 = arith.mulf %1523, %1542 : vector<16x256xf32>
    %c2_832 = arith.constant 2 : index
    %c0_833 = arith.constant 0 : index
    %c0_834 = arith.constant 0 : index
    %1544 = vector.load %arg14[%c2_832, %c0_833, %c0_834] : memref<9x1x16xf32, #tpu.memory_space<vmem>>, vector<1x1x16xf32>
    %1545 = vector.shape_cast %1544 : vector<1x1x16xf32> to vector<1x16xf32>
    %cst_835 = arith.constant dense<0.000000e+00> : vector<1x256xf32>
    %1546 = tpu.matmul %1545, %1543, %cst_835 {dimension_numbers = #tpu.dot_dimension_numbers<[1], [0], [0], [1], [0, 0, 1, 1], [], []>} : vector<1x16xf32>, vector<16x256xf32>, vector<1x256xf32> -> vector<1x256xf32>
    %1547 = arith.addf %1522, %1546 : vector<1x256xf32>
    %c0_836 = arith.constant 0 : index
    %c127_837 = arith.constant 127 : index
    %1548 = vector.load %arg17[%c0_836, %c127_837] : memref<16x512xf32, #tpu.memory_space<vmem>>, vector<16x256xf32>
    %c0_i32_838 = arith.constant 0 : i32
    %1549 = vector.broadcast %c0_i32_838 : i32 to vector<1x256xi32>
    %1550 = arith.addi %1469, %1549 : vector<1x256xi32>
    %c-1_i32_839 = arith.constant -1 : i32
    %1551 = vector.broadcast %c-1_i32_839 : i32 to vector<1x256xi32>
    %1552 = arith.addi %1471, %1551 : vector<1x256xi32>
    %c0_i32_840 = arith.constant 0 : i32
    %1553 = vector.broadcast %c0_i32_840 : i32 to vector<1x256xi32>
    %1554 = arith.cmpi sge, %1550, %1553 : vector<1x256xi32>
    %c16_i32_841 = arith.constant 16 : i32
    %1555 = vector.broadcast %c16_i32_841 : i32 to vector<1x256xi32>
    %1556 = arith.cmpi slt, %1550, %1555 : vector<1x256xi32>
    %1557 = arith.andi %1554, %1556 : vector<1x256xi1>
    %c0_i32_842 = arith.constant 0 : i32
    %1558 = vector.broadcast %c0_i32_842 : i32 to vector<1x256xi32>
    %1559 = arith.cmpi sge, %1552, %1558 : vector<1x256xi32>
    %1560 = arith.andi %1557, %1559 : vector<1x256xi1>
    %c16_i32_843 = arith.constant 16 : i32
    %1561 = vector.broadcast %c16_i32_843 : i32 to vector<1x256xi32>
    %1562 = arith.cmpi slt, %1552, %1561 : vector<1x256xi32>
    %1563 = arith.andi %1560, %1562 : vector<1x256xi1>
    %cst_844 = arith.constant 1.000000e+00 : f32
    %cst_845 = arith.constant 0.000000e+00 : f32
    %1564 = vector.broadcast %cst_844 : f32 to vector<1x256xf32>
    %1565 = vector.broadcast %cst_845 : f32 to vector<1x256xf32>
    %1566 = arith.select %1563, %1564, %1565 : vector<1x256xi1>, vector<1x256xf32>
    %1567 = vector.broadcast %1566 : vector<1x256xf32> to vector<16x256xf32>
    %1568 = arith.mulf %1548, %1567 : vector<16x256xf32>
    %c3_846 = arith.constant 3 : index
    %c0_847 = arith.constant 0 : index
    %c0_848 = arith.constant 0 : index
    %1569 = vector.load %arg14[%c3_846, %c0_847, %c0_848] : memref<9x1x16xf32, #tpu.memory_space<vmem>>, vector<1x1x16xf32>
    %1570 = vector.shape_cast %1569 : vector<1x1x16xf32> to vector<1x16xf32>
    %cst_849 = arith.constant dense<0.000000e+00> : vector<1x256xf32>
    %1571 = tpu.matmul %1570, %1568, %cst_849 {dimension_numbers = #tpu.dot_dimension_numbers<[1], [0], [0], [1], [0, 0, 1, 1], [], []>} : vector<1x16xf32>, vector<16x256xf32>, vector<1x256xf32> -> vector<1x256xf32>
    %1572 = arith.addf %1547, %1571 : vector<1x256xf32>
    %c0_850 = arith.constant 0 : index
    %c128_851 = arith.constant 128 : index
    %1573 = vector.load %arg17[%c0_850, %c128_851] : memref<16x512xf32, #tpu.memory_space<vmem>>, vector<16x256xf32>
    %c4_852 = arith.constant 4 : index
    %c0_853 = arith.constant 0 : index
    %c0_854 = arith.constant 0 : index
    %1574 = vector.load %arg14[%c4_852, %c0_853, %c0_854] : memref<9x1x16xf32, #tpu.memory_space<vmem>>, vector<1x1x16xf32>
    %1575 = vector.shape_cast %1574 : vector<1x1x16xf32> to vector<1x16xf32>
    %cst_855 = arith.constant dense<0.000000e+00> : vector<1x256xf32>
    %1576 = tpu.matmul %1575, %1573, %cst_855 {dimension_numbers = #tpu.dot_dimension_numbers<[1], [0], [0], [1], [0, 0, 1, 1], [], []>} : vector<1x16xf32>, vector<16x256xf32>, vector<1x256xf32> -> vector<1x256xf32>
    %1577 = arith.addf %1572, %1576 : vector<1x256xf32>
    %c0_856 = arith.constant 0 : index
    %c129_857 = arith.constant 129 : index
    %1578 = vector.load %arg17[%c0_856, %c129_857] : memref<16x512xf32, #tpu.memory_space<vmem>>, vector<16x256xf32>
    %c0_i32_858 = arith.constant 0 : i32
    %1579 = vector.broadcast %c0_i32_858 : i32 to vector<1x256xi32>
    %1580 = arith.addi %1469, %1579 : vector<1x256xi32>
    %c1_i32_859 = arith.constant 1 : i32
    %1581 = vector.broadcast %c1_i32_859 : i32 to vector<1x256xi32>
    %1582 = arith.addi %1471, %1581 : vector<1x256xi32>
    %c0_i32_860 = arith.constant 0 : i32
    %1583 = vector.broadcast %c0_i32_860 : i32 to vector<1x256xi32>
    %1584 = arith.cmpi sge, %1580, %1583 : vector<1x256xi32>
    %c16_i32_861 = arith.constant 16 : i32
    %1585 = vector.broadcast %c16_i32_861 : i32 to vector<1x256xi32>
    %1586 = arith.cmpi slt, %1580, %1585 : vector<1x256xi32>
    %1587 = arith.andi %1584, %1586 : vector<1x256xi1>
    %c0_i32_862 = arith.constant 0 : i32
    %1588 = vector.broadcast %c0_i32_862 : i32 to vector<1x256xi32>
    %1589 = arith.cmpi sge, %1582, %1588 : vector<1x256xi32>
    %1590 = arith.andi %1587, %1589 : vector<1x256xi1>
    %c16_i32_863 = arith.constant 16 : i32
    %1591 = vector.broadcast %c16_i32_863 : i32 to vector<1x256xi32>
    %1592 = arith.cmpi slt, %1582, %1591 : vector<1x256xi32>
    %1593 = arith.andi %1590, %1592 : vector<1x256xi1>
    %cst_864 = arith.constant 1.000000e+00 : f32
    %cst_865 = arith.constant 0.000000e+00 : f32
    %1594 = vector.broadcast %cst_864 : f32 to vector<1x256xf32>
    %1595 = vector.broadcast %cst_865 : f32 to vector<1x256xf32>
    %1596 = arith.select %1593, %1594, %1595 : vector<1x256xi1>, vector<1x256xf32>
    %1597 = vector.broadcast %1596 : vector<1x256xf32> to vector<16x256xf32>
    %1598 = arith.mulf %1578, %1597 : vector<16x256xf32>
    %c5_866 = arith.constant 5 : index
    %c0_867 = arith.constant 0 : index
    %c0_868 = arith.constant 0 : index
    %1599 = vector.load %arg14[%c5_866, %c0_867, %c0_868] : memref<9x1x16xf32, #tpu.memory_space<vmem>>, vector<1x1x16xf32>
    %1600 = vector.shape_cast %1599 : vector<1x1x16xf32> to vector<1x16xf32>
    %cst_869 = arith.constant dense<0.000000e+00> : vector<1x256xf32>
    %1601 = tpu.matmul %1600, %1598, %cst_869 {dimension_numbers = #tpu.dot_dimension_numbers<[1], [0], [0], [1], [0, 0, 1, 1], [], []>} : vector<1x16xf32>, vector<16x256xf32>, vector<1x256xf32> -> vector<1x256xf32>
    %1602 = arith.addf %1577, %1601 : vector<1x256xf32>
    %c0_870 = arith.constant 0 : index
    %c143_871 = arith.constant 143 : index
    %1603 = vector.load %arg17[%c0_870, %c143_871] : memref<16x512xf32, #tpu.memory_space<vmem>>, vector<16x256xf32>
    %c1_i32_872 = arith.constant 1 : i32
    %1604 = vector.broadcast %c1_i32_872 : i32 to vector<1x256xi32>
    %1605 = arith.addi %1469, %1604 : vector<1x256xi32>
    %c-1_i32_873 = arith.constant -1 : i32
    %1606 = vector.broadcast %c-1_i32_873 : i32 to vector<1x256xi32>
    %1607 = arith.addi %1471, %1606 : vector<1x256xi32>
    %c0_i32_874 = arith.constant 0 : i32
    %1608 = vector.broadcast %c0_i32_874 : i32 to vector<1x256xi32>
    %1609 = arith.cmpi sge, %1605, %1608 : vector<1x256xi32>
    %c16_i32_875 = arith.constant 16 : i32
    %1610 = vector.broadcast %c16_i32_875 : i32 to vector<1x256xi32>
    %1611 = arith.cmpi slt, %1605, %1610 : vector<1x256xi32>
    %1612 = arith.andi %1609, %1611 : vector<1x256xi1>
    %c0_i32_876 = arith.constant 0 : i32
    %1613 = vector.broadcast %c0_i32_876 : i32 to vector<1x256xi32>
    %1614 = arith.cmpi sge, %1607, %1613 : vector<1x256xi32>
    %1615 = arith.andi %1612, %1614 : vector<1x256xi1>
    %c16_i32_877 = arith.constant 16 : i32
    %1616 = vector.broadcast %c16_i32_877 : i32 to vector<1x256xi32>
    %1617 = arith.cmpi slt, %1607, %1616 : vector<1x256xi32>
    %1618 = arith.andi %1615, %1617 : vector<1x256xi1>
    %cst_878 = arith.constant 1.000000e+00 : f32
    %cst_879 = arith.constant 0.000000e+00 : f32
    %1619 = vector.broadcast %cst_878 : f32 to vector<1x256xf32>
    %1620 = vector.broadcast %cst_879 : f32 to vector<1x256xf32>
    %1621 = arith.select %1618, %1619, %1620 : vector<1x256xi1>, vector<1x256xf32>
    %1622 = vector.broadcast %1621 : vector<1x256xf32> to vector<16x256xf32>
    %1623 = arith.mulf %1603, %1622 : vector<16x256xf32>
    %c6_880 = arith.constant 6 : index
    %c0_881 = arith.constant 0 : index
    %c0_882 = arith.constant 0 : index
    %1624 = vector.load %arg14[%c6_880, %c0_881, %c0_882] : memref<9x1x16xf32, #tpu.memory_space<vmem>>, vector<1x1x16xf32>
    %1625 = vector.shape_cast %1624 : vector<1x1x16xf32> to vector<1x16xf32>
    %cst_883 = arith.constant dense<0.000000e+00> : vector<1x256xf32>
    %1626 = tpu.matmul %1625, %1623, %cst_883 {dimension_numbers = #tpu.dot_dimension_numbers<[1], [0], [0], [1], [0, 0, 1, 1], [], []>} : vector<1x16xf32>, vector<16x256xf32>, vector<1x256xf32> -> vector<1x256xf32>
    %1627 = arith.addf %1602, %1626 : vector<1x256xf32>
    %c0_884 = arith.constant 0 : index
    %c144_885 = arith.constant 144 : index
    %1628 = vector.load %arg17[%c0_884, %c144_885] : memref<16x512xf32, #tpu.memory_space<vmem>>, vector<16x256xf32>
    %c1_i32_886 = arith.constant 1 : i32
    %1629 = vector.broadcast %c1_i32_886 : i32 to vector<1x256xi32>
    %1630 = arith.addi %1469, %1629 : vector<1x256xi32>
    %c0_i32_887 = arith.constant 0 : i32
    %1631 = vector.broadcast %c0_i32_887 : i32 to vector<1x256xi32>
    %1632 = arith.addi %1471, %1631 : vector<1x256xi32>
    %c0_i32_888 = arith.constant 0 : i32
    %1633 = vector.broadcast %c0_i32_888 : i32 to vector<1x256xi32>
    %1634 = arith.cmpi sge, %1630, %1633 : vector<1x256xi32>
    %c16_i32_889 = arith.constant 16 : i32
    %1635 = vector.broadcast %c16_i32_889 : i32 to vector<1x256xi32>
    %1636 = arith.cmpi slt, %1630, %1635 : vector<1x256xi32>
    %1637 = arith.andi %1634, %1636 : vector<1x256xi1>
    %c0_i32_890 = arith.constant 0 : i32
    %1638 = vector.broadcast %c0_i32_890 : i32 to vector<1x256xi32>
    %1639 = arith.cmpi sge, %1632, %1638 : vector<1x256xi32>
    %1640 = arith.andi %1637, %1639 : vector<1x256xi1>
    %c16_i32_891 = arith.constant 16 : i32
    %1641 = vector.broadcast %c16_i32_891 : i32 to vector<1x256xi32>
    %1642 = arith.cmpi slt, %1632, %1641 : vector<1x256xi32>
    %1643 = arith.andi %1640, %1642 : vector<1x256xi1>
    %cst_892 = arith.constant 1.000000e+00 : f32
    %cst_893 = arith.constant 0.000000e+00 : f32
    %1644 = vector.broadcast %cst_892 : f32 to vector<1x256xf32>
    %1645 = vector.broadcast %cst_893 : f32 to vector<1x256xf32>
    %1646 = arith.select %1643, %1644, %1645 : vector<1x256xi1>, vector<1x256xf32>
    %1647 = vector.broadcast %1646 : vector<1x256xf32> to vector<16x256xf32>
    %1648 = arith.mulf %1628, %1647 : vector<16x256xf32>
    %c7_894 = arith.constant 7 : index
    %c0_895 = arith.constant 0 : index
    %c0_896 = arith.constant 0 : index
    %1649 = vector.load %arg14[%c7_894, %c0_895, %c0_896] : memref<9x1x16xf32, #tpu.memory_space<vmem>>, vector<1x1x16xf32>
    %1650 = vector.shape_cast %1649 : vector<1x1x16xf32> to vector<1x16xf32>
    %cst_897 = arith.constant dense<0.000000e+00> : vector<1x256xf32>
    %1651 = tpu.matmul %1650, %1648, %cst_897 {dimension_numbers = #tpu.dot_dimension_numbers<[1], [0], [0], [1], [0, 0, 1, 1], [], []>} : vector<1x16xf32>, vector<16x256xf32>, vector<1x256xf32> -> vector<1x256xf32>
    %1652 = arith.addf %1627, %1651 : vector<1x256xf32>
    %c0_898 = arith.constant 0 : index
    %c145_899 = arith.constant 145 : index
    %1653 = vector.load %arg17[%c0_898, %c145_899] : memref<16x512xf32, #tpu.memory_space<vmem>>, vector<16x256xf32>
    %c1_i32_900 = arith.constant 1 : i32
    %1654 = vector.broadcast %c1_i32_900 : i32 to vector<1x256xi32>
    %1655 = arith.addi %1469, %1654 : vector<1x256xi32>
    %c1_i32_901 = arith.constant 1 : i32
    %1656 = vector.broadcast %c1_i32_901 : i32 to vector<1x256xi32>
    %1657 = arith.addi %1471, %1656 : vector<1x256xi32>
    %c0_i32_902 = arith.constant 0 : i32
    %1658 = vector.broadcast %c0_i32_902 : i32 to vector<1x256xi32>
    %1659 = arith.cmpi sge, %1655, %1658 : vector<1x256xi32>
    %c16_i32_903 = arith.constant 16 : i32
    %1660 = vector.broadcast %c16_i32_903 : i32 to vector<1x256xi32>
    %1661 = arith.cmpi slt, %1655, %1660 : vector<1x256xi32>
    %1662 = arith.andi %1659, %1661 : vector<1x256xi1>
    %c0_i32_904 = arith.constant 0 : i32
    %1663 = vector.broadcast %c0_i32_904 : i32 to vector<1x256xi32>
    %1664 = arith.cmpi sge, %1657, %1663 : vector<1x256xi32>
    %1665 = arith.andi %1662, %1664 : vector<1x256xi1>
    %c16_i32_905 = arith.constant 16 : i32
    %1666 = vector.broadcast %c16_i32_905 : i32 to vector<1x256xi32>
    %1667 = arith.cmpi slt, %1657, %1666 : vector<1x256xi32>
    %1668 = arith.andi %1665, %1667 : vector<1x256xi1>
    %cst_906 = arith.constant 1.000000e+00 : f32
    %cst_907 = arith.constant 0.000000e+00 : f32
    %1669 = vector.broadcast %cst_906 : f32 to vector<1x256xf32>
    %1670 = vector.broadcast %cst_907 : f32 to vector<1x256xf32>
    %1671 = arith.select %1668, %1669, %1670 : vector<1x256xi1>, vector<1x256xf32>
    %1672 = vector.broadcast %1671 : vector<1x256xf32> to vector<16x256xf32>
    %1673 = arith.mulf %1653, %1672 : vector<16x256xf32>
    %c8_908 = arith.constant 8 : index
    %c0_909 = arith.constant 0 : index
    %c0_910 = arith.constant 0 : index
    %1674 = vector.load %arg14[%c8_908, %c0_909, %c0_910] : memref<9x1x16xf32, #tpu.memory_space<vmem>>, vector<1x1x16xf32>
    %1675 = vector.shape_cast %1674 : vector<1x1x16xf32> to vector<1x16xf32>
    %cst_911 = arith.constant dense<0.000000e+00> : vector<1x256xf32>
    %1676 = tpu.matmul %1675, %1673, %cst_911 {dimension_numbers = #tpu.dot_dimension_numbers<[1], [0], [0], [1], [0, 0, 1, 1], [], []>} : vector<1x16xf32>, vector<16x256xf32>, vector<1x256xf32> -> vector<1x256xf32>
    %1677 = arith.addf %1652, %1676 : vector<1x256xf32>
    %c0_912 = arith.constant 0 : index
    %c0_913 = arith.constant 0 : index
    %1678 = vector.load %arg15[%c0_912, %c0_913] : memref<1x1xf32, #tpu.memory_space<vmem>>, vector<1x1xf32>
    %1679 = vector.broadcast %1678 : vector<1x1xf32> to vector<1x256xf32>
    %1680 = arith.addf %1677, %1679 : vector<1x256xf32>
    %1681 = math.absf %1680 : vector<1x256xf32>
    %cst_914 = arith.constant 0.000000e+00 : f32
    %1682 = vector.broadcast %cst_914 : f32 to vector<1x256xf32>
    %1683 = arith.subf %1682, %1681 : vector<1x256xf32>
    %1684 = math.exp %1683 : vector<1x256xf32>
    %cst_915 = arith.constant 0.000000e+00 : f32
    %1685 = vector.broadcast %cst_915 : f32 to vector<1x256xf32>
    %1686 = arith.cmpf oge, %1680, %1685 : vector<1x256xf32>
    %cst_916 = arith.constant 1.000000e+00 : f32
    %1687 = vector.broadcast %cst_916 : f32 to vector<1x256xf32>
    %1688 = arith.addf %1687, %1684 : vector<1x256xf32>
    %cst_917 = arith.constant 1.000000e+00 : f32
    %1689 = vector.broadcast %cst_917 : f32 to vector<1x256xf32>
    %1690 = arith.divf %1689, %1688 : vector<1x256xf32>
    %cst_918 = arith.constant 1.000000e+00 : f32
    %1691 = vector.broadcast %cst_918 : f32 to vector<1x256xf32>
    %1692 = arith.addf %1691, %1684 : vector<1x256xf32>
    %1693 = arith.divf %1684, %1692 : vector<1x256xf32>
    %1694 = arith.select %1686, %1690, %1693 : vector<1x256xi1>, vector<1x256xf32>
    %c0_919 = arith.constant 0 : index
    %c0_920 = arith.constant 0 : index
    %c0_921 = arith.constant 0 : index
    %1695 = vector.load %arg16[%c0_919, %c0_920, %c0_921] : memref<1x1x256xf32, #tpu.memory_space<vmem>>, vector<1x1x256xf32>
    %1696 = vector.shape_cast %1695 : vector<1x1x256xf32> to vector<1x256xf32>
    %1697 = vector.shape_cast %1694 : vector<1x256xf32> to vector<1x1x256xf32>
    tpu.vector_store %arg16[%c0_919, %c0_920, %c0_921], %1697 {strides = array<i32>} : memref<1x1x256xf32, #tpu.memory_space<vmem>>, vector<1x1x256xf32>,
    return
  }
  func.func @transform_0(%arg0: i32) -> (i32, i32, i32) {
    %c0_i32 = arith.constant 0 : i32
    %c0_i32_0 = arith.constant 0 : i32
    %c0_i32_1 = arith.constant 0 : i32
    return %arg0, %c0_i32, %c0_i32_0 : i32, i32, i32
  }
  func.func @transform_1(%arg0: i32) -> (i32, i32, i32) {
    %c0_i32 = arith.constant 0 : i32
    %c0_i32_0 = arith.constant 0 : i32
    %c0_i32_1 = arith.constant 0 : i32
    %c0_i32_2 = arith.constant 0 : i32
    return %c0_i32, %c0_i32_0, %c0_i32_1 : i32, i32, i32
  }
  func.func @transform_2(%arg0: i32) -> (i32, i32) {
    %c0_i32 = arith.constant 0 : i32
    %c0_i32_0 = arith.constant 0 : i32
    %c0_i32_1 = arith.constant 0 : i32
    return %c0_i32, %c0_i32_0 : i32, i32
  }
  func.func @transform_3(%arg0: i32) -> (i32, i32, i32) {
    %c0_i32 = arith.constant 0 : i32
    %c0_i32_0 = arith.constant 0 : i32
    %c0_i32_1 = arith.constant 0 : i32
    %c0_i32_2 = arith.constant 0 : i32
    return %c0_i32, %c0_i32_0, %c0_i32_1 : i32, i32, i32
  }
  func.func @transform_4(%arg0: i32) -> (i32, i32) {
    %c0_i32 = arith.constant 0 : i32
    %c0_i32_0 = arith.constant 0 : i32
    %c0_i32_1 = arith.constant 0 : i32
    return %c0_i32, %c0_i32_0 : i32, i32
  }
  func.func @transform_5(%arg0: i32) -> (i32, i32, i32) {
    %c0_i32 = arith.constant 0 : i32
    %c0_i32_0 = arith.constant 0 : i32
    %c0_i32_1 = arith.constant 0 : i32
    %c0_i32_2 = arith.constant 0 : i32
    return %c0_i32, %c0_i32_0, %c0_i32_1 : i32, i32, i32
  }
  func.func @transform_6(%arg0: i32) -> (i32, i32) {
    %c0_i32 = arith.constant 0 : i32
    %c0_i32_0 = arith.constant 0 : i32
    %c0_i32_1 = arith.constant 0 : i32
    return %c0_i32, %c0_i32_0 : i32, i32
  }
  func.func @transform_7(%arg0: i32) -> (i32, i32, i32) {
    %c0_i32 = arith.constant 0 : i32
    %c0_i32_0 = arith.constant 0 : i32
    %c0_i32_1 = arith.constant 0 : i32
    %c0_i32_2 = arith.constant 0 : i32
    return %c0_i32, %c0_i32_0, %c0_i32_1 : i32, i32, i32
  }
  func.func @transform_8(%arg0: i32) -> (i32, i32) {
    %c0_i32 = arith.constant 0 : i32
    %c0_i32_0 = arith.constant 0 : i32
    %c0_i32_1 = arith.constant 0 : i32
    return %c0_i32, %c0_i32_0 : i32, i32
  }
  func.func @transform_9(%arg0: i32) -> (i32, i32, i32) {
    %c0_i32 = arith.constant 0 : i32
    %c0_i32_0 = arith.constant 0 : i32
    %c0_i32_1 = arith.constant 0 : i32
    %c0_i32_2 = arith.constant 0 : i32
    return %c0_i32, %c0_i32_0, %c0_i32_1 : i32, i32, i32
  }
  func.func @transform_10(%arg0: i32) -> (i32, i32) {
    %c0_i32 = arith.constant 0 : i32
    %c0_i32_0 = arith.constant 0 : i32
    %c0_i32_1 = arith.constant 0 : i32
    return %c0_i32, %c0_i32_0 : i32, i32
  }
  func.func @transform_11(%arg0: i32) -> (i32, i32, i32) {
    %c0_i32 = arith.constant 0 : i32
    %c0_i32_0 = arith.constant 0 : i32
    %c0_i32_1 = arith.constant 0 : i32
    %c0_i32_2 = arith.constant 0 : i32
    return %c0_i32, %c0_i32_0, %c0_i32_1 : i32, i32, i32
  }
  func.func @transform_12(%arg0: i32) -> (i32, i32) {
    %c0_i32 = arith.constant 0 : i32
    %c0_i32_0 = arith.constant 0 : i32
    %c0_i32_1 = arith.constant 0 : i32
    return %c0_i32, %c0_i32_0 : i32, i32
  }
  func.func @transform_13(%arg0: i32) -> (i32, i32, i32) {
    %c0_i32 = arith.constant 0 : i32
    %c0_i32_0 = arith.constant 0 : i32
    %c0_i32_1 = arith.constant 0 : i32
    %c0_i32_2 = arith.constant 0 : i32
    return %c0_i32, %c0_i32_0, %c0_i32_1 : i32, i32, i32
  }
  func.func @transform_14(%arg0: i32) -> (i32, i32) {
    %c0_i32 = arith.constant 0 : i32
    %c0_i32_0 = arith.constant 0 : i32
    %c0_i32_1 = arith.constant 0 : i32
    return %c0_i32, %c0_i32_0 : i32, i32
  }
  func.func @transform_15(%arg0: i32) -> (i32, i32, i32) {
    %c0_i32 = arith.constant 0 : i32
    %c0_i32_0 = arith.constant 0 : i32
    %c0_i32_1 = arith.constant 0 : i32
    return %arg0, %c0_i32, %c0_i32_0 : i32, i32, i32
  }
}

</mosaic_0001>

<bundles_post_ra>
// kernel: autoencoder_forward.1
= control target key start
LH: loop header
LB: loop body
LE: loop exit
PB: predicated region body
PF: predicated region fallthrough
CT: control target
= control target key end

     0   :  { %s9138_s20 = smov 0   ;;  %s11213_s0 = inlined_call_operand.vmem [shape: f32[2,1,256], index: 0, kind: input, shape index: {}]   ;;  %s11214_s1 = inlined_call_operand.vmem [shape: f32[9,16,1], index: 1, kind: input, shape index: {}]   ;;  %s11215_s2 = inlined_call_operand.vmem [shape: f32[16,1], index: 2, kind: input, shape index: {}]   ;;  %s11216_s3 = inlined_call_operand.vmem [shape: f32[9,8,16], index: 3, kind: input, shape index: {}]   ;;  %s11217_s4 = inlined_call_operand.vmem [shape: f32[8,1], index: 4, kind: input, shape index: {}]   ;;  %s11218_s5 = inlined_call_operand.vmem [shape: f32[9,8,8], index: 5, kind: input, shape index: {}]   ;;  %s11219_s6 = inlined_call_operand.vmem [shape: f32[8,1], index: 6, kind: input, shape index: {}]   ;;  %s11220_s7 = inlined_call_operand.vmem [shape: f32[9,8,8], index: 7, kind: input, shape index: {}]   ;;  %s11221_s8 = inlined_call_operand.vmem [shape: f32[8,1], index: 8, kind: input, shape index: {}]   ;;  %s11222_s9 = inlined_call_operand.vmem [shape: f32[9,8,8], index: 9, kind: input, shape index: {}]   ;;  %s11223_s10 = inlined_call_operand.vmem [shape: f32[8,1], index: 10, kind: input, shape index: {}]   ;;  %s11224_s11 = inlined_call_operand.vmem [shape: f32[9,16,8], index: 11, kind: input, shape index: {}]   ;;  %s11225_s12 = inlined_call_operand.vmem [shape: f32[16,1], index: 12, kind: input, shape index: {}]   ;;  %s11226_s13 = inlined_call_operand.vmem [shape: f32[9,1,16], index: 13, kind: input, shape index: {}]   ;;  %s11227_s14 = inlined_call_operand.<no memory space> [shape: f32[1,1], index: 14, kind: input, shape index: {}]   ;;  %s11228_s15 = inlined_call_operand.vmem [shape: f32[2,1,256], index: 15, kind: output, shape index: {}]  }
   0x1   :  { %v20_v0 = vstv %s11227_s14 }
   0x2   :  { %21 = vst [vmem:[#allocation3] sm:$0x1] %v20_v0 }
   0x3 LB: > { %s7807_s21 = sadd.s32 4294967295, %s9017_s20   ;;  %p7811_p0 = scmp.ge.s32.totalorder %s9017_s20, 1  ;;  %s9017_s20 = sphi %s9138_s20, %s27_s20  }
   0x4   : > { %p438_p1 = scmp.lt.s32.totalorder %s9017_s20, 3 }
   0x6   : > { %p439_p2 = pnand %p7811_p0, %p438_p1 }
   0x8   : > { %442 = sbr.rel (%p439_p2) target bundleno = 4831 (0x12df), region = 80 }
   0xf   : > { %v7816_v1 = vld [vmem:[%s11214_s1 + $0x20] sm:$0xff]  ;;  %v7814_v2 = vld [vmem:[%s11214_s1 + $0x10] sm:$0xff]  ;;  %v501_v3 = vlaneseq  ;;  %v9019_v4 = vmov 0   ;;  %v9020_v5 = vmov 0.0   ;;  %v7815_v7 = vld [vmem:[%s11214_s1 + $0x18] sm:$0xff]  ;;  %p484_p3 = scmp.lt.s32.totalorder %s7807_s21, 1 }
  0x10   : > { %8723 = vset.pattern.permute.xlu1 %v9019_v4  ;;  %8722 = vset.pattern.permute.xlu0 %v9019_v4  ;;  %492 = vst [vmem:[#allocation2] sm:$0xff] %v9020_v5  ;;  %493 = vst [vmem:[#allocation2 + $0x8] sm:$0xff] %v9020_v5  ;;  %v7817_v8 = vld [vmem:[%s11214_s1 + $0x28] sm:$0xff]  ;;  %v9021_v9 = vmov 1966171168   ;;  %v7818_v17 = vld [vmem:[%s11214_s1 + $0x30] sm:$0xff] }
  0x11   : > { %494 = vst [vmem:[#allocation2 + $0x10] sm:$0xff] %v9020_v5  ;;  %495 = vst [vmem:[#allocation2 + $0x18] sm:$0xff] %v9020_v5  ;;  %747 = vperm.xlu1 %8723, %v7816_v1   ;;  %640 = vperm.xlu0 %8722, %v7814_v2   ;;  %v9157_v6 = vand.u32 127, %v501_v3  ;;  %v540_v10 = vunpack.c.l.s4 %v9021_v9  ;;  %v9183_v19 = vshrl.u32 %v501_v3, 7  ;;  %v11336_v22 = vmov 0  ;;  %s11588_s21 = smov (!%p484_p3, %s7807_s21), 1 }
  0x12   : > { %v7820_v25 = vld [vmem:[%s11214_s1 + $0x40] sm:$0xff]  ;;  %s11229_s18 = sshll.u32 %s11588_s21, 1  ;;  %s9022_s14 = smov 1   ;;  %v11350_v44 = vmov 0  ;;  %v11355_v49 = vmov 0  ;;  %v11358_v53 = vmov 0 }
  0x13   : > { %v510_v11 = vadd.s32 128, %v9157_v6  ;;  %v9167_v12 = vshra.s32 %v9157_v6, 4  ;;  %v9170_v13 = vand.u32 15, %v9157_v6  ;;  %v541_v18 = vunpack.c.0.s8 %v540_v10  ;;  %s487_s23 = scalar_lea.vmem %s11213_s0, %s11229_s18  ;;  %s11304_s24 = smov 112   ;;  %v7821_v62 = vld [vmem:[%s11214_s1 + $0x48] sm:$0xff]  ;;  %v7819_v0 = vld [vmem:[%s11214_s1 + $0x38] sm:$0xff] }
  0x14   : > { %v500_v40 = vld [vmem:[%s487_s23] sm:$0x3]  ;;  %s11270_s25 = smov 113   ;;  %s9025_s28 = smov 127   ;;  %v7822_v4 = vld [vmem:[%s11214_s1 + $0x50] sm:$0xff] }
  0x15   : > { %645 = vperm.xlu1 %8723, %v7815_v7   ;;  %752 = vperm.xlu0 %8722, %v7817_v8   ;;  %v9172_v14 = vshra.s32 %v510_v11, 4  ;;  %v9174_v15 = vand.u32 15, %v510_v11  ;;  %v9177_v16 = vadd.s32 1, %v9170_v13  ;;  %vm813_vm0 = vcmp.ge.s32.totalorder %v9167_v12, 0  ;;  %v7824_v2 = vld [vmem:[%s11214_s1 + $0x60] sm:$0xff]  ;;  %s11324_s23 = smov 16  }
  0x16   : > { %vm815_vm1 = vcmp.lt.s32.totalorder %v9167_v12, 16  ;;  %v516_v23 = vadd.s32 4294967295, %v9167_v12  ;;  %v9218_v26 = vsub.s32 %v541_v18, %v9183_v19  ;;  %v9232_v29 = vadd.s32 4294967295, %v9170_v13  ;;  %v7825_v11 = vld [vmem:[%s11214_s1 + $0x68] sm:$0xff]  ;;  %s11230_s29 = smov 15   ;;  %v7823_v18 = vld [vmem:[%s11214_s1 + $0x58] sm:$0xff] }
  0x17   : > { %11332 = vst [vmem:[#allocation4_spill] sm:$0xff] %v9177_v16  ;;  %v9190_v20 = vadd.s32 1, %v9174_v15  ;;  %vm11264_vm2 = vcmp.lt.s32.totalorder %v9177_v16, 16  ;;  %vm814_vm3 = vcmp.ge.s32.totalorder %v9172_v14, 0  ;;  %vm816_vm4 = vcmp.lt.s32.totalorder %v9172_v14, 16  ;;  %vm9195_vm5 = vmand %vm813_vm0, %vm815_vm1  ;;  %v560_v34 = vld [vmem:[%s11214_s1] sm:$0xff] }
  0x18   : > { %vm9199_vm6 = vmand %vm814_vm3, %vm816_vm4  ;;  %v517_v24 = vadd.s32 4294967295, %v9172_v14  ;;  %11339 = vst [vmem:[#allocation7_spill] sm:$0xff] %v9218_v26  ;;  %vm520_vm10 = vcmp.ge.s32.totalorder %v516_v23, 0  ;;  %vm522_vm12 = vcmp.lt.s32.totalorder %v516_v23, 16  ;;  %v9247_v33 = vadd.s32 4294967295, %v9174_v15  ;;  %v7828_v23 = vld [vmem:[%s11214_s1 + $0x80] sm:$0xff] }
  0x19   : > { %11333 = vst [vmem:[#allocation5_spill] sm:$0xff] %v9190_v20  ;;  %v11337_v22 = vsel %vm9199_vm6, 4294967295, %v11336_v22  ;;  %853 = vperm.xlu1 %8723, %v7818_v17   ;;  %vm11258_vm7 = vcmp.lt.s32.totalorder %v9190_v20, 16  ;;  %vm975_vm8 = vmand %vm9195_vm5, %vm11264_vm2  ;;  %vm526_vm0 = vcmp.ge.s32.totalorder %v9232_v29, 0  ;;  %v1074_v36 = vadd.s32 1, %v9167_v12  ;;  %s11306_s19 = smov 17  }
  0x1a   : > { %11338 = vst [vmem:[#allocation6_spill] sm:$0xff] %v11337_v22  ;;  %vm976_vm9 = vmand %vm9199_vm6, %vm11258_vm7  ;;  %v9225_v27 = vsel %vm975_vm8, 1.0, %v9020_v5  ;;  %vm521_vm11 = vcmp.ge.s32.totalorder %v517_v24, 0  ;;  %vm523_vm13 = vcmp.lt.s32.totalorder %v517_v24, 16  ;;  %vm527_vm3 = vcmp.ge.s32.totalorder %v9247_v33, 0  ;;  %s11290_s16 = smov 111  }
  0x1b   : > { %11340 = vst [vmem:[#allocation8_spill] sm:$0xff] %v9225_v27  ;;  %v9229_v28 = vsel %vm976_vm9, 1.0, %v9020_v5  ;;  %vm9242_vm14 = vmand %vm520_vm10, %vm522_vm12  ;;  %v1075_v39 = vadd.s32 1, %v9172_v14  ;;  %vm1076_vm8 = vcmp.ge.s32.totalorder %v1074_v36, 0  ;;  %vm1078_vm9 = vcmp.lt.s32.totalorder %v1074_v36, 16  ;;  %v7827_v36 = vld [vmem:[%s11214_s1 + $0x78] sm:$0xff] }
  0x1c   : > { %11341 = vst [vmem:[#allocation9_spill] sm:$0xff] %v9229_v28  ;;  %v981_v30 = vcombine.low %v9225_v27, %v9229_v28  ;;  %vm9249_vm15 = vmand %vm521_vm11, %vm523_vm13  ;;  %v9256_v35 = vsel %vm9242_vm14, 1.0, %v9020_v5  ;;  %vm9290_vm13 = vcmp.lt.s32.totalorder %v501_v3, 256  ;;  %s11288_s18 = smov 110   ;;  %s9032_s26 = smov 126  }
  0x1d   : > { %923 = vperm.xlu1 %8723, %v7820_v25   ;;  %11346 = vst [vmem:[#allocation10_spill] sm:$0xff] %v9256_v35  ;;  %v9264_v38 = vsel %vm9249_vm15, 1.0, %v9020_v5  ;;  %vm714_vm1 = vmand %vm9242_vm14, %vm11264_vm2  ;;  %vm1077_vm11 = vcmp.ge.s32.totalorder %v1075_v39, 0  ;;  %vm1079_vm12 = vcmp.lt.s32.totalorder %v1075_v39, 16  ;;  %v11351_v44 = vsel %vm9290_vm13, 4294967295, %v11350_v44  ;;  %v7826_v25 = vld [vmem:[%s11214_s1 + $0x70] sm:$0xff] }
  0x1e   : > { %v988_v31 = vrot.slane %v981_v30, %v9218_v26  ;;  %11347 = vst [vmem:[#allocation11_spill] sm:$0xff] %v9264_v38  ;;  %v613_v41 = vcombine.low %v9256_v35, %v9264_v38  ;;  %vm715_vm4 = vmand %vm9249_vm15, %vm11258_vm7  ;;  %v9279_v42 = vsel %vm714_vm1, 1.0, %v9020_v5  ;;  %s11276_s27 = smov 96   ;;  %s11272_s30 = smov 94  }
  0x1f   : > { %11348 = vst [vmem:[#allocation12_spill] sm:$0xff] %v9279_v42  ;;  %v9283_v43 = vsel %vm715_vm4, 1.0, %v9020_v5  ;;  %vm819_vm10 = vmand %vm9195_vm5, %vm526_vm0  ;;  %s11327_s17 = smov 121   ;;  %s11326_s22 = smov 119  }
  0x20   : > { %v995_v37 = vrot.slane %v988_v31, %v9218_v26  ;;  %11349 = vst [vmem:[#allocation13_spill] sm:$0xff] %v9283_v43  ;;  %11352 = vst [vmem:[#allocation14_spill] sm:$0xff] %v11351_v44  ;;  %v620_v45 = vrot.slane %v613_v41, %v9218_v26  ;;  %v720_v46 = vcombine.low %v9279_v42, %v9283_v43  ;;  %v9302_v47 = vsel %vm819_vm10, 1.0, %v9020_v5  ;;  %v7829_v31 = vld [vmem:[%s11214_s1 + $0x88] sm:$0xff] }
  0x21   : > { %vm820_vm1 = vmand %vm9199_vm6, %vm527_vm3  ;;  %11353 = vst [vmem:[#allocation15_spill] sm:$0xff] %v9302_v47  ;;  %v1385_v41 = vld [vmem:[%s11215_s2 + $0x8] sm:$0xff] }
  0x22   : > { %996 = vrot.lane.b32.xlu1 %v995_v37, %s9022_s14  ;;  %506 = vst.msk [vmem:[#allocation2 + $0x8] ss:$8 sm:$0x3] %vm9290_vm13, %v500_v40  ;;  %v9307_v48 = vsel %vm820_vm1, 1.0, %v9020_v5  ;;  %vm9310_vm4 = vmand %vm1076_vm8, %vm1078_vm9  ;;  %v627_v50 = vrot.slane %v620_v45, %v9218_v26  ;;  %v727_v51 = vrot.slane %v720_v46, %v9218_v26  ;;  %v1384_v37 = vld [vmem:[%s11215_s2] sm:$0xff]  ;;  %v561_v40 = vld [vmem:[%s11214_s1 + $0x8] sm:$0xff] }
  0x23   : > { %11354 = vst [vmem:[#allocation16_spill] sm:$0xff] %v9307_v48  ;;  %v11356_v49 = vsel %vm9310_vm4, 4294967295, %v11355_v49  ;;  %v827_v52 = vcombine.low %v9302_v47, %v9307_v48  ;;  %vm9318_vm10 = vmand %vm1077_vm11, %vm1079_vm12  ;;  %v9325_v54 = vsel %vm9310_vm4, 1.0, %v9020_v5 }
  0x24   : > { %11357 = vst [vmem:[#allocation17_spill] sm:$0xff] %v11356_v49  ;;  %v11359_v53 = vsel %vm9318_vm10, 4294967295, %v11358_v53  ;;  %v9330_v55 = vsel %vm9318_vm10, 1.0, %v9020_v5  ;;  %vm1082_vm8 = vmand %vm9310_vm4, %vm526_vm0  ;;  %628 = vrot.lane.b32.xlu0 %v627_v50, %s11304_s24  ;;  %v734_v56 = vrot.slane %v727_v51, %v9218_v26  ;;  %v9447_v51 = vsub.s32 0, %v9183_v19 }
  0x25   : > { %11360 = vst [vmem:[#allocation18_spill] sm:$0xff] %v11359_v53  ;;  %v834_v57 = vrot.slane %v827_v52, %v9218_v26  ;;  %vm1083_vm9 = vmand %vm9318_vm10, %vm527_vm3  ;;  %v9344_v58 = vsel %vm1082_vm8, 1.0, %v9020_v5  ;;  %v1191_v61 = vcombine.low %v9325_v54, %v9330_v55  ;;  %v9450_v52 = vsub.s32 1, %v9183_v19 }
  0x26   : > { %11361 = vst [vmem:[#allocation19_spill] sm:$0xff] %v9344_v58  ;;  %v9347_v59 = vsel %vm1083_vm9, 1.0, %v9020_v5  ;;  %735 = vrot.lane.b32.xlu1 %v734_v56, %s11270_s25  ;;  %vm1286_vm11 = vmand %vm9310_vm4, %vm11264_vm2  ;;  %vm11256_vm9 = vcmask 924672   ;;  %s11328_s25 = smov 120  }
  0x27   : > { %11362 = vst [vmem:[#allocation20_spill] sm:$0xff] %v9347_v59  ;;  %v841_v60 = vrot.slane %v834_v57, %v9218_v26  ;;  %v1090_v63 = vcombine.low %v9344_v58, %v9347_v59  ;;  %v1198_v1 = vrot.slane %v1191_v61, %v9218_v26  ;;  %vm1287_vm12 = vmand %vm9318_vm10, %vm11258_vm7  ;;  %v9381_v9 = vsel %vm1286_vm11, 1.0, %v9020_v5 }
  0x28   : > { %11363 = vst [vmem:[#allocation21_spill] sm:$0xff] %v9381_v9  ;;  %v9384_v10 = vsel %vm1287_vm12, 1.0, %v9020_v5  ;;  %vm528_vm1 = vmand %vm9242_vm14, %vm526_vm0  ;;  %vm11268_vm14 = vcmask 916480   ;;  %vm11265_vm0 = vcmask 7168   ;;  %vm11255_vm11 = vcmask 121856  }
  0x29   : > { %842 = vrot.lane.b32.xlu0 %v841_v60, %s9025_s28  ;;  %v1097_v3 = vrot.slane %v1090_v63, %v9218_v26  ;;  %v1205_v7 = vrot.slane %v1198_v1, %v9218_v26  ;;  %11364 = vst [vmem:[#allocation22_spill] sm:$0xff] %v9384_v10  ;;  %v1292_v17 = vcombine.low %v9381_v9, %v9384_v10  ;;  %vm529_vm8 = vmand %vm9249_vm15, %vm527_vm3  ;;  %v9412_v29 = vsel %vm528_vm1, 1.0, %v9020_v5  ;;  %v917_v56 = vld [vmem:[#allocation2 + $0x8] ss:$8 sm:$0x3] }
  0x2a   : > { %928 = vperm.xlu1 %8723, %v7821_v62   ;;  %11365 = vst [vmem:[#allocation23_spill] sm:$0xff] %v9412_v29  ;;  %v9415_v30 = vsel %vm529_vm8, 1.0, %v9020_v5  ;;  %11367 = vst [vmem:[#allocation25_spill] sm:$0xff] %v9447_v51  ;;  %v935_v61 = vrot.slane %v917_v56, %v9447_v51  ;;  %v939_v62 = vrot.slane %v917_v56, %v9450_v52  ;;  %vm11269_vm15 = vcmask 1039360  }
  0x2b   : > { %v1104_v8 = vrot.slane %v1097_v3, %v9218_v26  ;;  %v1299_v24 = vrot.slane %v1292_v17, %v9218_v26  ;;  %11366 = vst [vmem:[#allocation24_spill] sm:$0xff] %v9415_v30  ;;  %v538_v33 = vcombine.low %v9412_v29, %v9415_v30  ;;  %vm11267_vm3 = vcmask 130048  }
  0x2c   : > { %vm11266_vm12 = vcmask 138240   ;;  %vm11263_vm1 = vcmask 908288   ;;  %vm11257_vm8 = vcmask 1031168   ;;  %vm11259_vm7 = vcmask 769024  }
  0x2d   : > { %858 = vperm.xlu0 %8722, %v7819_v0   ;;  %v1306_v32 = vrot.slane %v1299_v24, %v9218_v26  ;;  %v545_v5 = vrot.slane %v538_v33, %v9218_v26 }
  0x2e   : > { %1117 = vperm.xlu1 %8723, %v7824_v2  }
  0x2f   : > { %v552_v39 = vrot.slane %v545_v5, %v9218_v26  ;;  %v812_v5 = vld [vmem:[#allocation2] ss:$8 sm:$0x7] }
  0x31   : > { %1008 = vperm.xlu0 %8722, %v7822_v4  }
  0x32   : > { %1206 = vrot.lane.b32.xlu1 %v1205_v7, %s11324_s23  ;;  %v600_v7 = vld [vmem:[#allocation2] ss:$8 sm:$0x7]  ;;  %s9048_s23 = smov 3  }
  0x35   : > { %1105 = vrot.lane.b32.xlu0 %v1104_v8, %s11230_s29  ;;  %s11274_s29 = smov 95  }
  0x36   : > { %1122 = vperm.xlu1 %8723, %v7825_v11  }
  0x39   : > { %1013 = vperm.xlu0 %8722, %v7823_v18  }
  0x3a   : > { %1319 = vperm.xlu1 %8723, %v7828_v23   ;;  %v9462_v23 = vsub.s32 2, %v9183_v19 }
  0x3d   : > { %1218 = vperm.xlu0 %8722, %v7826_v25  }
  0x3e   : > { %1324 = vperm.xlu1 %8723, %v7829_v31  }
  0x41   : > { %1307 = vrot.lane.b32.xlu0 %v1306_v32, %s11306_s19 }
  0x42   : > { %564 = vperm.xlu1 %8723, %v560_v34  }
  0x45   : > { %1223 = vperm.xlu0 %8722, %v7827_v36  }
  0x46   : > { %1388 = vperm.xlu1 %8723, %v1384_v37  }
  0x49   : > { %553 = vrot.lane.b32.xlu0 %v552_v39, %s11290_s16 }
  0x4d   : > { %569 = vperm.xlu0 %8722, %v561_v40  }
  0x51   : > { %1393 = vperm.xlu0 %8722, %v1385_v41  }
  0x90   : > { %v9442_v45 = vpop.permute.xlu1 %747  ;;  %v641_v46 = vpop.permute.xlu0 %640 }
  0x94   : > { %v9444_v50 = vpop.permute.xlu1 %645  ;;  %v9452_v60 = vpop.permute.xlu0 %752 }
  0x98   : > { %v854_v57 = vpop.permute.xlu1 %853  ;;  %v629_v2 = vpop.permute.xlu0 %628 }
  0x99   : > { %v630_v4 = vrot.slane %v629_v2, 7 }
  0x9b   : > { %v632_v8 = vsel %vm11268_vm14, %v630_v4, %v629_v2 }
  0x9c   : > { %v924_v63 = vpop.permute.xlu1 %923  ;;  %v843_v17 = vpop.permute.xlu0 %842  ;;  %v634_v18 = vmul.f32 %v632_v8, %v600_v7 }
  0x9d   : > { %v942_v0 = vmul.f32 %v935_v61, %v924_v63  ;;  %v943_v1 = vmul.f32 %v939_v62, %v924_v63  ;;  %v844_v24 = vrot.slane %v843_v17, 7 }
  0x9e   : > { %v660_v33 = vrot.slane %v634_v18, %v9462_v23  ;;  %v656_v34 = vrot.slane %v634_v18, %v9450_v52  ;;  %v652_v41 = vrot.slane %v634_v18, %v9447_v51 }
  0x9f   : > { %952 = vrot.lane.b32.xlu0 %v943_v1, %s11290_s16  ;;  %950 = vrot.lane.b32.xlu1 %v942_v0, %s11290_s16  ;;  %v845_v36 = vsel %vm11269_vm15, %v844_v24, %v843_v17 }
  0xa0   : > { %v997_v3 = vpop.permute.xlu1 %996  ;;  %v847_v37 = vmul.f32 %v845_v36, %v812_v5  ;;  %v666_v39 = vmul.f32 %v660_v33, %v641_v46  ;;  %v665_v40 = vmul.f32 %v656_v34, %v641_v46  ;;  %v668_v4 = vmul.f32 %v656_v34, %v9444_v50 }
  0xa1   : > { %v998_v0 = vrot.slane %v997_v3, 7  ;;  %v667_v34 = vmul.f32 %v652_v41, %v9444_v50 }
  0xa2   : > { %v873_v63 = vrot.slane %v847_v37, %v9462_v23  ;;  %v865_v7 = vrot.slane %v847_v37, %v9447_v51  ;;  %v869_v8 = vrot.slane %v847_v37, %v9450_v52 }
  0xa3   : > { %v1000_v17 = vsel %vm11265_vm0, %v998_v0, %v997_v3 }
  0xa4   : > { %v9459_v11 = vpop.permute.xlu1 %735  ;;  %v879_v2 = vmul.f32 %v873_v63, %v854_v57  ;;  %v877_v24 = vmul.f32 %v865_v7, %v854_v57 }
  0xa9   : > { %v929_v25 = vpop.permute.xlu1 %928 }
  0xaa   : > { %v944_v31 = vmul.f32 %v935_v61, %v929_v25  ;;  %v945_v32 = vmul.f32 %v939_v62, %v929_v25  ;;  %v669_v61 = vmul.f32 %v660_v33, %v9444_v50  ;;  %v664_v62 = vmul.f32 %v652_v41, %v641_v46  ;;  %v972_v46 = vld [vmem:[#allocation2 + $0x8] ss:$8 sm:$0x7] }
  0xab   : > { %v878_v25 = vmul.f32 %v869_v8, %v854_v57 }
  0xac   : > { %954 = vrot.lane.b32.xlu0 %v944_v31, %s11290_s16  ;;  %956 = vrot.lane.b32.xlu1 %v945_v32, %s11290_s16  ;;  %v859_v56 = vpop.permute.xlu0 %858  ;;  %v1002_v32 = vmul.f32 %v1000_v17, %v972_v46  ;;  %v737_v46 = vrot.slane %v9459_v11, 7  ;;  %s9046_s16 = smov 123  }
  0xad   : > { %v9482_v18 = vpop.permute.xlu1 %1117  ;;  %v881_v33 = vmul.f32 %v869_v8, %v859_v56  ;;  %v882_v57 = vmul.f32 %v873_v63, %v859_v56  ;;  %v880_v8 = vmul.f32 %v865_v7, %v859_v56 }
  0xae   : > { %v1020_v3 = vrot.slane %v1002_v32, %v9447_v51  ;;  %v1024_v50 = vrot.slane %v1002_v32, %v9450_v52 }
  0xb0   : > { %680 = vrot.lane.b32.xlu0 %v666_v39, %s9025_s28  ;;  %678 = vrot.lane.b32.xlu1 %v665_v40, %s9025_s28  ;;  %v1009_v1 = vpop.permute.xlu0 %1008  ;;  %v1028_v40 = vrot.slane %v1002_v32, %v9462_v23 }
  0xb1   : > { %v1207_v5 = vpop.permute.xlu1 %1206  ;;  %v1032_v37 = vmul.f32 %v1020_v3, %v1009_v1 }
  0xb2   : > { %v1208_v39 = vrot.slane %v1207_v5, 7  ;;  %v1034_v41 = vmul.f32 %v1028_v40, %v1009_v1 }
  0xb4   : > { %686 = vrot.lane.b32.xlu0 %v669_v61, %s9025_s28  ;;  %676 = vrot.lane.b32.xlu1 %v664_v62, %s9025_s28  ;;  %v9484_v31 = vpop.permute.xlu0 %1105  ;;  %v1033_v61 = vmul.f32 %v1024_v50, %v1009_v1  ;;  %v1182_v62 = vld [vmem:[#allocation2 + $0x8] ss:$8 sm:$0x7]  ;;  %v1210_v0 = vsel %vm11267_vm3, %v1208_v39, %v1207_v5 }
  0xb5   : > { %v1212_v63 = vmul.f32 %v1210_v0, %v1182_v62 }
  0xb7   : > { %v1230_v32 = vrot.slane %v1212_v63, %v9447_v51 }
  0xb8   : > { %893 = vrot.lane.b32.xlu0 %v879_v2, %s11304_s24  ;;  %684 = vrot.lane.b32.xlu1 %v668_v4, %s9025_s28  ;;  %v1014_v36 = vpop.permute.xlu0 %1013 }
  0xb9   : > { %v1035_v4 = vmul.f32 %v1020_v3, %v1014_v36  ;;  %v1037_v1 = vmul.f32 %v1028_v40, %v1014_v36  ;;  %v1238_v3 = vrot.slane %v1212_v63, %v9462_v23 }
  0xbc   : > { %889 = vrot.lane.b32.xlu0 %v877_v24, %s11304_s24  ;;  %891 = vrot.lane.b32.xlu1 %v878_v25, %s11304_s24  ;;  %v1219_v2 = vpop.permute.xlu0 %1218  ;;  %v1036_v24 = vmul.f32 %v1024_v50, %v1014_v36  ;;  %v1234_v25 = vrot.slane %v1212_v63, %v9450_v52 }
  0xbd   : > { %v1242_v5 = vmul.f32 %v1230_v32, %v1219_v2 }
  0xbe   : > { %v1243_v7 = vmul.f32 %v1234_v25, %v1219_v2 }
  0xc0   : > { %897 = vrot.lane.b32.xlu0 %v881_v33, %s11304_s24  ;;  %682 = vrot.lane.b32.xlu1 %v667_v34, %s9025_s28  ;;  %v1308_v17 = vpop.permute.xlu0 %1307  ;;  %v705_v33 = vld [vmem:[#allocation2] ss:$8 sm:$0x7]  ;;  %v739_v34 = vsel %vm11256_vm9, %v737_v46, %v9459_v11  ;;  %v1107_v11 = vrot.slane %v9484_v31, 7  ;;  %vm11261_vm9 = vcmask 785408  }
  0xc1   : > { %v741_v56 = vmul.f32 %v739_v34, %v705_v33 }
  0xc2   : > { %v1109_v62 = vsel %vm11255_vm11, %v1107_v11, %v9484_v31  ;;  %vm11262_vm11 = vcmask 900096  }
  0xc3   : > { %v763_v39 = vrot.slane %v741_v56, %v9450_v52 }
  0xc4   : > { %1044 = vrot.lane.b32.xlu0 %v1032_v37, %s11288_s18  ;;  %899 = vrot.lane.b32.xlu1 %v882_v57, %s11304_s24  ;;  %v1224_v37 = vpop.permute.xlu0 %1223  ;;  %v1244_v57 = vmul.f32 %v1238_v3, %v1219_v2 }
  0xc5   : > { %v1246_v36 = vmul.f32 %v1234_v25, %v1224_v37  ;;  %v772_v40 = vmul.f32 %v763_v39, %v9442_v45  ;;  %v1245_v50 = vmul.f32 %v1230_v32, %v1224_v37  ;;  %v1247_v63 = vmul.f32 %v1238_v3, %v1224_v37 }
  0xc6   : > { %v1309_v32 = vrot.slane %v1308_v17, 7 }
  0xc8   : > { %1048 = vrot.lane.b32.xlu0 %v1034_v41, %s11288_s18  ;;  %1046 = vrot.lane.b32.xlu1 %v1033_v61, %s11288_s18  ;;  %v759_v41 = vrot.slane %v741_v56, %v9447_v51  ;;  %v1073_v61 = vld [vmem:[#allocation2 + $0x8] ss:$8 sm:$0x7] }
  0xc9   : > { %v1111_v0 = vmul.f32 %v1109_v62, %v1073_v61 }
  0xca   : > { %v771_v2 = vmul.f32 %v759_v41, %v9442_v45  ;;  %v774_v33 = vmul.f32 %v759_v41, %v9452_v60 }
  0xcb   : > { %v1129_v31 = vrot.slane %v1111_v0, %v9447_v51  ;;  %v1137_v25 = vrot.slane %v1111_v0, %v9462_v23  ;;  %v1133_v34 = vrot.slane %v1111_v0, %v9450_v52 }
  0xcc   : > { %1050 = vrot.lane.b32.xlu0 %v1035_v4, %s11288_s18  ;;  %895 = vrot.lane.b32.xlu1 %v880_v8, %s11304_s24  ;;  %v767_v4 = vrot.slane %v741_v56, %v9462_v23  ;;  %v1283_v56 = vld [vmem:[#allocation2 + $0x8] ss:$8 sm:$0x7] }
  0xce   : > { %v776_v8 = vmul.f32 %v767_v4, %v9452_v60  ;;  %v773_v46 = vmul.f32 %v767_v4, %v9442_v45  ;;  %v1143_v45 = vmul.f32 %v1137_v25, %v9482_v18 }
  0xd0   : > { %1054 = vrot.lane.b32.xlu0 %v1037_v1, %s11288_s18  ;;  %1052 = vrot.lane.b32.xlu1 %v1036_v24, %s11288_s18  ;;  %v1141_v1 = vmul.f32 %v1129_v31, %v9482_v18  ;;  %v775_v24 = vmul.f32 %v763_v39, %v9452_v60  ;;  %s9047_s18 = smov 4  }
  0xd4   : > { %1256 = vrot.lane.b32.xlu0 %v1243_v7, %s11274_s29  ;;  %1254 = vrot.lane.b32.xlu1 %v1242_v5, %s11274_s29  ;;  %v1311_v7 = vsel %vm11266_vm12, %v1309_v32, %v1308_v17  ;;  %v1123_v5 = vpop.permute.xlu1 %1122 }
  0xd5   : > { %v1313_v3 = vmul.f32 %v1311_v7, %v1283_v56  ;;  %v1144_v37 = vmul.f32 %v1129_v31, %v1123_v5  ;;  %v1145_v60 = vmul.f32 %v1133_v34, %v1123_v5 }
  0xd7   : > { %v1335_v39 = vrot.slane %v1313_v3, %v9450_v52  ;;  %v1331_v11 = vrot.slane %v1313_v3, %v9447_v51  ;;  %v1339_v41 = vrot.slane %v1313_v3, %v9462_v23 }
  0xd8   : > { %1262 = vrot.lane.b32.xlu0 %v1246_v36, %s11274_s29  ;;  %1258 = vrot.lane.b32.xlu1 %v1244_v57, %s11274_s29  ;;  %v1142_v36 = vmul.f32 %v1133_v34, %v9482_v18  ;;  %v1146_v57 = vmul.f32 %v1137_v25, %v1123_v5  ;;  %v1320_v17 = vpop.permute.xlu1 %1319 }
  0xd9   : > { %v1345_v62 = vmul.f32 %v1339_v41, %v1320_v17 }
  0xdc   : > { %785 = vrot.lane.b32.xlu0 %v772_v40, %s9032_s26  ;;  %1260 = vrot.lane.b32.xlu1 %v1245_v50, %s11274_s29  ;;  %v1344_v40 = vmul.f32 %v1335_v39, %v1320_v17  ;;  %v1343_v50 = vmul.f32 %v1331_v11, %v1320_v17  ;;  %v1325_v18 = vpop.permute.xlu1 %1324 }
  0xdd   : > { %v1346_v61 = vmul.f32 %v1331_v11, %v1325_v18  ;;  %v1348_v0 = vmul.f32 %v1339_v41, %v1325_v18 }
  0xe0   : > { %783 = vrot.lane.b32.xlu0 %v771_v2, %s9032_s26  ;;  %1264 = vrot.lane.b32.xlu1 %v1247_v63, %s11274_s29  ;;  %v1347_v2 = vmul.f32 %v1335_v39, %v1325_v18  ;;  %v554_v63 = vpop.permute.xlu0 %553  ;;  %v565_v4 = vpop.permute.xlu1 %564  ;;  %s9040_s29 = smov 9  }
  0xe4   : > { %793 = vrot.lane.b32.xlu0 %v776_v8, %s9032_s26  ;;  %787 = vrot.lane.b32.xlu1 %v773_v46, %s9032_s26  ;;  %v9555_v8 = vpop.permute.xlu0 %569  ;;  %v9557_v46 = vpop.permute.xlu1 %1388 }
  0xe8   : > { %1153 = vrot.lane.b32.xlu0 %v1141_v1, %s11276_s27  ;;  %791 = vrot.lane.b32.xlu1 %v775_v24, %s9032_s26  ;;  %v9559_v31 = vpop.permute.xlu0 %1393 }
  0xec   : > { %1157 = vrot.lane.b32.xlu0 %v1143_v45, %s11276_s27  ;;  %789 = vrot.lane.b32.xlu1 %v774_v33, %s9032_s26 }
  0xf0   : > { %1159 = vrot.lane.b32.xlu0 %v1144_v37, %s11276_s27  ;;  %1155 = vrot.lane.b32.xlu1 %v1142_v36, %s11276_s27 }
  0xf4   : > { %1163 = vrot.lane.b32.xlu0 %v1146_v57, %s11276_s27  ;;  %1161 = vrot.lane.b32.xlu1 %v1145_v60, %s11276_s27  ;;  %s9041_s27 = smov 8  }
  0xf8   : > { %1357 = vrot.lane.b32.xlu0 %v1344_v40, %s11272_s30  ;;  %1355 = vrot.lane.b32.xlu1 %v1343_v50, %s11272_s30 }
  0xfc   : > { %1361 = vrot.lane.b32.xlu0 %v1346_v61, %s11272_s30  ;;  %1359 = vrot.lane.b32.xlu1 %v1345_v62, %s11272_s30  ;;  %v555_v61 = vrot.slane %v554_v63, 7 }
  0xfe   : > { %v557_v44 = vsel %vm11263_vm1, %v555_v61, %v554_v63 }
 0x100   : > { %1365 = vrot.lane.b32.xlu0 %v1348_v0, %s11272_s30  ;;  %1363 = vrot.lane.b32.xlu1 %v1347_v2, %s11272_s30  ;;  %v515_v2 = vld [vmem:[#allocation2] ss:$8 sm:$0x7]  ;;  %s9039_s30 = smov 7  }
 0x101   : > { %v559_v26 = vmul.f32 %v557_v44, %v515_v2 }
 0x103   : > { %v576_v48 = vrot.slane %v559_v26, %v9447_v51  ;;  %v580_v42 = vrot.slane %v559_v26, %v9450_v52  ;;  %v584_v61 = vrot.slane %v559_v26, %v9462_v23 }
 0x105   : > { %v588_v29 = vmul.f32 %v576_v48, %v565_v4  ;;  %v589_v2 = vmul.f32 %v580_v42, %v565_v4  ;;  %v590_v10 = vmul.f32 %v584_v61, %v565_v4 }
 0x111   : > { %v9561_v1 = vpop.permute.xlu0 %952  ;;  %v9563_v24 = vpop.permute.xlu1 %950 }
 0x11e   : > { %v9565_v25 = vpop.permute.xlu0 %954  ;;  %v9567_v32 = vpop.permute.xlu1 %956 }
 0x122   : > { %v681_v45 = vpop.permute.xlu0 %680  ;;  %v679_v33 = vpop.permute.xlu1 %678 }
 0x123   : > { %v690_v44 = vsel %vm11269_vm15, %v679_v33, %v681_v45  ;;  %v701_v53 = vadd.f32 %v681_v45, %v590_v10 }
 0x124   : > { %v700_v28 = vadd.f32 %v690_v44, %v589_v2 }
 0x126   : > { %v687_v34 = vpop.permute.xlu0 %686  ;;  %v677_v56 = vpop.permute.xlu1 %676 }
 0x127   : > { %v689_v30 = vsel %vm11269_vm15, %v677_v56, %v679_v33 }
 0x128   : > { %v699_v51 = vadd.f32 %v689_v30, %v588_v29 }
 0x12a   : > { %v9569_v7 = vpop.permute.xlu0 %893  ;;  %v685_v5 = vpop.permute.xlu1 %684 }
 0x12b   : > { %v692_v26 = vsel %vm11269_vm15, %v685_v5, %v687_v34 }
 0x12e   : > { %v890_v3 = vpop.permute.xlu0 %889  ;;  %v892_v37 = vpop.permute.xlu1 %891 }
 0x12f   : > { %v901_v9 = vsel %vm11268_vm14, %v890_v3, %v892_v37  ;;  %v902_v29 = vsel %vm11268_vm14, %v892_v37, %v9569_v7 }
 0x132   : > { %v9571_v36 = vpop.permute.xlu0 %897  ;;  %v683_v57 = vpop.permute.xlu1 %682 }
 0x133   : > { %v691_v30 = vsel %vm11269_vm15, %v683_v57, %v685_v5  ;;  %v958_v5 = vsel %vm11263_vm1, %v9563_v24, %v9561_v1 }
 0x136   : > { %v9573_v60 = vpop.permute.xlu0 %1044  ;;  %v9575_v39 = vpop.permute.xlu1 %899 }
 0x13a   : > { %v9577_v11 = vpop.permute.xlu0 %1048  ;;  %v9579_v17 = vpop.permute.xlu1 %1046 }
 0x13e   : > { %v9581_v40 = vpop.permute.xlu0 %1050  ;;  %v9583_v50 = vpop.permute.xlu1 %895 }
 0x142   : > { %v9585_v41 = vpop.permute.xlu0 %1054  ;;  %v9587_v18 = vpop.permute.xlu1 %1052 }
 0x146   : > { %v9589_v62 = vpop.permute.xlu0 %1256  ;;  %v9591_v0 = vpop.permute.xlu1 %1254 }
 0x14a   : > { %v9594_v59 = vpop.permute.xlu0 %1262  ;;  %v9596_v58 = vpop.permute.xlu1 %1258 }
 0x14e   : > { %v786_v47 = vpop.permute.xlu0 %785  ;;  %v9599_v43 = vpop.permute.xlu1 %1260 }
 0x152   : > { %v784_v38 = vpop.permute.xlu0 %783  ;;  %v9603_v35 = vpop.permute.xlu1 %1264 }
 0x153   : > { %v796_v63 = vsel %vm11257_vm8, %v784_v38, %v786_v47  ;;  %v593_v38 = vmul.f32 %v584_v61, %v9555_v8 }
 0x154   : > { %v806_v27 = vadd.f32 %v796_v63, %v699_v51  ;;  %v592_v51 = vmul.f32 %v580_v42, %v9555_v8 }
 0x155   : > { %v704_v4 = vadd.f32 %v687_v34, %v593_v38  ;;  %v903_v34 = vsel %vm11268_vm14, %v9583_v50, %v9571_v36 }
 0x156   : > { %v794_v20 = vpop.permute.xlu0 %793  ;;  %v788_v16 = vpop.permute.xlu1 %787  ;;  %v911_v49 = vadd.f32 %v901_v9, %v806_v27  ;;  %v703_v9 = vadd.f32 %v692_v26, %v592_v51 }
 0x157   : > { %v797_v52 = vsel %vm11257_vm8, %v786_v47, %v788_v16  ;;  %v591_v47 = vmul.f32 %v576_v48, %v9555_v8  ;;  %v811_v37 = vadd.f32 %v794_v20, %v704_v4 }
 0x158   : > { %v807_v56 = vadd.f32 %v797_v52, %v700_v28  ;;  %v808_v28 = vadd.f32 %v788_v16, %v701_v53  ;;  %v966_v45 = vadd.f32 %v9563_v24, %v911_v49  ;;  %v1057_v24 = vsel %vm11262_vm11, %v9573_v60, %v9579_v17 }
 0x159   : > { %v702_v10 = vadd.f32 %v691_v30, %v591_v47  ;;  %v916_v2 = vadd.f32 %v9575_v39, %v811_v37 }
 0x15a   : > { %v1154_v22 = vpop.permute.xlu0 %1153  ;;  %v792_v33 = vpop.permute.xlu1 %791  ;;  %v912_v23 = vadd.f32 %v902_v29, %v807_v56  ;;  %v913_v16 = vadd.f32 %v9569_v7, %v808_v28  ;;  %v1067_v49 = vadd.f32 %v9573_v60, %v966_v45  ;;  %v1058_v60 = vsel %vm11262_vm11, %v9579_v17, %v9577_v11 }
 0x15b   : > { %v799_v27 = vsel %vm11257_vm8, %v792_v33, %v794_v20  ;;  %v904_v20 = vsel %vm11268_vm14, %v9571_v36, %v9575_v39  ;;  %v959_v36 = vsel %vm11263_vm1, %v9565_v25, %v9567_v32 }
 0x15c   : > { %v810_v48 = vadd.f32 %v799_v27, %v703_v9  ;;  %v967_v8 = vadd.f32 %v958_v5, %v912_v23  ;;  %v968_v52 = vadd.f32 %v9561_v1, %v913_v16  ;;  %v1176_v38 = vadd.f32 %v1154_v22, %v1067_v49 }
 0x15d   : > { %v971_v1 = vadd.f32 %v9567_v32, %v916_v2  ;;  %v1060_v32 = vsel %vm11262_vm11, %v9587_v18, %v9585_v41 }
 0x15e   : > { %v1158_v3 = vpop.permute.xlu0 %1157  ;;  %v790_v44 = vpop.permute.xlu1 %789  ;;  %v915_v50 = vadd.f32 %v904_v20, %v810_v48  ;;  %v1068_v56 = vadd.f32 %v1057_v24, %v967_v8  ;;  %v1069_v51 = vadd.f32 %v1058_v60, %v968_v52  ;;  %v1277_v17 = vadd.f32 %v9591_v0, %v1176_v38 }
 0x15f   : > { %v798_v42 = vsel %vm11257_vm8, %v790_v44, %v792_v33  ;;  %vm11260_vm8 = vcmask 777216   ;;  %v1072_v44 = vadd.f32 %v1060_v32, %v971_v1  ;;  %v9686_v60 = vshra.s32 %v9157_v6, 3 }
 0x160   : > { %v809_v53 = vadd.f32 %v798_v42, %v702_v10  ;;  %v970_v47 = vadd.f32 %v959_v36, %v915_v50  ;;  %v1268_v37 = vsel %vm11260_vm8, %v9589_v62, %v9596_v58  ;;  %v1270_v58 = vsel %vm11260_vm8, %v9594_v59, %v9603_v35 }
 0x161   : > { %v11279_v1 = vmul.u32 2, %v9686_v60 }
 0x162   : > { %v914_v57 = vadd.f32 %v903_v34, %v809_v53  ;;  %v1160_v63 = vpop.permute.xlu0 %1159  ;;  %v1156_v61 = vpop.permute.xlu1 %1155 }
 0x163   : > { %v1166_v7 = vsel %vm11261_vm9, %v1154_v22, %v1156_v61  ;;  %v1167_v39 = vsel %vm11261_vm9, %v1156_v61, %v1158_v3  ;;  %v1267_v22 = vsel %vm11260_vm8, %v9591_v0, %v9589_v62  ;;  %v1269_v61 = vsel %vm11260_vm8, %v9599_v43, %v9594_v59 }
 0x164   : > { %v969_v33 = vadd.f32 %v9565_v25, %v914_v57  ;;  %v1177_v26 = vadd.f32 %v1166_v7, %v1068_v56  ;;  %v1059_v25 = vsel %vm11262_vm11, %v9581_v40, %v9587_v18  ;;  %v1178_v23 = vadd.f32 %v1167_v39, %v1069_v51 }
 0x165   : > { %v1071_v3 = vadd.f32 %v1059_v25, %v970_v47  ;;  %v9689_v39 = vand.u32 7, %v9157_v6  ;;  %v1519_v47 = vmul.u32 16, %v11279_v1 }
 0x166   : > { %v1164_v29 = vpop.permute.xlu0 %1163  ;;  %v1162_v30 = vpop.permute.xlu1 %1161  ;;  %v1070_v28 = vadd.f32 %v9581_v40, %v969_v33  ;;  %v1278_v27 = vadd.f32 %v1267_v22, %v1177_v26  ;;  %v1279_v41 = vadd.f32 %v1268_v37, %v1178_v23 }
 0x167   : > { %v1168_v9 = vsel %vm11261_vm9, %v1160_v63, %v1162_v30  ;;  %v1169_v10 = vsel %vm11261_vm9, %v1162_v30, %v1164_v29 }
 0x168   : > { %v1179_v0 = vadd.f32 %v1160_v63, %v1070_v28  ;;  %v1180_v42 = vadd.f32 %v1168_v9, %v1071_v3  ;;  %v1181_v16 = vadd.f32 %v1169_v10, %v1072_v44  ;;  %v9720_v3 = vadd.s32 136, %v9183_v19 }
 0x169   : > { %v9723_v44 = vadd.s32 8, %v9183_v19 }
 0x16a   : > { %v1358_v4 = vpop.permute.xlu0 %1357  ;;  %v1356_v11 = vpop.permute.xlu1 %1355  ;;  %v1280_v62 = vadd.f32 %v9599_v43, %v1179_v0  ;;  %v1281_v24 = vadd.f32 %v1269_v61, %v1180_v42  ;;  %v1282_v7 = vadd.f32 %v1270_v58, %v1181_v16  ;;  %v9739_v0 = vadd.s32 16, %v9183_v19 }
 0x16b   : > { %v1368_v45 = vsel %vm11259_vm7, %v1356_v11, %v1358_v4  ;;  %v1378_v5 = vadd.f32 %v1356_v11, %v1277_v17  ;;  %v9742_v42 = vadd.s32 24, %v9183_v19  ;;  %v9788_v61 = vadd.s32 48, %v9183_v19 }
 0x16c   : > { %v1379_v40 = vadd.f32 %v1368_v45, %v1278_v27  ;;  %v9717_v45 = vadd.s32 128, %v9183_v19  ;;  %v9797_v58 = vadd.s32 56, %v9183_v19 }
 0x16d   : > { %v1396_v57 = vadd.f32 %v9557_v46, %v1378_v5  ;;  %v9728_v5 = vadd.s32 144, %v9183_v19 }
 0x16e   : > { %v1362_v48 = vpop.permute.xlu0 %1361  ;;  %v1360_v53 = vpop.permute.xlu1 %1359  ;;  %v1397_v18 = vadd.f32 %v9557_v46, %v1379_v40  ;;  %v9731_v40 = vadd.s32 152, %v9183_v19 }
 0x16f   : > { %v1369_v8 = vsel %vm11259_vm7, %v1358_v4, %v1360_v53  ;;  %v1381_v52 = vadd.f32 %v1362_v48, %v1280_v62  ;;  %v1402_v29 = vmax.f32 %v1396_v57, 0.0  ;;  %v9702_v4 = vld [vmem:[#allocation2] sm:$0xff]  ;;  %v11280_v53 = vmov 1.0|1.0  }
 0x170   : > { %v1380_v34 = vadd.f32 %v1369_v8, %v1279_v41  ;;  %v1403_v49 = vmax.f32 %v1397_v18, 0.0  ;;  %11368 = vst [vmem:[#allocation26_spill] sm:$0xff] %v9731_v40  ;;  %v9765_v41 = vadd.s32 160, %v9183_v19  ;;  %v9769_v18 = vadd.s32 168, %v9183_v19 }
 0x171   : > { %v9772_v8 = vadd.s32 32, %v9183_v19  ;;  %v9785_v57 = vadd.s32 184, %v9183_v19  ;;  %v9804_v62 = vadd.s32 192, %v9183_v19 }
 0x172   : > { %v1366_v63 = vpop.permute.xlu0 %1365  ;;  %v1364_v20 = vpop.permute.xlu1 %1363  ;;  %1416 = vrot.lane.b32.xlu1 %v1403_v49, %s11306_s19  ;;  %v1398_v2 = vadd.f32 %v9557_v46, %v1380_v34  ;;  %v1399_v46 = vadd.f32 %v9559_v31, %v1381_v52  ;;  %11369 = vst [vmem:[#allocation27_spill] sm:$0xff] %v9765_v41  ;;  %11370 = vst [vmem:[#allocation28_spill] sm:$0xff] %v9769_v18  ;;  %v9775_v34 = vadd.s32 40, %v9183_v19  ;;  %v9778_v49 = vadd.s32 176, %v9183_v19 }
 0x173   : > { %v1370_v50 = vsel %vm11259_vm7, %v1362_v48, %v1364_v20  ;;  %v1371_v56 = vsel %vm11259_vm7, %v1364_v20, %v1366_v63  ;;  %11372 = vst [vmem:[#allocation30_spill] sm:$0xff] %v9785_v57  ;;  %11373 = vst [vmem:[#allocation31_spill] sm:$0xff] %v9804_v62  ;;  %v9808_v63 = vadd.s32 200, %v9183_v19  ;;  %v9816_v20 = vadd.s32 64, %v9183_v19 }
 0x174   : > { %v1382_v33 = vadd.f32 %v1370_v50, %v1281_v24  ;;  %v1383_v38 = vadd.f32 %v1371_v56, %v1282_v7  ;;  %v1404_v26 = vmax.f32 %v1398_v2, 0.0  ;;  %v1405_v36 = vmax.f32 %v1399_v46, 0.0  ;;  %11371 = vst [vmem:[#allocation29_spill] sm:$0xff] %v9778_v49 }
 0x175   : > { %11374 = vst [vmem:[#allocation32_spill] sm:$0xff] %v9808_v63  ;;  %v9819_v24 = vadd.s32 72, %v9183_v19  ;;  %v9835_v7 = vadd.s32 208, %v9183_v19  ;;  %v9838_v2 = vadd.s32 216, %v9183_v19  ;;  %v9841_v52 = vadd.s32 80, %v9183_v19 }
 0x176   : > { %1418 = vrot.lane.b32.xlu0 %v1404_v26, %s11306_s19  ;;  %1414 = vrot.lane.b32.xlu1 %v1402_v29, %s11306_s19  ;;  %v1400_v35 = vadd.f32 %v9559_v31, %v1382_v33  ;;  %v1401_v43 = vadd.f32 %v9559_v31, %v1383_v38  ;;  %v11278_v31 = vmul.u32 2, %v9689_v39  ;;  %v9844_v50 = vadd.s32 88, %v9183_v19 }
 0x177   : > { %11375 = vst [vmem:[#allocation33_spill] sm:$0xff] %v9835_v7  ;;  %11376 = vst [vmem:[#allocation34_spill] sm:$0xff] %v9838_v2  ;;  %v9847_v56 = vadd.s32 224, %v9183_v19  ;;  %v9850_v33 = vadd.s32 232, %v9183_v19  ;;  %v9867_v26 = vadd.s32 96, %v9183_v19  ;;  %v9870_v29 = vadd.s32 104, %v9183_v19 }
 0x178   : > { %v1406_v59 = vmax.f32 %v1400_v35, 0.0  ;;  %v1407_v30 = vmax.f32 %v1401_v43, 0.0  ;;  %v9708_v17 = vadd.s32 %v11278_v31, %v1519_v47  ;;  %v9880_v46 = vadd.s32 240, %v9183_v19 }
 0x179   : > { %11377 = vst [vmem:[#allocation35_spill] sm:$0xff] %v9847_v56  ;;  %11378 = vst [vmem:[#allocation36_spill] sm:$0xff] %v9850_v33 }
 0x17a   : > { %1422 = vrot.lane.b32.xlu0 %v1406_v59, %s11306_s19  ;;  %1424 = vrot.lane.b32.xlu1 %v1407_v30, %s11306_s19  ;;  %vm1555_vm7 = vcmp.eq.s32.totalorder %v9183_v19, %v9708_v17  ;;  %vm1571_vm8 = vcmp.eq.s32.totalorder %v9717_v45, %v9708_v17  ;;  %vm1572_vm9 = vcmp.eq.s32.totalorder %v9720_v3, %v9708_v17 }
 0x17b   : > { %vm8440_vm11 = vmpackc.low %vm1572_vm9, %vm1571_vm8  ;;  %vm1556_vm1 = vcmp.eq.s32.totalorder %v9723_v44, %v9708_v17  ;;  %vm1573_vm2 = vcmp.eq.s32.totalorder %v9728_v5, %v9708_v17  ;;  %vm1574_vm0 = vcmp.eq.s32.totalorder %v9731_v40, %v9708_v17  ;;  %vm1557_vm8 = vcmp.eq.s32.totalorder %v9739_v0, %v9708_v17  ;;  %11380 = vst [vmem:[#allocation37_spill] sm:$0xff] %v9880_v46 }
 0x17c   : > { %8441 = vmatprep.subr.msk.bf16.mxu0 %vm8440_vm11, %v11280_v53  ;;  %vm8442_vm9 = vmpackc.low %vm1556_vm1, %vm1555_vm7  ;;  %vm1559_vm11 = vcmp.eq.s32.totalorder %v9772_v8, %v9708_v17  ;;  %vm1560_vm1 = vcmp.eq.s32.totalorder %v9775_v34, %v9708_v17 }
 0x17d   : > { %8443 = vmatpush3.bf16.msk.msra.mxu0 %vm8442_vm9, %v11280_v53  ;;  %vm8444_vm3 = vmpackc.low %vm1574_vm0, %vm1573_vm2  ;;  %vm1575_vm2 = vcmp.eq.s32.totalorder %v9765_v41, %v9708_v17  ;;  %vm1576_vm0 = vcmp.eq.s32.totalorder %v9769_v18, %v9708_v17  ;;  %vm1578_vm9 = vcmp.eq.s32.totalorder %v9785_v57, %v9708_v17 }
 0x17e   : > { %1420 = vrot.lane.b32.xlu0 %v1405_v36, %s11306_s19  ;;  %8445 = vmatprep.subr.msk.bf16.mxu0 %vm8444_vm3, %v11280_v53  ;;  %vm8448_vm3 = vmpackc.low %vm1576_vm0, %vm1575_vm2  ;;  %vm1561_vm2 = vcmp.eq.s32.totalorder %v9788_v61, %v9708_v17  ;;  %vm1562_vm0 = vcmp.eq.s32.totalorder %v9797_v58, %v9708_v17  ;;  %v9883_v36 = vadd.s32 248, %v9183_v19  ;;  %s9045_s19 = smov 125  }
 0x180   : > { %11381 = vst [vmem:[#allocation38_spill] sm:$0xff] %v9883_v36 }
 0x1e4   : > { %v1417_v51 = vpop.permute.xlu1 %1416 }
 0x1e8   : > { %v1419_v22 = vpop.permute.xlu0 %1418  ;;  %v1415_v28 = vpop.permute.xlu1 %1414 }
 0x1e9   : > { %v9696_v25 = vsel %vm11266_vm12, %v1417_v51, %v1419_v22  ;;  %v9699_v23 = vsel %vm11266_vm12, %v1415_v28, %v1417_v51  ;;  %v9890_v22 = vadd.s32 112, %v9183_v19  ;;  %v9893_v28 = vadd.s32 120, %v9183_v19 }
 0x1ea   : > { %1434 = vst [vmem:[#allocation2 + $0x8] sm:$0xff] %v9699_v23  ;;  %v8724_v11 = vpack.i.bf16 %v9702_v4, %v9696_v25 }
 0x1ec   : > { %v1423_v27 = vpop.permute.xlu0 %1422  ;;  %v1425_v32 = vpop.permute.xlu1 %1424  ;;  %8725 = vrot.lane.b32.xlu1 %v8724_v11, %s9025_s28 }
 0x1ed   : > { %v9712_v9 = vsel %vm11266_vm12, %v1423_v27, %v1425_v32 }
 0x1ee   : > { %v8729_v10 = vpack.i.bf16 %v9712_v9, %v9699_v23 }
 0x1f0   : > { %v1421_v37 = vpop.permute.xlu0 %1420  ;;  %8730 = vrot.lane.b32.xlu0 %v8729_v10, %s9025_s28 }
 0x1f1   : > { %v9745_v16 = vsel %vm11266_vm12, %v1421_v37, %v1423_v27  ;;  %vm1558_vm12 = vcmp.eq.s32.totalorder %v9742_v42, %v9708_v17 }
 0x1f2   : > { %1436 = vst [vmem:[#allocation2 + $0x28] sm:$0xff] %v9745_v16  ;;  %v8734_v48 = vpack.i.bf16 %v9745_v16, %v9702_v4  ;;  %vm8446_vm7 = vmpackc.low %vm1558_vm12, %vm1557_vm8  ;;  %vm1577_vm12 = vcmp.eq.s32.totalorder %v9778_v49, %v9708_v17 }
 0x1f3   : > { %8447 = vmatpush3.bf16.msk.msra.mxu0 %vm8446_vm7, %v11280_v53  ;;  %vm8450_vm8 = vmpackc.low %vm1560_vm1, %vm1559_vm11  ;;  %vm1579_vm7 = vcmp.eq.s32.totalorder %v9804_v62, %v9708_v17 }
 0x1f4   : > { %8735 = vrot.lane.b32.xlu1 %v8734_v48, %s9025_s28  ;;  %8449 = vmatprep.subr.msk.bf16.mxu0 %vm8448_vm3, %v11280_v53  ;;  %vm8452_vm14 = vmpackc.low %vm1578_vm9, %vm1577_vm12  ;;  %vm1580_vm3 = vcmp.eq.s32.totalorder %v9808_v63, %v9708_v17  ;;  %vm1563_vm12 = vcmp.eq.s32.totalorder %v9816_v20, %v9708_v17  ;;  %vm1564_vm9 = vcmp.eq.s32.totalorder %v9819_v24, %v9708_v17 }
 0x1f5   : > { %vm8454_vm11 = vmpackc.low %vm1562_vm0, %vm1561_vm2  ;;  %vm1566_vm2 = vcmp.eq.s32.totalorder %v9844_v50, %v9708_v17 }
 0x1f6   : > { %vm8456_vm1 = vmpackc.low %vm1580_vm3, %vm1579_vm7  ;;  %vm1583_vm7 = vcmp.eq.s32.totalorder %v9847_v56, %v9708_v17  ;;  %vm1584_vm3 = vcmp.eq.s32.totalorder %v9850_v33, %v9708_v17 }
 0x1f7   : > { %8451 = vmatpush3.bf16.msk.msra.mxu0 %vm8450_vm8, %v11280_v53  ;;  %vm8458_vm15 = vmpackc.low %vm1564_vm9, %vm1563_vm12  ;;  %vm1565_vm8 = vcmp.eq.s32.totalorder %v9841_v52, %v9708_v17  ;;  %vm1567_vm12 = vcmp.eq.s32.totalorder %v9867_v26, %v9708_v17  ;;  %vm1568_vm9 = vcmp.eq.s32.totalorder %v9870_v29, %v9708_v17 }
 0x1f8   : > { %8453 = vmatprep.subr.msk.bf16.mxu0 %vm8452_vm14, %v11280_v53  ;;  %vm1581_vm14 = vcmp.eq.s32.totalorder %v9835_v7, %v9708_v17 }
 0x1fb   : > { %8455 = vmatpush3.bf16.msk.msra.mxu0 %vm8454_vm11, %v11280_v53  ;;  %vm8462_vm11 = vmpackc.low %vm1566_vm2, %vm1565_vm8  ;;  %vm1585_vm8 = vcmp.eq.s32.totalorder %v9880_v46, %v9708_v17  ;;  %vm1586_vm2 = vcmp.eq.s32.totalorder %v9883_v36, %v9708_v17 }
 0x1fc   : > { %8457 = vmatprep.subr.msk.bf16.mxu0 %vm8456_vm1, %v11280_v53  ;;  %vm8464_vm1 = vmpackc.low %vm1584_vm3, %vm1583_vm7  ;;  %vm1569_vm7 = vcmp.eq.s32.totalorder %v9890_v22, %v9708_v17  ;;  %vm1570_vm3 = vcmp.eq.s32.totalorder %v9893_v28, %v9708_v17 }
 0x1ff   : > { %8459 = vmatpush3.bf16.msk.msra.mxu0 %vm8458_vm15, %v11280_v53  ;;  %vm1582_vm15 = vcmp.eq.s32.totalorder %v9838_v2, %v9708_v17 }
 0x200   : > { %vm8460_vm0 = vmpackc.low %vm1582_vm15, %vm1581_vm14  ;;  %vm11379_vm14 = vcmask 1039360  }
 0x201   : > { %8461 = vmatprep.subr.msk.bf16.mxu0 %vm8460_vm0, %v11280_v53  ;;  %vm8466_vm15 = vmpackc.low %vm1568_vm9, %vm1567_vm12 }
 0x202   : > { %vm8468_vm0 = vmpackc.low %vm1586_vm2, %vm1585_vm8 }
 0x203   : > { %8463 = vmatpush3.bf16.msk.msra.mxu0 %vm8462_vm11, %v11280_v53  ;;  %vm8470_vm11 = vmpackc.low %vm1570_vm3, %vm1569_vm7 }
 0x204   : > { %8465 = vmatprep.subr.msk.bf16.mxu0 %vm8464_vm1, %v11280_v53  ;;  %vm11382_vm1 = vmmov %vm11379_vm14 }
 0x205   : > { %vm11383_vm12 = vmmov %vm11382_vm1 }
 0x206   : > { %vm11384_vm9 = vmmov %vm11382_vm1 }
 0x207   : > { %8467 = vmatpush3.bf16.msk.msra.mxu0 %vm8466_vm15, %v11280_v53  ;;  %vm2023_vm15 = vcmp.lt.s32.totalorder %v9686_v60, 8 }
 0x208   : > { %8469 = vmatprep.subr.msk.bf16.mxu0 %vm8468_vm0, %v11280_v53 }
 0x20b   : > { %8471 = vmatpush3.bf16.msk.msra.mxu0 %vm8470_vm11, %v11280_v53 }
 0x25e   : > { %v8726_v38 = vpop.permute.xlu1 %8725 }
 0x25f   : > { %v8728_v35 = vunpack.i.h.bf16 %v8726_v38  ;;  %v8727_v43 = vunpack.i.l.bf16 %v8726_v38 }
 0x261   : > { %v1482_v59 = vmax.f32 %v9702_v4, %v8728_v35  ;;  %v1467_v30 = vsel %vm11379_vm14, %v8727_v43, %v8728_v35  ;;  %vm2022_vm14 = vcmp.ge.s32.totalorder %v9686_v60, 0 }
 0x262   : > { %v8731_v51 = vpop.permute.xlu0 %8730  ;;  %v9886_v47 = vmax.f32 %v9696_v25, %v1467_v30  ;;  %vm9929_vm0 = vmand %vm2022_vm14, %vm2023_vm15 }
 0x263   : > { %v8732_v11 = vunpack.i.l.bf16 %v8731_v51  ;;  %v8733_v10 = vunpack.i.h.bf16 %v8731_v51  ;;  %v1915_v51 = vadd.s32 1, %v9689_v39 }
 0x264   : > { %v8739_v27 = vpack.i.bf16 %v1482_v59, %v9886_v47 }
 0x265   : > { %v1466_v32 = vsel %vm11382_vm1, %v8732_v11, %v8727_v43  ;;  %v1701_v43 = vadd.s32 4294967295, %v9686_v60  ;;  %v1702_v11 = vadd.s32 4294967295, %v9689_v39  ;;  %vm1918_vm3 = vcmp.lt.s32.totalorder %v1915_v51, 8 }
 0x266   : > { %v8736_v25 = vpop.permute.xlu1 %8735  ;;  %8740 = vrot.lane.b32.xlu0 %v8739_v27, %s11304_s24  ;;  %v9912_v17 = vmax.f32 %v9699_v23, %v1466_v32 }
 0x267   : > { %v8738_v37 = vunpack.i.h.bf16 %v8736_v25  ;;  %v8737_v48 = vunpack.i.l.bf16 %v8736_v25  ;;  %v2297_v25 = vadd.s32 1, %v9686_v60  ;;  %vm1703_vm8 = vcmp.ge.s32.totalorder %v1701_v43, 0 }
 0x268   : > { %vm1704_vm2 = vcmp.lt.s32.totalorder %v1701_v43, 8  ;;  %vm1706_vm11 = vcmp.ge.s32.totalorder %v1702_v11, 0 }
 0x269   : > { %v1485_v38 = vmax.f32 %v9702_v4, %v8737_v48  ;;  %v1468_v35 = vsel %vm11383_vm12, %v8738_v37, %v8733_v10  ;;  %v1469_v59 = vsel %vm11384_vm9, %v8733_v10, %v8737_v48  ;;  %vm9933_vm7 = vmand %vm1703_vm8, %vm1704_vm2  ;;  %vm2298_vm12 = vcmp.ge.s32.totalorder %v2297_v25, 0 }
 0x26a   : > { %v9915_v30 = vmax.f32 %v9745_v16, %v1468_v35  ;;  %v9918_v27 = vmax.f32 %v9712_v9, %v1469_v59  ;;  %vm1919_vm1 = vmand %vm9933_vm7, %vm1918_vm3  ;;  %vm2299_vm9 = vcmp.lt.s32.totalorder %v2297_v25, 8 }
 0x26b   : > { %v1920_v10 = vsel %vm1919_vm1, 1.0, %v9702_v4  ;;  %vm1707_vm14 = vmand %vm9933_vm7, %vm1706_vm11 }
 0x26c   : > { %v8749_v23 = vpack.i.bf16 %v9915_v30, %v1485_v38  ;;  %v8744_v16 = vpack.i.bf16 %v9918_v27, %v9912_v17  ;;  %v1710_v37 = vsel %vm1707_vm14, 1.0, %v9702_v4  ;;  %vm2025_vm15 = vmand %vm9929_vm0, %vm1706_vm11  ;;  %v1724_v38 = vsel %vm9933_vm7, 1.0, %v9702_v4 }
 0x26d   : > { %vm9950_vm8 = vmand %vm2298_vm12, %vm2299_vm9  ;;  %v2027_v35 = vsel %vm2025_vm15, 1.0, %v9702_v4  ;;  %vm11323_vm9 = vcmask 523264   ;;  %vm11321_vm14 = vmmov 0   ;;  %vm11319_vm15 = vcmask 72704  }
 0x26e   : > { %8750 = vrot.lane.b32.xlu0 %v8749_v23, %s11304_s24  ;;  %8745 = vrot.lane.b32.xlu1 %v8744_v16, %s11304_s24  ;;  %vm2301_vm2 = vmand %vm9950_vm8, %vm1706_vm11  ;;  %v2396_v25 = vsel %vm9950_vm8, 1.0, %v9702_v4  ;;  %s9044_s24 = smov 124  }
 0x26f   : > { %vm2205_vm1 = vmand %vm9929_vm0, %vm1918_vm3  ;;  %v2303_v59 = vsel %vm2301_vm2, 1.0, %v9702_v4  ;;  %vm11391_vm0 = vcmask 916480   ;;  %8222 = vmatprep.mubr.msk.f32.mxu1 %vm11321_vm14, %v9702_v4  ;;  %vm11396_vm2 = vcmask 130048  }
 0x270   : > { %v2206_v43 = vsel %vm2205_vm1, 1.0, %v9702_v4  ;;  %vm2488_vm7 = vmand %vm9950_vm8, %vm1918_vm3  ;;  %vm11318_vm8 = vcmask 56320   ;;  %vm11397_vm1 = vcmask 7168  }
 0x271   : > { %v2489_v11 = vsel %vm2488_vm7, 1.0, %v9702_v4  ;;  %vm11392_vm3 = vmmov %vm11391_vm0 }
 0x272   : > { %1922 = vrot.lane.b32.xlu0 %v1920_v10, %s11327_s17  ;;  %1712 = vrot.lane.b32.xlu1 %v1710_v37, %s11326_s22  ;;  %vm11393_vm11 = vmmov %vm11391_vm0 }
 0x273   : > { %vm11394_vm12 = vmmov %vm11391_vm0 }
 0x274   : > { %vm11398_vm7 = vmmov %vm11397_vm1 }
 0x276   : > { %1726 = vrot.lane.b32.xlu0 %v1724_v38, %s11328_s25  ;;  %2029 = vrot.lane.b32.xlu1 %v2027_v35, %s9025_s28 }
 0x27a   : > { %2305 = vrot.lane.b32.xlu0 %v2303_v59, %s9039_s30  ;;  %2208 = vrot.lane.b32.xlu1 %v2206_v43, %s9022_s14 }
 0x27e   : > { %2491 = vrot.lane.b32.xlu0 %v2489_v11, %s9040_s29  ;;  %2398 = vrot.lane.b32.xlu1 %v2396_v25, %s9041_s27 }
 0x2d8   : > { %v8741_v51 = vpop.permute.xlu0 %8740 }
 0x2d9   : > { %v8743_v23 = vunpack.i.h.bf16 %v8741_v51  ;;  %v8742_v16 = vunpack.i.l.bf16 %v8741_v51 }
 0x2db   : > { %v1505_v9 = vsel %vm11391_vm0, %v8742_v16, %v8743_v23  ;;  %vm11320_vm0 = vcmask 64512  }
 0x2dc   : > { %v1513_v32 = vmax.f32 %v9886_v47, %v1505_v9 }
 0x2de   : > { %1683 = vmatprep.mubr.f32.mxu0 %v1513_v32 }
 0x2e0   : > { %v8751_v10 = vpop.permute.xlu0 %8750  ;;  %v8746_v37 = vpop.permute.xlu1 %8745 }
 0x2e1   : > { %v8753_v38 = vunpack.i.h.bf16 %v8751_v10  ;;  %v8752_v35 = vunpack.i.l.bf16 %v8751_v10  ;;  %v8748_v48 = vunpack.i.h.bf16 %v8746_v37  ;;  %v8747_v59 = vunpack.i.l.bf16 %v8746_v37 }
 0x2e3   : > { %v1504_v43 = vsel %vm11392_vm3, %v8747_v59, %v8742_v16  ;;  %v1507_v11 = vsel %vm11393_vm11, %v8748_v48, %v8752_v35  ;;  %v1506_v51 = vsel %vm11394_vm12, %v8753_v38, %v8748_v48  ;;  %vm11399_vm3 = vmmov %vm11396_vm2 }
 0x2e4   : > { %v1512_v25 = vmax.f32 %v9912_v17, %v1504_v43  ;;  %v1515_v31 = vmax.f32 %v9918_v27, %v1507_v11  ;;  %v1514_v47 = vmax.f32 %v9915_v30, %v1506_v51  ;;  %v9991_v17 = vpop.permute.xlu1 %1712  ;;  %v9999_v38 = vpop.permute.xlu0 %1922  ;;  %v11282_v11 = vmov 0.0|0.0   ;;  %vm11400_vm11 = vmmov %vm11396_vm2 }
 0x2e5   : > { %v1925_v59 = vmul.f32 %v9702_v4, %v9999_v38  ;;  %8475 = vmatprep.subr.bf16.mxu1 %v11282_v11  ;;  %8472 = vmatprep.subr.bf16.mxu0 %v11282_v11  ;;  %vm11401_vm12 = vmmov %vm11396_vm2 }
 0x2e6   : > { %1684 = vmatmul.mubr.f32.vlgmr.msra.gmra.mrb[0].mxu0 %v1512_v25 }
 0x2e7   : > { %1688 = vmatprep.mubr.f32.mxu0 %v1515_v31  ;;  %v1715_v31 = vmul.f32 %v9702_v4, %v9991_v17 }
 0x2e8   : > { %v10010_v25 = vpop.permute.xlu1 %2029 }
 0x2ea   : > { %1689 = vmatmul.mubr.f32.gmra.mrb[2].mxu0 %v1514_v47  ;;  %v2032_v47 = vmul.f32 %v9702_v4, %v10010_v25 }
 0x2eb   : > { %8215 = vmatprep.mubr.msk.f32.mxu0 %vm11321_vm14, %v9702_v4 }
 0x3b9   : > { %v8110_v23 = vpop.f32.mrb[0].mxu0 }
 0x3ba   : > { %v8111_v9 = vpop.f32.mrb[1].mxu0 }
 0x3bb   : > { %v8112_v32 = vadd.f32 %v8111_v9, %v8110_v23 }
 0x3bd   : > { %1695 = vst.msk [vmem:[#allocation2 + $0x8] sm:$0xff] %vm11323_vm9, %v8112_v32  ;;  %v8113_v16 = vpop.f32.mrb[2].mxu0 }
 0x3be   : > { %v8114_v10 = vpop.f32.mrb[3].mxu0 }
 0x3bf   : > { %v8115_v37 = vadd.f32 %v8114_v10, %v8113_v16  ;;  %v10024_v10 = vpop.permute.xlu0 %1726 }
 0x3c1   : > { %1696 = vst.msk [vmem:[#allocation2 + $0x28] sm:$0xff] %vm11323_vm9, %v8115_v37  ;;  %v1729_v37 = vmul.f32 %v9702_v4, %v10024_v10 }
 0x3c4   : > { %v9993_v27 = vld [vmem:[#allocation2 + $0x8] sm:$0xff] }
 0x3c5   : > { %v1716_v30 = vmul.f32 %v9991_v17, %v9993_v27  ;;  %v1926_v43 = vmul.f32 %v9999_v38, %v9993_v27  ;;  %v2033_v16 = vmul.f32 %v10010_v25, %v9993_v27 }
 0x3c7   : > { %v8754_v48 = vpack.i.bf16 %v1716_v30, %v1715_v31  ;;  %v8759_v9 = vpack.i.bf16 %v1926_v43, %v1925_v59  ;;  %v8764_v30 = vpack.i.bf16 %v2033_v16, %v2032_v47  ;;  %v1730_v43 = vmul.f32 %v10024_v10, %v9993_v27 }
 0x3c8   : > { %v10001_v35 = vld [vmem:[#allocation2 + $0x28] sm:$0xff] }
 0x3c9   : > { %8755 = vrot.lane.b32.xlu1 %v8754_v48, %s9040_s29  ;;  %v1718_v51 = vmul.f32 %v9991_v17, %v10001_v35  ;;  %v1928_v32 = vmul.f32 %v9999_v38, %v10001_v35  ;;  %v2035_v48 = vmul.f32 %v10010_v25, %v10001_v35  ;;  %v8784_v1 = vpack.i.bf16 %v1730_v43, %v1729_v37 }
 0x3cb   : > { %v8769_v23 = vpack.i.bf16 %v1718_v51, %v1715_v31  ;;  %v8774_v31 = vpack.i.bf16 %v1928_v32, %v1925_v59  ;;  %v10034_v51 = vpop.permute.xlu1 %2208  ;;  %v1732_v59 = vmul.f32 %v10024_v10, %v10001_v35  ;;  %v10042_v32 = vpop.permute.xlu0 %2305 }
 0x3cc   : > { %v2211_v16 = vmul.f32 %v10034_v51, %v9993_v27  ;;  %v2308_v53 = vmul.f32 %v10042_v32, %v9993_v27 }
 0x3cd   : > { %8770 = vrot.lane.b32.xlu0 %v8769_v23, %s9040_s29  ;;  %8760 = vrot.lane.b32.xlu1 %v8759_v9, %s9039_s30  ;;  %v2212_v23 = vmul.f32 %v10034_v51, %v10001_v35  ;;  %v8779_v9 = vpack.i.bf16 %v2035_v48, %v2032_v47  ;;  %v8789_v48 = vpack.i.bf16 %v1732_v59, %v1729_v37 }
 0x3cf   : > { %v8794_v43 = vpack.i.bf16 %v2212_v23, %v2211_v16  ;;  %v2580_v23 = vld [vmem:[%s11217_s4] sm:$0xff] }
 0x3d1   : > { %8775 = vrot.lane.b32.xlu0 %v8774_v31, %s9039_s30  ;;  %8765 = vrot.lane.b32.xlu1 %v8764_v30, %s9022_s14  ;;  %v10048_v31 = vpop.permute.xlu1 %2398  ;;  %v2309_v30 = vmul.f32 %v10042_v32, %v10001_v35 }
 0x3d2   : > { %v2402_v47 = vmul.f32 %v10048_v31, %v10001_v35  ;;  %v2401_v11 = vmul.f32 %v10048_v31, %v9993_v27 }
 0x3d3   : > { %v8799_v36 = vpack.i.bf16 %v2309_v30, %v2308_v53 }
 0x3d4   : > { %v8804_v46 = vpack.i.bf16 %v2402_v47, %v2401_v11 }
 0x3d5   : > { %8780 = vrot.lane.b32.xlu0 %v8779_v9, %s9022_s14  ;;  %8785 = vrot.lane.b32.xlu1 %v8784_v1, %s9041_s27  ;;  %v10060_v1 = vpop.permute.xlu0 %2491 }
 0x3d6   : > { %v2495_v9 = vmul.f32 %v10060_v1, %v10001_v35  ;;  %v2494_v37 = vmul.f32 %v10060_v1, %v9993_v27 }
 0x3d8   : > { %v8809_v59 = vpack.i.bf16 %v2495_v9, %v2494_v37 }
 0x3d9   : > { %8790 = vrot.lane.b32.xlu0 %v8789_v48, %s9041_s27  ;;  %8795 = vrot.lane.b32.xlu1 %v8794_v43, %s9025_s28 }
 0x3dd   : > { %8800 = vrot.lane.b32.xlu0 %v8799_v36, %s11327_s17  ;;  %8805 = vrot.lane.b32.xlu1 %v8804_v46, %s11328_s25 }
 0x3e1   : > { %8810 = vrot.lane.b32.xlu0 %v8809_v59, %s11326_s22  ;;  %2583 = vperm.xlu1 %8723, %v2580_v23   ;;  %s9049_s22 = smov 5  }
 0x43b   : > { %v8756_v16 = vpop.permute.xlu1 %8755 }
 0x43c   : > { %v8758_v48 = vunpack.i.h.bf16 %v8756_v16  ;;  %v8757_v43 = vunpack.i.l.bf16 %v8756_v16  ;;  %v1719_v16 = vld [vmem:[%s11216_s3] sm:$0xff] }
 0x43e   : > { %v1838_v46 = vsel %vm11319_vm15, %v8757_v43, %v8758_v48  ;;  %v11395_v48 = vmov 0.0|0.0  }
 0x43f   : > { %v8771_v53 = vpop.permute.xlu0 %8770  ;;  %v8761_v11 = vpop.permute.xlu1 %8760 }
 0x440   : > { %v8773_v30 = vunpack.i.h.bf16 %v8771_v53  ;;  %v8772_v47 = vunpack.i.l.bf16 %v8771_v53  ;;  %v8763_v33 = vunpack.i.h.bf16 %v8761_v11  ;;  %v8762_v36 = vunpack.i.l.bf16 %v8761_v11 }
 0x442   : > { %v1839_v56 = vsel %vm11319_vm15, %v8772_v47, %v8773_v30  ;;  %v1944_v7 = vsel %vm11318_vm8, %v8762_v36, %v8763_v33 }
 0x443   : > { %v8776_v2 = vpop.permute.xlu0 %8775  ;;  %v8766_v9 = vpop.permute.xlu1 %8765  ;;  %v8476_v37 = vpack.c.bf16 %v1839_v56, %v1838_v46 }
 0x444   : > { %v8778_v59 = vunpack.i.h.bf16 %v8776_v2  ;;  %v8777_v23 = vunpack.i.l.bf16 %v8776_v2  ;;  %v8768_v11 = vunpack.i.h.bf16 %v8766_v9  ;;  %v8767_v63 = vunpack.i.l.bf16 %v8766_v9  ;;  %v7865_v2 = vld [vmem:[%s11216_s3 + $0x10] sm:$0xff] }
 0x445   : > { %8477 = vmatpush3.bf16.msra.mxu1 %v8476_v37 }
 0x446   : > { %v1945_v53 = vsel %vm11318_vm8, %v8777_v23, %v8778_v59  ;;  %8478 = vmatprep.subr.bf16.mxu1 %v11395_v48  ;;  %v2050_v33 = vsel %vm11397_vm1, %v8767_v63, %v8768_v11  ;;  %vm11402_vm1 = vmmov %vm11396_vm2 }
 0x447   : > { %v8781_v43 = vpop.permute.xlu0 %8780  ;;  %v8786_v30 = vpop.permute.xlu1 %8785  ;;  %v8479_v47 = vpack.c.bf16 %v1945_v53, %v1944_v7 }
 0x448   : > { %v8783_v62 = vunpack.i.h.bf16 %v8781_v43  ;;  %v8782_v56 = vunpack.i.l.bf16 %v8781_v43  ;;  %8223 = vmatmul.mubr.msk.f32.vlgmr.msra.gmra.mrb[0].mxu1 %vm11396_vm2, %v1719_v16  ;;  %v8788_v46 = vunpack.i.h.bf16 %v8786_v30  ;;  %v8787_v9 = vunpack.i.l.bf16 %v8786_v30 }
 0x449   : > { %8480 = vmatpush3.bf16.msra.mxu1 %v8479_v47  ;;  %8229 = vmatprep.mubr.msk.f32.mxu1 %vm11321_vm14, %v9702_v4  ;;  %v8485_v47 = vpack.c.bf16 %v10001_v35, %v9993_v27 }
 0x44a   : > { %v2051_v36 = vsel %vm11398_vm7, %v8782_v56, %v8783_v62  ;;  %8481 = vmatprep.subr.bf16.mxu1 %v11395_v48  ;;  %v7867_v62 = vld [vmem:[%s11216_s3 + $0x18] sm:$0xff]  ;;  %v1748_v63 = vsel %vm11320_vm0, %v8787_v9, %v8788_v46  ;;  %v7871_v9 = vld [vmem:[%s11216_s3 + $0x28] sm:$0xff]  ;;  %vm11403_vm7 = vmmov %vm11402_vm1 }
 0x44b   : > { %v8791_v7 = vpop.permute.xlu0 %8790  ;;  %v8482_v37 = vpack.c.bf16 %v2051_v36, %v2050_v33  ;;  %v8796_v16 = vpop.permute.xlu1 %8795  ;;  %v7869_v33 = vld [vmem:[%s11216_s3 + $0x20] sm:$0xff] }
 0x44c   : > { %v8793_v59 = vunpack.i.h.bf16 %v8791_v7  ;;  %v8792_v23 = vunpack.i.l.bf16 %v8791_v7  ;;  %8230 = vmatmul.mubr.msk.f32.vlgmr.msra.gmra.mrb[2].mxu1 %vm11399_vm3, %v7865_v2  ;;  %v8798_v11 = vunpack.i.h.bf16 %v8796_v16  ;;  %v8797_v43 = vunpack.i.l.bf16 %v8796_v16  ;;  %v7862_v2 = vld [vmem:[%s11216_s3 + $0x8] sm:$0xff]  ;;  %v7873_v16 = vld [vmem:[%s11216_s3 + $0x30] sm:$0xff]  ;;  %vm11404_vm3 = vmmov %vm11402_vm1 }
 0x44d   : > { %8483 = vmatpush3.bf16.msra.mxu1 %v8482_v37  ;;  %8236 = vmatprep.mubr.msk.f32.mxu1 %vm11321_vm14, %v9702_v4 }
 0x44e   : > { %v1749_v53 = vsel %vm11320_vm0, %v8792_v23, %v8793_v59  ;;  %8484 = vmatprep.subr.bf16.mxu1 %v11395_v48  ;;  %v8488_v36 = vpack.c.bf16 %v8798_v11, %v8797_v43  ;;  %v7875_v11 = vld [vmem:[%s11216_s3 + $0x38] sm:$0xff] }
 0x44f   : > { %v8473_v30 = vpack.c.bf16 %v1749_v53, %v1748_v63  ;;  %v8801_v56 = vpop.permute.xlu0 %8800  ;;  %v8806_v46 = vpop.permute.xlu1 %8805 }
 0x450   : > { %8237 = vmatmul.mubr.msk.f32.vlgmr.msra.gmra.mrb[4].mxu1 %vm11400_vm11, %v7867_v62  ;;  %v8803_v27 = vunpack.i.h.bf16 %v8801_v56  ;;  %v8802_v35 = vunpack.i.l.bf16 %v8801_v56  ;;  %v8808_v37 = vunpack.i.h.bf16 %v8806_v46  ;;  %v8807_v59 = vunpack.i.l.bf16 %v8806_v46  ;;  %vm11405_vm11 = vmmov %vm11402_vm1 }
 0x451   : > { %8474 = vmatpush3.bf16.msra.mxu0 %v8473_v30  ;;  %8486 = vmatpush3.bf16.msra.mxu1 %v8485_v47  ;;  %v7877_v30 = vld [vmem:[%s11216_s3 + $0x40] sm:$0xff] }
 0x452   : > { %8243 = vmatprep.mubr.msk.f32.mxu1 %vm11321_vm14, %v9702_v4  ;;  %8487 = vmatprep.subr.bf16.mxu1 %v11395_v48  ;;  %v8491_v7 = vpack.c.bf16 %v8803_v27, %v8802_v35  ;;  %v8494_v62 = vpack.c.bf16 %v8808_v37, %v8807_v59 }
 0x453   : > { %8499 = vmatprep.subr.bf16.mxu0 %v11395_v48  ;;  %v8811_v23 = vpop.permute.xlu0 %8810 }
 0x454   : > { %8216 = vmatmul.mubr.msk.f32.vlgmr.msra.gmra.mrb[4].mxu0 %vm11401_vm12, %v7862_v2  ;;  %8244 = vmatmul.mubr.msk.f32.vlgmr.msra.gmra.mrb[6].mxu1 %vm11396_vm2, %v7869_v33  ;;  %v8813_v63 = vunpack.i.h.bf16 %v8811_v23  ;;  %v8812_v53 = vunpack.i.l.bf16 %v8811_v23 }
 0x455   : > { %8489 = vmatpush3.bf16.msra.mxu1 %v8488_v36  ;;  %8250 = vmatprep.mubr.msk.f32.mxu1 %vm11321_vm14, %v9702_v4 }
 0x456   : > { %8490 = vmatprep.subr.bf16.mxu1 %v11395_v48  ;;  %8290 = vmatprep.mubr.msk.f32.mxu0 %vm11321_vm14, %v9702_v4  ;;  %v8497_v43 = vpack.c.bf16 %v8813_v63, %v8812_v53 }
 0x458   : > { %8251 = vmatmul.mubr.msk.f32.vlgmr.msra.gmra.mrb[8].mxu1 %vm11402_vm1, %v7871_v9 }
 0x459   : > { %8492 = vmatpush3.bf16.msra.mxu1 %v8491_v7  ;;  %8257 = vmatprep.mubr.msk.f32.mxu1 %vm11321_vm14, %v9702_v4 }
 0x45a   : > { %8493 = vmatprep.subr.bf16.mxu1 %v11395_v48 }
 0x45c   : > { %8258 = vmatmul.mubr.msk.f32.vlgmr.msra.gmra.mrb[10].mxu1 %vm11403_vm7, %v7873_v16 }
 0x45d   : > { %8495 = vmatpush3.bf16.msra.mxu1 %v8494_v62  ;;  %8264 = vmatprep.mubr.msk.f32.mxu1 %vm11321_vm14, %v9702_v4 }
 0x45e   : > { %8496 = vmatprep.subr.bf16.mxu1 %v11395_v48 }
 0x460   : > { %8265 = vmatmul.mubr.msk.f32.vlgmr.msra.gmra.mrb[12].mxu1 %vm11404_vm3, %v7875_v11  ;;  %v2584_v41 = vpop.permute.xlu1 %2583 }
 0x461   : > { %8498 = vmatpush3.bf16.msra.mxu1 %v8497_v43  ;;  %8271 = vmatprep.mubr.msk.f32.mxu1 %vm11321_vm14, %v9702_v4 }
 0x462   : > { %8293 = vmatprep.subr.mxu1 %v9702_v4 }
 0x464   : > { %8272 = vmatmul.mubr.msk.f32.vlgmr.msra.gmra.mrb[14].mxu1 %vm11405_vm11, %v7877_v30 }
 0x465   : > { %8295 = vmatprep.mubr.msk.f32.mxu1 %vm11321_vm14, %v9702_v4 }
 0x51b   : > { %v1911_v47 = vpop.f32.mrb[0].mxu1 }
 0x51c   : > { %v8224_v56 = vpop.f32.mrb[1].mxu1 }
 0x51f   : > { %v2017_v2 = vpop.f32.mrb[2].mxu1 }
 0x520   : > { %v8231_v33 = vpop.f32.mrb[3].mxu1 }
 0x523   : > { %v2123_v36 = vpop.f32.mrb[4].mxu1 }
 0x524   : > { %v8238_v27 = vpop.f32.mrb[5].mxu1 }
 0x527   : > { %v1821_v35 = vpop.f32.mrb[4].mxu0  ;;  %v2199_v46 = vpop.f32.mrb[6].mxu1 }
 0x528   : > { %v1912_v9 = vadd.f32 %v1911_v47, %v1821_v35  ;;  %v8245_v7 = vpop.f32.mrb[7].mxu1  ;;  %v8217_v37 = vpop.f32.mrb[5].mxu0  ;;  %v2600_v47 = vshra.s32 %v9157_v6, 2 }
 0x52a   : > { %v2021_v59 = vadd.f32 %v2017_v2, %v1912_v9  ;;  %v2601_v2 = vand.u32 3, %v9157_v6 }
 0x52b   : > { %v2292_v23 = vpop.f32.mrb[8].mxu1 }
 0x52c   : > { %v2127_v16 = vadd.f32 %v2123_v36, %v2021_v59  ;;  %v8252_v62 = vpop.f32.mrb[9].mxu1  ;;  %v2602_v36 = vmul.u32 2, %v2600_v47  ;;  %v2604_v9 = vmul.u32 2, %v2601_v2 }
 0x52e   : > { %v2203_v63 = vadd.f32 %v2199_v46, %v2127_v16  ;;  %v2603_v46 = vmul.u32 8, %v2602_v36 }
 0x52f   : > { %v2389_v53 = vpop.f32.mrb[10].mxu1 }
 0x530   : > { %v2296_v11 = vadd.f32 %v2292_v23, %v2203_v63  ;;  %v8259_v43 = vpop.f32.mrb[11].mxu1  ;;  %v2605_v7 = vadd.s32 %v2604_v9, %v2603_v46  ;;  %v3249_v23 = vadd.s32 1, %v2600_v47 }
 0x532   : > { %v2393_v30 = vadd.f32 %v2389_v53, %v2296_v11  ;;  %vm2606_vm12 = vcmp.eq.s32.totalorder %v9183_v19, %v2605_v7  ;;  %vm2607_vm2 = vcmp.eq.s32.totalorder %v9723_v44, %v2605_v7  ;;  %vm2608_vm1 = vcmp.eq.s32.totalorder %v9739_v0, %v2605_v7 }
 0x533   : > { %v2482_v57 = vpop.f32.mrb[12].mxu1  ;;  %vm2609_vm7 = vcmp.eq.s32.totalorder %v9742_v42, %v2605_v7  ;;  %vm8500_vm3 = vmpackc.low %vm2607_vm2, %vm2606_vm12  ;;  %vm2610_vm8 = vcmp.eq.s32.totalorder %v9772_v8, %v2605_v7  ;;  %vm2611_vm15 = vcmp.eq.s32.totalorder %v9775_v34, %v2605_v7  ;;  %vm2612_vm14 = vcmp.eq.s32.totalorder %v9788_v61, %v2605_v7 }
 0x534   : > { %v2486_v56 = vadd.f32 %v2482_v57, %v2393_v30  ;;  %v8266_v49 = vpop.f32.mrb[13].mxu1  ;;  %vm8503_vm11 = vmpackc.low %vm2609_vm7, %vm2608_vm1  ;;  %vm2613_vm12 = vcmp.eq.s32.totalorder %v9797_v58, %v2605_v7  ;;  %v2699_v57 = vadd.s32 4294967295, %v2601_v2 }
 0x535   : > { %vm8506_vm0 = vmpackc.low %vm2611_vm15, %vm2610_vm8  ;;  %v2892_v49 = vadd.s32 1, %v2601_v2  ;;  %vm2989_vm8 = vcmp.ge.s32.totalorder %v2600_v47, 0 }
 0x536   : > { %vm8509_vm2 = vmpackc.low %vm2613_vm12, %vm2612_vm14 }
 0x537   : > { %v2575_v33 = vpop.f32.mrb[14].mxu1 }
 0x538   : > { %v2579_v18 = vadd.f32 %v2575_v33, %v2486_v56  ;;  %v8273_v27 = vpop.f32.mrb[15].mxu1 }
 0x53a   : > { %v2586_v40 = vadd.f32 %v2584_v41, %v2579_v18  ;;  %v11406_v18 = vmov 1.0|1.0  }
 0x53b   : > { %8501 = vmatpush3.bf16.msk.msra.mxu0 %vm8500_vm3, %v11406_v18  ;;  %vm2895_vm3 = vcmp.lt.s32.totalorder %v2892_v49, 4 }
 0x53c   : > { %v2587_v35 = vmax.f32 %v2586_v40, 0.0  ;;  %8502 = vmatprep.subr.bf16.mxu0 %v11395_v48  ;;  %v2698_v40 = vadd.s32 4294967295, %v2600_v47 }
 0x53e   : > { %2588 = vst.msk [vmem:[#allocation2 + $0x8] sm:$0xff] %vm11323_vm9, %v2587_v35  ;;  %vm2700_vm1 = vcmp.ge.s32.totalorder %v2698_v40, 0  ;;  %vm2701_vm7 = vcmp.lt.s32.totalorder %v2698_v40, 4  ;;  %vm3251_vm9 = vcmp.lt.s32.totalorder %v3249_v23, 4 }
 0x53f   : > { %8504 = vmatpush3.bf16.msk.msra.mxu0 %vm8503_vm11, %v11406_v18  ;;  %vm2702_vm15 = vmand %vm2700_vm1, %vm2701_vm7  ;;  %vm2990_vm11 = vcmp.lt.s32.totalorder %v2600_v47, 4  ;;  %vm3250_vm7 = vcmp.ge.s32.totalorder %v3249_v23, 0 }
 0x540   : > { %8505 = vmatprep.subr.bf16.mxu0 %v11395_v48  ;;  %v2719_v37 = vsel %vm2702_vm15, 1.0, %v9702_v4  ;;  %vm2896_vm14 = vmand %vm2702_vm15, %vm2895_vm3 }
 0x541   : > { %v2897_v59 = vsel %vm2896_vm14, 1.0, %v9702_v4  ;;  %vm2991_vm12 = vmand %vm2989_vm8, %vm2990_vm11 }
 0x542   : > { %vm3252_vm11 = vmand %vm3250_vm7, %vm3251_vm9  ;;  %vm11407_vm9 = vcmask 523264   ;;  %vm11329_vm7 = vcmask 23552  }
 0x543   : > { %8507 = vmatpush3.bf16.msk.msra.mxu0 %vm8506_vm0, %v11406_v18  ;;  %vm2703_vm0 = vcmp.ge.s32.totalorder %v2699_v57, 0  ;;  %v3343_v11 = vsel %vm3252_vm11, 1.0, %v9702_v4  ;;  %vm3430_vm14 = vmand %vm3252_vm11, %vm2895_vm3 }
 0x544   : > { %8508 = vmatprep.subr.bf16.mxu0 %v11395_v48  ;;  %vm2704_vm1 = vmand %vm2702_vm15, %vm2703_vm0  ;;  %v3431_v56 = vsel %vm3430_vm14, 1.0, %v9702_v4 }
 0x545   : > { %v2589_v41 = vld [vmem:[#allocation2 + $0x8] sm:$0xff]  ;;  %v2707_v53 = vsel %vm2704_vm1, 1.0, %v9702_v4  ;;  %vm2992_vm8 = vmand %vm2991_vm12, %vm2703_vm0  ;;  %vm11410_vm1 = vcmask 64512  }
 0x546   : > { %2591 = vrot.lane.b32.xlu0 %v2589_v41, %s9025_s28  ;;  %v2994_v43 = vsel %vm2992_vm8, 1.0, %v9702_v4  ;;  %vm3253_vm15 = vmand %vm3252_vm11, %vm2703_vm0  ;;  %vm11409_vm0 = vcmask 130048  }
 0x547   : > { %8510 = vmatpush3.bf16.msk.msra.mxu0 %vm8509_vm2, %v11406_v18  ;;  %vm3162_vm2 = vmand %vm2991_vm12, %vm2895_vm3  ;;  %v3255_v30 = vsel %vm3253_vm15, 1.0, %v9702_v4  ;;  %vm11408_vm3 = vmmov 0   ;;  %vm11330_vm12 = vcmask 31744   ;;  %vm11413_vm15 = vcmask 7168  }
 0x548   : > { %8308 = vmatprep.subr.mxu0 %v9702_v4  ;;  %v3163_v63 = vsel %vm3162_vm2, 1.0, %v9702_v4  ;;  %vm2816_vm2 = vcmask 39936   ;;  %vm11411_vm8 = vmmov %vm11410_vm1 }
 0x549   : > { %vm11412_vm11 = vmmov %vm11410_vm1 }
 0x54a   : > { %2721 = vrot.lane.b32.xlu0 %v2719_v37, %s9044_s24  ;;  %vm11414_vm14 = vmmov %vm11410_vm1 }
 0x54e   : > { %2899 = vrot.lane.b32.xlu0 %v2897_v59, %s9045_s19 }
 0x552   : > { %3165 = vrot.lane.b32.xlu0 %v3163_v63, %s9022_s14 }
 0x556   : > { %3345 = vrot.lane.b32.xlu0 %v3343_v11, %s9047_s18 }
 0x5b8   : > { %v2592_v16 = vpop.permute.xlu0 %2591 }
 0x5b9   : > { %v2594_v62 = vmax.f32 %v2589_v41, %v2592_v16 }
 0x5bb   : > { %2596 = vrot.lane.b32.xlu1 %v2594_v62, %s11328_s25 }
 0x5bc   : > { %v2722_v33 = vpop.permute.xlu0 %2721 }
 0x5bd   : > { %v2724_v27 = vmul.f32 %v9702_v4, %v2722_v33 }
 0x5bf   : > { %2709 = vrot.lane.b32.xlu1 %v2707_v53, %s9046_s16  ;;  %2730 = vrot.lane.b32.xlu0 %v2724_v27, %s9047_s18 }
 0x5c0   : > { %v2900_v9 = vpop.permute.xlu0 %2899 }
 0x5c1   : > { %v2902_v46 = vmul.f32 %v9702_v4, %v2900_v9 }
 0x5c3   : > { %2996 = vrot.lane.b32.xlu1 %v2994_v43, %s9025_s28 }
 0x5c4   : > { %v3166_v57 = vpop.permute.xlu0 %3165 }
 0x5c7   : > { %3257 = vrot.lane.b32.xlu1 %v3255_v30, %s9048_s23 }
 0x5c8   : > { %v3346_v23 = vpop.permute.xlu0 %3345 }
 0x5cb   : > { %3433 = vrot.lane.b32.xlu1 %v3431_v56, %s9049_s22 }
 0x62d   : > { %v2597_v47 = vpop.permute.xlu1 %2596 }
 0x62e   : > { %v2599_v2 = vmax.f32 %v2594_v62, %v2597_v47 }
 0x630   : > { %8291 = vmatmul.mubr.msk.f32.vlgmr.msra.gmra.mrb[6].mxu0 %vm11407_vm9, %v2599_v2  ;;  %vm11415_vm9 = vmmov %vm11410_vm1 }
 0x631   : > { %v2710_v35 = vpop.permute.xlu1 %2709  ;;  %8310 = vmatprep.mubr.msk.f32.mxu0 %vm11408_vm3, %v9702_v4  ;;  %v2731_v27 = vpop.permute.xlu0 %2730 }
 0x632   : > { %v2712_v36 = vmul.f32 %v9702_v4, %v2710_v35 }
 0x634   : > { %2812 = vrot.lane.b32.xlu0 %v2712_v36, %s9049_s22 }
 0x635   : > { %v2997_v7 = vpop.permute.xlu1 %2996 }
 0x636   : > { %v2999_v41 = vmul.f32 %v9702_v4, %v2997_v7  ;;  %v3517_v4 = vld [vmem:[%s11219_s6] sm:$0xff] }
 0x638   : > { %2908 = vrot.lane.b32.xlu0 %v2902_v46, %s9048_s23  ;;  %v10216_v46 = vld [vmem:[#allocation2] sm:$0xff] }
 0x639   : > { %v3258_v11 = vpop.permute.xlu1 %3257 }
 0x63c   : > { %3005 = vrot.lane.b32.xlu0 %v2999_v41, %s9022_s14  ;;  %v2714_v41 = vld [vmem:[%s11218_s5] sm:$0xff] }
 0x63d   : > { %v3434_v56 = vpop.permute.xlu1 %3433 }
 0x6a6   : > { %v2813_v47 = vpop.permute.xlu0 %2812 }
 0x6aa   : > { %v2909_v36 = vpop.permute.xlu0 %2908 }
 0x703   : > { %v2691_v40 = vpop.f32.mrb[6].mxu0 }
 0x704   : > { %2695 = vst.msk [vmem:[#allocation2 + $0x8] sm:$0xff] %vm11409_vm0, %v2691_v40  ;;  %v8292_v49 = vpop.f32.mrb[7].mxu0  ;;  %vm11416_vm0 = vmmov %vm11410_vm1 }
 0x705   : > { %v3006_v49 = vpop.permute.xlu0 %3005 }
 0x70b   : > { %v2697_v37 = vld [vmem:[#allocation2 + $0x8] sm:$0xff] }
 0x70c   : > { %v3168_v59 = vmul.f32 %v3166_v57, %v2697_v37  ;;  %v2725_v16 = vmul.f32 %v2722_v33, %v2697_v37  ;;  %v3348_v62 = vmul.f32 %v3346_v23, %v2697_v37  ;;  %v2713_v63 = vmul.f32 %v2710_v35, %v2697_v37  ;;  %v7888_v35 = vld [vmem:[%s11218_s5 + $0x8] sm:$0xff] }
 0x70d   : > { %v2903_v53 = vmul.f32 %v2900_v9, %v2697_v37  ;;  %v3000_v43 = vmul.f32 %v2997_v7, %v2697_v37  ;;  %v3260_v30 = vmul.f32 %v3258_v11, %v2697_v37  ;;  %v3436_v33 = vmul.f32 %v3434_v56, %v2697_v37  ;;  %v7897_v11 = vld [vmem:[%s11218_s5 + $0x28] sm:$0xff] }
 0x70e   : > { %3172 = vrot.lane.b32.xlu0 %v3168_v59, %s9025_s28  ;;  %2732 = vrot.lane.b32.xlu1 %v2725_v16, %s9047_s18  ;;  %v7891_v59 = vld [vmem:[%s11218_s5 + $0x10] sm:$0xff] }
 0x712   : > { %3352 = vrot.lane.b32.xlu0 %v3348_v62, %s9044_s24  ;;  %2814 = vrot.lane.b32.xlu1 %v2713_v63, %s9049_s22  ;;  %v7893_v62 = vld [vmem:[%s11218_s5 + $0x18] sm:$0xff]  ;;  %s11439_s22 = smov 120  }
 0x716   : > { %3520 = vperm.xlu0 %8722, %v3517_v4   ;;  %2910 = vrot.lane.b32.xlu1 %v2903_v53, %s9048_s23  ;;  %v7895_v53 = vld [vmem:[%s11218_s5 + $0x20] sm:$0xff] }
 0x71a   : > { %3007 = vrot.lane.b32.xlu1 %v3000_v43, %s9022_s14  ;;  %v7899_v43 = vld [vmem:[%s11218_s5 + $0x30] sm:$0xff] }
 0x71e   : > { %3264 = vrot.lane.b32.xlu1 %v3260_v30, %s9045_s19 }
 0x722   : > { %3440 = vrot.lane.b32.xlu1 %v3436_v33, %s9046_s16  ;;  %v7901_v33 = vld [vmem:[%s11218_s5 + $0x38] sm:$0xff]  ;;  %s9050_s16 = smov 2  }
 0x780   : > { %v2733_v2 = vpop.permute.xlu1 %2732  ;;  %v3173_v63 = vpop.permute.xlu0 %3172 }
 0x781   : > { %v2735_v9 = vsel %vm11330_vm12, %v2731_v27, %v2733_v2  ;;  %v7903_v27 = vld [vmem:[%s11218_s5 + $0x40] sm:$0xff] }
 0x782   : > { %8294 = vmatpush3.msra.mxu1 %v2735_v9 }
 0x783   : > { %8296 = vmatmul.mubr.msk.f32.vlgmr.msra.gmra.mrb[16].mxu1 %vm11410_vm1, %v7888_v35  ;;  %8298 = vmatprep.subr.mxu1 %v10216_v46  ;;  %vm11418_vm1 = vmmov %vm11416_vm0 }
 0x784   : > { %v2815_v7 = vpop.permute.xlu1 %2814  ;;  %8300 = vmatprep.mubr.msk.f32.mxu1 %vm11408_vm3, %v10216_v46  ;;  %v3353_v30 = vpop.permute.xlu0 %3352 }
 0x785   : > { %v2817_v40 = vsel %vm2816_vm2, %v2813_v47, %v2815_v7  ;;  %vm11417_vm2 = vmmov %vm11416_vm0 }
 0x786   : > { %8299 = vmatpush3.msra.mxu1 %v2817_v40 }
 0x787   : > { %8301 = vmatmul.mubr.msk.f32.vlgmr.msra.gmra.mrb[18].mxu1 %vm11411_vm8, %v2714_v41  ;;  %8303 = vmatprep.subr.mxu1 %v10216_v46  ;;  %vm11419_vm8 = vmmov %vm11416_vm0 }
 0x788   : > { %v2911_v57 = vpop.permute.xlu1 %2910  ;;  %8305 = vmatprep.mubr.msk.f32.mxu1 %vm11408_vm3, %v10216_v46 }
 0x789   : > { %v2913_v23 = vsel %vm11329_vm7, %v2909_v36, %v2911_v57 }
 0x78a   : > { %8304 = vmatpush3.msra.mxu1 %v2913_v23 }
 0x78b   : > { %8306 = vmatmul.mubr.msk.f32.vlgmr.msra.gmra.mrb[20].mxu1 %vm11412_vm11, %v7891_v59  ;;  %8313 = vmatprep.subr.mxu1 %v10216_v46  ;;  %vm11420_vm11 = vcmask 130048  }
 0x78c   : > { %v3008_v16 = vpop.permute.xlu1 %3007  ;;  %8314 = vmatpush3.msra.mxu1 %v2697_v37  ;;  %8315 = vmatprep.mubr.msk.f32.mxu1 %vm11408_vm3, %v10216_v46 }
 0x78d   : > { %v3009_v4 = vsel %vm11413_vm15, %v3006_v49, %v3008_v16  ;;  %8323 = vmatprep.subr.mxu1 %v10216_v46 }
 0x78e   : > { %8309 = vmatpush3.msra.mxu0 %v3009_v4 }
 0x78f   : > { %8311 = vmatmul.mubr.msk.f32.vlgmr.msra.gmra.mrb[8].mxu0 %vm11414_vm14, %v7893_v62  ;;  %8318 = vmatprep.subr.mxu0 %v10216_v46 }
 0x790   : > { %v3265_v37 = vpop.permute.xlu1 %3264  ;;  %8316 = vmatmul.mubr.msk.f32.vlgmr.msra.gmra.mrb[22].mxu1 %vm11415_vm9, %v7895_v53  ;;  %8319 = vmatpush3.msra.mxu0 %v3173_v63 }
 0x791   : > { %8324 = vmatpush3.msra.mxu1 %v3265_v37  ;;  %8320 = vmatprep.mubr.msk.f32.mxu0 %vm11408_vm3, %v10216_v46 }
 0x792   : > { %8328 = vmatprep.subr.mxu0 %v10216_v46  ;;  %8325 = vmatprep.mubr.msk.f32.mxu1 %vm11408_vm3, %v10216_v46 }
 0x793   : > { %8321 = vmatmul.mubr.msk.f32.vlgmr.msra.gmra.mrb[10].mxu0 %vm11416_vm0, %v7897_v11  ;;  %8333 = vmatprep.subr.mxu1 %v10216_v46 }
 0x794   : > { %8329 = vmatpush3.msra.mxu0 %v3353_v30  ;;  %v3441_v56 = vpop.permute.xlu1 %3440  ;;  %8326 = vmatmul.mubr.msk.f32.vlgmr.msra.gmra.mrb[24].mxu1 %vm11417_vm2, %v7899_v43 }
 0x795   : > { %8334 = vmatpush3.msra.mxu1 %v3441_v56  ;;  %8330 = vmatprep.mubr.msk.f32.mxu0 %vm11408_vm3, %v10216_v46 }
 0x796   : > { %8335 = vmatprep.mubr.msk.f32.mxu1 %vm11408_vm3, %v10216_v46  ;;  %8511 = vmatprep.subr.bf16.mxu0 %v11395_v48 }
 0x797   : > { %8331 = vmatmul.mubr.msk.f32.vlgmr.msra.gmra.mrb[12].mxu0 %vm11418_vm1, %v7901_v33  ;;  %8345 = vmatprep.subr.mxu1 %v10216_v46 }
 0x798   : > { %8336 = vmatmul.mubr.msk.f32.vlgmr.msra.gmra.mrb[26].mxu1 %vm11419_vm8, %v7903_v27  ;;  %8342 = vmatprep.mubr.msk.f32.mxu0 %vm11408_vm3, %v10216_v46 }
 0x799   : > { %8347 = vmatprep.mubr.msk.f32.mxu1 %vm11408_vm3, %v10216_v46 }
 0x856   : > { %v2806_v47 = vpop.f32.mrb[16].mxu1 }
 0x857   : > { %v8297_v2 = vpop.f32.mrb[17].mxu1 }
 0x858   : > { %v3521_v2 = vpop.permute.xlu0 %3520 }
 0x85a   : > { %v2888_v35 = vpop.f32.mrb[18].mxu1 }
 0x85b   : > { %v2889_v36 = vadd.f32 %v2888_v35, %v2806_v47  ;;  %v8302_v9 = vpop.f32.mrb[19].mxu1 }
 0x85c   : > { %v3538_v9 = vand.u32 1, %v9157_v6 }
 0x85e   : > { %v2984_v7 = vpop.f32.mrb[20].mxu1 }
 0x85f   : > { %v2988_v41 = vadd.f32 %v2984_v7, %v2889_v36  ;;  %v8307_v48 = vpop.f32.mrb[21].mxu1  ;;  %v3537_v36 = vshra.s32 %v9157_v6, 1 }
 0x860   : > { %v3541_v48 = vmul.u32 2, %v3538_v9 }
 0x861   : > { %v3623_v6 = vadd.s32 4294967295, %v3537_v36  ;;  %vm3913_vm7 = vcmp.lt.s32.totalorder %v3537_v36, 2 }
 0x862   : > { %v3080_v40 = vpop.f32.mrb[8].mxu0 }
 0x863   : > { %v3084_v49 = vadd.f32 %v3080_v40, %v2988_v41  ;;  %v8312_v57 = vpop.f32.mrb[9].mxu0  ;;  %v3156_v59 = vpop.f32.mrb[22].mxu1  ;;  %v3539_v41 = vmul.u32 2, %v3537_v36  ;;  %vm3625_vm0 = vcmp.ge.s32.totalorder %v3623_v6, 0  ;;  %vm3626_vm2 = vcmp.lt.s32.totalorder %v3623_v6, 2 }
 0x864   : > { %v8317_v23 = vpop.f32.mrb[23].mxu1  ;;  %vm3627_vm8 = vmand %vm3625_vm0, %vm3626_vm2 }
 0x865   : > { %v3160_v16 = vadd.f32 %v3156_v59, %v3084_v49  ;;  %v3540_v40 = vmul.u32 4, %v3539_v41  ;;  %v3816_v59 = vadd.s32 1, %v3538_v9  ;;  %v3624_v23 = vadd.s32 4294967295, %v3538_v9 }
 0x866   : > { %v3244_v62 = vpop.f32.mrb[10].mxu0 }
 0x867   : > { %v3248_v63 = vadd.f32 %v3244_v62, %v3160_v16  ;;  %v8322_v4 = vpop.f32.mrb[11].mxu0  ;;  %v3336_v53 = vpop.f32.mrb[24].mxu1  ;;  %v3542_v49 = vadd.s32 %v3541_v48, %v3540_v40  ;;  %vm3819_vm1 = vcmp.lt.s32.totalorder %v3816_v59, 2  ;;  %v3644_v16 = vsel %vm3627_vm8, 1.0, %v10216_v46 }
 0x868   : > { %v8327_v37 = vpop.f32.mrb[25].mxu1 }
 0x869   : > { %v3340_v11 = vadd.f32 %v3336_v53, %v3248_v63  ;;  %vm3543_vm15 = vcmp.eq.s32.totalorder %v9183_v19, %v3542_v49  ;;  %vm3544_vm14 = vcmp.eq.s32.totalorder %v9723_v44, %v3542_v49  ;;  %v4172_v63 = vadd.s32 1, %v3537_v36 }
 0x86a   : > { %v3424_v43 = vpop.f32.mrb[12].mxu0  ;;  %vm8512_vm9 = vmpackc.low %vm3544_vm14, %vm3543_vm15  ;;  %vm3628_vm14 = vcmp.ge.s32.totalorder %v3624_v23, 0 }
 0x86b   : > { %v3428_v30 = vadd.f32 %v3424_v43, %v3340_v11  ;;  %v8332_v56 = vpop.f32.mrb[13].mxu0  ;;  %v3512_v33 = vpop.f32.mrb[26].mxu1  ;;  %8513 = vmatpush3.bf16.msk.msra.mxu0 %vm8512_vm9, %v11406_v18  ;;  %vm3820_vm15 = vmand %vm3627_vm8, %vm3819_vm1  ;;  %vm4173_vm0 = vcmp.ge.s32.totalorder %v4172_v63, 0  ;;  %vm4174_vm2 = vcmp.lt.s32.totalorder %v4172_v63, 2 }
 0x86c   : > { %v8337_v27 = vpop.f32.mrb[27].mxu1  ;;  %8350 = vmatprep.subr.mxu0 %v10216_v46  ;;  %v3821_v62 = vsel %vm3820_vm15, 1.0, %v10216_v46  ;;  %vm3629_vm13 = vmand %vm3627_vm8, %vm3628_vm14 }
 0x86d   : > { %v3516_v47 = vadd.f32 %v3512_v33, %v3428_v30  ;;  %v3632_v11 = vsel %vm3629_vm13, 1.0, %v10216_v46 }
 0x86f   : > { %v3523_v35 = vadd.f32 %v3521_v2, %v3516_v47 }
 0x871   : > { %v3524_v7 = vmax.f32 %v3523_v35, 0.0 }
 0x873   : > { %3525 = vst.msk [vmem:[#allocation2 + $0x8] sm:$0xff] %vm11420_vm11, %v3524_v7  ;;  %vm3912_vm11 = vcmp.ge.s32.totalorder %v3537_v36, 0 }
 0x874   : > { %vm3914_vm9 = vmand %vm3912_vm11, %vm3913_vm7  ;;  %vm3659_vm11 = vcmask 15360  }
 0x875   : > { %vm4085_vm12 = vmand %vm3914_vm9, %vm3819_vm1 }
 0x876   : > { %v4086_v37 = vsel %vm4085_vm12, 1.0, %v10216_v46  ;;  %vm3915_vm15 = vmand %vm3914_vm9, %vm3628_vm14  ;;  %vm11421_vm12 = vcmask 130048   ;;  %vm11424_vm9 = vcmask 23552  }
 0x877   : > { %vm4175_vm7 = vmand %vm4173_vm0, %vm4174_vm2  ;;  %v3917_v30 = vsel %vm3915_vm15, 1.0, %v10216_v46  ;;  %vm11426_vm2 = vcmask 7168  }
 0x878   : > { %v4266_v43 = vsel %vm4175_vm7, 1.0, %v10216_v46  ;;  %vm4176_vm8 = vmand %vm4175_vm7, %vm3628_vm14  ;;  %vm11423_vm14 = vcmask 64512  }
 0x879   : > { %v4178_v56 = vsel %vm4176_vm8, 1.0, %v10216_v46  ;;  %vm4353_vm13 = vmand %vm4175_vm7, %vm3819_vm1  ;;  %vm11422_vm1 = vcmask 31744  }
 0x87a   : > { %v3526_v57 = vld [vmem:[#allocation2 + $0x8] sm:$0xff]  ;;  %v4354_v33 = vsel %vm4353_vm13, 1.0, %v10216_v46  ;;  %vm11425_vm0 = vmmov %vm11423_vm14 }
 0x87b   : > { %3528 = vrot.lane.b32.xlu1 %v3526_v57, %s9025_s28  ;;  %vm11427_vm15 = vmmov %vm11425_vm0 }
 0x87c   : > { %vm11428_vm7 = vmmov %vm11426_vm2 }
 0x87d   : > { %vm11429_vm8 = vmmov %vm11425_vm0 }
 0x87e   : > { %vm11430_vm13 = vmmov %vm11425_vm0 }
 0x87f   : > { %3646 = vrot.lane.b32.xlu1 %v3644_v16, %s9032_s26 }
 0x883   : > { %3823 = vrot.lane.b32.xlu1 %v3821_v62, %s9025_s28 }
 0x887   : > { %4088 = vrot.lane.b32.xlu1 %v4086_v37, %s9022_s14 }
 0x88b   : > { %4268 = vrot.lane.b32.xlu1 %v4266_v43, %s9050_s16 }
 0x8ed   : > { %v3529_v4 = vpop.permute.xlu1 %3528 }
 0x8ee   : > { %v3531_v53 = vmax.f32 %v3526_v57, %v3529_v4 }
 0x8f0   : > { %3533 = vrot.lane.b32.xlu0 %v3531_v53, %s9044_s24 }
 0x8f1   : > { %v3647_v27 = vpop.permute.xlu1 %3646 }
 0x8f2   : > { %v3649_v47 = vmul.f32 %v10216_v46, %v3647_v27 }
 0x8f4   : > { %3634 = vrot.lane.b32.xlu0 %v3632_v11, %s9045_s19  ;;  %3655 = vrot.lane.b32.xlu1 %v3649_v47, %s9050_s16  ;;  %v4534_v47 = vmul.f32 %v10216_v46, %v9991_v17 }
 0x8f5   : > { %v3824_v7 = vpop.permute.xlu1 %3823 }
 0x8f6   : > { %v3826_v41 = vmul.f32 %v10216_v46, %v3824_v7 }
 0x8f8   : > { %3919 = vrot.lane.b32.xlu0 %v3917_v30, %s9025_s28 }
 0x8f9   : > { %v4089_v6 = vpop.permute.xlu1 %4088 }
 0x8fc   : > { %4180 = vrot.lane.b32.xlu0 %v4178_v56, %s9022_s14 }
 0x8fd   : > { %v4269_v16 = vpop.permute.xlu1 %4268 }
 0x900   : > { %4356 = vrot.lane.b32.xlu0 %v4354_v33, %s9048_s23 }
 0x962   : > { %v3534_v2 = vpop.permute.xlu0 %3533 }
 0x963   : > { %v3536_v35 = vmax.f32 %v3531_v53, %v3534_v2  ;;  %v4440_v53 = vld [vmem:[%s11221_s8] sm:$0xff]  ;;  %v4703_v2 = vmul.f32 %v10216_v46, %v9999_v38 }
 0x965   : > { %8343 = vmatmul.mubr.msk.f32.vlgmr.msra.gmra.mrb[14].mxu0 %vm11421_vm12, %v3536_v35  ;;  %v4789_v35 = vmul.f32 %v10216_v46, %v10010_v25  ;;  %vm11431_vm12 = vmmov %vm11425_vm0 }
 0x966   : > { %v3635_v36 = vpop.permute.xlu0 %3634  ;;  %8352 = vmatprep.mubr.msk.f32.mxu0 %vm11408_vm3, %v10216_v46 }
 0x967   : > { %v3637_v9 = vmul.f32 %v10216_v46, %v3635_v36 }
 0x969   : > { %3737 = vrot.lane.b32.xlu1 %v3637_v9, %s9048_s23 }
 0x96a   : > { %v3920_v48 = vpop.permute.xlu0 %3919 }
 0x96b   : > { %v3922_v40 = vmul.f32 %v10216_v46, %v3920_v48 }
 0x96d   : > { %3832 = vrot.lane.b32.xlu1 %v3826_v41, %s9022_s14  ;;  %v7908_v41 = vld [vmem:[%s11220_s7 + $0x8] sm:$0xff] }
 0x96e   : > { %v4181_v11 = vpop.permute.xlu0 %4180 }
 0x971   : > { %3928 = vrot.lane.b32.xlu1 %v3922_v40, %s9022_s14 }
 0x972   : > { %v4357_v56 = vpop.permute.xlu0 %4356 }
 0xa38   : > { %v3616_v49 = vpop.f32.mrb[14].mxu0 }
 0xa39   : > { %3620 = vst.msk [vmem:[#allocation2 + $0x8] sm:$0xff] %vm11422_vm1, %v3616_v49  ;;  %v8344_v57 = vpop.f32.mrb[15].mxu0  ;;  %vm11432_vm1 = vmmov %vm11425_vm0 }
 0xa3a   : > { %v3639_v57 = vld [vmem:[%s11220_s7] sm:$0xff] }
 0xa40   : > { %v3622_v59 = vld [vmem:[#allocation2 + $0x8] sm:$0xff] }
 0xa41   : > { %v4091_v23 = vmul.f32 %v4089_v6, %v3622_v59  ;;  %v3650_v62 = vmul.f32 %v3647_v27, %v3622_v59  ;;  %v4271_v63 = vmul.f32 %v4269_v16, %v3622_v59  ;;  %v3638_v4 = vmul.f32 %v3635_v36, %v3622_v59  ;;  %v3656_v36 = vpop.permute.xlu1 %3655 }
 0xa42   : > { %v3827_v37 = vmul.f32 %v3824_v7, %v3622_v59  ;;  %v3923_v43 = vmul.f32 %v3920_v48, %v3622_v59  ;;  %v4183_v30 = vmul.f32 %v4181_v11, %v3622_v59  ;;  %v4359_v33 = vmul.f32 %v4357_v56, %v3622_v59  ;;  %v7919_v56 = vld [vmem:[%s11220_s7 + $0x30] sm:$0xff] }
 0xa43   : > { %4095 = vrot.lane.b32.xlu1 %v4091_v23, %s9025_s28  ;;  %3657 = vrot.lane.b32.xlu0 %v3650_v62, %s9050_s16  ;;  %v4537_v27 = vmul.f32 %v10216_v46, %v10024_v10  ;;  %v7911_v62 = vld [vmem:[%s11220_s7 + $0x10] sm:$0xff] }
 0xa45   : > { %v3738_v9 = vpop.permute.xlu1 %3737 }
 0xa47   : > { %4275 = vrot.lane.b32.xlu1 %v4271_v63, %s9032_s26  ;;  %3739 = vrot.lane.b32.xlu0 %v3638_v4, %s9048_s23  ;;  %s9052_s23 = smov 33  }
 0xa49   : > { %v3833_v48 = vpop.permute.xlu1 %3832 }
 0xa4b   : > { %4443 = vperm.xlu1 %8723, %v4440_v53   ;;  %3834 = vrot.lane.b32.xlu0 %v3827_v37, %s9022_s14  ;;  %v7913_v53 = vld [vmem:[%s11220_s7 + $0x18] sm:$0xff] }
 0xa4d   : > { %v3929_v23 = vpop.permute.xlu1 %3928 }
 0xa4f   : > { %3930 = vrot.lane.b32.xlu0 %v3923_v43, %s9022_s14  ;;  %v7915_v43 = vld [vmem:[%s11220_s7 + $0x20] sm:$0xff] }
 0xa53   : > { %4187 = vrot.lane.b32.xlu0 %v4183_v30, %s9025_s28  ;;  %v7917_v30 = vld [vmem:[%s11220_s7 + $0x28] sm:$0xff] }
 0xa57   : > { %4363 = vrot.lane.b32.xlu0 %v4359_v33, %s9045_s19  ;;  %s9053_s19 = smov 32  }
 0xa5b   : > { %4543 = vrot.lane.b32.xlu0 %v4537_v27, %s9041_s27 }
 0xa5f   : > { %4624 = vrot.lane.b32.xlu0 %v4534_v47, %s9040_s29  ;;  %v7921_v47 = vld [vmem:[%s11220_s7 + $0x38] sm:$0xff] }
 0xa63   : > { %4709 = vrot.lane.b32.xlu0 %v4703_v2, %s9039_s30  ;;  %v7923_v2 = vld [vmem:[%s11220_s7 + $0x40] sm:$0xff] }
 0xa67   : > { %4795 = vrot.lane.b32.xlu0 %v4789_v35, %s9022_s14  ;;  %v11435_v35 = vmul.u32 2, %v9686_v60 }
 0xab5   : > { %v3658_v7 = vpop.permute.xlu0 %3657  ;;  %v4096_v37 = vpop.permute.xlu1 %4095 }
 0xab6   : > { %v3660_v40 = vsel %vm3659_vm11, %v3656_v36, %v3658_v7  ;;  %v4448_v36 = vshra.s32 %v11435_v35, 3 }
 0xab7   : > { %8346 = vmatpush3.msra.mxu1 %v3660_v40 }
 0xab8   : > { %8348 = vmatmul.mubr.msk.f32.vlgmr.msra.gmra.mrb[28].mxu1 %vm11423_vm14, %v7908_v41  ;;  %8355 = vmatprep.subr.mxu1 %v10216_v46  ;;  %vm11433_vm14 = vmmov %vm11425_vm0  ;;  %v4450_v41 = vmul.u32 2, %v4448_v36 }
 0xab9   : > { %v3740_v49 = vpop.permute.xlu0 %3739  ;;  %8357 = vmatprep.mubr.msk.f32.mxu1 %vm11408_vm3, %v10216_v46  ;;  %v4276_v33 = vpop.permute.xlu1 %4275 }
 0xaba   : > { %v3741_v6 = vsel %vm11424_vm9, %v3738_v9, %v3740_v49  ;;  %vm11434_vm9 = vmmov %vm11425_vm0  ;;  %v11436_v9 = vmul.u32 2, %v9689_v39 }
 0xabb   : > { %8351 = vmatpush3.msra.mxu0 %v3741_v6 }
 0xabc   : > { %8353 = vmatmul.mubr.msk.f32.vlgmr.msra.gmra.mrb[16].mxu0 %vm11425_vm0, %v3639_v57  ;;  %8360 = vmatprep.subr.mxu0 %v10216_v46  ;;  %v4449_v7 = vshra.s32 %v11436_v9, 3 }
 0xabd   : > { %v3835_v16 = vpop.permute.xlu0 %3834  ;;  %8362 = vmatprep.mubr.msk.f32.mxu0 %vm11408_vm3, %v10216_v46 }
 0xabe   : > { %v3836_v63 = vsel %vm11426_vm2, %v3833_v48, %v3835_v16  ;;  %v4451_v48 = vadd.s32 %v4450_v41, %v4449_v7  ;;  %vm4457_vm2 = vcmask 1043456  }
 0xabf   : > { %8356 = vmatpush3.msra.mxu1 %v3836_v63 }
 0xac0   : > { %8358 = vmatmul.mubr.msk.f32.vlgmr.msra.gmra.mrb[30].mxu1 %vm11427_vm15, %v7911_v62  ;;  %8365 = vmatprep.subr.mxu1 %v10216_v46  ;;  %vm4452_vm0 = vcmp.eq.s32.totalorder %v9183_v19, %v4451_v48  ;;  %vm11437_vm15 = vcmask 31744  }
 0xac1   : > { %v3931_v4 = vpop.permute.xlu0 %3930  ;;  %8366 = vmatpush3.msra.mxu1 %v3622_v59  ;;  %8367 = vmatprep.mubr.msk.f32.mxu1 %vm11408_vm3, %v10216_v46  ;;  %v4453_v40 = vsel %vm4452_vm0, 1.0, %v10216_v46  ;;  %vm11447_vm0 = vcmask 7168  }
 0xac2   : > { %v3932_v11 = vsel %vm11428_vm7, %v3929_v23, %v3931_v4  ;;  %8375 = vmatprep.subr.mxu1 %v10216_v46  ;;  %vm11438_vm7 = vcmask 523264  }
 0xac3   : > { %8361 = vmatpush3.msra.mxu0 %v3932_v11 }
 0xac4   : > { %8363 = vmatmul.mubr.msk.f32.vlgmr.msra.gmra.mrb[18].mxu0 %vm11429_vm8, %v7913_v53  ;;  %8370 = vmatprep.subr.mxu0 %v10216_v46  ;;  %vm11442_vm8 = vmmov %vm11432_vm1 }
 0xac5   : > { %v4188_v59 = vpop.permute.xlu0 %4187  ;;  %8368 = vmatmul.mubr.msk.f32.vlgmr.msra.gmra.mrb[32].mxu1 %vm11430_vm13, %v7915_v43  ;;  %8371 = vmatpush3.msra.mxu0 %v4096_v37  ;;  %vm11443_vm13 = vmmov %vm11432_vm1 }
 0xac6   : > { %8376 = vmatpush3.msra.mxu1 %v4188_v59  ;;  %8372 = vmatprep.mubr.msk.f32.mxu0 %vm11408_vm3, %v10216_v46 }
 0xac7   : > { %8380 = vmatprep.subr.mxu0 %v10216_v46  ;;  %8377 = vmatprep.mubr.msk.f32.mxu1 %vm11408_vm3, %v10216_v46 }
 0xac8   : > { %8373 = vmatmul.mubr.msk.f32.vlgmr.msra.gmra.mrb[20].mxu0 %vm11431_vm12, %v7917_v30  ;;  %8385 = vmatprep.subr.mxu1 %v10216_v46  ;;  %vm11444_vm12 = vcmask 72704  }
 0xac9   : > { %8381 = vmatpush3.msra.mxu0 %v4276_v33  ;;  %v4364_v27 = vpop.permute.xlu0 %4363  ;;  %8378 = vmatmul.mubr.msk.f32.vlgmr.msra.gmra.mrb[34].mxu1 %vm11432_vm1, %v7919_v56 }
 0xaca   : > { %8386 = vmatpush3.msra.mxu1 %v4364_v27  ;;  %8382 = vmatprep.mubr.msk.f32.mxu0 %vm11408_vm3, %v10216_v46  ;;  %v4444_v48 = vpop.permute.xlu1 %4443 }
 0xacb   : > { %8387 = vmatprep.mubr.msk.f32.mxu1 %vm11408_vm3, %v10216_v46  ;;  %8390 = vmatprep.subr.mxu0 %v10216_v46 }
 0xacc   : > { %8383 = vmatmul.mubr.msk.f32.vlgmr.msra.gmra.mrb[22].mxu0 %vm11433_vm14, %v7921_v47  ;;  %8395 = vmatprep.subr.mxu1 %v10216_v46  ;;  %vm11445_vm14 = vcmask 56320  }
 0xacd   : > { %8388 = vmatmul.mubr.msk.f32.vlgmr.msra.gmra.mrb[36].mxu1 %vm11434_vm9, %v7923_v2  ;;  %8392 = vmatprep.mubr.msk.f32.mxu0 %vm11408_vm3, %v10216_v46  ;;  %vm11446_vm9 = vmmov %vm11432_vm1 }
 0xace   : > { %8397 = vmatprep.mubr.msk.f32.mxu1 %vm11408_vm3, %v10216_v46  ;;  %8391 = vmatpush3.msk.msra.mxu0 %vm4457_vm2, %v4453_v40  ;;  %vm11448_vm2 = vmmov %vm11432_vm1 }
 0xacf   : > { %8400 = vmatprep.subr.mxu0 %v10216_v46 }
 0xb8b   : > { %v3731_v49 = vpop.f32.mrb[28].mxu1 }
 0xb8c   : > { %v8349_v57 = vpop.f32.mrb[29].mxu1 }
 0xb8f   : > { %v3812_v6 = vpop.f32.mrb[16].mxu0 }
 0xb90   : > { %v3813_v23 = vadd.f32 %v3812_v6, %v3731_v49  ;;  %v8354_v16 = vpop.f32.mrb[17].mxu0 }
 0xb93   : > { %v3907_v60 = vpop.f32.mrb[30].mxu1 }
 0xb94   : > { %v3911_v62 = vadd.f32 %v3907_v60, %v3813_v23  ;;  %v8359_v63 = vpop.f32.mrb[31].mxu1 }
 0xb97   : > { %v4003_v39 = vpop.f32.mrb[18].mxu0 }
 0xb98   : > { %v4007_v4 = vadd.f32 %v4003_v39, %v3911_v62  ;;  %v8364_v53 = vpop.f32.mrb[19].mxu0  ;;  %v4079_v37 = vpop.f32.mrb[32].mxu1  ;;  %v5275_v39 = vld [vmem:[%s11223_s10] sm:$0xff] }
 0xb99   : > { %v8369_v11 = vpop.f32.mrb[33].mxu1 }
 0xb9a   : > { %v4083_v43 = vadd.f32 %v4079_v37, %v4007_v4  ;;  %v4544_v4 = vpop.permute.xlu0 %4543 }
 0xb9b   : > { %v4167_v59 = vpop.f32.mrb[20].mxu0 }
 0xb9c   : > { %v4171_v30 = vadd.f32 %v4167_v59, %v4083_v43  ;;  %v8374_v56 = vpop.f32.mrb[21].mxu0  ;;  %v4259_v33 = vpop.f32.mrb[34].mxu1 }
 0xb9d   : > { %v8379_v27 = vpop.f32.mrb[35].mxu1 }
 0xb9e   : > { %v4263_v47 = vadd.f32 %v4259_v33, %v4171_v30  ;;  %v4625_v53 = vpop.permute.xlu0 %4624  ;;  %v7930_v30 = vld [vmem:[%s11222_s9 + $0x10] sm:$0xff] }
 0xb9f   : > { %v4347_v2 = vpop.f32.mrb[22].mxu0 }
 0xba0   : > { %v4351_v35 = vadd.f32 %v4347_v2, %v4263_v47  ;;  %v8384_v36 = vpop.f32.mrb[23].mxu0  ;;  %v4435_v9 = vpop.f32.mrb[36].mxu1  ;;  %v7932_v47 = vld [vmem:[%s11222_s9 + $0x18] sm:$0xff] }
 0xba1   : > { %v8389_v7 = vpop.f32.mrb[37].mxu1  ;;  %v7934_v36 = vld [vmem:[%s11222_s9 + $0x20] sm:$0xff] }
 0xba2   : > { %v4439_v41 = vadd.f32 %v4435_v9, %v4351_v35  ;;  %v7936_v7 = vld [vmem:[%s11222_s9 + $0x28] sm:$0xff] }
 0xba4   : > { %v4446_v40 = vadd.f32 %v4444_v48, %v4439_v41  ;;  %v7938_v41 = vld [vmem:[%s11222_s9 + $0x30] sm:$0xff] }
 0xba6   : > { %v4447_v49 = vmax.f32 %v4446_v40, 0.0 }
 0xba8   : > { %8393 = vmatmul.mubr.msk.f32.vlgmr.msra.gmra.mrb[24].mxu0 %vm11437_vm15, %v4447_v49  ;;  %vm11449_vm15 = vmmov %vm11432_vm1  ;;  %v7940_v49 = vld [vmem:[%s11222_s9 + $0x38] sm:$0xff] }
 0xba9   : > { %8402 = vmatprep.mubr.msk.f32.mxu0 %vm11408_vm3, %v10216_v46 }
 0xc7b   : > { %v4527_v57 = vpop.f32.mrb[24].mxu0 }
 0xc7c   : > { %4531 = vst.msk [vmem:[#allocation2 + $0x8] sm:$0xff] %vm11438_vm7, %v4527_v57  ;;  %v8394_v6 = vpop.f32.mrb[25].mxu0  ;;  %vm11450_vm7 = vmmov %vm11432_vm1  ;;  %v7942_v57 = vld [vmem:[%s11222_s9 + $0x40] sm:$0xff] }
 0xc7d   : > { %v5287_v6 = vmul.u32 8, %v9170_v13 }
 0xc83   : > { %v4533_v23 = vld [vmem:[#allocation2 + $0x8] sm:$0xff] }
 0xc84   : > { %v4951_v16 = vmul.f32 %v4533_v23, %v10034_v51  ;;  %v4538_v60 = vmul.f32 %v4533_v23, %v10024_v10  ;;  %v5113_v62 = vmul.f32 %v4533_v23, %v10048_v31  ;;  %v4535_v63 = vmul.f32 %v4533_v23, %v9991_v17 }
 0xc85   : > { %v4704_v51 = vmul.f32 %v4533_v23, %v9999_v38  ;;  %v4790_v10 = vmul.f32 %v4533_v23, %v10010_v25  ;;  %v5032_v31 = vmul.f32 %v4533_v23, %v10042_v32  ;;  %v5194_v17 = vmul.f32 %v4533_v23, %v10060_v1  ;;  %v7927_v38 = vld [vmem:[%s11222_s9 + $0x8] sm:$0xff]  ;;  %v4710_v25 = vpop.permute.xlu0 %4709  ;;  %v4536_v1 = vld [vmem:[%s11222_s9] sm:$0xff] }
 0xc86   : > { %4955 = vrot.lane.b32.xlu0 %v4951_v16, %s9025_s28  ;;  %4545 = vrot.lane.b32.xlu1 %v4538_v60, %s9041_s27  ;;  %s11440_s27 = smov 121   ;;  %v5283_v16 = vmul.u32 8, %v9167_v12 }
 0xc89   : > { %v4796_v56 = vpop.permute.xlu0 %4795 }
 0xc8a   : > { %5117 = vrot.lane.b32.xlu0 %v5113_v62, %s11439_s22  ;;  %4626 = vrot.lane.b32.xlu1 %v4535_v63, %s9040_s29  ;;  %s11441_s29 = smov 119   ;;  %v5288_v62 = vmul.u32 8, %v9174_v15  ;;  %v5289_v63 = vshra.s32 %v5287_v6, 4  ;;  %s11471_s22 = smov 112  }
 0xc8e   : > { %5278 = vperm.xlu0 %8722, %v5275_v39   ;;  %4711 = vrot.lane.b32.xlu1 %v4704_v51, %s9039_s30  ;;  %v5285_v39 = vshra.s32 %v5283_v16, 4  ;;  %v5290_v51 = vshra.s32 %v5288_v62, 4  ;;  %v11467_v16 = vld [vmem:[#allocation8_spill] sm:$0xff]  ;;  %s9054_s30 = smov 34  }
 0xc92   : > { %4797 = vrot.lane.b32.xlu1 %v4790_v10, %s9022_s14 }
 0xc96   : > { %5036 = vrot.lane.b32.xlu1 %v5032_v31, %s11440_s27  ;;  %v5291_v31 = vmul.u32 8, %v5285_v39  ;;  %s11454_s27 = smov 16  }
 0xc9a   : > { %5198 = vrot.lane.b32.xlu1 %v5194_v17, %s11441_s29  ;;  %s9051_s29 = smov 18  }
 0xcf8   : > { %v4546_v37 = vpop.permute.xlu1 %4545  ;;  %v4956_v2 = vpop.permute.xlu0 %4955 }
 0xcf9   : > { %v4547_v11 = vsel %vm11442_vm8, %v4544_v4, %v4546_v37  ;;  %vm11451_vm8 = vmmov %vm11432_vm1  ;;  %v5293_v4 = vadd.s32 %v5291_v31, %v5289_v63  ;;  %v5601_v37 = vadd.s32 2, %v9170_v13 }
 0xcfa   : > { %8396 = vmatpush3.msra.mxu1 %v4547_v11  ;;  %v6080_v11 = vadd.s32 2, %v9167_v12 }
 0xcfb   : > { %8398 = vmatmul.mubr.msk.f32.vlgmr.msra.gmra.mrb[38].mxu1 %vm11443_vm13, %v7927_v38  ;;  %8405 = vmatprep.subr.mxu1 %v10216_v46  ;;  %vm11452_vm13 = vmmov %vm11432_vm1  ;;  %v5602_v38 = vadd.s32 2, %v9174_v15 }
 0xcfc   : > { %v4627_v32 = vpop.permute.xlu1 %4626  ;;  %8407 = vmatprep.mubr.msk.f32.mxu1 %vm11408_vm3, %v10216_v46  ;;  %v5118_v48 = vpop.permute.xlu0 %5117 }
 0xcfd   : > { %v4628_v43 = vsel %vm11444_vm12, %v4625_v53, %v4627_v32  ;;  %vm11453_vm12 = vmmov %vm11432_vm1  ;;  %v8819_v53 = vpack.i.bf16 %v9330_v55, %v9325_v54 }
 0xcfe   : > { %8401 = vmatpush3.msra.mxu0 %v4628_v43 }
 0xcff   : > { %8403 = vmatmul.mubr.msk.f32.vlgmr.msra.gmra.mrb[26].mxu0 %vm11432_vm1, %v4536_v1  ;;  %8410 = vmatprep.subr.mxu0 %v10216_v46 }
 0xd00   : > { %v4712_v59 = vpop.permute.xlu1 %4711  ;;  %8412 = vmatprep.mubr.msk.f32.mxu0 %vm11408_vm3, %v10216_v46  ;;  %8820 = vrot.lane.b32.xlu0 %v8819_v53, %s11454_s27 }
 0xd01   : > { %v4713_v33 = vsel %vm11445_vm14, %v4710_v25, %v4712_v59  ;;  %v6081_v25 = vadd.s32 2, %v9172_v14 }
 0xd02   : > { %8406 = vmatpush3.msra.mxu1 %v4713_v33 }
 0xd03   : > { %8408 = vmatmul.mubr.msk.f32.vlgmr.msra.gmra.mrb[40].mxu1 %vm11446_vm9, %v7930_v30  ;;  %8415 = vmatprep.subr.mxu1 %v10216_v46  ;;  %vm5295_vm9 = vcmp.eq.s32.totalorder %v9183_v19, %v5293_v4 }
 0xd04   : > { %8416 = vmatpush3.msra.mxu1 %v4533_v23  ;;  %v4798_v27 = vpop.permute.xlu1 %4797  ;;  %8417 = vmatprep.mubr.msk.f32.mxu1 %vm11408_vm3, %v10216_v46  ;;  %v5284_v23 = vmul.u32 8, %v9172_v14 }
 0xd05   : > { %v4799_v35 = vsel %vm11447_vm0, %v4796_v56, %v4798_v27  ;;  %8425 = vmatprep.subr.mxu1 %v10216_v46  ;;  %vm5297_vm0 = vcmp.eq.s32.totalorder %v9723_v44, %v5293_v4  ;;  %v11460_v27 = vld [vmem:[#allocation21_spill] sm:$0xff] }
 0xd06   : > { %8411 = vmatpush3.msra.mxu0 %v4799_v35  ;;  %v5286_v60 = vshra.s32 %v5284_v23, 4  ;;  %v11462_v35 = vld [vmem:[#allocation4_spill] sm:$0xff] }
 0xd07   : > { %8413 = vmatmul.mubr.msk.f32.vlgmr.msra.gmra.mrb[28].mxu0 %vm11448_vm2, %v7932_v47  ;;  %8420 = vmatprep.subr.mxu0 %v10216_v46  ;;  %vm8516_vm2 = vmpackc.low %vm5297_vm0, %vm5295_vm9  ;;  %vm5303_vm0 = vcmp.eq.s32.totalorder %v9772_v8, %v5293_v4  ;;  %v11461_v47 = vld [vmem:[#allocation22_spill] sm:$0xff] }
 0xd08   : > { %8418 = vmatmul.mubr.msk.f32.vlgmr.msra.gmra.mrb[42].mxu1 %vm11449_vm15, %v7934_v36  ;;  %8421 = vmatpush3.msra.mxu0 %v4956_v2  ;;  %v5037_v9 = vpop.permute.xlu1 %5036  ;;  %v5292_v10 = vmul.u32 8, %v5286_v60  ;;  %v8824_v2 = vpack.i.bf16 %v11461_v47, %v11460_v27  ;;  %v11468_v60 = vld [vmem:[#allocation9_spill] sm:$0xff] }
 0xd09   : > { %8426 = vmatpush3.msra.mxu1 %v5037_v9  ;;  %8422 = vmatprep.mubr.msk.f32.mxu0 %vm11408_vm3, %v10216_v46  ;;  %v8844_v62 = vpack.i.bf16 %v11468_v60, %v11467_v16 }
 0xd0a   : > { %8430 = vmatprep.subr.mxu0 %v10216_v46  ;;  %8427 = vmatprep.mubr.msk.f32.mxu1 %vm11408_vm3, %v10216_v46  ;;  %v5294_v17 = vadd.s32 %v5292_v10, %v5290_v51 }
 0xd0b   : > { %8423 = vmatmul.mubr.msk.f32.vlgmr.msra.gmra.mrb[30].mxu0 %vm11450_vm7, %v7936_v7  ;;  %8435 = vmatprep.subr.mxu1 %v10216_v46  ;;  %v11464_v7 = vld [vmem:[#allocation5_spill] sm:$0xff] }
 0xd0c   : > { %8431 = vmatpush3.msra.mxu0 %v5118_v48  ;;  %8428 = vmatmul.mubr.msk.f32.vlgmr.msra.gmra.mrb[44].mxu1 %vm11451_vm8, %v7938_v41  ;;  %v5199_v40 = vpop.permute.xlu1 %5198  ;;  %vm5298_vm1 = vcmp.eq.s32.totalorder %v9723_v44, %v5294_v17  ;;  %vm5300_vm15 = vcmp.eq.s32.totalorder %v9739_v0, %v5294_v17  ;;  %vm5302_vm7 = vcmp.eq.s32.totalorder %v9742_v42, %v5294_v17 }
 0xd0d   : > { %8436 = vmatpush3.msra.mxu1 %v5199_v40  ;;  %8432 = vmatprep.mubr.msk.f32.mxu0 %vm11408_vm3, %v10216_v46  ;;  %vm8518_vm8 = vmpackc.low %vm5302_vm7, %vm5300_vm15  ;;  %vm5308_vm7 = vcmp.eq.s32.totalorder %v9788_v61, %v5294_v17 }
 0xd0e   : > { %8437 = vmatprep.mubr.msk.f32.mxu1 %vm11408_vm3, %v10216_v46  ;;  %vm5296_vm3 = vcmp.eq.s32.totalorder %v9183_v19, %v5294_v17 }
 0xd0f   : > { %8433 = vmatmul.mubr.msk.f32.vlgmr.msra.gmra.mrb[32].mxu0 %vm11452_vm13, %v7940_v49  ;;  %vm8514_vm14 = vmpackc.low %vm5298_vm1, %vm5296_vm3  ;;  %vm5299_vm13 = vcmp.eq.s32.totalorder %v9739_v0, %v5293_v4  ;;  %vm5304_vm1 = vcmp.eq.s32.totalorder %v9772_v8, %v5294_v17 }
 0xd10   : > { %8438 = vmatmul.mubr.msk.f32.vlgmr.msra.gmra.mrb[46].mxu1 %vm11453_vm12, %v7942_v57  ;;  %5394 = vmatprep.mubr.f32.mxu0 %v10216_v46  ;;  %vm5301_vm12 = vcmp.eq.s32.totalorder %v9742_v42, %v5293_v4 }
 0xd11   : > { %5588 = vmatprep.mubr.f32.mxu1 %v10216_v46  ;;  %8515 = vmatprep.subr.msk.bf16.mxu0 %vm8514_vm14, %v11406_v18  ;;  %vm8520_vm3 = vmpackc.low %vm5301_vm12, %vm5299_vm13  ;;  %vm5306_vm14 = vcmp.eq.s32.totalorder %v9775_v34, %v5294_v17  ;;  %vm5307_vm12 = vcmp.eq.s32.totalorder %v9788_v61, %v5293_v4 }
 0xd12   : > { %8517 = vmatpush1.bf16.msk.msra.mxu0 %vm8516_vm2, %v11406_v18  ;;  %vm8522_vm9 = vmpackc.low %vm5306_vm14, %vm5304_vm1  ;;  %vm5305_vm2 = vcmp.eq.s32.totalorder %v9775_v34, %v5293_v4  ;;  %vm5607_vm14 = vcmp.lt.s32.totalorder %v5601_v37, 16 }
 0xd13   : > { %8519 = vmatprep.subr.msk.bf16.mxu0 %vm8518_vm8, %v11406_v18  ;;  %vm8524_vm15 = vmpackc.low %vm5305_vm2, %vm5303_vm0  ;;  %vm5310_vm8 = vcmp.eq.s32.totalorder %v9797_v58, %v5294_v17 }
 0xd14   : > { %vm8526_vm13 = vmpackc.low %vm5310_vm8, %vm5308_vm7  ;;  %vm6084_vm7 = vcmp.lt.s32.totalorder %v6080_v11, 16 }
 0xd15   : > { %vm5609_vm0 = vmand %vm9195_vm5, %vm5607_vm14 }
 0xd16   : > { %8521 = vmatpush1.bf16.msk.msra.mxu0 %vm8520_vm3, %v11406_v18  ;;  %vm5309_vm3 = vcmp.eq.s32.totalorder %v9797_v58, %v5293_v4  ;;  %v5611_v54 = vsel %vm5609_vm0, 1.0, %v10216_v46  ;;  %vm5959_vm8 = vmand %vm9310_vm4, %vm5607_vm14 }
 0xd17   : > { %8523 = vmatprep.subr.msk.bf16.mxu0 %vm8522_vm9, %v11406_v18  ;;  %vm8528_vm1 = vmpackc.low %vm5309_vm3, %vm5307_vm12  ;;  %vm5608_vm9 = vcmp.lt.s32.totalorder %v5602_v38, 16  ;;  %vm6085_vm12 = vcmp.lt.s32.totalorder %v6081_v25, 16  ;;  %v5961_v59 = vsel %vm5959_vm8, 1.0, %v10216_v46  ;;  %vm11463_vm3 = vcmp.lt.s32.totalorder %v11462_v35, 16 }
 0xd18   : > { %vm5610_vm2 = vmand %vm9199_vm6, %vm5608_vm9 }
 0xd19   : > { %v5612_v55 = vsel %vm5610_vm2, 1.0, %v10216_v46  ;;  %vm5960_vm5 = vmand %vm9318_vm10, %vm5608_vm9 }
 0xd1a   : > { %8525 = vmatpush1.bf16.msk.msra.mxu0 %vm8524_vm15, %v11406_v18  ;;  %vm6082_vm15 = vcmp.ge.s32.totalorder %v6080_v11, 0  ;;  %v8814_v43 = vpack.i.bf16 %v5612_v55, %v5611_v54  ;;  %v5962_v30 = vsel %vm5960_vm5, 1.0, %v10216_v46  ;;  %vm6223_vm5 = vcmask 269312  }
 0xd1b   : > { %8527 = vmatprep.subr.msk.bf16.mxu0 %vm8526_vm13, %v11406_v18  ;;  %vm6083_vm13 = vcmp.ge.s32.totalorder %v6081_v25, 0  ;;  %vm10556_vm6 = vmand %vm6082_vm15, %vm6084_vm7  ;;  %v8829_v33 = vpack.i.bf16 %v5962_v30, %v5961_v59  ;;  %vm5969_vm7 = vcmask 146432  }
 0xd1c   : > { %8815 = vrot.lane.b32.xlu1 %v8814_v43, %s9050_s16  ;;  %vm6087_vm4 = vmand %vm6083_vm13, %vm6085_vm12  ;;  %v6092_v36 = vsel %vm10556_vm6, 1.0, %v10216_v46  ;;  %s11466_s16 = smov 17   ;;  %vm11475_vm13 = vcmask 138240   ;;  %vm6100_vm12 = vcmask 261120  }
 0xd1d   : > { %vm6213_vm10 = vmand %vm10556_vm6, %vm11463_vm3  ;;  %v6093_v9 = vsel %vm6087_vm4, 1.0, %v10216_v46  ;;  %8830 = vrot.lane.b32.xlu0 %v8829_v33, %s9051_s29  ;;  %s11474_s29 = smov 111   ;;  %vm11481_vm3 = vcmask 1031168  }
 0xd1e   : > { %8529 = vmatpush1.bf16.msk.msra.mxu0 %vm8528_vm1, %v11406_v18  ;;  %vm11465_vm1 = vcmp.lt.s32.totalorder %v11464_v7, 16  ;;  %v6215_v41 = vsel %vm6213_vm10, 1.0, %v10216_v46  ;;  %vm6336_vm2 = vmand %vm10556_vm6, %vm5607_vm14  ;;  %v8834_v49 = vpack.i.bf16 %v6093_v9, %v6092_v36  ;;  %v5279_v9 = vpop.permute.xlu0 %5278  ;;  %vm11469_vm14 = vcmask 523264  }
 0xd1f   : > { %vm6214_vm0 = vmand %vm6087_vm4, %vm11465_vm1  ;;  %v6338_v57 = vsel %vm6336_vm2, 1.0, %v10216_v46  ;;  %vm11479_vm6 = vcmask 7168  }
 0xd20   : > { %v6216_v48 = vsel %vm6214_vm0, 1.0, %v10216_v46  ;;  %8825 = vrot.lane.b32.xlu1 %v8824_v2, %s11466_s16  ;;  %vm6337_vm15 = vmand %vm6087_vm4, %vm5608_vm9  ;;  %vm11470_vm9 = vcmask 130048   ;;  %vm6346_vm4 = vcmask 277504   ;;  %vm11484_vm0 = vcmask 916480  }
 0xd21   : > { %v8839_v40 = vpack.i.bf16 %v6216_v48, %v6215_v41  ;;  %v6339_v6 = vsel %vm6337_vm15, 1.0, %v10216_v46  ;;  %vm11482_vm10 = vmmov %vm11481_vm3 }
 0xd22   : > { %v8849_v23 = vpack.i.bf16 %v6339_v6, %v6338_v57  ;;  %vm11485_vm2 = vmmov %vm11484_vm0 }
 0xd23   : > { %8840 = vrot.lane.b32.xlu0 %v8839_v40, %s9052_s23  ;;  %s11477_s23 = smov 96  }
 0xd24   : > { %8835 = vrot.lane.b32.xlu1 %v8834_v49, %s9053_s19  ;;  %s11478_s19 = smov 95  }
 0xd27   : > { %8850 = vrot.lane.b32.xlu0 %v8849_v23, %s9054_s30  ;;  %s11480_s30 = smov 94  }
 0xd28   : > { %8845 = vrot.lane.b32.xlu1 %v8844_v62, %s9022_s14 }
 0xd72   : > { %v8821_v6 = vpop.permute.xlu0 %8820 }
 0xd73   : > { %v8823_v23 = vunpack.i.h.bf16 %v8821_v6  ;;  %v10590_v16 = vunpack.i.l.bf16 %v8821_v6 }
 0xd75   : > { %v10594_v60 = vsel %vm11470_vm9, %v10590_v16, %v8823_v23 }
 0xd8e   : > { %v8816_v36 = vpop.permute.xlu1 %8815 }
 0xd8f   : > { %v8818_v7 = vunpack.i.h.bf16 %v8816_v36  ;;  %v8817_v41 = vunpack.i.l.bf16 %v8816_v36 }
 0xd91   : > { %v5625_v40 = vmul.f32 %v10216_v46, %v8818_v7  ;;  %v5619_v49 = vsel %vm3659_vm11, %v8817_v41, %v8818_v7  ;;  %vm11472_vm11 = vcmask 64512  }
 0xd92   : > { %vm11473_vm8 = vmmov %vm11472_vm11 }
 0xd93   : > { %5636 = vrot.lane.b32.xlu0 %v5625_v40, %s9032_s26  ;;  %vm11483_vm1 = vmmov %vm11473_vm8 }
 0xd94   : > { %vm11486_vm15 = vmmov %vm11483_vm1 }
 0xd95   : > { %vm11488_vm9 = vmmov %vm11483_vm1 }
 0xdce   : > { %v4618_v63 = vpop.f32.mrb[38].mxu1 }
 0xdcf   : > { %v8399_v39 = vpop.f32.mrb[39].mxu1 }
 0xdd2   : > { %v4699_v51 = vpop.f32.mrb[26].mxu0 }
 0xdd3   : > { %v4700_v10 = vadd.f32 %v4699_v51, %v4618_v63  ;;  %v8404_v31 = vpop.f32.mrb[27].mxu0 }
 0xdd4   : > { %v8826_v31 = vpop.permute.xlu1 %8825 }
 0xdd6   : > { %v4784_v17 = vpop.f32.mrb[40].mxu1 }
 0xdd7   : > { %v4788_v4 = vadd.f32 %v4784_v17, %v4700_v10  ;;  %v8409_v53 = vpop.f32.mrb[41].mxu1  ;;  %v8831_v17 = vpop.permute.xlu0 %8830 }
 0xdda   : > { %v4870_v37 = vpop.f32.mrb[28].mxu0 }
 0xddb   : > { %v4874_v38 = vadd.f32 %v4870_v37, %v4788_v4  ;;  %v8414_v11 = vpop.f32.mrb[29].mxu0  ;;  %v4946_v25 = vpop.f32.mrb[42].mxu1  ;;  %v8828_v4 = vunpack.i.h.bf16 %v8826_v31  ;;  %v10614_v37 = vld [vmem:[#allocation2] sm:$0xff] }
 0xddc   : > { %v8419_v32 = vpop.f32.mrb[43].mxu1  ;;  %v8833_v11 = vunpack.i.h.bf16 %v8831_v17  ;;  %v8841_v36 = vpop.permute.xlu0 %8840 }
 0xddd   : > { %v4950_v54 = vadd.f32 %v4946_v25, %v4874_v38  ;;  %v5406_v38 = vld [vmem:[%s11224_s11 + $0x8] sm:$0xff]  ;;  %v8832_v25 = vunpack.i.l.bf16 %v8831_v17  ;;  %v10620_v32 = vunpack.i.l.bf16 %v8826_v31  ;;  %v8843_v7 = vunpack.i.h.bf16 %v8841_v36 }
 0xdde   : > { %v5027_v55 = vpop.f32.mrb[30].mxu0 }
 0xddf   : > { %v5031_v1 = vadd.f32 %v5027_v55, %v4950_v54  ;;  %v8424_v43 = vpop.f32.mrb[31].mxu0  ;;  %v5108_v21 = vpop.f32.mrb[44].mxu1  ;;  %v10624_v54 = vmul.f32 %v10614_v37, %v8828_v4  ;;  %v10628_v55 = vmul.f32 %v10614_v37, %v8823_v23  ;;  %v6230_v31 = vmul.f32 %v10614_v37, %v8843_v7 }
 0xde0   : > { %v8429_v59 = vpop.f32.mrb[45].mxu1  ;;  %v10636_v43 = vsel %vm11475_vm13, %v10620_v32, %v8828_v4 }
 0xde1   : > { %v5112_v30 = vadd.f32 %v5108_v21, %v5031_v1  ;;  %v5970_v1 = vsel %vm5969_vm7, %v8832_v25, %v8833_v11  ;;  %vm11490_vm7 = vmmov %vm11483_vm1 }
 0xde2   : > { %v5189_v56 = vpop.f32.mrb[32].mxu0 }
 0xde3   : > { %v5193_v33 = vadd.f32 %v5189_v56, %v5112_v30  ;;  %v8434_v27 = vpop.f32.mrb[33].mxu0  ;;  %v5270_v47 = vpop.f32.mrb[46].mxu1 }
 0xde4   : > { %v8439_v2 = vpop.f32.mrb[47].mxu1  ;;  %v8836_v30 = vpop.permute.xlu1 %8835 }
 0xde5   : > { %v5274_v35 = vadd.f32 %v5270_v47, %v5193_v33  ;;  %v8838_v56 = vunpack.i.h.bf16 %v8836_v30  ;;  %v8837_v2 = vunpack.i.l.bf16 %v8836_v30 }
 0xde7   : > { %v5281_v48 = vadd.f32 %v5279_v9, %v5274_v35  ;;  %v6107_v47 = vmul.f32 %v10614_v37, %v8838_v56  ;;  %v5976_v35 = vmul.f32 %v10614_v37, %v8833_v11  ;;  %v8842_v9 = vunpack.i.l.bf16 %v8841_v36 }
 0xde9   : > { %v5282_v57 = vmax.f32 %v5281_v48, 0.0  ;;  %v6224_v40 = vsel %vm6223_vm5, %v8842_v9, %v8843_v7  ;;  %vm11494_vm5 = vcmask 785408  }
 0xdeb   : > { %7960 = vmatmul.mubr.msk.f32.vlgmr.msra.gmra.mrb[34].mxu0 %vm11469_vm14, %v5282_v57  ;;  %v8846_v57 = vpop.permute.xlu1 %8845  ;;  %vm11487_vm14 = vcmask 908288  }
 0xdec   : > { %5505 = vmatprep.mubr.f32.mxu0 %v10216_v46  ;;  %v5405_v46 = vld [vmem:[%s11224_s11] sm:$0xff]  ;;  %v8848_v23 = vunpack.i.h.bf16 %v8846_v57 }
 0xebe   : > { %v10596_v62 = vpop.f32.mrb[34].mxu0 }
 0xebf   : > { %v10598_v63 = vpop.f32.mrb[35].mxu0  ;;  %v5623_v10 = vmul.f32 %v8817_v41, %v10596_v62  ;;  %v5737_v53 = vmul.f32 %v10590_v16, %v10596_v62  ;;  %v5974_v33 = vmul.f32 %v8832_v25, %v10596_v62  ;;  %v5851_v27 = vmul.f32 %v10620_v32, %v10596_v62 }
 0xec0   : > { %5524 = vmatprep.subr.mxu1 %v10598_v63  ;;  %v5738_v39 = vmul.f32 %v10594_v60, %v10598_v63  ;;  %v5624_v51 = vmul.f32 %v5619_v49, %v10598_v63  ;;  %v5975_v21 = vmul.f32 %v5970_v1, %v10598_v63  ;;  %v5852_v59 = vmul.f32 %v10636_v43, %v10598_v63 }
 0xec1   : > { %5525 = vmatpush1.msra.mxu1 %v10596_v62  ;;  %v6101_v41 = vsel %vm6100_vm12, %v8837_v2, %v8838_v56  ;;  %v6228_v48 = vmul.f32 %v8842_v9, %v10596_v62  ;;  %v6229_v6 = vmul.f32 %v6224_v40, %v10598_v63  ;;  %v6457_v56 = vld [vmem:[%s11225_s12] sm:$0xff]  ;;  %vm11493_vm12 = vmmov %vm11483_vm1 }
 0xec2   : > { %5748 = vrot.lane.b32.xlu0 %v5738_v39, %s11471_s22  ;;  %5634 = vrot.lane.b32.xlu1 %v5624_v51, %s9032_s26  ;;  %v6106_v49 = vmul.f32 %v6101_v41, %v10598_v63  ;;  %v6105_v39 = vmul.f32 %v8837_v2, %v10596_v62  ;;  %v10660_v51 = vunpack.i.l.bf16 %v8846_v57  ;;  %v7968_v41 = vld [vmem:[%s11224_s11 + $0x28] sm:$0xff] }
 0xec3   : > { %7965 = vmatmul.mubr.msk.f32.vlgmr.msra.gmra.mrb[48].mxu1 %vm11472_vm11, %v5405_v46  ;;  %v8851_v46 = vpop.permute.xlu0 %8850  ;;  %vm11489_vm11 = vmmov %vm11487_vm14 }
 0xec4   : > { %5594 = vmatprep.mubr.f32.mxu1 %v10614_v37  ;;  %v8853_v17 = vunpack.i.h.bf16 %v8851_v46  ;;  %v5416_v30 = vmul.f32 %v10660_v51, %v10596_v62 }
 0xec6   : > { %5746 = vrot.lane.b32.xlu0 %v5737_v53, %s11471_s22  ;;  %5632 = vrot.lane.b32.xlu1 %v5623_v10, %s9032_s26  ;;  %s11476_s26 = smov 110   ;;  %v10664_v10 = vmul.f32 %v10614_v37, %v8848_v23  ;;  %v6353_v4 = vmul.f32 %v10614_v37, %v8853_v17  ;;  %v8852_v53 = vunpack.i.l.bf16 %v8851_v46 }
 0xec7   : > { %7966 = vmatmul.mubr.msk.f32.gmra.mrb[50].mxu1 %vm11473_vm8, %v5406_v38  ;;  %v10673_v38 = vsel %vm11479_vm6, %v10660_v51, %v8848_v23  ;;  %vm11491_vm8 = vcmask 900096   ;;  %vm11495_vm6 = vmmov %vm11483_vm1 }
 0xec8   : > { %5712 = vmatprep.mubr.f32.mxu1 %v10614_v37  ;;  %v5417_v11 = vmul.f32 %v10673_v38, %v10598_v63  ;;  %v6347_v25 = vsel %vm6346_vm4, %v8852_v53, %v8853_v17  ;;  %v6351_v1 = vmul.f32 %v8852_v53, %v10596_v62  ;;  %v7967_v62 = vld [vmem:[%s11224_s11 + $0x20] sm:$0xff]  ;;  %vm11492_vm13 = vmmov %vm11491_vm8 }
 0xec9   : > { %vm11496_vm4 = vmmov %vm11494_vm5 }
 0xeca   : > { %5864 = vrot.lane.b32.xlu0 %v10624_v54, %s11474_s29  ;;  %5750 = vrot.lane.b32.xlu1 %v10628_v55, %s11471_s22 }
 0xece   : > { %5985 = vrot.lane.b32.xlu0 %v5975_v21, %s11476_s26  ;;  %5862 = vrot.lane.b32.xlu1 %v5852_v59, %s11474_s29  ;;  %v6352_v21 = vmul.f32 %v6347_v25, %v10598_v63  ;;  %v6458_v59 = vld [vmem:[%s11225_s12 + $0x8] sm:$0xff]  ;;  %v5637_v63 = vpop.permute.xlu0 %5636 }
 0xed2   : > { %5983 = vrot.lane.b32.xlu0 %v5974_v33, %s11476_s26  ;;  %5860 = vrot.lane.b32.xlu1 %v5851_v27, %s11474_s29 }
 0xed6   : > { %6118 = vrot.lane.b32.xlu0 %v6107_v47, %s11477_s23  ;;  %5987 = vrot.lane.b32.xlu1 %v5976_v35, %s11476_s26  ;;  %s11532_s26 = smov 113  }
 0xeda   : > { %6237 = vrot.lane.b32.xlu0 %v6228_v48, %s11478_s19  ;;  %6116 = vrot.lane.b32.xlu1 %v6106_v49, %s11477_s23 }
 0xede   : > { %6239 = vrot.lane.b32.xlu0 %v6229_v6, %s11478_s19  ;;  %6114 = vrot.lane.b32.xlu1 %v6105_v39, %s11477_s23  ;;  %v7971_v6 = vld [vmem:[%s11224_s11 + $0x30] sm:$0xff]  ;;  %s11535_s23 = smov 15  }
 0xee2   : > { %5429 = vrot.lane.b32.xlu0 %v10664_v10, %s9025_s28  ;;  %6241 = vrot.lane.b32.xlu1 %v6230_v31, %s11478_s19  ;;  %v7972_v31 = vld [vmem:[%s11224_s11 + $0x38] sm:$0xff] }
 0xee6   : > { %6364 = vrot.lane.b32.xlu0 %v6353_v4, %s11480_s30  ;;  %5427 = vrot.lane.b32.xlu1 %v5417_v11, %s9025_s28  ;;  %v7975_v11 = vld [vmem:[%s11224_s11 + $0x40] sm:$0xff] }
 0xeea   : > { %6360 = vrot.lane.b32.xlu0 %v6351_v1, %s11480_s30  ;;  %6362 = vrot.lane.b32.xlu1 %v6352_v21, %s11480_s30 }
 0xeee   : > { %6466 = vperm.xlu0 %8722, %v6458_v59   ;;  %5425 = vrot.lane.b32.xlu1 %v5416_v30, %s9025_s28  ;;  %v7976_v30 = vld [vmem:[%s11224_s11 + $0x48] sm:$0xff] }
 0xef2   : > { %6461 = vperm.xlu1 %8723, %v6457_v56  }
 0xf34   : > { %v5749_v33 = vpop.permute.xlu0 %5748  ;;  %v5635_v27 = vpop.permute.xlu1 %5634 }
 0xf35   : > { %v5639_v47 = vsel %vm11481_vm3, %v5635_v27, %v5637_v63  ;;  %v6478_v63 = vmul.u32 14, %v9172_v14  ;;  %vm11497_vm3 = vmmov %vm11483_vm1 }
 0xf36   : > { %5648 = vmatprep.subr.mxu1 %v5639_v47 }
 0xf38   : > { %v5747_v2 = vpop.permute.xlu0 %5746  ;;  %v5633_v35 = vpop.permute.xlu1 %5632 }
 0xf39   : > { %v5638_v36 = vsel %vm11482_vm10, %v5633_v35, %v5635_v27  ;;  %v5752_v40 = vsel %vm11485_vm2, %v5747_v2, %v5749_v33  ;;  %v6477_v27 = vmul.u32 14, %v9167_v12  ;;  %v7979_v2 = vld [vmem:[%s11224_s11 + $0x50] sm:$0xff]  ;;  %vm11498_vm10 = vcmask 777216  }
 0xf3a   : > { %5649 = vmatpush1.msra.mxu1 %v5638_v36  ;;  %v6482_v36 = vmul.u32 14, %v9174_v15  ;;  %vm11500_vm2 = vmmov %vm11498_vm10 }
 0xf3b   : > { %7969 = vmatmul.mubr.msk.f32.vlgmr.msra.gmra.mrb[48].mxu1 %vm11483_vm1, %v7967_v62  ;;  %v6480_v62 = vshra.s32 %v6478_v63, 4  ;;  %v6479_v14 = vshra.s32 %v6477_v27, 4  ;;  %v11527_v27 = vld [vmem:[#allocation24_spill] sm:$0xff] }
 0xf3c   : > { %v5865_v9 = vpop.permute.xlu0 %5864  ;;  %v5751_v7 = vpop.permute.xlu1 %5750  ;;  %5718 = vmatprep.mubr.f32.mxu1 %v10614_v37 }
 0xf3d   : > { %v5753_v48 = vsel %vm11484_vm0, %v5749_v33, %v5751_v7  ;;  %vm11499_vm0 = vcmask 1039360  }
 0xf3e   : > { %5762 = vmatprep.subr.mxu1 %v5753_v48 }
 0xf3f   : > { %7970 = vmatmul.mubr.msk.f32.gmra.mrb[50].mxu1 %vm11486_vm15, %v7968_v41  ;;  %v7980_v41 = vld [vmem:[%s11224_s11 + $0x58] sm:$0xff]  ;;  %vm11501_vm15 = vmmov %vm11483_vm1 }
 0xf40   : > { %v5986_v49 = vpop.permute.xlu0 %5985  ;;  %5763 = vmatpush1.msra.mxu1 %v5752_v40  ;;  %v5863_v57 = vpop.permute.xlu1 %5862  ;;  %5826 = vmatprep.mubr.f32.mxu1 %v10614_v37  ;;  %v6484_v40 = vshra.s32 %v6482_v36, 4  ;;  %v11530_v36 = vld [vmem:[#allocation15_spill] sm:$0xff] }
 0xf41   : > { %v5867_v23 = vsel %vm11487_vm14, %v5863_v57, %v5865_v9  ;;  %v6481_v9 = vmul.u32 14, %v9170_v13  ;;  %v7983_v13 = vld [vmem:[%s11224_s11 + $0x60] sm:$0xff]  ;;  %vm11502_vm14 = vcmask 769024  }
 0xf42   : > { %5876 = vmatprep.subr.mxu1 %v5867_v23 }
 0xf43   : > { %7973 = vmatmul.mubr.msk.f32.vlgmr.msra.gmra.mrb[48].mxu1 %vm11488_vm9, %v7971_v6  ;;  %v6483_v15 = vshra.s32 %v6481_v9, 4  ;;  %vm11503_vm9 = vmmov %vm11483_vm1 }
 0xf44   : > { %v5984_v39 = vpop.permute.xlu0 %5983  ;;  %v5861_v46 = vpop.permute.xlu1 %5860  ;;  %5832 = vmatprep.mubr.f32.mxu1 %v10614_v37 }
 0xf45   : > { %v5866_v17 = vsel %vm11489_vm11, %v5861_v46, %v5863_v57  ;;  %v5989_v1 = vsel %vm11492_vm13, %v5984_v39, %v5986_v49  ;;  %v6485_v57 = vmul.u32 16, %v6479_v14  ;;  %v11531_v14 = vld [vmem:[#allocation16_spill] sm:$0xff] }
 0xf46   : > { %5877 = vmatpush1.msra.mxu1 %v5866_v17  ;;  %v8869_v9 = vpack.i.bf16 %v11531_v14, %v11530_v36 }
 0xf47   : > { %7974 = vmatmul.mubr.msk.f32.gmra.mrb[50].mxu1 %vm11490_vm7, %v7972_v31  ;;  %v10756_v17 = vadd.s32 %v6485_v57, %v6483_v15 }
 0xf48   : > { %v6119_v4 = vpop.permute.xlu0 %6118  ;;  %v5988_v53 = vpop.permute.xlu1 %5987  ;;  %5940 = vmatprep.mubr.f32.mxu1 %v10614_v37 }
 0xf49   : > { %v5990_v25 = vsel %vm11491_vm8, %v5986_v49, %v5988_v53  ;;  %v6486_v49 = vmul.u32 16, %v6480_v62  ;;  %v7984_v53 = vld [vmem:[%s11224_s11 + $0x68] sm:$0xff]  ;;  %vm6489_vm8 = vcmp.eq.s32.totalorder %v9183_v19, %v10756_v17  ;;  %vm6491_vm13 = vcmp.eq.s32.totalorder %v9723_v44, %v10756_v17 }
 0xf4a   : > { %5999 = vmatprep.subr.mxu1 %v5990_v25 }
 0xf4b   : > { %7977 = vmatmul.mubr.msk.f32.vlgmr.msra.gmra.mrb[48].mxu1 %vm11493_vm12, %v7975_v11  ;;  %v10752_v46 = vadd.s32 %v6486_v49, %v6484_v40  ;;  %vm11504_vm12 = vmmov %vm11499_vm0 }
 0xf4c   : > { %v6238_v21 = vpop.permute.xlu0 %6237  ;;  %6000 = vmatpush1.msra.mxu1 %v5989_v1  ;;  %v6117_v59 = vpop.permute.xlu1 %6116  ;;  %5946 = vmatprep.mubr.f32.mxu1 %v10614_v37 }
 0xf4d   : > { %v6121_v56 = vsel %vm11494_vm5, %v6117_v59, %v6119_v4  ;;  %vm6490_vm11 = vcmp.eq.s32.totalorder %v9183_v19, %v10752_v46  ;;  %vm6492_vm7 = vcmp.eq.s32.totalorder %v9723_v44, %v10752_v46  ;;  %v7988_v19 = vld [vmem:[%s11224_s11 + $0x78] sm:$0xff] }
 0xf4e   : > { %6130 = vmatprep.subr.mxu1 %v6121_v56  ;;  %vm8530_vm5 = vmpackc.low %vm6492_vm7, %vm6490_vm11  ;;  %v7962_v44 = vld [vmem:[%s11224_s11 + $0x18] sm:$0xff]  ;;  %vm6500_vm11 = vcmp.eq.s32.totalorder %v9775_v34, %v10752_v46 }
 0xf4f   : > { %7978 = vmatmul.mubr.msk.f32.gmra.mrb[50].mxu1 %vm11495_vm6, %v7976_v30  ;;  %vm6494_vm6 = vcmp.eq.s32.totalorder %v9739_v0, %v10752_v46  ;;  %vm11507_vm7 = vmmov %vm11483_vm1 }
 0xf50   : > { %v6240_v33 = vpop.permute.xlu0 %6239  ;;  %v6115_v47 = vpop.permute.xlu1 %6114  ;;  %6063 = vmatprep.mubr.f32.mxu1 %v10614_v37 }
 0xf51   : > { %v6120_v35 = vsel %vm11496_vm4, %v6115_v47, %v6117_v59  ;;  %v6243_v31 = vsel %vm11500_vm2, %v6238_v21, %v6240_v33  ;;  %v7987_v21 = vld [vmem:[%s11224_s11 + $0x70] sm:$0xff]  ;;  %vm6496_vm4 = vcmp.eq.s32.totalorder %v9742_v42, %v10752_v46  ;;  %vm6493_vm2 = vcmp.eq.s32.totalorder %v9739_v0, %v10756_v17  ;;  %v7991_v0 = vld [vmem:[%s11224_s11 + $0x80] sm:$0xff] }
 0xf52   : > { %v7961_v59 = vld [vmem:[%s11224_s11 + $0x10] sm:$0xff] }
 0xf53   : > { %7981 = vmatmul.mubr.msk.f32.vlgmr.msra.gmra.mrb[48].mxu1 %vm11497_vm3, %v7979_v2  ;;  %vm11505_vm3 = vmmov %vm11502_vm14  ;;  %v11528_v2 = vld [vmem:[#allocation12_spill] sm:$0xff] }
 0xf54   : > { %6131 = vmatpush1.msra.mxu1 %v6120_v35  ;;  %v5430_v7 = vpop.permute.xlu0 %5429  ;;  %v6242_v12 = vpop.permute.xlu1 %6241  ;;  %6069 = vmatprep.mubr.f32.mxu1 %v10614_v37  ;;  %v11529_v35 = vld [vmem:[#allocation13_spill] sm:$0xff] }
 0xf55   : > { %v6244_v48 = vsel %vm11498_vm10, %v6240_v33, %v6242_v12  ;;  %vm11506_vm10 = vmmov %vm11483_vm1  ;;  %v11526_v33 = vld [vmem:[#allocation23_spill] sm:$0xff]  ;;  %v8864_v62 = vpack.i.bf16 %v11529_v35, %v11528_v2 }
 0xf56   : > { %6253 = vmatprep.subr.mxu1 %v6244_v48  ;;  %v8859_v47 = vpack.i.bf16 %v11527_v27, %v11526_v33 }
 0xf57   : > { %7982 = vmatmul.mubr.msk.f32.gmra.mrb[50].mxu1 %vm11483_vm1, %v7980_v41 }
 0xf58   : > { %v5428_v6 = vpop.permute.xlu1 %5427  ;;  %6194 = vmatprep.mubr.f32.mxu1 %v10614_v37  ;;  %v6365_v39 = vpop.permute.xlu0 %6364  ;;  %8860 = vrot.lane.b32.xlu0 %v8859_v47, %s11474_s29 }
 0xf59   : > { %v5432_v23 = vsel %vm11499_vm0, %v5428_v6, %v5430_v7  ;;  %vm8532_vm0 = vmpackc.low %vm6491_vm13, %vm6489_vm8  ;;  %v11534_v7 = vld [vmem:[#allocation20_spill] sm:$0xff] }
 0xf5a   : > { %5441 = vmatprep.subr.mxu0 %v5432_v23  ;;  %vm11508_vm8 = vmmov %vm11483_vm1 }
 0xf5b   : > { %7985 = vmatmul.mubr.msk.f32.vlgmr.msra.gmra.mrb[48].mxu1 %vm11501_vm15, %v7983_v13  ;;  %vm6495_vm15 = vcmp.eq.s32.totalorder %v9742_v42, %v10756_v17  ;;  %v7992_v42 = vld [vmem:[%s11224_s11 + $0x88] sm:$0xff] }
 0xf5c   : > { %6254 = vmatpush1.msra.mxu1 %v6243_v31  ;;  %v6363_v4 = vpop.permute.xlu1 %6362  ;;  %6200 = vmatprep.mubr.f32.mxu1 %v10614_v37  ;;  %v6361_v25 = vpop.permute.xlu0 %6360  ;;  %vm8536_vm13 = vmpackc.low %vm6495_vm15, %vm6493_vm2  ;;  %vm6501_vm2 = vcmp.eq.s32.totalorder %v9788_v61, %v10756_v17  ;;  %vm6503_vm15 = vcmp.eq.s32.totalorder %v9797_v58, %v10756_v17 }
 0xf5d   : > { %v6367_v11 = vsel %vm11502_vm14, %v6363_v4, %v6365_v39  ;;  %v6366_v56 = vsel %vm11505_vm3, %v6361_v25, %v6363_v4  ;;  %vm8534_vm14 = vmpackc.low %vm6496_vm4, %vm6494_vm6  ;;  %vm6499_vm6 = vcmp.eq.s32.totalorder %v9775_v34, %v10756_v17  ;;  %vm6502_vm4 = vcmp.eq.s32.totalorder %v9788_v61, %v10752_v46  ;;  %v11515_v34 = vld [vmem:[#allocation30_spill] sm:$0xff]  ;;  %v11516_v61 = vld [vmem:[#allocation31_spill] sm:$0xff]  ;;  %8870 = vrot.lane.b32.xlu0 %v8869_v9, %s9025_s28 }
 0xf5e   : > { %6376 = vmatprep.subr.mxu1 %v6367_v11  ;;  %vm6504_vm3 = vcmp.eq.s32.totalorder %v9797_v58, %v10752_v46  ;;  %v11517_v58 = vld [vmem:[#allocation32_spill] sm:$0xff] }
 0xf5f   : > { %7986 = vmatmul.mubr.msk.f32.gmra.mrb[50].mxu1 %vm11503_vm9, %v7984_v53  ;;  %vm6498_vm9 = vcmp.eq.s32.totalorder %v9772_v8, %v10752_v46 }
 0xf60   : > { %v5426_v1 = vpop.permute.xlu1 %5425  ;;  %6317 = vmatprep.mubr.f32.mxu1 %v10614_v37 }
 0xf61   : > { %v5431_v30 = vsel %vm11504_vm12, %v5426_v1, %v5428_v6  ;;  %vm8538_vm12 = vmpackc.low %vm6500_vm11, %vm6498_vm9  ;;  %vm6508_vm9 = vcmp.eq.s32.totalorder %v9819_v24, %v10752_v46 }
 0xf62   : > { %5442 = vmatpush1.msra.mxu0 %v5431_v30  ;;  %vm11510_vm11 = vmmov %vm11507_vm7 }
 0xf63   : > { %7989 = vmatmul.mubr.msk.f32.vlgmr.msra.gmra.mrb[48].mxu1 %vm11506_vm10, %v7987_v21  ;;  %7963 = vmatmul.mubr.msk.f32.vlgmr.msra.gmra.mrb[36].mxu0 %vm11483_vm1, %v7961_v59  ;;  %vm11509_vm10 = vmmov %vm11483_vm1 }
 0xf64   : > { %6377 = vmatpush1.msra.mxu1 %v6366_v56  ;;  %6323 = vmatprep.mubr.f32.mxu1 %v10614_v37 }
 0xf65   : > { %5511 = vmatprep.mubr.f32.mxu0 %v10614_v37  ;;  %8531 = vmatprep.subr.msk.bf16.mxu0 %vm8530_vm5, %v11406_v18  ;;  %vm6497_vm5 = vcmp.eq.s32.totalorder %v9772_v8, %v10756_v17  ;;  %v11511_v8 = vld [vmem:[#allocation26_spill] sm:$0xff] }
 0xf66   : > { %8533 = vmatpush1.bf16.msk.msra.mxu0 %vm8532_vm0, %v11406_v18  ;;  %vm8540_vm1 = vmpackc.low %vm6499_vm6, %vm6497_vm5  ;;  %vm6510_vm5 = vcmp.eq.s32.totalorder %v9841_v52, %v10752_v46  ;;  %vm6512_vm6 = vcmp.eq.s32.totalorder %v9844_v50, %v10752_v46 }
 0xf67   : > { %7990 = vmatmul.mubr.msk.f32.gmra.mrb[50].mxu1 %vm11507_vm7, %v7988_v19  ;;  %7964 = vmatmul.mubr.msk.f32.gmra.mrb[38].mxu0 %vm11508_vm8, %v7962_v44  ;;  %vm8542_vm0 = vmpackc.low %vm6504_vm3, %vm6502_vm4 }
 0xf68   : > { %6440 = vmatprep.mubr.f32.mxu1 %v10614_v37  ;;  %8535 = vmatprep.subr.msk.bf16.mxu0 %vm8534_vm14, %v11406_v18  ;;  %vm6506_vm14 = vcmp.eq.s32.totalorder %v9816_v20, %v10752_v46  ;;  %vm8544_vm7 = vmpackc.low %vm6503_vm15, %vm6501_vm2  ;;  %vm6516_vm2 = vcmp.eq.s32.totalorder %v9870_v29, %v10752_v46 }
 0xf69   : > { %vm8546_vm8 = vmpackc.low %vm6508_vm9, %vm6506_vm14  ;;  %vm6513_vm9 = vcmp.eq.s32.totalorder %v9867_v26, %v10756_v17 }
 0xf6a   : > { %8537 = vmatpush1.bf16.msk.msra.mxu0 %vm8536_vm13, %v11406_v18  ;;  %vm6505_vm13 = vcmp.eq.s32.totalorder %v9816_v20, %v10756_v17  ;;  %vm8550_vm3 = vmpackc.low %vm6512_vm6, %vm6510_vm5  ;;  %vm6517_vm5 = vcmp.eq.s32.totalorder %v9890_v22, %v10756_v17  ;;  %vm6519_vm6 = vcmp.eq.s32.totalorder %v9893_v28, %v10756_v17  ;;  %v11518_v20 = vld [vmem:[#allocation33_spill] sm:$0xff] }
 0xf6b   : > { %7993 = vmatmul.mubr.msk.f32.vlgmr.msra.gmra.mrb[48].mxu1 %vm11509_vm10, %v7991_v0  ;;  %8539 = vmatprep.subr.msk.bf16.mxu0 %vm8538_vm12, %v11406_v18  ;;  %vm6507_vm12 = vcmp.eq.s32.totalorder %v9819_v24, %v10756_v17  ;;  %vm6509_vm10 = vcmp.eq.s32.totalorder %v9841_v52, %v10756_v17  ;;  %v11519_v24 = vld [vmem:[#allocation34_spill] sm:$0xff]  ;;  %v11520_v52 = vld [vmem:[#allocation35_spill] sm:$0xff] }
 0xf6c   : > { %6446 = vmatprep.mubr.f32.mxu1 %v10614_v37  ;;  %vm8548_vm4 = vmpackc.low %vm6507_vm12, %vm6505_vm13 }
 0xf6d   : > { %v6467_v53 = vpop.permute.xlu0 %6466 }
 0xf6e   : > { %8541 = vmatpush1.bf16.msk.msra.mxu0 %vm8540_vm1, %v11406_v18  ;;  %vm6511_vm1 = vcmp.eq.s32.totalorder %v9844_v50, %v10756_v17  ;;  %v11521_v50 = vld [vmem:[#allocation36_spill] sm:$0xff] }
 0xf6f   : > { %7994 = vmatmul.mubr.msk.f32.gmra.mrb[50].mxu1 %vm11510_vm11, %v7992_v42  ;;  %8543 = vmatprep.subr.msk.bf16.mxu0 %vm8542_vm0, %v11406_v18  ;;  %vm6514_vm0 = vcmp.eq.s32.totalorder %v9867_v26, %v10752_v46  ;;  %vm8552_vm15 = vmpackc.low %vm6511_vm1, %vm6509_vm10  ;;  %vm6515_vm11 = vcmp.eq.s32.totalorder %v9870_v29, %v10756_v17  ;;  %v11522_v26 = vld [vmem:[#allocation37_spill] sm:$0xff]  ;;  %v11523_v29 = vld [vmem:[#allocation38_spill] sm:$0xff] }
 0xf70   : > { %6828 = vmatprep.mubr.f32.mxu1 %v10614_v37  ;;  %vm8554_vm14 = vmpackc.low %vm6516_vm2, %vm6514_vm0  ;;  %vm6521_vm0 = vcmp.eq.s32.totalorder %v9717_v45, %v10756_v17  ;;  %vm6523_vm2 = vcmp.eq.s32.totalorder %v9720_v3, %v10756_v17 }
 0xf71   : > { %vm8556_vm13 = vmpackc.low %vm6515_vm11, %vm6513_vm9  ;;  %v6462_v13 = vpop.permute.xlu1 %6461 }
 0xf72   : > { %8545 = vmatpush1.bf16.msk.msra.mxu0 %vm8544_vm7, %v11406_v18  ;;  %vm6518_vm7 = vcmp.eq.s32.totalorder %v9890_v22, %v10752_v46  ;;  %vm8560_vm10 = vmpackc.low %vm6519_vm6, %vm6517_vm5  ;;  %v11524_v22 = vld [vmem:[#allocation10_spill] sm:$0xff] }
 0xf73   : > { %8547 = vmatprep.subr.msk.bf16.mxu0 %vm8546_vm8, %v11406_v18  ;;  %vm6520_vm8 = vcmp.eq.s32.totalorder %v9893_v28, %v10752_v46  ;;  %vm8564_vm9 = vmpackc.low %vm6523_vm2, %vm6521_vm0  ;;  %v11525_v28 = vld [vmem:[#allocation11_spill] sm:$0xff] }
 0xf74   : > { %vm8558_vm12 = vmpackc.low %vm6520_vm8, %vm6518_vm7  ;;  %vm6525_vm7 = vcmp.eq.s32.totalorder %v9728_v5, %v10756_v17  ;;  %vm6527_vm8 = vcmp.eq.s32.totalorder %v11511_v8, %v10756_v17  ;;  %v8854_v63 = vpack.i.bf16 %v11525_v28, %v11524_v22 }
 0xf75   : > { %vm8568_vm5 = vmpackc.low %vm6527_vm8, %vm6525_vm7 }
 0xf76   : > { %8549 = vmatpush1.bf16.msk.msra.mxu0 %vm8548_vm4, %v11406_v18  ;;  %vm6522_vm4 = vcmp.eq.s32.totalorder %v9717_v45, %v10752_v46  ;;  %v11512_v45 = vld [vmem:[#allocation27_spill] sm:$0xff]  ;;  %8855 = vrot.lane.b32.xlu1 %v8854_v63, %s11471_s22 }
 0xf77   : > { %8551 = vmatprep.subr.msk.bf16.mxu0 %vm8550_vm3, %v11406_v18  ;;  %vm6524_vm3 = vcmp.eq.s32.totalorder %v9720_v3, %v10752_v46  ;;  %v11513_v3 = vld [vmem:[#allocation28_spill] sm:$0xff] }
 0xf78   : > { %vm8562_vm1 = vmpackc.low %vm6524_vm3, %vm6522_vm4  ;;  %vm6529_vm4 = vcmp.eq.s32.totalorder %v11512_v45, %v10756_v17  ;;  %vm6531_vm3 = vcmp.eq.s32.totalorder %v11513_v3, %v10756_v17 }
 0xf79   : > { %vm8572_vm0 = vmpackc.low %vm6531_vm3, %vm6529_vm4 }
 0xf7a   : > { %8553 = vmatpush1.bf16.msk.msra.mxu0 %vm8552_vm15, %v11406_v18  ;;  %vm6526_vm15 = vcmp.eq.s32.totalorder %v9728_v5, %v10752_v46  ;;  %v11514_v5 = vld [vmem:[#allocation29_spill] sm:$0xff]  ;;  %8865 = vrot.lane.b32.xlu1 %v8864_v62, %s11532_s26 }
 0xf7b   : > { %8555 = vmatprep.subr.msk.bf16.mxu0 %vm8554_vm14, %v11406_v18  ;;  %vm6528_vm14 = vcmp.eq.s32.totalorder %v11511_v8, %v10752_v46 }
 0xf7c   : > { %vm8566_vm11 = vmpackc.low %vm6528_vm14, %vm6526_vm15  ;;  %vm6533_vm15 = vcmp.eq.s32.totalorder %v11514_v5, %v10756_v17  ;;  %vm6535_vm14 = vcmp.eq.s32.totalorder %v11515_v34, %v10756_v17 }
 0xf7d   : > { %vm8576_vm7 = vmpackc.low %vm6535_vm14, %vm6533_vm15  ;;  %vm6548_vm15 = vcmp.eq.s32.totalorder %v11521_v50, %v10752_v46 }
 0xf7e   : > { %8557 = vmatpush1.bf16.msk.msra.mxu0 %vm8556_vm13, %v11406_v18  ;;  %vm6530_vm13 = vcmp.eq.s32.totalorder %v11512_v45, %v10752_v46 }
 0xf7f   : > { %8559 = vmatprep.subr.msk.bf16.mxu0 %vm8558_vm12, %v11406_v18  ;;  %vm6532_vm12 = vcmp.eq.s32.totalorder %v11513_v3, %v10752_v46 }
 0xf80   : > { %vm8570_vm6 = vmpackc.low %vm6532_vm12, %vm6530_vm13  ;;  %vm6537_vm13 = vcmp.eq.s32.totalorder %v11516_v61, %v10756_v17  ;;  %vm6539_vm12 = vcmp.eq.s32.totalorder %v11517_v58, %v10756_v17 }
 0xf81   : > { %vm8580_vm4 = vmpackc.low %vm6539_vm12, %vm6537_vm13  ;;  %vm6552_vm13 = vcmp.eq.s32.totalorder %v11523_v29, %v10752_v46 }
 0xf82   : > { %8561 = vmatpush1.bf16.msk.msra.mxu0 %vm8560_vm10, %v11406_v18  ;;  %vm6534_vm10 = vcmp.eq.s32.totalorder %v11514_v5, %v10752_v46 }
 0xf83   : > { %8563 = vmatprep.subr.msk.bf16.mxu0 %vm8562_vm1, %v11406_v18  ;;  %vm6536_vm1 = vcmp.eq.s32.totalorder %v11515_v34, %v10752_v46 }
 0xf84   : > { %vm8574_vm2 = vmpackc.low %vm6536_vm1, %vm6534_vm10  ;;  %vm6541_vm10 = vcmp.eq.s32.totalorder %v11518_v20, %v10756_v17  ;;  %vm6543_vm1 = vcmp.eq.s32.totalorder %v11519_v24, %v10756_v17 }
 0xf86   : > { %8565 = vmatpush1.bf16.msk.msra.mxu0 %vm8564_vm9, %v11406_v18  ;;  %vm6538_vm9 = vcmp.eq.s32.totalorder %v11516_v61, %v10752_v46 }
 0xf87   : > { %8567 = vmatprep.subr.msk.bf16.mxu0 %vm8566_vm11, %v11406_v18  ;;  %vm6540_vm11 = vcmp.eq.s32.totalorder %v11517_v58, %v10752_v46 }
 0xf88   : > { %vm8578_vm8 = vmpackc.low %vm6540_vm11, %vm6538_vm9  ;;  %vm6545_vm9 = vcmp.eq.s32.totalorder %v11520_v52, %v10756_v17  ;;  %vm6547_vm11 = vcmp.eq.s32.totalorder %v11521_v50, %v10756_v17 }
 0xf8a   : > { %8569 = vmatpush1.bf16.msk.msra.mxu0 %vm8568_vm5, %v11406_v18  ;;  %vm6542_vm5 = vcmp.eq.s32.totalorder %v11518_v20, %v10752_v46 }
 0xf8b   : > { %8571 = vmatprep.subr.msk.bf16.mxu0 %vm8570_vm6, %v11406_v18  ;;  %vm6544_vm6 = vcmp.eq.s32.totalorder %v11519_v24, %v10752_v46 }
 0xf8c   : > { %vm8582_vm3 = vmpackc.low %vm6544_vm6, %vm6542_vm5  ;;  %vm6549_vm5 = vcmp.eq.s32.totalorder %v11522_v26, %v10756_v17  ;;  %vm6551_vm6 = vcmp.eq.s32.totalorder %v11523_v29, %v10756_v17 }
 0xf8e   : > { %8573 = vmatpush1.bf16.msk.msra.mxu0 %vm8572_vm0, %v11406_v18  ;;  %vm8584_vm0 = vmpackc.low %vm6543_vm1, %vm6541_vm10  ;;  %vm11537_vm10 = vcmask 1039360   ;;  %vm11538_vm1 = vcmask 916480  }
 0xf8f   : > { %8575 = vmatprep.subr.msk.bf16.mxu0 %vm8574_vm2, %v11406_v18  ;;  %vm6546_vm2 = vcmp.eq.s32.totalorder %v11520_v52, %v10752_v46 }
 0xf90   : > { %vm8586_vm14 = vmpackc.low %vm6548_vm15, %vm6546_vm2  ;;  %vm11540_vm2 = vcmask 121856   ;;  %vm11541_vm15 = vcmask 130048  }
 0xf92   : > { %8577 = vmatpush1.bf16.msk.msra.mxu0 %vm8576_vm7, %v11406_v18  ;;  %vm8588_vm7 = vmpackc.low %vm6547_vm11, %vm6545_vm9 }
 0xf93   : > { %8579 = vmatprep.subr.msk.bf16.mxu0 %vm8578_vm8, %v11406_v18  ;;  %vm6550_vm8 = vcmp.eq.s32.totalorder %v11522_v26, %v10752_v46 }
 0xf94   : > { %vm8590_vm12 = vmpackc.low %vm6552_vm13, %vm6550_vm8 }
 0xf96   : > { %8581 = vmatpush1.bf16.msk.msra.mxu0 %vm8580_vm4, %v11406_v18  ;;  %vm8592_vm4 = vmpackc.low %vm6551_vm6, %vm6549_vm5 }
 0xf97   : > { %8583 = vmatprep.subr.msk.bf16.mxu0 %vm8582_vm3, %v11406_v18  ;;  %vm11536_vm3 = vcmask 924672   ;;  %vm11550_vm6 = vmmov %vm11540_vm2 }
 0xf9a   : > { %8585 = vmatpush1.bf16.msk.msra.mxu0 %vm8584_vm0, %v11406_v18  ;;  %vm11539_vm0 = vcmask 908288  }
 0xf9b   : > { %8587 = vmatprep.subr.msk.bf16.mxu0 %vm8586_vm14, %v11406_v18  ;;  %vm11542_vm14 = vmmov %vm11541_vm15 }
 0xf9c   : > { %vm11543_vm9 = vmmov %vm11542_vm14 }
 0xf9d   : > { %vm11544_vm11 = vmmov %vm11543_vm9 }
 0xf9e   : > { %8589 = vmatpush1.bf16.msk.msra.mxu0 %vm8588_vm7, %v11406_v18  ;;  %vm11545_vm7 = vcmask 138240   ;;  %vm11547_vm13 = vmmov %vm11543_vm9 }
 0xf9f   : > { %8591 = vmatprep.subr.msk.bf16.mxu0 %vm8590_vm12, %v11406_v18  ;;  %vm11546_vm8 = vmmov %vm11545_vm7 }
 0xfa0   : > { %vm11548_vm12 = vmmov %vm11545_vm7 }
 0xfa1   : > { %vm11549_vm5 = vmmov %vm11545_vm7 }
 0xfa2   : > { %8593 = vmatpush1.bf16.msk.msra.mxu0 %vm8592_vm4, %v11406_v18  ;;  %v11533_v18 = vld [vmem:[#allocation19_spill] sm:$0xff]  ;;  %vm11551_vm4 = vmmov %vm11540_vm2 }
 0xfa3   : > { %v8874_v12 = vpack.i.bf16 %v11534_v7, %v11533_v18 }
 0xfa5   : > { %8875 = vrot.lane.b32.xlu1 %v8874_v12, %s11535_s23 }
 0xfca   : > { %v8861_v44 = vpop.permute.xlu0 %8860 }
 0xfcb   : > { %v8863_v58 = vunpack.i.h.bf16 %v8861_v44  ;;  %v8862_v20 = vunpack.i.l.bf16 %v8861_v44 }
 0xfcd   : > { %v6708_v29 = vsel %vm11539_vm0, %v8862_v20, %v8863_v58  ;;  %v6712_v14 = vmul.f32 %v10614_v37, %v8862_v20  ;;  %vm11555_vm0 = vcmask 7168  }
 0xfcf   : > { %v10973_v42 = vpop.permute.xlu0 %8870 }
 0xfd0   : > { %v8873_v3 = vunpack.i.h.bf16 %v10973_v42  ;;  %v8872_v5 = vunpack.i.l.bf16 %v10973_v42 }
 0xfd2   : > { %v7057_v50 = vsel %vm11537_vm10, %v8872_v5, %v8873_v3  ;;  %vm11553_vm10 = vmmov %vm11540_vm2 }
 0xfe8   : > { %v8856_v19 = vpop.permute.xlu1 %8855 }
 0xfe9   : > { %v8858_v34 = vunpack.i.h.bf16 %v8856_v19  ;;  %v8857_v61 = vunpack.i.l.bf16 %v8856_v19 }
 0xfeb   : > { %v6723_v26 = vsel %vm11538_vm1, %v8857_v61, %v8858_v34  ;;  %v6727_v63 = vmul.f32 %v10614_v37, %v8857_v61  ;;  %vm11554_vm1 = vmmov %vm11543_vm9 }
 0xfec   : > { %v10971_v0 = vpop.permute.xlu1 %8865 }
 0xfed   : > { %v8868_v8 = vunpack.i.h.bf16 %v10971_v0  ;;  %v8867_v45 = vunpack.i.l.bf16 %v10971_v0 }
 0xfef   : > { %v6939_v52 = vsel %vm11536_vm3, %v8867_v45, %v8868_v8  ;;  %vm11552_vm3 = vmmov %vm11540_vm2 }
0x1017   : > { %v10979_v24 = vpop.permute.xlu1 %8875 }
0x1018   : > { %v10990_v22 = vunpack.i.l.bf16 %v10979_v24 }
0x1036   : > { %v5507_v41 = vpop.f32.mrb[36].mxu0 }
0x1037   : > { %v5509_v48 = vpop.f32.mrb[37].mxu0 }
0x103a   : > { %v5513_v40 = vpop.f32.mrb[38].mxu0 }
0x103b   : > { %v5515_v49 = vpop.f32.mrb[39].mxu0 }
0x103e   : > { %v6442_v15 = vpop.f32.mrb[48].mxu1 }
0x103f   : > { %v8630_v57 = vadd.f32 %v6442_v15, %v5507_v41  ;;  %v6444_v6 = vpop.f32.mrb[49].mxu1 }
0x1040   : > { %v8631_v23 = vadd.f32 %v6444_v6, %v5509_v48 }
0x1041   : > { %v6469_v39 = vadd.f32 %v8630_v57, %v6462_v13 }
0x1042   : > { %v6470_v46 = vadd.f32 %v8631_v23, %v6462_v13  ;;  %v6448_v31 = vpop.f32.mrb[50].mxu1 }
0x1043   : > { %v8632_v17 = vadd.f32 %v6448_v31, %v5513_v40  ;;  %v6450_v4 = vpop.f32.mrb[51].mxu1  ;;  %v6473_v1 = vmax.f32 %v6469_v39, 0.0 }
0x1044   : > { %v6474_v11 = vmax.f32 %v6470_v46, 0.0  ;;  %v8633_v25 = vadd.f32 %v6450_v4, %v5515_v49 }
0x1045   : > { %v6471_v21 = vadd.f32 %v8632_v17, %v6467_v53 }
0x1046   : > { %v6472_v59 = vadd.f32 %v8633_v25, %v6467_v53  ;;  %6681 = vmatprep.mubr.f32.mxu0 %v6474_v11 }
0x1047   : > { %6682 = vmatmul.mubr.f32.vlgmr.msra.gmra.mrb[40].mxu0 %v6473_v1  ;;  %v6475_v56 = vmax.f32 %v6471_v21, 0.0 }
0x1048   : > { %v6476_v30 = vmax.f32 %v6472_v59, 0.0 }
0x104a   : > { %6687 = vmatprep.mubr.f32.mxu0 %v6476_v30 }
0x104b   : > { %6688 = vmatmul.mubr.f32.gmra.mrb[42].mxu0 %v6475_v56  ;;  %v8889_v56 = vpack.i.bf16 %v6727_v63, %v6727_v63 }
0x111a   : > { %v10992_v28 = vpop.f32.mrb[40].mxu0 }
0x111b   : > { %6694 = vst [vmem:[#allocation2 + $0x8] sm:$0xff] %v10992_v28  ;;  %v10996_v33 = vpop.f32.mrb[41].mxu0  ;;  %v10999_v27 = vmul.f32 %v6939_v52, %v10992_v28  ;;  %v11002_v47 = vmul.f32 %v7057_v50, %v10992_v28  ;;  %v6713_v2 = vmul.f32 %v6708_v29, %v10992_v28  ;;  %v6728_v36 = vmul.f32 %v6723_v26, %v10992_v28 }
0x111c   : > { %6695 = vst [vmem:[#allocation2 + $0x10] sm:$0xff] %v10996_v33  ;;  %v6945_v35 = vmul.f32 %v8868_v8, %v10996_v33  ;;  %v11008_v62 = vmul.f32 %v8873_v3, %v10996_v33  ;;  %v11014_v9 = vmul.f32 %v10990_v22, %v10992_v28  ;;  %v6729_v18 = vmul.f32 %v8858_v34, %v10996_v33 }
0x111d   : > { %v6714_v7 = vmul.f32 %v8863_v58, %v10996_v33  ;;  %v7256_v40 = vmul.f32 %v10996_v33, %v10673_v38  ;;  %v11027_v49 = vmul.f32 %v10660_v51, %v10992_v28  ;;  %v11036_v23 = vmul.f32 %v10996_v33, %v10594_v60 }
0x111e   : > { %v11018_v12 = vpop.f32.mrb[42].mxu0  ;;  %v8909_v41 = vpack.i.bf16 %v6945_v35, %v10999_v27  ;;  %v8924_v48 = vpack.i.bf16 %v11008_v62, %v11002_v47  ;;  %v8879_v6 = vpack.i.bf16 %v6729_v18, %v6728_v36  ;;  %v7061_v35 = vmul.f32 %v10614_v37, %v8872_v5 }
0x111f   : > { %6696 = vst [vmem:[#allocation2 + $0x28] sm:$0xff] %v11018_v12  ;;  %v7065_v15 = vmul.f32 %v7057_v50, %v11018_v12  ;;  %v11031_v57 = vpop.f32.mrb[43].mxu0  ;;  %v6731_v13 = vmul.f32 %v6723_v26, %v11018_v12  ;;  %v11040_v39 = vmul.f32 %v10990_v22, %v11018_v12  ;;  %v8894_v31 = vpack.i.bf16 %v6714_v7, %v6713_v2 }
0x1120   : > { %v6732_v46 = vmul.f32 %v8858_v34, %v11031_v57  ;;  %v6716_v17 = vmul.f32 %v6708_v29, %v11018_v12  ;;  %8880 = vrot.lane.b32.xlu0 %v8879_v6, %s11454_s27  ;;  %v6717_v4 = vmul.f32 %v8863_v58, %v11031_v57  ;;  %v6947_v53 = vmul.f32 %v6939_v52, %v11018_v12 }
0x1121   : > { %v6948_v11 = vmul.f32 %v8868_v8, %v11031_v57  ;;  %v7066_v25 = vmul.f32 %v8873_v3, %v11031_v57  ;;  %v8939_v21 = vpack.i.bf16 %v10664_v10, %v7256_v40  ;;  %v7259_v59 = vmul.f32 %v11031_v57, %v10673_v38 }
0x1122   : > { %v8884_v1 = vpack.i.bf16 %v6732_v46, %v6731_v13  ;;  %v7258_v30 = vmul.f32 %v10660_v51, %v11018_v12  ;;  %v8899_v19 = vpack.i.bf16 %v6717_v4, %v6716_v17  ;;  %v8964_v3 = vpack.i.bf16 %v11040_v39, %v11014_v9 }
0x1123   : > { %v8914_v44 = vpack.i.bf16 %v6948_v11, %v6947_v53  ;;  %v8929_v34 = vpack.i.bf16 %v7066_v25, %v7065_v15  ;;  %v8944_v61 = vpack.i.bf16 %v10664_v10, %v7259_v59  ;;  %v8969_v58 = vpack.i.bf16 %v10628_v55, %v11036_v23 }
0x1124   : > { %8885 = vrot.lane.b32.xlu1 %v8884_v1, %s11454_s27  ;;  %v8949_v8 = vpack.i.bf16 %v7258_v30, %v11027_v49  ;;  %8890 = vrot.lane.b32.xlu0 %v8889_v56, %s11454_s27  ;;  %v7487_v51 = vmul.f32 %v11031_v57, %v10594_v60  ;;  %v7483_v38 = vmul.f32 %v10590_v16, %v10992_v28 }
0x1125   : > { %v7486_v20 = vmul.f32 %v10590_v16, %v11018_v12  ;;  %v7594_v10 = vmul.f32 %v10996_v33, %v10636_v43  ;;  %v7597_v52 = vmul.f32 %v11031_v57, %v10636_v43  ;;  %v7593_v50 = vmul.f32 %v10620_v32, %v10992_v28 }
0x1126   : > { %v7596_v26 = vmul.f32 %v10620_v32, %v11018_v12  ;;  %v8610_v60 = vpack.c.bf16 %v11031_v57, %v10996_v33  ;;  %v8974_v29 = vpack.i.bf16 %v10628_v55, %v7487_v51  ;;  %v8612_v27 = vpack.c.bf16 %v11018_v12, %v10992_v28 }
0x1127   : > { %v8979_v63 = vpack.i.bf16 %v7486_v20, %v7483_v38  ;;  %v8984_v16 = vpack.i.bf16 %v10624_v54, %v7594_v10  ;;  %v8989_v43 = vpack.i.bf16 %v10624_v54, %v7597_v52  ;;  %v6943_v32 = vmul.f32 %v10614_v37, %v8867_v45 }
0x1128   : > { %8895 = vrot.lane.b32.xlu1 %v8894_v31, %s11466_s16  ;;  %v8994_v47 = vpack.i.bf16 %v7596_v26, %v7593_v50  ;;  %8900 = vrot.lane.b32.xlu0 %v8899_v19, %s11466_s16  ;;  %v8904_v2 = vpack.i.bf16 %v6712_v14, %v6712_v14  ;;  %v8878_v54 = vunpack.i.h.bf16 %v10979_v24  ;;  %v8934_v0 = vpack.i.bf16 %v7061_v35, %v7061_v35 }
0x1129   : > { %v8919_v55 = vpack.i.bf16 %v6943_v32, %v6943_v32 }
0x112a   : > { %v7369_v45 = vsel %vm11540_vm2, %v10990_v22, %v8878_v54  ;;  %v7375_v42 = vmul.f32 %v10614_v37, %v8878_v54  ;;  %v7703_v22 = vld [vmem:[#allocation3] sm:$0x1]  ;;  %vm11556_vm2 = vmmov %vm11555_vm0 }
0x112b   : > { %v7374_v5 = vmul.f32 %v7369_v45, %v10996_v33  ;;  %v7377_v62 = vmul.f32 %v7369_v45, %v11031_v57 }
0x112c   : > { %8905 = vrot.lane.b32.xlu1 %v8904_v2, %s11466_s16  ;;  %8910 = vrot.lane.b32.xlu0 %v8909_v41, %s11535_s23 }
0x112d   : > { %v8954_v24 = vpack.i.bf16 %v7375_v42, %v7374_v5  ;;  %v8959_v36 = vpack.i.bf16 %v7375_v42, %v7377_v62  ;;  %v11138_v62 = vld [vmem:[#allocation2] sm:$0xff] }
0x1130   : > { %8915 = vrot.lane.b32.xlu1 %v8914_v44, %s11535_s23  ;;  %8920 = vrot.lane.b32.xlu0 %v8919_v55, %s11535_s23 }
0x1134   : > { %8925 = vrot.lane.b32.xlu1 %v8924_v48, %s9022_s14  ;;  %8930 = vrot.lane.b32.xlu0 %v8929_v34, %s9022_s14 }
0x1138   : > { %8935 = vrot.lane.b32.xlu1 %v8934_v0, %s9022_s14  ;;  %8940 = vrot.lane.b32.xlu0 %v8939_v21, %s9025_s28  ;;  %v8059_v21 = vld [vmem:[%s11226_s13 + $0x1] sm:$0x1] }
0x113c   : > { %8945 = vrot.lane.b32.xlu1 %v8944_v61, %s9025_s28  ;;  %8950 = vrot.lane.b32.xlu0 %v8949_v8, %s9025_s28 }
0x1140   : > { %8955 = vrot.lane.b32.xlu1 %v8954_v24, %s11532_s26  ;;  %8960 = vrot.lane.b32.xlu0 %v8959_v36, %s11532_s26 }
0x1144   : > { %8965 = vrot.lane.b32.xlu1 %v8964_v3, %s11532_s26  ;;  %8970 = vrot.lane.b32.xlu0 %v8969_v58, %s11471_s22 }
0x1148   : > { %8975 = vrot.lane.b32.xlu1 %v8974_v29, %s11471_s22  ;;  %8980 = vrot.lane.b32.xlu0 %v8979_v63, %s11471_s22  ;;  %v6718_v63 = vld [vmem:[%s11226_s13] sm:$0x1]  ;;  %s11584_s22 = sshll.u32 %s11588_s21, 1 }
0x1149   : > { %s491_s30 = scalar_lea.vmem %s11228_s15, %s11584_s22 }
0x114c   : > { %8985 = vrot.lane.b32.xlu1 %v8984_v16, %s11474_s29  ;;  %8990 = vrot.lane.b32.xlu0 %v8989_v43, %s11474_s29 }
0x1150   : > { %8995 = vrot.lane.b32.xlu1 %v8994_v47, %s11474_s29  ;;  %7706 = vperm.xlu0 %8722, %v7703_v22  }
0x1192   : > { %v8881_v14 = vpop.permute.xlu0 %8880 }
0x1193   : > { %v8883_v9 = vunpack.i.h.bf16 %v8881_v14  ;;  %v8882_v18 = vunpack.i.l.bf16 %v8881_v14 }
0x1195   : > { %v6754_v6 = vsel %vm11541_vm15, %v8882_v18, %v8883_v9  ;;  %vm11557_vm15 = vmmov %vm11555_vm0 }
0x1196   : > { %v8886_v7 = vpop.permute.xlu1 %8885  ;;  %v8891_v41 = vpop.permute.xlu0 %8890 }
0x1197   : > { %v8888_v48 = vunpack.i.h.bf16 %v8886_v7  ;;  %v8887_v40 = vunpack.i.l.bf16 %v8886_v7  ;;  %v8893_v49 = vunpack.i.h.bf16 %v8891_v41  ;;  %v8892_v15 = vunpack.i.l.bf16 %v8891_v41 }
0x1199   : > { %v6756_v13 = vsel %vm11542_vm14, %v8887_v40, %v8888_v48  ;;  %v6753_v23 = vsel %vm11543_vm9, %v8892_v15, %v8882_v18  ;;  %v6755_v39 = vsel %vm11544_vm11, %v8893_v49, %v8887_v40  ;;  %vm11558_vm14 = vmmov %vm11555_vm0  ;;  %v8062_v48 = vld [vmem:[%s11226_s13 + $0x2] sm:$0x1]  ;;  %vm11560_vm11 = vcmask 1039360  }
0x119a   : > { %v8896_v46 = vpop.permute.xlu1 %8895  ;;  %v8594_v31 = vpack.c.bf16 %v6756_v13, %v6754_v6  ;;  %v8596_v17 = vpack.c.bf16 %v6755_v39, %v6753_v23  ;;  %v8901_v11 = vpop.permute.xlu0 %8900  ;;  %vm11559_vm9 = vmmov %vm11554_vm1 }
0x119b   : > { %v8898_v4 = vunpack.i.h.bf16 %v8896_v46  ;;  %v8897_v53 = vunpack.i.l.bf16 %v8896_v46  ;;  %v8903_v25 = vunpack.i.h.bf16 %v8901_v11  ;;  %v8902_v1 = vunpack.i.l.bf16 %v8901_v11 }
0x119c   : > { %8595 = vmatprep.subr.bf16.mxu1 %v8594_v31 }
0x119d   : > { %8597 = vmatpush1.bf16.msra.mxu1 %v8596_v17  ;;  %v6854_v59 = vsel %vm11545_vm7, %v8897_v53, %v8898_v4  ;;  %v6856_v56 = vsel %vm11546_vm8, %v8902_v1, %v8903_v25  ;;  %v8064_v17 = vld [vmem:[%s11226_s13 + $0x3] sm:$0x1]  ;;  %vm11561_vm7 = vmmov %vm11560_vm11 }
0x119e   : > { %v8906_v30 = vpop.permute.xlu1 %8905  ;;  %v8911_v34 = vpop.permute.xlu0 %8910  ;;  %v8598_v61 = vpack.c.bf16 %v6856_v56, %v6854_v59  ;;  %vm11562_vm8 = vmmov %vm11554_vm1 }
0x119f   : > { %v8908_v19 = vunpack.i.h.bf16 %v8906_v30  ;;  %v8907_v44 = vunpack.i.l.bf16 %v8906_v30  ;;  %v8913_v58 = vunpack.i.h.bf16 %v8911_v34  ;;  %v8912_v51 = vunpack.i.l.bf16 %v8911_v34 }
0x11a0   : > { %8060 = vmatmul.mubr.msk.f32.vlgmr.msra.gmra.mrb[52].mxu1 %vm11547_vm13, %v8059_v21  ;;  %8599 = vmatprep.subr.bf16.mxu1 %v8598_v61  ;;  %vm11563_vm13 = vmmov %vm11561_vm7 }
0x11a1   : > { %v6853_v8 = vsel %vm11548_vm12, %v8907_v44, %v8897_v53  ;;  %v6855_v3 = vsel %vm11549_vm5, %v8908_v19, %v8902_v1  ;;  %6928 = vmatprep.mubr.f32.mxu1 %v10614_v37  ;;  %v6970_v16 = vsel %vm11550_vm6, %v8912_v51, %v8913_v58  ;;  %vm11564_vm12 = vmmov %vm11561_vm7  ;;  %v8066_v44 = vld [vmem:[%s11226_s13 + $0x4] sm:$0x1]  ;;  %vm11565_vm5 = vcmask 924672  }
0x11a2   : > { %v8600_v38 = vpack.c.bf16 %v6855_v3, %v6853_v8  ;;  %v8916_v20 = vpop.permute.xlu1 %8915  ;;  %v8921_v50 = vpop.permute.xlu0 %8920  ;;  %vm11566_vm6 = vmmov %vm11565_vm5 }
0x11a3   : > { %v8918_v10 = vunpack.i.h.bf16 %v8916_v20  ;;  %v8917_v52 = vunpack.i.l.bf16 %v8916_v20  ;;  %v8923_v26 = vunpack.i.h.bf16 %v8921_v50  ;;  %v8922_v29 = vunpack.i.l.bf16 %v8921_v50 }
0x11a4   : > { %8601 = vmatpush1.bf16.msra.mxu1 %v8600_v38 }
0x11a5   : > { %v6972_v43 = vsel %vm11551_vm4, %v8917_v52, %v8918_v10  ;;  %v6971_v47 = vsel %vm11552_vm3, %v8923_v26, %v8917_v52  ;;  %v6969_v37 = vsel %vm11553_vm10, %v8922_v29, %v8912_v51  ;;  %vm11567_vm4 = vmmov %vm11554_vm1  ;;  %v8068_v26 = vld [vmem:[%s11226_s13 + $0x5] sm:$0x1] }
0x11a6   : > { %v8926_v32 = vpop.permute.xlu1 %8925  ;;  %v8602_v2 = vpack.c.bf16 %v6972_v43, %v6970_v16  ;;  %v8604_v55 = vpack.c.bf16 %v6971_v47, %v6969_v37  ;;  %v8931_v0 = vpop.permute.xlu0 %8930  ;;  %vm11568_vm3 = vmmov %vm11565_vm5 }
0x11a7   : > { %v8928_v35 = vunpack.i.h.bf16 %v8926_v32  ;;  %v8927_v54 = vunpack.i.l.bf16 %v8926_v32  ;;  %v8933_v45 = vunpack.i.h.bf16 %v8931_v0  ;;  %v8932_v42 = vunpack.i.l.bf16 %v8931_v0  ;;  %vm11569_vm10 = vmmov %vm11568_vm3 }
0x11a8   : > { %8061 = vmatmul.mubr.msk.f32.vlgmr.msra.gmra.mrb[52].mxu1 %vm11554_vm1, %v6718_v63  ;;  %8603 = vmatprep.subr.bf16.mxu1 %v8602_v2  ;;  %vm11570_vm1 = vcmask 916480  }
0x11a9   : > { %8605 = vmatpush1.bf16.msra.mxu1 %v8604_v55  ;;  %v7088_v5 = vsel %vm11555_vm0, %v8927_v54, %v8928_v35  ;;  %7044 = vmatprep.mubr.f32.mxu1 %v11138_v62  ;;  %v7090_v36 = vsel %vm11556_vm2, %v8932_v42, %v8933_v45  ;;  %vm11571_vm0 = vmmov %vm11570_vm1 }
0x11aa   : > { %v8936_v24 = vpop.permute.xlu1 %8935  ;;  %v8941_v9 = vpop.permute.xlu0 %8940  ;;  %v8606_v18 = vpack.c.bf16 %v7090_v36, %v7088_v5  ;;  %vm11572_vm2 = vmmov %vm11567_vm4 }
0x11ab   : > { %v8938_v22 = vunpack.i.h.bf16 %v8936_v24  ;;  %v8937_v14 = vunpack.i.l.bf16 %v8936_v24  ;;  %v8943_v39 = vunpack.i.h.bf16 %v8941_v9  ;;  %v8942_v46 = vunpack.i.l.bf16 %v8941_v9  ;;  %v8070_v24 = vld [vmem:[%s11226_s13 + $0x6] sm:$0x1] }
0x11ac   : > { %8607 = vmatprep.subr.bf16.mxu1 %v8606_v18 }
0x11ad   : > { %v7087_v7 = vsel %vm11557_vm15, %v8937_v14, %v8927_v54  ;;  %v7089_v41 = vsel %vm11558_vm14, %v8938_v22, %v8932_v42  ;;  %v7282_v53 = vsel %vm11561_vm7, %v8942_v46, %v8943_v39  ;;  %vm11573_vm15 = vmmov %vm11571_vm0 }
0x11ae   : > { %v8608_v40 = vpack.c.bf16 %v7089_v41, %v7087_v7  ;;  %v8946_v49 = vpop.permute.xlu1 %8945  ;;  %v8951_v15 = vpop.permute.xlu0 %8950  ;;  %vm11574_vm14 = vmmov %vm11571_vm0 }
0x11af   : > { %v8948_v6 = vunpack.i.h.bf16 %v8946_v49  ;;  %v8947_v13 = vunpack.i.l.bf16 %v8946_v49  ;;  %v8953_v11 = vunpack.i.h.bf16 %v8951_v15  ;;  %v8952_v25 = vunpack.i.l.bf16 %v8951_v15  ;;  %vm11577_vm7 = vmmov %vm11572_vm2  ;;  %v8074_v15 = vld [vmem:[%s11226_s13 + $0x8] sm:$0x1] }
0x11b0   : > { %8063 = vmatmul.mubr.msk.f32.vlgmr.msra.gmra.mrb[52].mxu1 %vm11559_vm9, %v8062_v48  ;;  %vm11575_vm9 = vcmask 908288  }
0x11b1   : > { %8609 = vmatpush1.bf16.msra.mxu1 %v8608_v40  ;;  %7162 = vmatprep.mubr.f32.mxu1 %v11138_v62  ;;  %v7284_v4 = vsel %vm11560_vm11, %v8947_v13, %v8948_v6  ;;  %v7283_v56 = vsel %vm11563_vm13, %v8953_v11, %v8947_v13  ;;  %v7281_v19 = vsel %vm11564_vm12, %v8952_v25, %v8942_v46  ;;  %vm11576_vm11 = vmmov %vm11575_vm9  ;;  %v8072_v40 = vld [vmem:[%s11226_s13 + $0x7] sm:$0x1]  ;;  %v11582_v13 = vld [vmem:[#allocation25_spill] sm:$0xff] }
0x11b2   : > { %8611 = vmatprep.subr.bf16.mxu1 %v8610_v60  ;;  %v8956_v23 = vpop.permute.xlu1 %8955  ;;  %v8961_v31 = vpop.permute.xlu0 %8960  ;;  %v8614_v21 = vpack.c.bf16 %v7284_v4, %v7282_v53  ;;  %v8616_v3 = vpack.c.bf16 %v7283_v56, %v7281_v19  ;;  %vm11580_vm12 = vmmov %vm11572_vm2 }
0x11b3   : > { %v8958_v33 = vunpack.i.h.bf16 %v8956_v23  ;;  %v8957_v57 = vunpack.i.l.bf16 %v8956_v23  ;;  %v8963_v60 = vunpack.i.h.bf16 %v8961_v31  ;;  %v8962_v59 = vunpack.i.l.bf16 %v8961_v31 }
0x11b5   : > { %v7400_v34 = vsel %vm11565_vm5, %v8957_v57, %v8958_v33  ;;  %v7402_v61 = vsel %vm11566_vm6, %v8962_v59, %v8963_v60  ;;  %vm11581_vm5 = vmmov %vm11572_vm2 }
0x11b6   : > { %v8966_v1 = vpop.permute.xlu1 %8965  ;;  %v8971_v30 = vpop.permute.xlu0 %8970  ;;  %v8618_v58 = vpack.c.bf16 %v7402_v61, %v7400_v34 }
0x11b7   : > { %v8968_v28 = vunpack.i.h.bf16 %v8966_v1  ;;  %v8967_v12 = vunpack.i.l.bf16 %v8966_v1  ;;  %v8973_v20 = vunpack.i.h.bf16 %v8971_v30  ;;  %v8972_v10 = vunpack.i.l.bf16 %v8971_v30 }
0x11b8   : > { %8065 = vmatmul.mubr.msk.f32.vlgmr.msra.gmra.mrb[52].mxu1 %vm11562_vm8, %v8064_v17  ;;  %vm11578_vm8 = vmmov %vm11575_vm9 }
0x11b9   : > { %8613 = vmatpush1.bf16.msra.mxu1 %v8612_v27  ;;  %7240 = vmatprep.mubr.f32.mxu1 %v11138_v62  ;;  %v7399_v52 = vsel %vm11568_vm3, %v8967_v12, %v8957_v57  ;;  %v7401_v50 = vsel %vm11569_vm10, %v8968_v28, %v8962_v59  ;;  %v7510_v47 = vsel %vm11571_vm0, %v8972_v10, %v8973_v20  ;;  %vm11579_vm13 = vmmov %vm11578_vm8  ;;  %v11585_v12 = vld [vmem:[#allocation14_spill] sm:$0xff] }
0x11ba   : > { %8615 = vmatprep.subr.bf16.mxu1 %v8614_v21  ;;  %v8976_v8 = vpop.permute.xlu1 %8975  ;;  %v8981_v27 = vpop.permute.xlu0 %8980  ;;  %v8620_v43 = vpack.c.bf16 %v7401_v50, %v7399_v52  ;;  %vm11586_vm3 = vnez %v11585_v12 }
0x11bb   : > { %v8978_v51 = vunpack.i.h.bf16 %v8976_v8  ;;  %v8977_v38 = vunpack.i.l.bf16 %v8976_v8  ;;  %v8983_v37 = vunpack.i.h.bf16 %v8981_v27  ;;  %v8982_v32 = vunpack.i.l.bf16 %v8981_v27  ;;  %v11583_v8 = vld [vmem:[#allocation7_spill] sm:$0xff] }
0x11bd   : > { %v7512_v29 = vsel %vm11570_vm1, %v8977_v38, %v8978_v51  ;;  %v7511_v45 = vsel %vm11573_vm15, %v8983_v37, %v8977_v38  ;;  %v7509_v42 = vsel %vm11574_vm14, %v8982_v32, %v8972_v10 }
0x11be   : > { %v8986_v63 = vpop.permute.xlu1 %8985  ;;  %v8991_v16 = vpop.permute.xlu0 %8990  ;;  %v8622_v2 = vpack.c.bf16 %v7512_v29, %v7510_v47  ;;  %v8624_v14 = vpack.c.bf16 %v7511_v45, %v7509_v42 }
0x11bf   : > { %v8988_v55 = vunpack.i.h.bf16 %v8986_v63  ;;  %v8987_v35 = vunpack.i.l.bf16 %v8986_v63  ;;  %v8993_v54 = vunpack.i.h.bf16 %v8991_v16  ;;  %v8992_v0 = vunpack.i.l.bf16 %v8991_v16 }
0x11c0   : > { %8067 = vmatmul.mubr.msk.f32.vlgmr.msra.gmra.mrb[52].mxu1 %vm11567_vm4, %v8066_v44 }
0x11c1   : > { %8617 = vmatpush1.bf16.msra.mxu1 %v8616_v3  ;;  %7356 = vmatprep.mubr.f32.mxu1 %v11138_v62  ;;  %v7620_v36 = vsel %vm11575_vm9, %v8987_v35, %v8988_v55  ;;  %v7622_v22 = vsel %vm11576_vm11, %v8992_v0, %v8993_v54 }
0x11c2   : > { %8619 = vmatprep.subr.bf16.mxu1 %v8618_v58  ;;  %v8996_v5 = vpop.permute.xlu1 %8995  ;;  %v8626_v7 = vpack.c.bf16 %v7622_v22, %v7620_v36 }
0x11c3   : > { %v8998_v9 = vunpack.i.h.bf16 %v8996_v5  ;;  %v8997_v18 = vunpack.i.l.bf16 %v8996_v5 }
0x11c5   : > { %v7619_v41 = vsel %vm11578_vm8, %v8997_v18, %v8987_v35  ;;  %v7621_v48 = vsel %vm11579_vm13, %v8998_v9, %v8992_v0 }
0x11c6   : > { %v8628_v49 = vpack.c.bf16 %v7621_v48, %v7619_v41 }
0x11c8   : > { %8069 = vmatmul.mubr.msk.f32.vlgmr.msra.gmra.mrb[52].mxu1 %vm11572_vm2, %v8068_v26 }
0x11c9   : > { %8621 = vmatpush1.bf16.msra.mxu1 %v8620_v43  ;;  %7474 = vmatprep.mubr.f32.mxu1 %v11138_v62 }
0x11ca   : > { %8623 = vmatprep.subr.bf16.mxu1 %v8622_v2 }
0x11cf   : > { %v7707_v6 = vpop.permute.xlu0 %7706 }
0x11d0   : > { %8071 = vmatmul.mubr.msk.f32.vlgmr.msra.gmra.mrb[52].mxu1 %vm11577_vm7, %v8070_v24  ;;  %v7712_v23 = vrot.slane %v7707_v6, %v11582_v13 }
0x11d1   : > { %8625 = vmatpush1.bf16.msra.mxu1 %v8624_v14  ;;  %7584 = vmatprep.mubr.f32.mxu1 %v11138_v62 }
0x11d2   : > { %8627 = vmatprep.subr.bf16.mxu1 %v8626_v7 }
0x11d8   : > { %8073 = vmatmul.mubr.msk.f32.vlgmr.msra.gmra.mrb[52].mxu1 %vm11580_vm12, %v8072_v40 }
0x11d9   : > { %8629 = vmatpush1.bf16.msra.mxu1 %v8628_v49  ;;  %7694 = vmatprep.mubr.f32.mxu1 %v11138_v62 }
0x11e0   : > { %8075 = vmatmul.mubr.msk.f32.vlgmr.msra.gmra.mrb[52].mxu1 %vm11581_vm5, %v8074_v15 }
0x12b3   : > { %v7696_v39 = vpop.f32.mrb[52].mxu1 }
0x12b4   : > { %v7713_v46 = vadd.f32 %v7712_v23, %v7696_v39  ;;  %v7698_v31 = vpop.f32.mrb[53].mxu1 }
0x12b5   : > { %v7714_v17 = vadd.f32 %v7712_v23, %v7698_v31 }
0x12b6   : > { %v7715_v4 = vand.u32 2147483647, %v7713_v46  ;;  %vm7723_vm6 = vcmp.ge.f32.partialorder %v7713_v46, 0.0 }
0x12b7   : > { %v7716_v53 = vand.u32 2147483647, %v7714_v17  ;;  %vm7724_vm4 = vcmp.ge.f32.partialorder %v7714_v17, 0.0 }
0x12b8   : > { %v7717_v11 = vsub.f32 0.0, %v7715_v4 }
0x12b9   : > { %v7718_v25 = vsub.f32 0.0, %v7716_v53 }
0x12ba   : > { %v7719_v1 = vmul.f32 1.442695, %v7717_v11 }
0x12bb   : > { %v7721_v21 = vmul.f32 1.442695, %v7718_v25 }
0x12bc   : > { %8999 = vpow2.f32 %v7719_v1 }
0x12bd   : > { %9001 = vpow2.f32 %v7721_v21 }
0x12c6   : > { %v9000_v62 = vpop.eup %8999 }
0x12c7   : > { %v9002_v33 = vpop.eup %9001  ;;  %v7725_v57 = vadd.f32 1.0, %v9000_v62 }
0x12c8   : > { %v7726_v60 = vadd.f32 1.0, %v9002_v33 }
0x12c9   : > { %9003 = vrcp.f32 %v7725_v57 }
0x12ca   : > { %9005 = vrcp.f32 %v7726_v60 }
0x12d3   : > { %v9004_v59 = vpop.eup %9003 }
0x12d4   : > { %v9006_v30 = vpop.eup %9005  ;;  %v7731_v56 = vmul.f32 %v9004_v59, %v9000_v62 }
0x12d5   : > { %v7732_v19 = vmul.f32 %v9006_v30, %v9002_v33 }
0x12d6   : > { %v7733_v44 = vsel %vm7723_vm6, %v9004_v59, %v7731_v56 }
0x12d7   : > { %v7734_v34 = vsel %vm7724_vm4, %v9006_v30, %v7732_v19 }
0x12d8   : > { %v7737_v61 = vcombine.low %v7733_v44, %v7734_v34 }
0x12da   : > { %v7744_v3 = vrot.slane %v7737_v61, %v11583_v8 }
0x12dc   : > { %v7751_v28 = vrot.slane %v7744_v3, %v11583_v8 }
0x12de   : > { %7753 = vst.msk [vmem:[%s491_s30] sm:$0x3] %vm11586_vm3, %v7751_v28 }
0x12df PF: > { %s27_s20 = sadd.s32 1, %s9017_s20  }
0x12e0   : > { %p24_p4 = scmp.ge.s32.totalorder %s27_s20, 4  }
0x12e2   :  { %26 = sbr.rel (!%p24_p4) target bundleno = 3 (0x3), region = 167 }

</bundles_post_ra>
